<compile_context>
chip_gen: v7x
topology: tpu7x:2x2x1
jax: 0.10.0
libtpu: 0.0.40
codegen_flags: <defaults>
</compile_context>

<pallas_src>
import functools

import jax
import jax.numpy as jnp
from jax import lax
from jax.experimental import pallas as pl
from jax.experimental.pallas import tpu as pltpu


# ---------------------------------------------------------------------------
# Generation-aware VMEM limit (v5e/v6e: ~96 MiB usable, v7x: ~48 MiB).
# ---------------------------------------------------------------------------
def _default_vmem_limit():
    try:
        info = pltpu.get_tpu_info()
        cap = getattr(info, "vmem_capacity_bytes", None)
        if cap:
            return int(cap) * 3 // 4
    except Exception:
        pass
    return None


_VMEM_LIMIT = _default_vmem_limit()


# ---------------------------------------------------------------------------
# Fused kernel factory: L-layer LSTM recurrence + final FC, per (Bc, Tc) chunk.
# ---------------------------------------------------------------------------
def _make_char_rnn_kernel(n_layers):
    def kernel(*args):
        n_in = 1 + 3 * n_layers + 4
        x_ref = args[0]                                     # (Tc, Bc, Vp) time-major
        layer_refs = [args[1 + 3 * l: 4 + 3 * l] for l in range(n_layers)]
        fcw_ref, fcb_ref, h0_ref, c0_ref = args[1 + 3 * n_layers: n_in]
        out_ref, hT_ref, cT_ref = args[n_in: n_in + 3]
        h_scr, c_scr, act_scr, proj_scr = args[n_in + 3:]

        t_idx = pl.program_id(1)

        # (Re)load the initial hidden/cell state at the start of each batch chunk.
        # Correct because the time axis is the innermost grid axis.
        @pl.when(t_idx == 0)
        def _():
            h_scr[...] = h0_ref[...].astype(jnp.float32)
            c_scr[...] = c0_ref[...].astype(jnp.float32)

        Tc, Bc, _ = x_ref.shape
        H = h_scr.shape[-1]
        unroll = True if Tc <= 32 else 4

        for l, (wih_ref, whh_ref, b_ref) in enumerate(layer_refs):
            w_ih = wih_ref[...]                             # (in, 4H)  (bf16 or f32)
            w_hh = whh_ref[...]                             # (H, 4H)
            mxu_dt = w_hh.dtype                             # MXU operand dtype = weight dtype

            if l == 0:
                layer_in = x_ref[...].astype(mxu_dt)        # (Tc, Bc, Vp)
            else:
                layer_in = act_scr[...].astype(mxu_dt)      # (Tc, Bc, H)
            in_dim = layer_in.shape[-1]

            # Hoisted input projection for the whole chunk: one MXU matmul, bias folded
            # in (f32 accumulate), written time-major so per-step reads are full tiles.
            proj_scr[...] = (
                jnp.dot(layer_in.reshape(Tc * Bc, in_dim), w_ih,
                        preferred_element_type=jnp.float32)
                + b_ref[...]
            ).reshape(Tc, Bc, 4 * H)

            def step(i, carry):
                h, c = carry
                gates = proj_scr[i] + jnp.dot(
                    h.astype(mxu_dt), w_hh, preferred_element_type=jnp.float32)
                # PyTorch gate order [i, f, g, o]; H is lane-aligned (multiple of 128).
                i_g = jax.nn.sigmoid(gates[:, 0 * H:1 * H])
                f_g = jax.nn.sigmoid(gates[:, 1 * H:2 * H])
                g_g = jnp.tanh(gates[:, 2 * H:3 * H])
                o_g = jax.nn.sigmoid(gates[:, 3 * H:4 * H])
                c = f_g * c + i_g * g_g
                h = o_g * jnp.tanh(c)
                act_scr[i] = h                              # full (Bc, H) unmasked store
                return h, c

            h, c = lax.fori_loop(0, Tc, step, (h_scr[l], c_scr[l]), unroll=unroll)
            h_scr[l] = h
            c_scr[l] = c
            # Inter-layer LSTM dropout = identity in eval mode.

        # Fused final Linear over the whole chunk as one lane-dense slab.
        fcw = fcw_ref[...]
        acts = act_scr[...].astype(fcw.dtype)               # (Tc, Bc, H)
        logits = (
            jnp.dot(acts.reshape(Tc * Bc, H), fcw, preferred_element_type=jnp.float32)
            + fcb_ref[...]
        )
        # nn.Dropout(r_output) = identity in eval mode.
        out_ref[...] = logits.reshape(Tc, Bc, -1).astype(out_ref.dtype)

        @pl.when(t_idx == pl.num_programs(1) - 1)
        def _():
            hT_ref[...] = h_scr[...].astype(hT_ref.dtype)
            cT_ref[...] = c_scr[...].astype(cT_ref.dtype)

    return kernel


def _round_up(x, m):
    return (x + m - 1) // m * m


def _pick_chunk(n, target):
    """Largest divisor of n that is a multiple of 8 and <= target, else n (full dim)."""
    for c in range(min(target, n), 0, -1):
        if n % c == 0 and c % 8 == 0:
            return c
    return n


# ---------------------------------------------------------------------------
# CharRNN forward (matches PyTorch module semantics, eval mode)
# ---------------------------------------------------------------------------
@functools.partial(jax.jit, static_argnames=("t_chunk", "b_chunk"))
def char_rnn_forward(x, h0, c0, params, *, t_chunk=64, b_chunk=None):
    """x: (B, T, V) batch-first; h0, c0: (L, B, H).  Returns (out (B*T, V), (hT, cT))."""
    B, T, V = x.shape
    L, _, H = h0.shape
    assert H % 128 == 0, "hidden size must be lane-aligned (multiple of 128)"

    # Pad vocab to a lane-dense multiple of 128 (zero rows/cols -> identical math).
    Vp = _round_up(V, 128)
    lstm = list(params["lstm"])
    fc_w, fc_b = params["fc_w"], params["fc_b"]
    if Vp != V:
        x = jnp.pad(x, ((0, 0), (0, 0), (0, Vp - V)))
        w_ih0, w_hh0, b0 = lstm[0]
        lstm[0] = (jnp.pad(w_ih0, ((0, Vp - V), (0, 0))), w_hh0, b0)
        fc_w = jnp.pad(fc_w, ((0, 0), (0, Vp - V)))
        fc_b = jnp.pad(fc_b, ((0, 0), (0, Vp - V)))

    Tc = _pick_chunk(T, t_chunk)
    # Bigger Bc fills the MXU rows of the serialized h@W_hh; on v7x keep B//Bc >= 2.
    Bc = _pick_chunk(B, 256) if b_chunk is None else b_chunk
    assert B % Bc == 0 and T % Tc == 0

    # XLA-side layout plumbing: time-major so every per-timestep VMEM access in the
    # kernel is a full unmasked tile.
    x_tm = jnp.swapaxes(x, 0, 1)                            # (T, B, Vp)

    const2 = lambda b, t: (0, 0)
    in_specs = [pl.BlockSpec((Tc, Bc, Vp), lambda b, t: (t, b, 0))]
    flat_inputs = [x_tm]
    for l in range(L):
        w_ih, w_hh, bias = lstm[l]
        in_dim = Vp if l == 0 else H
        in_specs += [
            pl.BlockSpec((in_dim, 4 * H), const2),
            pl.BlockSpec((H, 4 * H), const2),
            pl.BlockSpec((1, 4 * H), const2),
        ]
        flat_inputs += [w_ih, w_hh, bias]
    in_specs += [
        pl.BlockSpec((H, Vp), const2),
        pl.BlockSpec((1, Vp), const2),
        pl.BlockSpec((L, Bc, H), lambda b, t: (0, b, 0)),
        pl.BlockSpec((L, Bc, H), lambda b, t: (0, b, 0)),
    ]
    flat_inputs += [fc_w, fc_b, h0, c0]

    out_specs = [
        pl.BlockSpec((Tc, Bc, Vp), lambda b, t: (t, b, 0)),
        pl.BlockSpec((L, Bc, H), lambda b, t: (0, b, 0)),
        pl.BlockSpec((L, Bc, H), lambda b, t: (0, b, 0)),
    ]
    out_shape = (
        jax.ShapeDtypeStruct((T, B, Vp), jnp.float32),
        jax.ShapeDtypeStruct((L, B, H), h0.dtype),
        jax.ShapeDtypeStruct((L, B, H), h0.dtype),
    )

    compiler_kwargs = dict(dimension_semantics=("parallel", "arbitrary"))
    if _VMEM_LIMIT is not None:
        compiler_kwargs["vmem_limit_bytes"] = _VMEM_LIMIT

    out_tbv, hT, cT = pl.pallas_call(
        _make_char_rnn_kernel(L),
        out_shape=out_shape,
        grid_spec=pltpu.PrefetchScalarGridSpec(
            num_scalar_prefetch=0,
            grid=(B // Bc, T // Tc),
            in_specs=in_specs,
            out_specs=out_specs,
            scratch_shapes=[
                pltpu.VMEM((L, Bc, H), jnp.float32),        # h state (all layers)
                pltpu.VMEM((L, Bc, H), jnp.float32),        # c state (all layers)
                pltpu.VMEM((Tc, Bc, H), jnp.float32),       # time-major chunk activations
                pltpu.VMEM((Tc, Bc, 4 * H), jnp.float32),   # time-major hoisted projections
            ],
        ),
        compiler_params=pltpu.CompilerParams(**compiler_kwargs),
    )(*flat_inputs)

    # (T, B, Vp) -> (B*T, V): matches `out.contiguous().view(-1, n_hidden)` row order.
    out = jnp.swapaxes(out_tbv, 0, 1).reshape(B * T, Vp)[:, :V]
    return out, (hT, cT)


# ---------------------------------------------------------------------------
# Parameter init & bf16 weight cast.
# NOTE: weights stored transposed vs PyTorch nn.LSTM/nn.Linear ((in,4H)/(H,4H)/(H,V)
# instead of (4H,in)/(4H,H)/(V,H)); loading a real checkpoint requires transposing.
# Gate order [i, f, g, o] and b_ih + b_hh folding match PyTorch.
# ---------------------------------------------------------------------------
def init_params(key, vocab, n_hidden, n_layers, dtype=jnp.float32):
    params = {"lstm": []}
    bound = 1.0 / float(n_hidden) ** 0.5
    for l in range(n_layers):
        in_dim = vocab if l == 0 else n_hidden
        key, k1, k2, k3, k4 = jax.random.split(key, 5)
        w_ih = jax.random.uniform(k1, (in_dim, 4 * n_hidden), dtype, -bound, bound)
        w_hh = jax.random.uniform(k2, (n_hidden, 4 * n_hidden), dtype, -bound, bound)
        b_ih = jax.random.uniform(k3, (4 * n_hidden,), dtype, -bound, bound)
        b_hh = jax.random.uniform(k4, (4 * n_hidden,), dtype, -bound, bound)
        params["lstm"].append((w_ih, w_hh, (b_ih + b_hh)[None, :]))
    key, k5, k6 = jax.random.split(key, 3)
    params["fc_w"] = jax.random.uniform(k5, (n_hidden, vocab), dtype, -bound, bound)
    params["fc_b"] = jax.random.uniform(k6, (vocab,), dtype, -bound, bound)[None, :]
    return params


def cast_matmul_weights(params, dtype=jnp.bfloat16):
    """Store the MXU operands (LSTM/FC weight matrices) in bf16; biases stay f32."""
    return {
        "lstm": [(w_ih.astype(dtype), w_hh.astype(dtype), b)
                 for (w_ih, w_hh, b) in params["lstm"]],
        "fc_w": params["fc_w"].astype(dtype),
        "fc_b": params["fc_b"],
    }


# ---------------------------------------------------------------------------
# Pure-JAX reference (for correctness check); compute_dtype mirrors the kernel's
# MXU operand dtype.
# ---------------------------------------------------------------------------
def reference_forward(x, h0, c0, params, compute_dtype=jnp.float32):
    B, T, V = x.shape
    L = h0.shape[0]

    def mm(a, b):
        return jnp.dot(a.astype(compute_dtype), b.astype(compute_dtype),
                       preferred_element_type=jnp.float32,
                       precision=jax.lax.Precision.HIGHEST)

    layer_in = x
    hTs, cTs = [], []
    for l in range(L):
        w_ih, w_hh, bias = params["lstm"][l]
        H = w_hh.shape[0]
        h = h0[l].astype(jnp.float32)
        c = c0[l].astype(jnp.float32)
        outs = []
        for t in range(T):
            g = mm(layer_in[:, t, :], w_ih) + mm(h, w_hh) + bias
            i = jax.nn.sigmoid(g[:, 0 * H:1 * H])
            f = jax.nn.sigmoid(g[:, 1 * H:2 * H])
            gg = jnp.tanh(g[:, 2 * H:3 * H])
            o = jax.nn.sigmoid(g[:, 3 * H:4 * H])
            c = f * c + i * gg
            h = o * jnp.tanh(c)
            outs.append(h)
        layer_in = jnp.stack(outs, axis=1)
        hTs.append(h)
        cTs.append(c)
    flat = layer_in.reshape(-1, layer_in.shape[-1])
    out = mm(flat, params["fc_w"]) + params["fc_b"]
    return out, (jnp.stack(hTs, 0), jnp.stack(cTs, 0))


if __name__ == "__main__":
    # Small, deterministic problem.  vocab=96 (non-multiple of 128) exercises the
    # lane-padding path; B=16/Bc=8 and T=32/Tc=16 exercise both grid axes and the
    # carried h/c scratch.
    VOCAB, HIDDEN, LAYERS, B, T = 96, 128, 2, 16, 32

    key = jax.random.PRNGKey(0)
    key, kx = jax.random.split(key)
    params_f32 = init_params(key, VOCAB, HIDDEN, LAYERS)

    ids = jax.random.randint(kx, (B, T), 0, VOCAB)
    x = jax.nn.one_hot(ids, VOCAB, dtype=jnp.float32)        # (B, T, V) batch_first
    h0 = jnp.zeros((LAYERS, B, HIDDEN), jnp.float32)         # init_hidden
    c0 = jnp.zeros((LAYERS, B, HIDDEN), jnp.float32)

    # --- f32-weight path ---------------------------------------------------
    out32, (hT32, cT32) = char_rnn_forward(x, h0, c0, params_f32,
                                           t_chunk=16, b_chunk=8)
    jax.block_until_ready((out32, hT32, cT32))
    ref_out, (ref_hT, ref_cT) = reference_forward(x, h0, c0, params_f32)

    assert out32.shape == (B * T, VOCAB)
    assert hT32.shape == (LAYERS, B, HIDDEN) and cT32.shape == (LAYERS, B, HIDDEN)
    assert jnp.allclose(out32, ref_out, atol=2e-2, rtol=2e-2)
    assert jnp.allclose(hT32, ref_hT, atol=2e-2, rtol=2e-2)
    assert jnp.allclose(cT32, ref_cT, atol=2e-2, rtol=2e-2)

    # --- bf16-weight path (recommended production config) -------------------
    params_bf16 = cast_matmul_weights(params_f32, jnp.bfloat16)
    out16, (hT16, cT16) = char_rnn_forward(x, h0, c0, params_bf16,
                                           t_chunk=16, b_chunk=8)
    jax.block_until_ready((out16, hT16, cT16))
    ref16_out, (ref16_hT, ref16_cT) = reference_forward(
        x, h0, c0, params_f32, compute_dtype=jnp.bfloat16)

    assert jnp.allclose(out16, ref16_out, atol=2e-2, rtol=2e-2)
    assert jnp.allclose(hT16, ref16_hT, atol=2e-2, rtol=2e-2)
    assert jnp.allclose(cT16, ref16_cT, atol=2e-2, rtol=2e-2)

    print("KERNEL_OK")
</pallas_src>

<mosaic_0001>
module attributes {stable_mosaic.version = 11 : i64} {
  func.func @kernel(%arg0: i32, %arg1: i32, %arg2: memref<16x8x128xf32, #tpu.memory_space<vmem>>, %arg3: memref<128x512xf32, #tpu.memory_space<vmem>>, %arg4: memref<128x512xf32, #tpu.memory_space<vmem>>, %arg5: memref<1x512xf32, #tpu.memory_space<vmem>>, %arg6: memref<128x512xf32, #tpu.memory_space<vmem>>, %arg7: memref<128x512xf32, #tpu.memory_space<vmem>>, %arg8: memref<1x512xf32, #tpu.memory_space<vmem>>, %arg9: memref<128x128xf32, #tpu.memory_space<vmem>>, %arg10: memref<1x128xf32, #tpu.memory_space<vmem>>, %arg11: memref<2x8x128xf32, #tpu.memory_space<vmem>>, %arg12: memref<2x8x128xf32, #tpu.memory_space<vmem>>, %arg13: memref<16x8x128xf32, #tpu.memory_space<vmem>>, %arg14: memref<2x8x128xf32, #tpu.memory_space<vmem>>, %arg15: memref<2x8x128xf32, #tpu.memory_space<vmem>>, %arg16: memref<2x8x128xf32, #tpu.memory_space<vmem>>, %arg17: memref<2x8x128xf32, #tpu.memory_space<vmem>>, %arg18: memref<16x8x128xf32, #tpu.memory_space<vmem>>, %arg19: memref<16x8x512xf32, #tpu.memory_space<vmem>>) attributes {dimension_semantics = [#tpu.dimension_semantics<parallel>, #tpu.dimension_semantics<arbitrary>], iteration_bounds = array<i64: 2, 2>, scalar_prefetch = 0 : i64, scratch_operands = 4 : i64, tpu.core_type = #tpu.core_type<tc>, window_params = [{transform_indices = @transform_0, window_bounds = array<i64: 16, 8, 128>}, {pipeline_mode = #tpu.pipeline_mode<synchronous>, transform_indices = @transform_1, window_bounds = array<i64: 128, 512>}, {pipeline_mode = #tpu.pipeline_mode<synchronous>, transform_indices = @transform_2, window_bounds = array<i64: 128, 512>}, {pipeline_mode = #tpu.pipeline_mode<synchronous>, transform_indices = @transform_3, window_bounds = array<i64: 1, 512>}, {pipeline_mode = #tpu.pipeline_mode<synchronous>, transform_indices = @transform_4, window_bounds = array<i64: 128, 512>}, {pipeline_mode = #tpu.pipeline_mode<synchronous>, transform_indices = @transform_5, window_bounds = array<i64: 128, 512>}, {pipeline_mode = #tpu.pipeline_mode<synchronous>, transform_indices = @transform_6, window_bounds = array<i64: 1, 512>}, {pipeline_mode = #tpu.pipeline_mode<synchronous>, transform_indices = @transform_7, window_bounds = array<i64: 128, 128>}, {pipeline_mode = #tpu.pipeline_mode<synchronous>, transform_indices = @transform_8, window_bounds = array<i64: 1, 128>}, {transform_indices = @transform_9, window_bounds = array<i64: 2, 8, 128>}, {transform_indices = @transform_10, window_bounds = array<i64: 2, 8, 128>}, {transform_indices = @transform_11, window_bounds = array<i64: 16, 8, 128>}, {transform_indices = @transform_12, window_bounds = array<i64: 2, 8, 128>}, {transform_indices = @transform_13, window_bounds = array<i64: 2, 8, 128>}]} {
    %c0_i32 = arith.constant 0 : i32
    %0 = arith.cmpi eq, %arg1, %c0_i32 : i32
    %1 = arith.extui %0 : i1 to i32
    %c0_i32_0 = arith.constant 0 : i32
    %2 = arith.cmpi ne, %1, %c0_i32_0 : i32
    scf.if %2 {
      %c0_335 = arith.constant 0 : index
      %c0_336 = arith.constant 0 : index
      %c0_337 = arith.constant 0 : index
      %1143 = vector.load %arg11[%c0_335, %c0_336, %c0_337] : memref<2x8x128xf32, #tpu.memory_space<vmem>>, vector<2x8x128xf32>
      %c0_338 = arith.constant 0 : index
      %c0_339 = arith.constant 0 : index
      %c0_340 = arith.constant 0 : index
      %1144 = vector.load %arg16[%c0_338, %c0_339, %c0_340] : memref<2x8x128xf32, #tpu.memory_space<vmem>>, vector<2x8x128xf32>
      tpu.vector_store %arg16[%c0_338, %c0_339, %c0_340], %1143 {strides = array<i32>} : memref<2x8x128xf32, #tpu.memory_space<vmem>>, vector<2x8x128xf32>,
      %c0_341 = arith.constant 0 : index
      %c0_342 = arith.constant 0 : index
      %c0_343 = arith.constant 0 : index
      %1145 = vector.load %arg12[%c0_341, %c0_342, %c0_343] : memref<2x8x128xf32, #tpu.memory_space<vmem>>, vector<2x8x128xf32>
      %c0_344 = arith.constant 0 : index
      %c0_345 = arith.constant 0 : index
      %c0_346 = arith.constant 0 : index
      %1146 = vector.load %arg17[%c0_344, %c0_345, %c0_346] : memref<2x8x128xf32, #tpu.memory_space<vmem>>, vector<2x8x128xf32>
      tpu.vector_store %arg17[%c0_344, %c0_345, %c0_346], %1145 {strides = array<i32>} : memref<2x8x128xf32, #tpu.memory_space<vmem>>, vector<2x8x128xf32>,
    } else {
    }
    %c0 = arith.constant 0 : index
    %c0_1 = arith.constant 0 : index
    %3 = vector.load %arg3[%c0, %c0_1] : memref<128x512xf32, #tpu.memory_space<vmem>>, vector<128x512xf32>
    %c0_2 = arith.constant 0 : index
    %c0_3 = arith.constant 0 : index
    %4 = vector.load %arg4[%c0_2, %c0_3] : memref<128x512xf32, #tpu.memory_space<vmem>>, vector<128x512xf32>
    %c0_4 = arith.constant 0 : index
    %c0_5 = arith.constant 0 : index
    %c0_6 = arith.constant 0 : index
    %5 = vector.load %arg2[%c0_4, %c0_5, %c0_6] : memref<16x8x128xf32, #tpu.memory_space<vmem>>, vector<16x8x128xf32>
    %6 = vector.shape_cast %5 : vector<16x8x128xf32> to vector<128x128xf32>
    %cst = arith.constant dense<0.000000e+00> : vector<128x512xf32>
    %7 = tpu.matmul %6, %3, %cst {dimension_numbers = #tpu.dot_dimension_numbers<[1], [0], [0], [1], [0, 0, 1, 1], [], []>} : vector<128x128xf32>, vector<128x512xf32>, vector<128x512xf32> -> vector<128x512xf32>
    %c0_7 = arith.constant 0 : index
    %c0_8 = arith.constant 0 : index
    %8 = vector.load %arg5[%c0_7, %c0_8] : memref<1x512xf32, #tpu.memory_space<vmem>>, vector<1x512xf32>
    %9 = vector.broadcast %8 : vector<1x512xf32> to vector<128x512xf32>
    %10 = arith.addf %7, %9 : vector<128x512xf32>
    %11 = vector.shape_cast %10 : vector<128x512xf32> to vector<16x8x512xf32>
    %c0_9 = arith.constant 0 : index
    %c0_10 = arith.constant 0 : index
    %c0_11 = arith.constant 0 : index
    %12 = vector.load %arg19[%c0_9, %c0_10, %c0_11] : memref<16x8x512xf32, #tpu.memory_space<vmem>>, vector<16x8x512xf32>
    tpu.vector_store %arg19[%c0_9, %c0_10, %c0_11], %11 {strides = array<i32>} : memref<16x8x512xf32, #tpu.memory_space<vmem>>, vector<16x8x512xf32>,
    %c0_12 = arith.constant 0 : index
    %c0_13 = arith.constant 0 : index
    %c0_14 = arith.constant 0 : index
    %13 = vector.load %arg16[%c0_12, %c0_13, %c0_14] : memref<2x8x128xf32, #tpu.memory_space<vmem>>, vector<1x8x128xf32>
    %14 = vector.shape_cast %13 : vector<1x8x128xf32> to vector<8x128xf32>
    %c0_15 = arith.constant 0 : index
    %c0_16 = arith.constant 0 : index
    %c0_17 = arith.constant 0 : index
    %15 = vector.load %arg17[%c0_15, %c0_16, %c0_17] : memref<2x8x128xf32, #tpu.memory_space<vmem>>, vector<1x8x128xf32>
    %16 = vector.shape_cast %15 : vector<1x8x128xf32> to vector<8x128xf32>
    %c0_i32_18 = arith.constant 0 : i32
    %17 = arith.index_cast %c0_i32_18 : i32 to index
    %c0_19 = arith.constant 0 : index
    %c0_20 = arith.constant 0 : index
    %18 = vector.load %arg19[%17, %c0_19, %c0_20] : memref<16x8x512xf32, #tpu.memory_space<vmem>>, vector<1x8x512xf32>
    %19 = vector.shape_cast %18 : vector<1x8x512xf32> to vector<8x512xf32>
    %cst_21 = arith.constant dense<0.000000e+00> : vector<8x512xf32>
    %20 = tpu.matmul %14, %4, %cst_21 {dimension_numbers = #tpu.dot_dimension_numbers<[1], [0], [0], [1], [0, 0, 1, 1], [], []>} : vector<8x128xf32>, vector<128x512xf32>, vector<8x512xf32> -> vector<8x512xf32>
    %21 = arith.addf %19, %20 : vector<8x512xf32>
    %22 = vector.extract_strided_slice %21 {offsets = [0, 0], sizes = [8, 128], strides = [1, 1]} : vector<8x512xf32> to vector<8x128xf32>
    %23 = arith.negf %22 : vector<8x128xf32>
    %24 = math.exp %23 : vector<8x128xf32>
    %cst_22 = arith.constant 1.000000e+00 : f32
    %25 = vector.broadcast %cst_22 : f32 to vector<8x128xf32>
    %26 = arith.addf %25, %24 : vector<8x128xf32>
    %27 = arith.divf %25, %26 : vector<8x128xf32>
    %28 = vector.extract_strided_slice %21 {offsets = [0, 128], sizes = [8, 128], strides = [1, 1]} : vector<8x512xf32> to vector<8x128xf32>
    %29 = arith.negf %28 : vector<8x128xf32>
    %30 = math.exp %29 : vector<8x128xf32>
    %cst_23 = arith.constant 1.000000e+00 : f32
    %31 = vector.broadcast %cst_23 : f32 to vector<8x128xf32>
    %32 = arith.addf %31, %30 : vector<8x128xf32>
    %33 = arith.divf %31, %32 : vector<8x128xf32>
    %34 = vector.extract_strided_slice %21 {offsets = [0, 256], sizes = [8, 128], strides = [1, 1]} : vector<8x512xf32> to vector<8x128xf32>
    %35 = math.tanh %34 : vector<8x128xf32>
    %36 = vector.extract_strided_slice %21 {offsets = [0, 384], sizes = [8, 128], strides = [1, 1]} : vector<8x512xf32> to vector<8x128xf32>
    %37 = arith.negf %36 : vector<8x128xf32>
    %38 = math.exp %37 : vector<8x128xf32>
    %cst_24 = arith.constant 1.000000e+00 : f32
    %39 = vector.broadcast %cst_24 : f32 to vector<8x128xf32>
    %40 = arith.addf %39, %38 : vector<8x128xf32>
    %41 = arith.divf %39, %40 : vector<8x128xf32>
    %42 = arith.mulf %33, %16 : vector<8x128xf32>
    %43 = arith.mulf %27, %35 : vector<8x128xf32>
    %44 = arith.addf %42, %43 : vector<8x128xf32>
    %45 = math.tanh %44 : vector<8x128xf32>
    %46 = arith.mulf %41, %45 : vector<8x128xf32>
    %47 = arith.index_cast %c0_i32_18 : i32 to index
    %c0_25 = arith.constant 0 : index
    %c0_26 = arith.constant 0 : index
    %48 = vector.load %arg18[%47, %c0_25, %c0_26] : memref<16x8x128xf32, #tpu.memory_space<vmem>>, vector<1x8x128xf32>
    %49 = vector.shape_cast %48 : vector<1x8x128xf32> to vector<8x128xf32>
    %50 = vector.shape_cast %46 : vector<8x128xf32> to vector<1x8x128xf32>
    tpu.vector_store %arg18[%47, %c0_25, %c0_26], %50 {strides = array<i32>} : memref<16x8x128xf32, #tpu.memory_space<vmem>>, vector<1x8x128xf32>,
    %c1_i32 = arith.constant 1 : i32
    %51 = arith.index_cast %c1_i32 : i32 to index
    %c0_27 = arith.constant 0 : index
    %c0_28 = arith.constant 0 : index
    %52 = vector.load %arg19[%51, %c0_27, %c0_28] : memref<16x8x512xf32, #tpu.memory_space<vmem>>, vector<1x8x512xf32>
    %53 = vector.shape_cast %52 : vector<1x8x512xf32> to vector<8x512xf32>
    %cst_29 = arith.constant dense<0.000000e+00> : vector<8x512xf32>
    %54 = tpu.matmul %46, %4, %cst_29 {dimension_numbers = #tpu.dot_dimension_numbers<[1], [0], [0], [1], [0, 0, 1, 1], [], []>} : vector<8x128xf32>, vector<128x512xf32>, vector<8x512xf32> -> vector<8x512xf32>
    %55 = arith.addf %53, %54 : vector<8x512xf32>
    %56 = vector.extract_strided_slice %55 {offsets = [0, 0], sizes = [8, 128], strides = [1, 1]} : vector<8x512xf32> to vector<8x128xf32>
    %57 = arith.negf %56 : vector<8x128xf32>
    %58 = math.exp %57 : vector<8x128xf32>
    %cst_30 = arith.constant 1.000000e+00 : f32
    %59 = vector.broadcast %cst_30 : f32 to vector<8x128xf32>
    %60 = arith.addf %59, %58 : vector<8x128xf32>
    %61 = arith.divf %59, %60 : vector<8x128xf32>
    %62 = vector.extract_strided_slice %55 {offsets = [0, 128], sizes = [8, 128], strides = [1, 1]} : vector<8x512xf32> to vector<8x128xf32>
    %63 = arith.negf %62 : vector<8x128xf32>
    %64 = math.exp %63 : vector<8x128xf32>
    %cst_31 = arith.constant 1.000000e+00 : f32
    %65 = vector.broadcast %cst_31 : f32 to vector<8x128xf32>
    %66 = arith.addf %65, %64 : vector<8x128xf32>
    %67 = arith.divf %65, %66 : vector<8x128xf32>
    %68 = vector.extract_strided_slice %55 {offsets = [0, 256], sizes = [8, 128], strides = [1, 1]} : vector<8x512xf32> to vector<8x128xf32>
    %69 = math.tanh %68 : vector<8x128xf32>
    %70 = vector.extract_strided_slice %55 {offsets = [0, 384], sizes = [8, 128], strides = [1, 1]} : vector<8x512xf32> to vector<8x128xf32>
    %71 = arith.negf %70 : vector<8x128xf32>
    %72 = math.exp %71 : vector<8x128xf32>
    %cst_32 = arith.constant 1.000000e+00 : f32
    %73 = vector.broadcast %cst_32 : f32 to vector<8x128xf32>
    %74 = arith.addf %73, %72 : vector<8x128xf32>
    %75 = arith.divf %73, %74 : vector<8x128xf32>
    %76 = arith.mulf %67, %44 : vector<8x128xf32>
    %77 = arith.mulf %61, %69 : vector<8x128xf32>
    %78 = arith.addf %76, %77 : vector<8x128xf32>
    %79 = math.tanh %78 : vector<8x128xf32>
    %80 = arith.mulf %75, %79 : vector<8x128xf32>
    %81 = arith.index_cast %c1_i32 : i32 to index
    %c0_33 = arith.constant 0 : index
    %c0_34 = arith.constant 0 : index
    %82 = vector.load %arg18[%81, %c0_33, %c0_34] : memref<16x8x128xf32, #tpu.memory_space<vmem>>, vector<1x8x128xf32>
    %83 = vector.shape_cast %82 : vector<1x8x128xf32> to vector<8x128xf32>
    %84 = vector.shape_cast %80 : vector<8x128xf32> to vector<1x8x128xf32>
    tpu.vector_store %arg18[%81, %c0_33, %c0_34], %84 {strides = array<i32>} : memref<16x8x128xf32, #tpu.memory_space<vmem>>, vector<1x8x128xf32>,
    %c2_i32 = arith.constant 2 : i32
    %85 = arith.index_cast %c2_i32 : i32 to index
    %c0_35 = arith.constant 0 : index
    %c0_36 = arith.constant 0 : index
    %86 = vector.load %arg19[%85, %c0_35, %c0_36] : memref<16x8x512xf32, #tpu.memory_space<vmem>>, vector<1x8x512xf32>
    %87 = vector.shape_cast %86 : vector<1x8x512xf32> to vector<8x512xf32>
    %cst_37 = arith.constant dense<0.000000e+00> : vector<8x512xf32>
    %88 = tpu.matmul %80, %4, %cst_37 {dimension_numbers = #tpu.dot_dimension_numbers<[1], [0], [0], [1], [0, 0, 1, 1], [], []>} : vector<8x128xf32>, vector<128x512xf32>, vector<8x512xf32> -> vector<8x512xf32>
    %89 = arith.addf %87, %88 : vector<8x512xf32>
    %90 = vector.extract_strided_slice %89 {offsets = [0, 0], sizes = [8, 128], strides = [1, 1]} : vector<8x512xf32> to vector<8x128xf32>
    %91 = arith.negf %90 : vector<8x128xf32>
    %92 = math.exp %91 : vector<8x128xf32>
    %cst_38 = arith.constant 1.000000e+00 : f32
    %93 = vector.broadcast %cst_38 : f32 to vector<8x128xf32>
    %94 = arith.addf %93, %92 : vector<8x128xf32>
    %95 = arith.divf %93, %94 : vector<8x128xf32>
    %96 = vector.extract_strided_slice %89 {offsets = [0, 128], sizes = [8, 128], strides = [1, 1]} : vector<8x512xf32> to vector<8x128xf32>
    %97 = arith.negf %96 : vector<8x128xf32>
    %98 = math.exp %97 : vector<8x128xf32>
    %cst_39 = arith.constant 1.000000e+00 : f32
    %99 = vector.broadcast %cst_39 : f32 to vector<8x128xf32>
    %100 = arith.addf %99, %98 : vector<8x128xf32>
    %101 = arith.divf %99, %100 : vector<8x128xf32>
    %102 = vector.extract_strided_slice %89 {offsets = [0, 256], sizes = [8, 128], strides = [1, 1]} : vector<8x512xf32> to vector<8x128xf32>
    %103 = math.tanh %102 : vector<8x128xf32>
    %104 = vector.extract_strided_slice %89 {offsets = [0, 384], sizes = [8, 128], strides = [1, 1]} : vector<8x512xf32> to vector<8x128xf32>
    %105 = arith.negf %104 : vector<8x128xf32>
    %106 = math.exp %105 : vector<8x128xf32>
    %cst_40 = arith.constant 1.000000e+00 : f32
    %107 = vector.broadcast %cst_40 : f32 to vector<8x128xf32>
    %108 = arith.addf %107, %106 : vector<8x128xf32>
    %109 = arith.divf %107, %108 : vector<8x128xf32>
    %110 = arith.mulf %101, %78 : vector<8x128xf32>
    %111 = arith.mulf %95, %103 : vector<8x128xf32>
    %112 = arith.addf %110, %111 : vector<8x128xf32>
    %113 = math.tanh %112 : vector<8x128xf32>
    %114 = arith.mulf %109, %113 : vector<8x128xf32>
    %115 = arith.index_cast %c2_i32 : i32 to index
    %c0_41 = arith.constant 0 : index
    %c0_42 = arith.constant 0 : index
    %116 = vector.load %arg18[%115, %c0_41, %c0_42] : memref<16x8x128xf32, #tpu.memory_space<vmem>>, vector<1x8x128xf32>
    %117 = vector.shape_cast %116 : vector<1x8x128xf32> to vector<8x128xf32>
    %118 = vector.shape_cast %114 : vector<8x128xf32> to vector<1x8x128xf32>
    tpu.vector_store %arg18[%115, %c0_41, %c0_42], %118 {strides = array<i32>} : memref<16x8x128xf32, #tpu.memory_space<vmem>>, vector<1x8x128xf32>,
    %c3_i32 = arith.constant 3 : i32
    %119 = arith.index_cast %c3_i32 : i32 to index
    %c0_43 = arith.constant 0 : index
    %c0_44 = arith.constant 0 : index
    %120 = vector.load %arg19[%119, %c0_43, %c0_44] : memref<16x8x512xf32, #tpu.memory_space<vmem>>, vector<1x8x512xf32>
    %121 = vector.shape_cast %120 : vector<1x8x512xf32> to vector<8x512xf32>
    %cst_45 = arith.constant dense<0.000000e+00> : vector<8x512xf32>
    %122 = tpu.matmul %114, %4, %cst_45 {dimension_numbers = #tpu.dot_dimension_numbers<[1], [0], [0], [1], [0, 0, 1, 1], [], []>} : vector<8x128xf32>, vector<128x512xf32>, vector<8x512xf32> -> vector<8x512xf32>
    %123 = arith.addf %121, %122 : vector<8x512xf32>
    %124 = vector.extract_strided_slice %123 {offsets = [0, 0], sizes = [8, 128], strides = [1, 1]} : vector<8x512xf32> to vector<8x128xf32>
    %125 = arith.negf %124 : vector<8x128xf32>
    %126 = math.exp %125 : vector<8x128xf32>
    %cst_46 = arith.constant 1.000000e+00 : f32
    %127 = vector.broadcast %cst_46 : f32 to vector<8x128xf32>
    %128 = arith.addf %127, %126 : vector<8x128xf32>
    %129 = arith.divf %127, %128 : vector<8x128xf32>
    %130 = vector.extract_strided_slice %123 {offsets = [0, 128], sizes = [8, 128], strides = [1, 1]} : vector<8x512xf32> to vector<8x128xf32>
    %131 = arith.negf %130 : vector<8x128xf32>
    %132 = math.exp %131 : vector<8x128xf32>
    %cst_47 = arith.constant 1.000000e+00 : f32
    %133 = vector.broadcast %cst_47 : f32 to vector<8x128xf32>
    %134 = arith.addf %133, %132 : vector<8x128xf32>
    %135 = arith.divf %133, %134 : vector<8x128xf32>
    %136 = vector.extract_strided_slice %123 {offsets = [0, 256], sizes = [8, 128], strides = [1, 1]} : vector<8x512xf32> to vector<8x128xf32>
    %137 = math.tanh %136 : vector<8x128xf32>
    %138 = vector.extract_strided_slice %123 {offsets = [0, 384], sizes = [8, 128], strides = [1, 1]} : vector<8x512xf32> to vector<8x128xf32>
    %139 = arith.negf %138 : vector<8x128xf32>
    %140 = math.exp %139 : vector<8x128xf32>
    %cst_48 = arith.constant 1.000000e+00 : f32
    %141 = vector.broadcast %cst_48 : f32 to vector<8x128xf32>
    %142 = arith.addf %141, %140 : vector<8x128xf32>
    %143 = arith.divf %141, %142 : vector<8x128xf32>
    %144 = arith.mulf %135, %112 : vector<8x128xf32>
    %145 = arith.mulf %129, %137 : vector<8x128xf32>
    %146 = arith.addf %144, %145 : vector<8x128xf32>
    %147 = math.tanh %146 : vector<8x128xf32>
    %148 = arith.mulf %143, %147 : vector<8x128xf32>
    %149 = arith.index_cast %c3_i32 : i32 to index
    %c0_49 = arith.constant 0 : index
    %c0_50 = arith.constant 0 : index
    %150 = vector.load %arg18[%149, %c0_49, %c0_50] : memref<16x8x128xf32, #tpu.memory_space<vmem>>, vector<1x8x128xf32>
    %151 = vector.shape_cast %150 : vector<1x8x128xf32> to vector<8x128xf32>
    %152 = vector.shape_cast %148 : vector<8x128xf32> to vector<1x8x128xf32>
    tpu.vector_store %arg18[%149, %c0_49, %c0_50], %152 {strides = array<i32>} : memref<16x8x128xf32, #tpu.memory_space<vmem>>, vector<1x8x128xf32>,
    %c4_i32 = arith.constant 4 : i32
    %153 = arith.index_cast %c4_i32 : i32 to index
    %c0_51 = arith.constant 0 : index
    %c0_52 = arith.constant 0 : index
    %154 = vector.load %arg19[%153, %c0_51, %c0_52] : memref<16x8x512xf32, #tpu.memory_space<vmem>>, vector<1x8x512xf32>
    %155 = vector.shape_cast %154 : vector<1x8x512xf32> to vector<8x512xf32>
    %cst_53 = arith.constant dense<0.000000e+00> : vector<8x512xf32>
    %156 = tpu.matmul %148, %4, %cst_53 {dimension_numbers = #tpu.dot_dimension_numbers<[1], [0], [0], [1], [0, 0, 1, 1], [], []>} : vector<8x128xf32>, vector<128x512xf32>, vector<8x512xf32> -> vector<8x512xf32>
    %157 = arith.addf %155, %156 : vector<8x512xf32>
    %158 = vector.extract_strided_slice %157 {offsets = [0, 0], sizes = [8, 128], strides = [1, 1]} : vector<8x512xf32> to vector<8x128xf32>
    %159 = arith.negf %158 : vector<8x128xf32>
    %160 = math.exp %159 : vector<8x128xf32>
    %cst_54 = arith.constant 1.000000e+00 : f32
    %161 = vector.broadcast %cst_54 : f32 to vector<8x128xf32>
    %162 = arith.addf %161, %160 : vector<8x128xf32>
    %163 = arith.divf %161, %162 : vector<8x128xf32>
    %164 = vector.extract_strided_slice %157 {offsets = [0, 128], sizes = [8, 128], strides = [1, 1]} : vector<8x512xf32> to vector<8x128xf32>
    %165 = arith.negf %164 : vector<8x128xf32>
    %166 = math.exp %165 : vector<8x128xf32>
    %cst_55 = arith.constant 1.000000e+00 : f32
    %167 = vector.broadcast %cst_55 : f32 to vector<8x128xf32>
    %168 = arith.addf %167, %166 : vector<8x128xf32>
    %169 = arith.divf %167, %168 : vector<8x128xf32>
    %170 = vector.extract_strided_slice %157 {offsets = [0, 256], sizes = [8, 128], strides = [1, 1]} : vector<8x512xf32> to vector<8x128xf32>
    %171 = math.tanh %170 : vector<8x128xf32>
    %172 = vector.extract_strided_slice %157 {offsets = [0, 384], sizes = [8, 128], strides = [1, 1]} : vector<8x512xf32> to vector<8x128xf32>
    %173 = arith.negf %172 : vector<8x128xf32>
    %174 = math.exp %173 : vector<8x128xf32>
    %cst_56 = arith.constant 1.000000e+00 : f32
    %175 = vector.broadcast %cst_56 : f32 to vector<8x128xf32>
    %176 = arith.addf %175, %174 : vector<8x128xf32>
    %177 = arith.divf %175, %176 : vector<8x128xf32>
    %178 = arith.mulf %169, %146 : vector<8x128xf32>
    %179 = arith.mulf %163, %171 : vector<8x128xf32>
    %180 = arith.addf %178, %179 : vector<8x128xf32>
    %181 = math.tanh %180 : vector<8x128xf32>
    %182 = arith.mulf %177, %181 : vector<8x128xf32>
    %183 = arith.index_cast %c4_i32 : i32 to index
    %c0_57 = arith.constant 0 : index
    %c0_58 = arith.constant 0 : index
    %184 = vector.load %arg18[%183, %c0_57, %c0_58] : memref<16x8x128xf32, #tpu.memory_space<vmem>>, vector<1x8x128xf32>
    %185 = vector.shape_cast %184 : vector<1x8x128xf32> to vector<8x128xf32>
    %186 = vector.shape_cast %182 : vector<8x128xf32> to vector<1x8x128xf32>
    tpu.vector_store %arg18[%183, %c0_57, %c0_58], %186 {strides = array<i32>} : memref<16x8x128xf32, #tpu.memory_space<vmem>>, vector<1x8x128xf32>,
    %c5_i32 = arith.constant 5 : i32
    %187 = arith.index_cast %c5_i32 : i32 to index
    %c0_59 = arith.constant 0 : index
    %c0_60 = arith.constant 0 : index
    %188 = vector.load %arg19[%187, %c0_59, %c0_60] : memref<16x8x512xf32, #tpu.memory_space<vmem>>, vector<1x8x512xf32>
    %189 = vector.shape_cast %188 : vector<1x8x512xf32> to vector<8x512xf32>
    %cst_61 = arith.constant dense<0.000000e+00> : vector<8x512xf32>
    %190 = tpu.matmul %182, %4, %cst_61 {dimension_numbers = #tpu.dot_dimension_numbers<[1], [0], [0], [1], [0, 0, 1, 1], [], []>} : vector<8x128xf32>, vector<128x512xf32>, vector<8x512xf32> -> vector<8x512xf32>
    %191 = arith.addf %189, %190 : vector<8x512xf32>
    %192 = vector.extract_strided_slice %191 {offsets = [0, 0], sizes = [8, 128], strides = [1, 1]} : vector<8x512xf32> to vector<8x128xf32>
    %193 = arith.negf %192 : vector<8x128xf32>
    %194 = math.exp %193 : vector<8x128xf32>
    %cst_62 = arith.constant 1.000000e+00 : f32
    %195 = vector.broadcast %cst_62 : f32 to vector<8x128xf32>
    %196 = arith.addf %195, %194 : vector<8x128xf32>
    %197 = arith.divf %195, %196 : vector<8x128xf32>
    %198 = vector.extract_strided_slice %191 {offsets = [0, 128], sizes = [8, 128], strides = [1, 1]} : vector<8x512xf32> to vector<8x128xf32>
    %199 = arith.negf %198 : vector<8x128xf32>
    %200 = math.exp %199 : vector<8x128xf32>
    %cst_63 = arith.constant 1.000000e+00 : f32
    %201 = vector.broadcast %cst_63 : f32 to vector<8x128xf32>
    %202 = arith.addf %201, %200 : vector<8x128xf32>
    %203 = arith.divf %201, %202 : vector<8x128xf32>
    %204 = vector.extract_strided_slice %191 {offsets = [0, 256], sizes = [8, 128], strides = [1, 1]} : vector<8x512xf32> to vector<8x128xf32>
    %205 = math.tanh %204 : vector<8x128xf32>
    %206 = vector.extract_strided_slice %191 {offsets = [0, 384], sizes = [8, 128], strides = [1, 1]} : vector<8x512xf32> to vector<8x128xf32>
    %207 = arith.negf %206 : vector<8x128xf32>
    %208 = math.exp %207 : vector<8x128xf32>
    %cst_64 = arith.constant 1.000000e+00 : f32
    %209 = vector.broadcast %cst_64 : f32 to vector<8x128xf32>
    %210 = arith.addf %209, %208 : vector<8x128xf32>
    %211 = arith.divf %209, %210 : vector<8x128xf32>
    %212 = arith.mulf %203, %180 : vector<8x128xf32>
    %213 = arith.mulf %197, %205 : vector<8x128xf32>
    %214 = arith.addf %212, %213 : vector<8x128xf32>
    %215 = math.tanh %214 : vector<8x128xf32>
    %216 = arith.mulf %211, %215 : vector<8x128xf32>
    %217 = arith.index_cast %c5_i32 : i32 to index
    %c0_65 = arith.constant 0 : index
    %c0_66 = arith.constant 0 : index
    %218 = vector.load %arg18[%217, %c0_65, %c0_66] : memref<16x8x128xf32, #tpu.memory_space<vmem>>, vector<1x8x128xf32>
    %219 = vector.shape_cast %218 : vector<1x8x128xf32> to vector<8x128xf32>
    %220 = vector.shape_cast %216 : vector<8x128xf32> to vector<1x8x128xf32>
    tpu.vector_store %arg18[%217, %c0_65, %c0_66], %220 {strides = array<i32>} : memref<16x8x128xf32, #tpu.memory_space<vmem>>, vector<1x8x128xf32>,
    %c6_i32 = arith.constant 6 : i32
    %221 = arith.index_cast %c6_i32 : i32 to index
    %c0_67 = arith.constant 0 : index
    %c0_68 = arith.constant 0 : index
    %222 = vector.load %arg19[%221, %c0_67, %c0_68] : memref<16x8x512xf32, #tpu.memory_space<vmem>>, vector<1x8x512xf32>
    %223 = vector.shape_cast %222 : vector<1x8x512xf32> to vector<8x512xf32>
    %cst_69 = arith.constant dense<0.000000e+00> : vector<8x512xf32>
    %224 = tpu.matmul %216, %4, %cst_69 {dimension_numbers = #tpu.dot_dimension_numbers<[1], [0], [0], [1], [0, 0, 1, 1], [], []>} : vector<8x128xf32>, vector<128x512xf32>, vector<8x512xf32> -> vector<8x512xf32>
    %225 = arith.addf %223, %224 : vector<8x512xf32>
    %226 = vector.extract_strided_slice %225 {offsets = [0, 0], sizes = [8, 128], strides = [1, 1]} : vector<8x512xf32> to vector<8x128xf32>
    %227 = arith.negf %226 : vector<8x128xf32>
    %228 = math.exp %227 : vector<8x128xf32>
    %cst_70 = arith.constant 1.000000e+00 : f32
    %229 = vector.broadcast %cst_70 : f32 to vector<8x128xf32>
    %230 = arith.addf %229, %228 : vector<8x128xf32>
    %231 = arith.divf %229, %230 : vector<8x128xf32>
    %232 = vector.extract_strided_slice %225 {offsets = [0, 128], sizes = [8, 128], strides = [1, 1]} : vector<8x512xf32> to vector<8x128xf32>
    %233 = arith.negf %232 : vector<8x128xf32>
    %234 = math.exp %233 : vector<8x128xf32>
    %cst_71 = arith.constant 1.000000e+00 : f32
    %235 = vector.broadcast %cst_71 : f32 to vector<8x128xf32>
    %236 = arith.addf %235, %234 : vector<8x128xf32>
    %237 = arith.divf %235, %236 : vector<8x128xf32>
    %238 = vector.extract_strided_slice %225 {offsets = [0, 256], sizes = [8, 128], strides = [1, 1]} : vector<8x512xf32> to vector<8x128xf32>
    %239 = math.tanh %238 : vector<8x128xf32>
    %240 = vector.extract_strided_slice %225 {offsets = [0, 384], sizes = [8, 128], strides = [1, 1]} : vector<8x512xf32> to vector<8x128xf32>
    %241 = arith.negf %240 : vector<8x128xf32>
    %242 = math.exp %241 : vector<8x128xf32>
    %cst_72 = arith.constant 1.000000e+00 : f32
    %243 = vector.broadcast %cst_72 : f32 to vector<8x128xf32>
    %244 = arith.addf %243, %242 : vector<8x128xf32>
    %245 = arith.divf %243, %244 : vector<8x128xf32>
    %246 = arith.mulf %237, %214 : vector<8x128xf32>
    %247 = arith.mulf %231, %239 : vector<8x128xf32>
    %248 = arith.addf %246, %247 : vector<8x128xf32>
    %249 = math.tanh %248 : vector<8x128xf32>
    %250 = arith.mulf %245, %249 : vector<8x128xf32>
    %251 = arith.index_cast %c6_i32 : i32 to index
    %c0_73 = arith.constant 0 : index
    %c0_74 = arith.constant 0 : index
    %252 = vector.load %arg18[%251, %c0_73, %c0_74] : memref<16x8x128xf32, #tpu.memory_space<vmem>>, vector<1x8x128xf32>
    %253 = vector.shape_cast %252 : vector<1x8x128xf32> to vector<8x128xf32>
    %254 = vector.shape_cast %250 : vector<8x128xf32> to vector<1x8x128xf32>
    tpu.vector_store %arg18[%251, %c0_73, %c0_74], %254 {strides = array<i32>} : memref<16x8x128xf32, #tpu.memory_space<vmem>>, vector<1x8x128xf32>,
    %c7_i32 = arith.constant 7 : i32
    %255 = arith.index_cast %c7_i32 : i32 to index
    %c0_75 = arith.constant 0 : index
    %c0_76 = arith.constant 0 : index
    %256 = vector.load %arg19[%255, %c0_75, %c0_76] : memref<16x8x512xf32, #tpu.memory_space<vmem>>, vector<1x8x512xf32>
    %257 = vector.shape_cast %256 : vector<1x8x512xf32> to vector<8x512xf32>
    %cst_77 = arith.constant dense<0.000000e+00> : vector<8x512xf32>
    %258 = tpu.matmul %250, %4, %cst_77 {dimension_numbers = #tpu.dot_dimension_numbers<[1], [0], [0], [1], [0, 0, 1, 1], [], []>} : vector<8x128xf32>, vector<128x512xf32>, vector<8x512xf32> -> vector<8x512xf32>
    %259 = arith.addf %257, %258 : vector<8x512xf32>
    %260 = vector.extract_strided_slice %259 {offsets = [0, 0], sizes = [8, 128], strides = [1, 1]} : vector<8x512xf32> to vector<8x128xf32>
    %261 = arith.negf %260 : vector<8x128xf32>
    %262 = math.exp %261 : vector<8x128xf32>
    %cst_78 = arith.constant 1.000000e+00 : f32
    %263 = vector.broadcast %cst_78 : f32 to vector<8x128xf32>
    %264 = arith.addf %263, %262 : vector<8x128xf32>
    %265 = arith.divf %263, %264 : vector<8x128xf32>
    %266 = vector.extract_strided_slice %259 {offsets = [0, 128], sizes = [8, 128], strides = [1, 1]} : vector<8x512xf32> to vector<8x128xf32>
    %267 = arith.negf %266 : vector<8x128xf32>
    %268 = math.exp %267 : vector<8x128xf32>
    %cst_79 = arith.constant 1.000000e+00 : f32
    %269 = vector.broadcast %cst_79 : f32 to vector<8x128xf32>
    %270 = arith.addf %269, %268 : vector<8x128xf32>
    %271 = arith.divf %269, %270 : vector<8x128xf32>
    %272 = vector.extract_strided_slice %259 {offsets = [0, 256], sizes = [8, 128], strides = [1, 1]} : vector<8x512xf32> to vector<8x128xf32>
    %273 = math.tanh %272 : vector<8x128xf32>
    %274 = vector.extract_strided_slice %259 {offsets = [0, 384], sizes = [8, 128], strides = [1, 1]} : vector<8x512xf32> to vector<8x128xf32>
    %275 = arith.negf %274 : vector<8x128xf32>
    %276 = math.exp %275 : vector<8x128xf32>
    %cst_80 = arith.constant 1.000000e+00 : f32
    %277 = vector.broadcast %cst_80 : f32 to vector<8x128xf32>
    %278 = arith.addf %277, %276 : vector<8x128xf32>
    %279 = arith.divf %277, %278 : vector<8x128xf32>
    %280 = arith.mulf %271, %248 : vector<8x128xf32>
    %281 = arith.mulf %265, %273 : vector<8x128xf32>
    %282 = arith.addf %280, %281 : vector<8x128xf32>
    %283 = math.tanh %282 : vector<8x128xf32>
    %284 = arith.mulf %279, %283 : vector<8x128xf32>
    %285 = arith.index_cast %c7_i32 : i32 to index
    %c0_81 = arith.constant 0 : index
    %c0_82 = arith.constant 0 : index
    %286 = vector.load %arg18[%285, %c0_81, %c0_82] : memref<16x8x128xf32, #tpu.memory_space<vmem>>, vector<1x8x128xf32>
    %287 = vector.shape_cast %286 : vector<1x8x128xf32> to vector<8x128xf32>
    %288 = vector.shape_cast %284 : vector<8x128xf32> to vector<1x8x128xf32>
    tpu.vector_store %arg18[%285, %c0_81, %c0_82], %288 {strides = array<i32>} : memref<16x8x128xf32, #tpu.memory_space<vmem>>, vector<1x8x128xf32>,
    %c8_i32 = arith.constant 8 : i32
    %289 = arith.index_cast %c8_i32 : i32 to index
    %c0_83 = arith.constant 0 : index
    %c0_84 = arith.constant 0 : index
    %290 = vector.load %arg19[%289, %c0_83, %c0_84] : memref<16x8x512xf32, #tpu.memory_space<vmem>>, vector<1x8x512xf32>
    %291 = vector.shape_cast %290 : vector<1x8x512xf32> to vector<8x512xf32>
    %cst_85 = arith.constant dense<0.000000e+00> : vector<8x512xf32>
    %292 = tpu.matmul %284, %4, %cst_85 {dimension_numbers = #tpu.dot_dimension_numbers<[1], [0], [0], [1], [0, 0, 1, 1], [], []>} : vector<8x128xf32>, vector<128x512xf32>, vector<8x512xf32> -> vector<8x512xf32>
    %293 = arith.addf %291, %292 : vector<8x512xf32>
    %294 = vector.extract_strided_slice %293 {offsets = [0, 0], sizes = [8, 128], strides = [1, 1]} : vector<8x512xf32> to vector<8x128xf32>
    %295 = arith.negf %294 : vector<8x128xf32>
    %296 = math.exp %295 : vector<8x128xf32>
    %cst_86 = arith.constant 1.000000e+00 : f32
    %297 = vector.broadcast %cst_86 : f32 to vector<8x128xf32>
    %298 = arith.addf %297, %296 : vector<8x128xf32>
    %299 = arith.divf %297, %298 : vector<8x128xf32>
    %300 = vector.extract_strided_slice %293 {offsets = [0, 128], sizes = [8, 128], strides = [1, 1]} : vector<8x512xf32> to vector<8x128xf32>
    %301 = arith.negf %300 : vector<8x128xf32>
    %302 = math.exp %301 : vector<8x128xf32>
    %cst_87 = arith.constant 1.000000e+00 : f32
    %303 = vector.broadcast %cst_87 : f32 to vector<8x128xf32>
    %304 = arith.addf %303, %302 : vector<8x128xf32>
    %305 = arith.divf %303, %304 : vector<8x128xf32>
    %306 = vector.extract_strided_slice %293 {offsets = [0, 256], sizes = [8, 128], strides = [1, 1]} : vector<8x512xf32> to vector<8x128xf32>
    %307 = math.tanh %306 : vector<8x128xf32>
    %308 = vector.extract_strided_slice %293 {offsets = [0, 384], sizes = [8, 128], strides = [1, 1]} : vector<8x512xf32> to vector<8x128xf32>
    %309 = arith.negf %308 : vector<8x128xf32>
    %310 = math.exp %309 : vector<8x128xf32>
    %cst_88 = arith.constant 1.000000e+00 : f32
    %311 = vector.broadcast %cst_88 : f32 to vector<8x128xf32>
    %312 = arith.addf %311, %310 : vector<8x128xf32>
    %313 = arith.divf %311, %312 : vector<8x128xf32>
    %314 = arith.mulf %305, %282 : vector<8x128xf32>
    %315 = arith.mulf %299, %307 : vector<8x128xf32>
    %316 = arith.addf %314, %315 : vector<8x128xf32>
    %317 = math.tanh %316 : vector<8x128xf32>
    %318 = arith.mulf %313, %317 : vector<8x128xf32>
    %319 = arith.index_cast %c8_i32 : i32 to index
    %c0_89 = arith.constant 0 : index
    %c0_90 = arith.constant 0 : index
    %320 = vector.load %arg18[%319, %c0_89, %c0_90] : memref<16x8x128xf32, #tpu.memory_space<vmem>>, vector<1x8x128xf32>
    %321 = vector.shape_cast %320 : vector<1x8x128xf32> to vector<8x128xf32>
    %322 = vector.shape_cast %318 : vector<8x128xf32> to vector<1x8x128xf32>
    tpu.vector_store %arg18[%319, %c0_89, %c0_90], %322 {strides = array<i32>} : memref<16x8x128xf32, #tpu.memory_space<vmem>>, vector<1x8x128xf32>,
    %c9_i32 = arith.constant 9 : i32
    %323 = arith.index_cast %c9_i32 : i32 to index
    %c0_91 = arith.constant 0 : index
    %c0_92 = arith.constant 0 : index
    %324 = vector.load %arg19[%323, %c0_91, %c0_92] : memref<16x8x512xf32, #tpu.memory_space<vmem>>, vector<1x8x512xf32>
    %325 = vector.shape_cast %324 : vector<1x8x512xf32> to vector<8x512xf32>
    %cst_93 = arith.constant dense<0.000000e+00> : vector<8x512xf32>
    %326 = tpu.matmul %318, %4, %cst_93 {dimension_numbers = #tpu.dot_dimension_numbers<[1], [0], [0], [1], [0, 0, 1, 1], [], []>} : vector<8x128xf32>, vector<128x512xf32>, vector<8x512xf32> -> vector<8x512xf32>
    %327 = arith.addf %325, %326 : vector<8x512xf32>
    %328 = vector.extract_strided_slice %327 {offsets = [0, 0], sizes = [8, 128], strides = [1, 1]} : vector<8x512xf32> to vector<8x128xf32>
    %329 = arith.negf %328 : vector<8x128xf32>
    %330 = math.exp %329 : vector<8x128xf32>
    %cst_94 = arith.constant 1.000000e+00 : f32
    %331 = vector.broadcast %cst_94 : f32 to vector<8x128xf32>
    %332 = arith.addf %331, %330 : vector<8x128xf32>
    %333 = arith.divf %331, %332 : vector<8x128xf32>
    %334 = vector.extract_strided_slice %327 {offsets = [0, 128], sizes = [8, 128], strides = [1, 1]} : vector<8x512xf32> to vector<8x128xf32>
    %335 = arith.negf %334 : vector<8x128xf32>
    %336 = math.exp %335 : vector<8x128xf32>
    %cst_95 = arith.constant 1.000000e+00 : f32
    %337 = vector.broadcast %cst_95 : f32 to vector<8x128xf32>
    %338 = arith.addf %337, %336 : vector<8x128xf32>
    %339 = arith.divf %337, %338 : vector<8x128xf32>
    %340 = vector.extract_strided_slice %327 {offsets = [0, 256], sizes = [8, 128], strides = [1, 1]} : vector<8x512xf32> to vector<8x128xf32>
    %341 = math.tanh %340 : vector<8x128xf32>
    %342 = vector.extract_strided_slice %327 {offsets = [0, 384], sizes = [8, 128], strides = [1, 1]} : vector<8x512xf32> to vector<8x128xf32>
    %343 = arith.negf %342 : vector<8x128xf32>
    %344 = math.exp %343 : vector<8x128xf32>
    %cst_96 = arith.constant 1.000000e+00 : f32
    %345 = vector.broadcast %cst_96 : f32 to vector<8x128xf32>
    %346 = arith.addf %345, %344 : vector<8x128xf32>
    %347 = arith.divf %345, %346 : vector<8x128xf32>
    %348 = arith.mulf %339, %316 : vector<8x128xf32>
    %349 = arith.mulf %333, %341 : vector<8x128xf32>
    %350 = arith.addf %348, %349 : vector<8x128xf32>
    %351 = math.tanh %350 : vector<8x128xf32>
    %352 = arith.mulf %347, %351 : vector<8x128xf32>
    %353 = arith.index_cast %c9_i32 : i32 to index
    %c0_97 = arith.constant 0 : index
    %c0_98 = arith.constant 0 : index
    %354 = vector.load %arg18[%353, %c0_97, %c0_98] : memref<16x8x128xf32, #tpu.memory_space<vmem>>, vector<1x8x128xf32>
    %355 = vector.shape_cast %354 : vector<1x8x128xf32> to vector<8x128xf32>
    %356 = vector.shape_cast %352 : vector<8x128xf32> to vector<1x8x128xf32>
    tpu.vector_store %arg18[%353, %c0_97, %c0_98], %356 {strides = array<i32>} : memref<16x8x128xf32, #tpu.memory_space<vmem>>, vector<1x8x128xf32>,
    %c10_i32 = arith.constant 10 : i32
    %357 = arith.index_cast %c10_i32 : i32 to index
    %c0_99 = arith.constant 0 : index
    %c0_100 = arith.constant 0 : index
    %358 = vector.load %arg19[%357, %c0_99, %c0_100] : memref<16x8x512xf32, #tpu.memory_space<vmem>>, vector<1x8x512xf32>
    %359 = vector.shape_cast %358 : vector<1x8x512xf32> to vector<8x512xf32>
    %cst_101 = arith.constant dense<0.000000e+00> : vector<8x512xf32>
    %360 = tpu.matmul %352, %4, %cst_101 {dimension_numbers = #tpu.dot_dimension_numbers<[1], [0], [0], [1], [0, 0, 1, 1], [], []>} : vector<8x128xf32>, vector<128x512xf32>, vector<8x512xf32> -> vector<8x512xf32>
    %361 = arith.addf %359, %360 : vector<8x512xf32>
    %362 = vector.extract_strided_slice %361 {offsets = [0, 0], sizes = [8, 128], strides = [1, 1]} : vector<8x512xf32> to vector<8x128xf32>
    %363 = arith.negf %362 : vector<8x128xf32>
    %364 = math.exp %363 : vector<8x128xf32>
    %cst_102 = arith.constant 1.000000e+00 : f32
    %365 = vector.broadcast %cst_102 : f32 to vector<8x128xf32>
    %366 = arith.addf %365, %364 : vector<8x128xf32>
    %367 = arith.divf %365, %366 : vector<8x128xf32>
    %368 = vector.extract_strided_slice %361 {offsets = [0, 128], sizes = [8, 128], strides = [1, 1]} : vector<8x512xf32> to vector<8x128xf32>
    %369 = arith.negf %368 : vector<8x128xf32>
    %370 = math.exp %369 : vector<8x128xf32>
    %cst_103 = arith.constant 1.000000e+00 : f32
    %371 = vector.broadcast %cst_103 : f32 to vector<8x128xf32>
    %372 = arith.addf %371, %370 : vector<8x128xf32>
    %373 = arith.divf %371, %372 : vector<8x128xf32>
    %374 = vector.extract_strided_slice %361 {offsets = [0, 256], sizes = [8, 128], strides = [1, 1]} : vector<8x512xf32> to vector<8x128xf32>
    %375 = math.tanh %374 : vector<8x128xf32>
    %376 = vector.extract_strided_slice %361 {offsets = [0, 384], sizes = [8, 128], strides = [1, 1]} : vector<8x512xf32> to vector<8x128xf32>
    %377 = arith.negf %376 : vector<8x128xf32>
    %378 = math.exp %377 : vector<8x128xf32>
    %cst_104 = arith.constant 1.000000e+00 : f32
    %379 = vector.broadcast %cst_104 : f32 to vector<8x128xf32>
    %380 = arith.addf %379, %378 : vector<8x128xf32>
    %381 = arith.divf %379, %380 : vector<8x128xf32>
    %382 = arith.mulf %373, %350 : vector<8x128xf32>
    %383 = arith.mulf %367, %375 : vector<8x128xf32>
    %384 = arith.addf %382, %383 : vector<8x128xf32>
    %385 = math.tanh %384 : vector<8x128xf32>
    %386 = arith.mulf %381, %385 : vector<8x128xf32>
    %387 = arith.index_cast %c10_i32 : i32 to index
    %c0_105 = arith.constant 0 : index
    %c0_106 = arith.constant 0 : index
    %388 = vector.load %arg18[%387, %c0_105, %c0_106] : memref<16x8x128xf32, #tpu.memory_space<vmem>>, vector<1x8x128xf32>
    %389 = vector.shape_cast %388 : vector<1x8x128xf32> to vector<8x128xf32>
    %390 = vector.shape_cast %386 : vector<8x128xf32> to vector<1x8x128xf32>
    tpu.vector_store %arg18[%387, %c0_105, %c0_106], %390 {strides = array<i32>} : memref<16x8x128xf32, #tpu.memory_space<vmem>>, vector<1x8x128xf32>,
    %c11_i32 = arith.constant 11 : i32
    %391 = arith.index_cast %c11_i32 : i32 to index
    %c0_107 = arith.constant 0 : index
    %c0_108 = arith.constant 0 : index
    %392 = vector.load %arg19[%391, %c0_107, %c0_108] : memref<16x8x512xf32, #tpu.memory_space<vmem>>, vector<1x8x512xf32>
    %393 = vector.shape_cast %392 : vector<1x8x512xf32> to vector<8x512xf32>
    %cst_109 = arith.constant dense<0.000000e+00> : vector<8x512xf32>
    %394 = tpu.matmul %386, %4, %cst_109 {dimension_numbers = #tpu.dot_dimension_numbers<[1], [0], [0], [1], [0, 0, 1, 1], [], []>} : vector<8x128xf32>, vector<128x512xf32>, vector<8x512xf32> -> vector<8x512xf32>
    %395 = arith.addf %393, %394 : vector<8x512xf32>
    %396 = vector.extract_strided_slice %395 {offsets = [0, 0], sizes = [8, 128], strides = [1, 1]} : vector<8x512xf32> to vector<8x128xf32>
    %397 = arith.negf %396 : vector<8x128xf32>
    %398 = math.exp %397 : vector<8x128xf32>
    %cst_110 = arith.constant 1.000000e+00 : f32
    %399 = vector.broadcast %cst_110 : f32 to vector<8x128xf32>
    %400 = arith.addf %399, %398 : vector<8x128xf32>
    %401 = arith.divf %399, %400 : vector<8x128xf32>
    %402 = vector.extract_strided_slice %395 {offsets = [0, 128], sizes = [8, 128], strides = [1, 1]} : vector<8x512xf32> to vector<8x128xf32>
    %403 = arith.negf %402 : vector<8x128xf32>
    %404 = math.exp %403 : vector<8x128xf32>
    %cst_111 = arith.constant 1.000000e+00 : f32
    %405 = vector.broadcast %cst_111 : f32 to vector<8x128xf32>
    %406 = arith.addf %405, %404 : vector<8x128xf32>
    %407 = arith.divf %405, %406 : vector<8x128xf32>
    %408 = vector.extract_strided_slice %395 {offsets = [0, 256], sizes = [8, 128], strides = [1, 1]} : vector<8x512xf32> to vector<8x128xf32>
    %409 = math.tanh %408 : vector<8x128xf32>
    %410 = vector.extract_strided_slice %395 {offsets = [0, 384], sizes = [8, 128], strides = [1, 1]} : vector<8x512xf32> to vector<8x128xf32>
    %411 = arith.negf %410 : vector<8x128xf32>
    %412 = math.exp %411 : vector<8x128xf32>
    %cst_112 = arith.constant 1.000000e+00 : f32
    %413 = vector.broadcast %cst_112 : f32 to vector<8x128xf32>
    %414 = arith.addf %413, %412 : vector<8x128xf32>
    %415 = arith.divf %413, %414 : vector<8x128xf32>
    %416 = arith.mulf %407, %384 : vector<8x128xf32>
    %417 = arith.mulf %401, %409 : vector<8x128xf32>
    %418 = arith.addf %416, %417 : vector<8x128xf32>
    %419 = math.tanh %418 : vector<8x128xf32>
    %420 = arith.mulf %415, %419 : vector<8x128xf32>
    %421 = arith.index_cast %c11_i32 : i32 to index
    %c0_113 = arith.constant 0 : index
    %c0_114 = arith.constant 0 : index
    %422 = vector.load %arg18[%421, %c0_113, %c0_114] : memref<16x8x128xf32, #tpu.memory_space<vmem>>, vector<1x8x128xf32>
    %423 = vector.shape_cast %422 : vector<1x8x128xf32> to vector<8x128xf32>
    %424 = vector.shape_cast %420 : vector<8x128xf32> to vector<1x8x128xf32>
    tpu.vector_store %arg18[%421, %c0_113, %c0_114], %424 {strides = array<i32>} : memref<16x8x128xf32, #tpu.memory_space<vmem>>, vector<1x8x128xf32>,
    %c12_i32 = arith.constant 12 : i32
    %425 = arith.index_cast %c12_i32 : i32 to index
    %c0_115 = arith.constant 0 : index
    %c0_116 = arith.constant 0 : index
    %426 = vector.load %arg19[%425, %c0_115, %c0_116] : memref<16x8x512xf32, #tpu.memory_space<vmem>>, vector<1x8x512xf32>
    %427 = vector.shape_cast %426 : vector<1x8x512xf32> to vector<8x512xf32>
    %cst_117 = arith.constant dense<0.000000e+00> : vector<8x512xf32>
    %428 = tpu.matmul %420, %4, %cst_117 {dimension_numbers = #tpu.dot_dimension_numbers<[1], [0], [0], [1], [0, 0, 1, 1], [], []>} : vector<8x128xf32>, vector<128x512xf32>, vector<8x512xf32> -> vector<8x512xf32>
    %429 = arith.addf %427, %428 : vector<8x512xf32>
    %430 = vector.extract_strided_slice %429 {offsets = [0, 0], sizes = [8, 128], strides = [1, 1]} : vector<8x512xf32> to vector<8x128xf32>
    %431 = arith.negf %430 : vector<8x128xf32>
    %432 = math.exp %431 : vector<8x128xf32>
    %cst_118 = arith.constant 1.000000e+00 : f32
    %433 = vector.broadcast %cst_118 : f32 to vector<8x128xf32>
    %434 = arith.addf %433, %432 : vector<8x128xf32>
    %435 = arith.divf %433, %434 : vector<8x128xf32>
    %436 = vector.extract_strided_slice %429 {offsets = [0, 128], sizes = [8, 128], strides = [1, 1]} : vector<8x512xf32> to vector<8x128xf32>
    %437 = arith.negf %436 : vector<8x128xf32>
    %438 = math.exp %437 : vector<8x128xf32>
    %cst_119 = arith.constant 1.000000e+00 : f32
    %439 = vector.broadcast %cst_119 : f32 to vector<8x128xf32>
    %440 = arith.addf %439, %438 : vector<8x128xf32>
    %441 = arith.divf %439, %440 : vector<8x128xf32>
    %442 = vector.extract_strided_slice %429 {offsets = [0, 256], sizes = [8, 128], strides = [1, 1]} : vector<8x512xf32> to vector<8x128xf32>
    %443 = math.tanh %442 : vector<8x128xf32>
    %444 = vector.extract_strided_slice %429 {offsets = [0, 384], sizes = [8, 128], strides = [1, 1]} : vector<8x512xf32> to vector<8x128xf32>
    %445 = arith.negf %444 : vector<8x128xf32>
    %446 = math.exp %445 : vector<8x128xf32>
    %cst_120 = arith.constant 1.000000e+00 : f32
    %447 = vector.broadcast %cst_120 : f32 to vector<8x128xf32>
    %448 = arith.addf %447, %446 : vector<8x128xf32>
    %449 = arith.divf %447, %448 : vector<8x128xf32>
    %450 = arith.mulf %441, %418 : vector<8x128xf32>
    %451 = arith.mulf %435, %443 : vector<8x128xf32>
    %452 = arith.addf %450, %451 : vector<8x128xf32>
    %453 = math.tanh %452 : vector<8x128xf32>
    %454 = arith.mulf %449, %453 : vector<8x128xf32>
    %455 = arith.index_cast %c12_i32 : i32 to index
    %c0_121 = arith.constant 0 : index
    %c0_122 = arith.constant 0 : index
    %456 = vector.load %arg18[%455, %c0_121, %c0_122] : memref<16x8x128xf32, #tpu.memory_space<vmem>>, vector<1x8x128xf32>
    %457 = vector.shape_cast %456 : vector<1x8x128xf32> to vector<8x128xf32>
    %458 = vector.shape_cast %454 : vector<8x128xf32> to vector<1x8x128xf32>
    tpu.vector_store %arg18[%455, %c0_121, %c0_122], %458 {strides = array<i32>} : memref<16x8x128xf32, #tpu.memory_space<vmem>>, vector<1x8x128xf32>,
    %c13_i32 = arith.constant 13 : i32
    %459 = arith.index_cast %c13_i32 : i32 to index
    %c0_123 = arith.constant 0 : index
    %c0_124 = arith.constant 0 : index
    %460 = vector.load %arg19[%459, %c0_123, %c0_124] : memref<16x8x512xf32, #tpu.memory_space<vmem>>, vector<1x8x512xf32>
    %461 = vector.shape_cast %460 : vector<1x8x512xf32> to vector<8x512xf32>
    %cst_125 = arith.constant dense<0.000000e+00> : vector<8x512xf32>
    %462 = tpu.matmul %454, %4, %cst_125 {dimension_numbers = #tpu.dot_dimension_numbers<[1], [0], [0], [1], [0, 0, 1, 1], [], []>} : vector<8x128xf32>, vector<128x512xf32>, vector<8x512xf32> -> vector<8x512xf32>
    %463 = arith.addf %461, %462 : vector<8x512xf32>
    %464 = vector.extract_strided_slice %463 {offsets = [0, 0], sizes = [8, 128], strides = [1, 1]} : vector<8x512xf32> to vector<8x128xf32>
    %465 = arith.negf %464 : vector<8x128xf32>
    %466 = math.exp %465 : vector<8x128xf32>
    %cst_126 = arith.constant 1.000000e+00 : f32
    %467 = vector.broadcast %cst_126 : f32 to vector<8x128xf32>
    %468 = arith.addf %467, %466 : vector<8x128xf32>
    %469 = arith.divf %467, %468 : vector<8x128xf32>
    %470 = vector.extract_strided_slice %463 {offsets = [0, 128], sizes = [8, 128], strides = [1, 1]} : vector<8x512xf32> to vector<8x128xf32>
    %471 = arith.negf %470 : vector<8x128xf32>
    %472 = math.exp %471 : vector<8x128xf32>
    %cst_127 = arith.constant 1.000000e+00 : f32
    %473 = vector.broadcast %cst_127 : f32 to vector<8x128xf32>
    %474 = arith.addf %473, %472 : vector<8x128xf32>
    %475 = arith.divf %473, %474 : vector<8x128xf32>
    %476 = vector.extract_strided_slice %463 {offsets = [0, 256], sizes = [8, 128], strides = [1, 1]} : vector<8x512xf32> to vector<8x128xf32>
    %477 = math.tanh %476 : vector<8x128xf32>
    %478 = vector.extract_strided_slice %463 {offsets = [0, 384], sizes = [8, 128], strides = [1, 1]} : vector<8x512xf32> to vector<8x128xf32>
    %479 = arith.negf %478 : vector<8x128xf32>
    %480 = math.exp %479 : vector<8x128xf32>
    %cst_128 = arith.constant 1.000000e+00 : f32
    %481 = vector.broadcast %cst_128 : f32 to vector<8x128xf32>
    %482 = arith.addf %481, %480 : vector<8x128xf32>
    %483 = arith.divf %481, %482 : vector<8x128xf32>
    %484 = arith.mulf %475, %452 : vector<8x128xf32>
    %485 = arith.mulf %469, %477 : vector<8x128xf32>
    %486 = arith.addf %484, %485 : vector<8x128xf32>
    %487 = math.tanh %486 : vector<8x128xf32>
    %488 = arith.mulf %483, %487 : vector<8x128xf32>
    %489 = arith.index_cast %c13_i32 : i32 to index
    %c0_129 = arith.constant 0 : index
    %c0_130 = arith.constant 0 : index
    %490 = vector.load %arg18[%489, %c0_129, %c0_130] : memref<16x8x128xf32, #tpu.memory_space<vmem>>, vector<1x8x128xf32>
    %491 = vector.shape_cast %490 : vector<1x8x128xf32> to vector<8x128xf32>
    %492 = vector.shape_cast %488 : vector<8x128xf32> to vector<1x8x128xf32>
    tpu.vector_store %arg18[%489, %c0_129, %c0_130], %492 {strides = array<i32>} : memref<16x8x128xf32, #tpu.memory_space<vmem>>, vector<1x8x128xf32>,
    %c14_i32 = arith.constant 14 : i32
    %493 = arith.index_cast %c14_i32 : i32 to index
    %c0_131 = arith.constant 0 : index
    %c0_132 = arith.constant 0 : index
    %494 = vector.load %arg19[%493, %c0_131, %c0_132] : memref<16x8x512xf32, #tpu.memory_space<vmem>>, vector<1x8x512xf32>
    %495 = vector.shape_cast %494 : vector<1x8x512xf32> to vector<8x512xf32>
    %cst_133 = arith.constant dense<0.000000e+00> : vector<8x512xf32>
    %496 = tpu.matmul %488, %4, %cst_133 {dimension_numbers = #tpu.dot_dimension_numbers<[1], [0], [0], [1], [0, 0, 1, 1], [], []>} : vector<8x128xf32>, vector<128x512xf32>, vector<8x512xf32> -> vector<8x512xf32>
    %497 = arith.addf %495, %496 : vector<8x512xf32>
    %498 = vector.extract_strided_slice %497 {offsets = [0, 0], sizes = [8, 128], strides = [1, 1]} : vector<8x512xf32> to vector<8x128xf32>
    %499 = arith.negf %498 : vector<8x128xf32>
    %500 = math.exp %499 : vector<8x128xf32>
    %cst_134 = arith.constant 1.000000e+00 : f32
    %501 = vector.broadcast %cst_134 : f32 to vector<8x128xf32>
    %502 = arith.addf %501, %500 : vector<8x128xf32>
    %503 = arith.divf %501, %502 : vector<8x128xf32>
    %504 = vector.extract_strided_slice %497 {offsets = [0, 128], sizes = [8, 128], strides = [1, 1]} : vector<8x512xf32> to vector<8x128xf32>
    %505 = arith.negf %504 : vector<8x128xf32>
    %506 = math.exp %505 : vector<8x128xf32>
    %cst_135 = arith.constant 1.000000e+00 : f32
    %507 = vector.broadcast %cst_135 : f32 to vector<8x128xf32>
    %508 = arith.addf %507, %506 : vector<8x128xf32>
    %509 = arith.divf %507, %508 : vector<8x128xf32>
    %510 = vector.extract_strided_slice %497 {offsets = [0, 256], sizes = [8, 128], strides = [1, 1]} : vector<8x512xf32> to vector<8x128xf32>
    %511 = math.tanh %510 : vector<8x128xf32>
    %512 = vector.extract_strided_slice %497 {offsets = [0, 384], sizes = [8, 128], strides = [1, 1]} : vector<8x512xf32> to vector<8x128xf32>
    %513 = arith.negf %512 : vector<8x128xf32>
    %514 = math.exp %513 : vector<8x128xf32>
    %cst_136 = arith.constant 1.000000e+00 : f32
    %515 = vector.broadcast %cst_136 : f32 to vector<8x128xf32>
    %516 = arith.addf %515, %514 : vector<8x128xf32>
    %517 = arith.divf %515, %516 : vector<8x128xf32>
    %518 = arith.mulf %509, %486 : vector<8x128xf32>
    %519 = arith.mulf %503, %511 : vector<8x128xf32>
    %520 = arith.addf %518, %519 : vector<8x128xf32>
    %521 = math.tanh %520 : vector<8x128xf32>
    %522 = arith.mulf %517, %521 : vector<8x128xf32>
    %523 = arith.index_cast %c14_i32 : i32 to index
    %c0_137 = arith.constant 0 : index
    %c0_138 = arith.constant 0 : index
    %524 = vector.load %arg18[%523, %c0_137, %c0_138] : memref<16x8x128xf32, #tpu.memory_space<vmem>>, vector<1x8x128xf32>
    %525 = vector.shape_cast %524 : vector<1x8x128xf32> to vector<8x128xf32>
    %526 = vector.shape_cast %522 : vector<8x128xf32> to vector<1x8x128xf32>
    tpu.vector_store %arg18[%523, %c0_137, %c0_138], %526 {strides = array<i32>} : memref<16x8x128xf32, #tpu.memory_space<vmem>>, vector<1x8x128xf32>,
    %c15_i32 = arith.constant 15 : i32
    %527 = arith.index_cast %c15_i32 : i32 to index
    %c0_139 = arith.constant 0 : index
    %c0_140 = arith.constant 0 : index
    %528 = vector.load %arg19[%527, %c0_139, %c0_140] : memref<16x8x512xf32, #tpu.memory_space<vmem>>, vector<1x8x512xf32>
    %529 = vector.shape_cast %528 : vector<1x8x512xf32> to vector<8x512xf32>
    %cst_141 = arith.constant dense<0.000000e+00> : vector<8x512xf32>
    %530 = tpu.matmul %522, %4, %cst_141 {dimension_numbers = #tpu.dot_dimension_numbers<[1], [0], [0], [1], [0, 0, 1, 1], [], []>} : vector<8x128xf32>, vector<128x512xf32>, vector<8x512xf32> -> vector<8x512xf32>
    %531 = arith.addf %529, %530 : vector<8x512xf32>
    %532 = vector.extract_strided_slice %531 {offsets = [0, 0], sizes = [8, 128], strides = [1, 1]} : vector<8x512xf32> to vector<8x128xf32>
    %533 = arith.negf %532 : vector<8x128xf32>
    %534 = math.exp %533 : vector<8x128xf32>
    %cst_142 = arith.constant 1.000000e+00 : f32
    %535 = vector.broadcast %cst_142 : f32 to vector<8x128xf32>
    %536 = arith.addf %535, %534 : vector<8x128xf32>
    %537 = arith.divf %535, %536 : vector<8x128xf32>
    %538 = vector.extract_strided_slice %531 {offsets = [0, 128], sizes = [8, 128], strides = [1, 1]} : vector<8x512xf32> to vector<8x128xf32>
    %539 = arith.negf %538 : vector<8x128xf32>
    %540 = math.exp %539 : vector<8x128xf32>
    %cst_143 = arith.constant 1.000000e+00 : f32
    %541 = vector.broadcast %cst_143 : f32 to vector<8x128xf32>
    %542 = arith.addf %541, %540 : vector<8x128xf32>
    %543 = arith.divf %541, %542 : vector<8x128xf32>
    %544 = vector.extract_strided_slice %531 {offsets = [0, 256], sizes = [8, 128], strides = [1, 1]} : vector<8x512xf32> to vector<8x128xf32>
    %545 = math.tanh %544 : vector<8x128xf32>
    %546 = vector.extract_strided_slice %531 {offsets = [0, 384], sizes = [8, 128], strides = [1, 1]} : vector<8x512xf32> to vector<8x128xf32>
    %547 = arith.negf %546 : vector<8x128xf32>
    %548 = math.exp %547 : vector<8x128xf32>
    %cst_144 = arith.constant 1.000000e+00 : f32
    %549 = vector.broadcast %cst_144 : f32 to vector<8x128xf32>
    %550 = arith.addf %549, %548 : vector<8x128xf32>
    %551 = arith.divf %549, %550 : vector<8x128xf32>
    %552 = arith.mulf %543, %520 : vector<8x128xf32>
    %553 = arith.mulf %537, %545 : vector<8x128xf32>
    %554 = arith.addf %552, %553 : vector<8x128xf32>
    %555 = math.tanh %554 : vector<8x128xf32>
    %556 = arith.mulf %551, %555 : vector<8x128xf32>
    %557 = arith.index_cast %c15_i32 : i32 to index
    %c0_145 = arith.constant 0 : index
    %c0_146 = arith.constant 0 : index
    %558 = vector.load %arg18[%557, %c0_145, %c0_146] : memref<16x8x128xf32, #tpu.memory_space<vmem>>, vector<1x8x128xf32>
    %559 = vector.shape_cast %558 : vector<1x8x128xf32> to vector<8x128xf32>
    %560 = vector.shape_cast %556 : vector<8x128xf32> to vector<1x8x128xf32>
    tpu.vector_store %arg18[%557, %c0_145, %c0_146], %560 {strides = array<i32>} : memref<16x8x128xf32, #tpu.memory_space<vmem>>, vector<1x8x128xf32>,
    %c16_i32 = arith.constant 16 : i32
    %c0_147 = arith.constant 0 : index
    %c0_148 = arith.constant 0 : index
    %c0_149 = arith.constant 0 : index
    %561 = vector.load %arg16[%c0_147, %c0_148, %c0_149] : memref<2x8x128xf32, #tpu.memory_space<vmem>>, vector<1x8x128xf32>
    %562 = vector.shape_cast %561 : vector<1x8x128xf32> to vector<8x128xf32>
    %563 = vector.shape_cast %556 : vector<8x128xf32> to vector<1x8x128xf32>
    tpu.vector_store %arg16[%c0_147, %c0_148, %c0_149], %563 {strides = array<i32>} : memref<2x8x128xf32, #tpu.memory_space<vmem>>, vector<1x8x128xf32>,
    %c0_150 = arith.constant 0 : index
    %c0_151 = arith.constant 0 : index
    %c0_152 = arith.constant 0 : index
    %564 = vector.load %arg17[%c0_150, %c0_151, %c0_152] : memref<2x8x128xf32, #tpu.memory_space<vmem>>, vector<1x8x128xf32>
    %565 = vector.shape_cast %564 : vector<1x8x128xf32> to vector<8x128xf32>
    %566 = vector.shape_cast %554 : vector<8x128xf32> to vector<1x8x128xf32>
    tpu.vector_store %arg17[%c0_150, %c0_151, %c0_152], %566 {strides = array<i32>} : memref<2x8x128xf32, #tpu.memory_space<vmem>>, vector<1x8x128xf32>,
    %c0_153 = arith.constant 0 : index
    %c0_154 = arith.constant 0 : index
    %567 = vector.load %arg6[%c0_153, %c0_154] : memref<128x512xf32, #tpu.memory_space<vmem>>, vector<128x512xf32>
    %c0_155 = arith.constant 0 : index
    %c0_156 = arith.constant 0 : index
    %568 = vector.load %arg7[%c0_155, %c0_156] : memref<128x512xf32, #tpu.memory_space<vmem>>, vector<128x512xf32>
    %c0_157 = arith.constant 0 : index
    %c0_158 = arith.constant 0 : index
    %c0_159 = arith.constant 0 : index
    %569 = vector.load %arg18[%c0_157, %c0_158, %c0_159] : memref<16x8x128xf32, #tpu.memory_space<vmem>>, vector<16x8x128xf32>
    %570 = vector.shape_cast %569 : vector<16x8x128xf32> to vector<128x128xf32>
    %cst_160 = arith.constant dense<0.000000e+00> : vector<128x512xf32>
    %571 = tpu.matmul %570, %567, %cst_160 {dimension_numbers = #tpu.dot_dimension_numbers<[1], [0], [0], [1], [0, 0, 1, 1], [], []>} : vector<128x128xf32>, vector<128x512xf32>, vector<128x512xf32> -> vector<128x512xf32>
    %c0_161 = arith.constant 0 : index
    %c0_162 = arith.constant 0 : index
    %572 = vector.load %arg8[%c0_161, %c0_162] : memref<1x512xf32, #tpu.memory_space<vmem>>, vector<1x512xf32>
    %573 = vector.broadcast %572 : vector<1x512xf32> to vector<128x512xf32>
    %574 = arith.addf %571, %573 : vector<128x512xf32>
    %575 = vector.shape_cast %574 : vector<128x512xf32> to vector<16x8x512xf32>
    %c0_163 = arith.constant 0 : index
    %c0_164 = arith.constant 0 : index
    %c0_165 = arith.constant 0 : index
    %576 = vector.load %arg19[%c0_163, %c0_164, %c0_165] : memref<16x8x512xf32, #tpu.memory_space<vmem>>, vector<16x8x512xf32>
    tpu.vector_store %arg19[%c0_163, %c0_164, %c0_165], %575 {strides = array<i32>} : memref<16x8x512xf32, #tpu.memory_space<vmem>>, vector<16x8x512xf32>,
    %c1 = arith.constant 1 : index
    %c0_166 = arith.constant 0 : index
    %c0_167 = arith.constant 0 : index
    %577 = vector.load %arg16[%c1, %c0_166, %c0_167] : memref<2x8x128xf32, #tpu.memory_space<vmem>>, vector<1x8x128xf32>
    %578 = vector.shape_cast %577 : vector<1x8x128xf32> to vector<8x128xf32>
    %c1_168 = arith.constant 1 : index
    %c0_169 = arith.constant 0 : index
    %c0_170 = arith.constant 0 : index
    %579 = vector.load %arg17[%c1_168, %c0_169, %c0_170] : memref<2x8x128xf32, #tpu.memory_space<vmem>>, vector<1x8x128xf32>
    %580 = vector.shape_cast %579 : vector<1x8x128xf32> to vector<8x128xf32>
    %c0_i32_171 = arith.constant 0 : i32
    %581 = arith.index_cast %c0_i32_171 : i32 to index
    %c0_172 = arith.constant 0 : index
    %c0_173 = arith.constant 0 : index
    %582 = vector.load %arg19[%581, %c0_172, %c0_173] : memref<16x8x512xf32, #tpu.memory_space<vmem>>, vector<1x8x512xf32>
    %583 = vector.shape_cast %582 : vector<1x8x512xf32> to vector<8x512xf32>
    %cst_174 = arith.constant dense<0.000000e+00> : vector<8x512xf32>
    %584 = tpu.matmul %578, %568, %cst_174 {dimension_numbers = #tpu.dot_dimension_numbers<[1], [0], [0], [1], [0, 0, 1, 1], [], []>} : vector<8x128xf32>, vector<128x512xf32>, vector<8x512xf32> -> vector<8x512xf32>
    %585 = arith.addf %583, %584 : vector<8x512xf32>
    %586 = vector.extract_strided_slice %585 {offsets = [0, 0], sizes = [8, 128], strides = [1, 1]} : vector<8x512xf32> to vector<8x128xf32>
    %587 = arith.negf %586 : vector<8x128xf32>
    %588 = math.exp %587 : vector<8x128xf32>
    %cst_175 = arith.constant 1.000000e+00 : f32
    %589 = vector.broadcast %cst_175 : f32 to vector<8x128xf32>
    %590 = arith.addf %589, %588 : vector<8x128xf32>
    %591 = arith.divf %589, %590 : vector<8x128xf32>
    %592 = vector.extract_strided_slice %585 {offsets = [0, 128], sizes = [8, 128], strides = [1, 1]} : vector<8x512xf32> to vector<8x128xf32>
    %593 = arith.negf %592 : vector<8x128xf32>
    %594 = math.exp %593 : vector<8x128xf32>
    %cst_176 = arith.constant 1.000000e+00 : f32
    %595 = vector.broadcast %cst_176 : f32 to vector<8x128xf32>
    %596 = arith.addf %595, %594 : vector<8x128xf32>
    %597 = arith.divf %595, %596 : vector<8x128xf32>
    %598 = vector.extract_strided_slice %585 {offsets = [0, 256], sizes = [8, 128], strides = [1, 1]} : vector<8x512xf32> to vector<8x128xf32>
    %599 = math.tanh %598 : vector<8x128xf32>
    %600 = vector.extract_strided_slice %585 {offsets = [0, 384], sizes = [8, 128], strides = [1, 1]} : vector<8x512xf32> to vector<8x128xf32>
    %601 = arith.negf %600 : vector<8x128xf32>
    %602 = math.exp %601 : vector<8x128xf32>
    %cst_177 = arith.constant 1.000000e+00 : f32
    %603 = vector.broadcast %cst_177 : f32 to vector<8x128xf32>
    %604 = arith.addf %603, %602 : vector<8x128xf32>
    %605 = arith.divf %603, %604 : vector<8x128xf32>
    %606 = arith.mulf %597, %580 : vector<8x128xf32>
    %607 = arith.mulf %591, %599 : vector<8x128xf32>
    %608 = arith.addf %606, %607 : vector<8x128xf32>
    %609 = math.tanh %608 : vector<8x128xf32>
    %610 = arith.mulf %605, %609 : vector<8x128xf32>
    %611 = arith.index_cast %c0_i32_171 : i32 to index
    %c0_178 = arith.constant 0 : index
    %c0_179 = arith.constant 0 : index
    %612 = vector.load %arg18[%611, %c0_178, %c0_179] : memref<16x8x128xf32, #tpu.memory_space<vmem>>, vector<1x8x128xf32>
    %613 = vector.shape_cast %612 : vector<1x8x128xf32> to vector<8x128xf32>
    %614 = vector.shape_cast %610 : vector<8x128xf32> to vector<1x8x128xf32>
    tpu.vector_store %arg18[%611, %c0_178, %c0_179], %614 {strides = array<i32>} : memref<16x8x128xf32, #tpu.memory_space<vmem>>, vector<1x8x128xf32>,
    %c1_i32_180 = arith.constant 1 : i32
    %615 = arith.index_cast %c1_i32_180 : i32 to index
    %c0_181 = arith.constant 0 : index
    %c0_182 = arith.constant 0 : index
    %616 = vector.load %arg19[%615, %c0_181, %c0_182] : memref<16x8x512xf32, #tpu.memory_space<vmem>>, vector<1x8x512xf32>
    %617 = vector.shape_cast %616 : vector<1x8x512xf32> to vector<8x512xf32>
    %cst_183 = arith.constant dense<0.000000e+00> : vector<8x512xf32>
    %618 = tpu.matmul %610, %568, %cst_183 {dimension_numbers = #tpu.dot_dimension_numbers<[1], [0], [0], [1], [0, 0, 1, 1], [], []>} : vector<8x128xf32>, vector<128x512xf32>, vector<8x512xf32> -> vector<8x512xf32>
    %619 = arith.addf %617, %618 : vector<8x512xf32>
    %620 = vector.extract_strided_slice %619 {offsets = [0, 0], sizes = [8, 128], strides = [1, 1]} : vector<8x512xf32> to vector<8x128xf32>
    %621 = arith.negf %620 : vector<8x128xf32>
    %622 = math.exp %621 : vector<8x128xf32>
    %cst_184 = arith.constant 1.000000e+00 : f32
    %623 = vector.broadcast %cst_184 : f32 to vector<8x128xf32>
    %624 = arith.addf %623, %622 : vector<8x128xf32>
    %625 = arith.divf %623, %624 : vector<8x128xf32>
    %626 = vector.extract_strided_slice %619 {offsets = [0, 128], sizes = [8, 128], strides = [1, 1]} : vector<8x512xf32> to vector<8x128xf32>
    %627 = arith.negf %626 : vector<8x128xf32>
    %628 = math.exp %627 : vector<8x128xf32>
    %cst_185 = arith.constant 1.000000e+00 : f32
    %629 = vector.broadcast %cst_185 : f32 to vector<8x128xf32>
    %630 = arith.addf %629, %628 : vector<8x128xf32>
    %631 = arith.divf %629, %630 : vector<8x128xf32>
    %632 = vector.extract_strided_slice %619 {offsets = [0, 256], sizes = [8, 128], strides = [1, 1]} : vector<8x512xf32> to vector<8x128xf32>
    %633 = math.tanh %632 : vector<8x128xf32>
    %634 = vector.extract_strided_slice %619 {offsets = [0, 384], sizes = [8, 128], strides = [1, 1]} : vector<8x512xf32> to vector<8x128xf32>
    %635 = arith.negf %634 : vector<8x128xf32>
    %636 = math.exp %635 : vector<8x128xf32>
    %cst_186 = arith.constant 1.000000e+00 : f32
    %637 = vector.broadcast %cst_186 : f32 to vector<8x128xf32>
    %638 = arith.addf %637, %636 : vector<8x128xf32>
    %639 = arith.divf %637, %638 : vector<8x128xf32>
    %640 = arith.mulf %631, %608 : vector<8x128xf32>
    %641 = arith.mulf %625, %633 : vector<8x128xf32>
    %642 = arith.addf %640, %641 : vector<8x128xf32>
    %643 = math.tanh %642 : vector<8x128xf32>
    %644 = arith.mulf %639, %643 : vector<8x128xf32>
    %645 = arith.index_cast %c1_i32_180 : i32 to index
    %c0_187 = arith.constant 0 : index
    %c0_188 = arith.constant 0 : index
    %646 = vector.load %arg18[%645, %c0_187, %c0_188] : memref<16x8x128xf32, #tpu.memory_space<vmem>>, vector<1x8x128xf32>
    %647 = vector.shape_cast %646 : vector<1x8x128xf32> to vector<8x128xf32>
    %648 = vector.shape_cast %644 : vector<8x128xf32> to vector<1x8x128xf32>
    tpu.vector_store %arg18[%645, %c0_187, %c0_188], %648 {strides = array<i32>} : memref<16x8x128xf32, #tpu.memory_space<vmem>>, vector<1x8x128xf32>,
    %c2_i32_189 = arith.constant 2 : i32
    %649 = arith.index_cast %c2_i32_189 : i32 to index
    %c0_190 = arith.constant 0 : index
    %c0_191 = arith.constant 0 : index
    %650 = vector.load %arg19[%649, %c0_190, %c0_191] : memref<16x8x512xf32, #tpu.memory_space<vmem>>, vector<1x8x512xf32>
    %651 = vector.shape_cast %650 : vector<1x8x512xf32> to vector<8x512xf32>
    %cst_192 = arith.constant dense<0.000000e+00> : vector<8x512xf32>
    %652 = tpu.matmul %644, %568, %cst_192 {dimension_numbers = #tpu.dot_dimension_numbers<[1], [0], [0], [1], [0, 0, 1, 1], [], []>} : vector<8x128xf32>, vector<128x512xf32>, vector<8x512xf32> -> vector<8x512xf32>
    %653 = arith.addf %651, %652 : vector<8x512xf32>
    %654 = vector.extract_strided_slice %653 {offsets = [0, 0], sizes = [8, 128], strides = [1, 1]} : vector<8x512xf32> to vector<8x128xf32>
    %655 = arith.negf %654 : vector<8x128xf32>
    %656 = math.exp %655 : vector<8x128xf32>
    %cst_193 = arith.constant 1.000000e+00 : f32
    %657 = vector.broadcast %cst_193 : f32 to vector<8x128xf32>
    %658 = arith.addf %657, %656 : vector<8x128xf32>
    %659 = arith.divf %657, %658 : vector<8x128xf32>
    %660 = vector.extract_strided_slice %653 {offsets = [0, 128], sizes = [8, 128], strides = [1, 1]} : vector<8x512xf32> to vector<8x128xf32>
    %661 = arith.negf %660 : vector<8x128xf32>
    %662 = math.exp %661 : vector<8x128xf32>
    %cst_194 = arith.constant 1.000000e+00 : f32
    %663 = vector.broadcast %cst_194 : f32 to vector<8x128xf32>
    %664 = arith.addf %663, %662 : vector<8x128xf32>
    %665 = arith.divf %663, %664 : vector<8x128xf32>
    %666 = vector.extract_strided_slice %653 {offsets = [0, 256], sizes = [8, 128], strides = [1, 1]} : vector<8x512xf32> to vector<8x128xf32>
    %667 = math.tanh %666 : vector<8x128xf32>
    %668 = vector.extract_strided_slice %653 {offsets = [0, 384], sizes = [8, 128], strides = [1, 1]} : vector<8x512xf32> to vector<8x128xf32>
    %669 = arith.negf %668 : vector<8x128xf32>
    %670 = math.exp %669 : vector<8x128xf32>
    %cst_195 = arith.constant 1.000000e+00 : f32
    %671 = vector.broadcast %cst_195 : f32 to vector<8x128xf32>
    %672 = arith.addf %671, %670 : vector<8x128xf32>
    %673 = arith.divf %671, %672 : vector<8x128xf32>
    %674 = arith.mulf %665, %642 : vector<8x128xf32>
    %675 = arith.mulf %659, %667 : vector<8x128xf32>
    %676 = arith.addf %674, %675 : vector<8x128xf32>
    %677 = math.tanh %676 : vector<8x128xf32>
    %678 = arith.mulf %673, %677 : vector<8x128xf32>
    %679 = arith.index_cast %c2_i32_189 : i32 to index
    %c0_196 = arith.constant 0 : index
    %c0_197 = arith.constant 0 : index
    %680 = vector.load %arg18[%679, %c0_196, %c0_197] : memref<16x8x128xf32, #tpu.memory_space<vmem>>, vector<1x8x128xf32>
    %681 = vector.shape_cast %680 : vector<1x8x128xf32> to vector<8x128xf32>
    %682 = vector.shape_cast %678 : vector<8x128xf32> to vector<1x8x128xf32>
    tpu.vector_store %arg18[%679, %c0_196, %c0_197], %682 {strides = array<i32>} : memref<16x8x128xf32, #tpu.memory_space<vmem>>, vector<1x8x128xf32>,
    %c3_i32_198 = arith.constant 3 : i32
    %683 = arith.index_cast %c3_i32_198 : i32 to index
    %c0_199 = arith.constant 0 : index
    %c0_200 = arith.constant 0 : index
    %684 = vector.load %arg19[%683, %c0_199, %c0_200] : memref<16x8x512xf32, #tpu.memory_space<vmem>>, vector<1x8x512xf32>
    %685 = vector.shape_cast %684 : vector<1x8x512xf32> to vector<8x512xf32>
    %cst_201 = arith.constant dense<0.000000e+00> : vector<8x512xf32>
    %686 = tpu.matmul %678, %568, %cst_201 {dimension_numbers = #tpu.dot_dimension_numbers<[1], [0], [0], [1], [0, 0, 1, 1], [], []>} : vector<8x128xf32>, vector<128x512xf32>, vector<8x512xf32> -> vector<8x512xf32>
    %687 = arith.addf %685, %686 : vector<8x512xf32>
    %688 = vector.extract_strided_slice %687 {offsets = [0, 0], sizes = [8, 128], strides = [1, 1]} : vector<8x512xf32> to vector<8x128xf32>
    %689 = arith.negf %688 : vector<8x128xf32>
    %690 = math.exp %689 : vector<8x128xf32>
    %cst_202 = arith.constant 1.000000e+00 : f32
    %691 = vector.broadcast %cst_202 : f32 to vector<8x128xf32>
    %692 = arith.addf %691, %690 : vector<8x128xf32>
    %693 = arith.divf %691, %692 : vector<8x128xf32>
    %694 = vector.extract_strided_slice %687 {offsets = [0, 128], sizes = [8, 128], strides = [1, 1]} : vector<8x512xf32> to vector<8x128xf32>
    %695 = arith.negf %694 : vector<8x128xf32>
    %696 = math.exp %695 : vector<8x128xf32>
    %cst_203 = arith.constant 1.000000e+00 : f32
    %697 = vector.broadcast %cst_203 : f32 to vector<8x128xf32>
    %698 = arith.addf %697, %696 : vector<8x128xf32>
    %699 = arith.divf %697, %698 : vector<8x128xf32>
    %700 = vector.extract_strided_slice %687 {offsets = [0, 256], sizes = [8, 128], strides = [1, 1]} : vector<8x512xf32> to vector<8x128xf32>
    %701 = math.tanh %700 : vector<8x128xf32>
    %702 = vector.extract_strided_slice %687 {offsets = [0, 384], sizes = [8, 128], strides = [1, 1]} : vector<8x512xf32> to vector<8x128xf32>
    %703 = arith.negf %702 : vector<8x128xf32>
    %704 = math.exp %703 : vector<8x128xf32>
    %cst_204 = arith.constant 1.000000e+00 : f32
    %705 = vector.broadcast %cst_204 : f32 to vector<8x128xf32>
    %706 = arith.addf %705, %704 : vector<8x128xf32>
    %707 = arith.divf %705, %706 : vector<8x128xf32>
    %708 = arith.mulf %699, %676 : vector<8x128xf32>
    %709 = arith.mulf %693, %701 : vector<8x128xf32>
    %710 = arith.addf %708, %709 : vector<8x128xf32>
    %711 = math.tanh %710 : vector<8x128xf32>
    %712 = arith.mulf %707, %711 : vector<8x128xf32>
    %713 = arith.index_cast %c3_i32_198 : i32 to index
    %c0_205 = arith.constant 0 : index
    %c0_206 = arith.constant 0 : index
    %714 = vector.load %arg18[%713, %c0_205, %c0_206] : memref<16x8x128xf32, #tpu.memory_space<vmem>>, vector<1x8x128xf32>
    %715 = vector.shape_cast %714 : vector<1x8x128xf32> to vector<8x128xf32>
    %716 = vector.shape_cast %712 : vector<8x128xf32> to vector<1x8x128xf32>
    tpu.vector_store %arg18[%713, %c0_205, %c0_206], %716 {strides = array<i32>} : memref<16x8x128xf32, #tpu.memory_space<vmem>>, vector<1x8x128xf32>,
    %c4_i32_207 = arith.constant 4 : i32
    %717 = arith.index_cast %c4_i32_207 : i32 to index
    %c0_208 = arith.constant 0 : index
    %c0_209 = arith.constant 0 : index
    %718 = vector.load %arg19[%717, %c0_208, %c0_209] : memref<16x8x512xf32, #tpu.memory_space<vmem>>, vector<1x8x512xf32>
    %719 = vector.shape_cast %718 : vector<1x8x512xf32> to vector<8x512xf32>
    %cst_210 = arith.constant dense<0.000000e+00> : vector<8x512xf32>
    %720 = tpu.matmul %712, %568, %cst_210 {dimension_numbers = #tpu.dot_dimension_numbers<[1], [0], [0], [1], [0, 0, 1, 1], [], []>} : vector<8x128xf32>, vector<128x512xf32>, vector<8x512xf32> -> vector<8x512xf32>
    %721 = arith.addf %719, %720 : vector<8x512xf32>
    %722 = vector.extract_strided_slice %721 {offsets = [0, 0], sizes = [8, 128], strides = [1, 1]} : vector<8x512xf32> to vector<8x128xf32>
    %723 = arith.negf %722 : vector<8x128xf32>
    %724 = math.exp %723 : vector<8x128xf32>
    %cst_211 = arith.constant 1.000000e+00 : f32
    %725 = vector.broadcast %cst_211 : f32 to vector<8x128xf32>
    %726 = arith.addf %725, %724 : vector<8x128xf32>
    %727 = arith.divf %725, %726 : vector<8x128xf32>
    %728 = vector.extract_strided_slice %721 {offsets = [0, 128], sizes = [8, 128], strides = [1, 1]} : vector<8x512xf32> to vector<8x128xf32>
    %729 = arith.negf %728 : vector<8x128xf32>
    %730 = math.exp %729 : vector<8x128xf32>
    %cst_212 = arith.constant 1.000000e+00 : f32
    %731 = vector.broadcast %cst_212 : f32 to vector<8x128xf32>
    %732 = arith.addf %731, %730 : vector<8x128xf32>
    %733 = arith.divf %731, %732 : vector<8x128xf32>
    %734 = vector.extract_strided_slice %721 {offsets = [0, 256], sizes = [8, 128], strides = [1, 1]} : vector<8x512xf32> to vector<8x128xf32>
    %735 = math.tanh %734 : vector<8x128xf32>
    %736 = vector.extract_strided_slice %721 {offsets = [0, 384], sizes = [8, 128], strides = [1, 1]} : vector<8x512xf32> to vector<8x128xf32>
    %737 = arith.negf %736 : vector<8x128xf32>
    %738 = math.exp %737 : vector<8x128xf32>
    %cst_213 = arith.constant 1.000000e+00 : f32
    %739 = vector.broadcast %cst_213 : f32 to vector<8x128xf32>
    %740 = arith.addf %739, %738 : vector<8x128xf32>
    %741 = arith.divf %739, %740 : vector<8x128xf32>
    %742 = arith.mulf %733, %710 : vector<8x128xf32>
    %743 = arith.mulf %727, %735 : vector<8x128xf32>
    %744 = arith.addf %742, %743 : vector<8x128xf32>
    %745 = math.tanh %744 : vector<8x128xf32>
    %746 = arith.mulf %741, %745 : vector<8x128xf32>
    %747 = arith.index_cast %c4_i32_207 : i32 to index
    %c0_214 = arith.constant 0 : index
    %c0_215 = arith.constant 0 : index
    %748 = vector.load %arg18[%747, %c0_214, %c0_215] : memref<16x8x128xf32, #tpu.memory_space<vmem>>, vector<1x8x128xf32>
    %749 = vector.shape_cast %748 : vector<1x8x128xf32> to vector<8x128xf32>
    %750 = vector.shape_cast %746 : vector<8x128xf32> to vector<1x8x128xf32>
    tpu.vector_store %arg18[%747, %c0_214, %c0_215], %750 {strides = array<i32>} : memref<16x8x128xf32, #tpu.memory_space<vmem>>, vector<1x8x128xf32>,
    %c5_i32_216 = arith.constant 5 : i32
    %751 = arith.index_cast %c5_i32_216 : i32 to index
    %c0_217 = arith.constant 0 : index
    %c0_218 = arith.constant 0 : index
    %752 = vector.load %arg19[%751, %c0_217, %c0_218] : memref<16x8x512xf32, #tpu.memory_space<vmem>>, vector<1x8x512xf32>
    %753 = vector.shape_cast %752 : vector<1x8x512xf32> to vector<8x512xf32>
    %cst_219 = arith.constant dense<0.000000e+00> : vector<8x512xf32>
    %754 = tpu.matmul %746, %568, %cst_219 {dimension_numbers = #tpu.dot_dimension_numbers<[1], [0], [0], [1], [0, 0, 1, 1], [], []>} : vector<8x128xf32>, vector<128x512xf32>, vector<8x512xf32> -> vector<8x512xf32>
    %755 = arith.addf %753, %754 : vector<8x512xf32>
    %756 = vector.extract_strided_slice %755 {offsets = [0, 0], sizes = [8, 128], strides = [1, 1]} : vector<8x512xf32> to vector<8x128xf32>
    %757 = arith.negf %756 : vector<8x128xf32>
    %758 = math.exp %757 : vector<8x128xf32>
    %cst_220 = arith.constant 1.000000e+00 : f32
    %759 = vector.broadcast %cst_220 : f32 to vector<8x128xf32>
    %760 = arith.addf %759, %758 : vector<8x128xf32>
    %761 = arith.divf %759, %760 : vector<8x128xf32>
    %762 = vector.extract_strided_slice %755 {offsets = [0, 128], sizes = [8, 128], strides = [1, 1]} : vector<8x512xf32> to vector<8x128xf32>
    %763 = arith.negf %762 : vector<8x128xf32>
    %764 = math.exp %763 : vector<8x128xf32>
    %cst_221 = arith.constant 1.000000e+00 : f32
    %765 = vector.broadcast %cst_221 : f32 to vector<8x128xf32>
    %766 = arith.addf %765, %764 : vector<8x128xf32>
    %767 = arith.divf %765, %766 : vector<8x128xf32>
    %768 = vector.extract_strided_slice %755 {offsets = [0, 256], sizes = [8, 128], strides = [1, 1]} : vector<8x512xf32> to vector<8x128xf32>
    %769 = math.tanh %768 : vector<8x128xf32>
    %770 = vector.extract_strided_slice %755 {offsets = [0, 384], sizes = [8, 128], strides = [1, 1]} : vector<8x512xf32> to vector<8x128xf32>
    %771 = arith.negf %770 : vector<8x128xf32>
    %772 = math.exp %771 : vector<8x128xf32>
    %cst_222 = arith.constant 1.000000e+00 : f32
    %773 = vector.broadcast %cst_222 : f32 to vector<8x128xf32>
    %774 = arith.addf %773, %772 : vector<8x128xf32>
    %775 = arith.divf %773, %774 : vector<8x128xf32>
    %776 = arith.mulf %767, %744 : vector<8x128xf32>
    %777 = arith.mulf %761, %769 : vector<8x128xf32>
    %778 = arith.addf %776, %777 : vector<8x128xf32>
    %779 = math.tanh %778 : vector<8x128xf32>
    %780 = arith.mulf %775, %779 : vector<8x128xf32>
    %781 = arith.index_cast %c5_i32_216 : i32 to index
    %c0_223 = arith.constant 0 : index
    %c0_224 = arith.constant 0 : index
    %782 = vector.load %arg18[%781, %c0_223, %c0_224] : memref<16x8x128xf32, #tpu.memory_space<vmem>>, vector<1x8x128xf32>
    %783 = vector.shape_cast %782 : vector<1x8x128xf32> to vector<8x128xf32>
    %784 = vector.shape_cast %780 : vector<8x128xf32> to vector<1x8x128xf32>
    tpu.vector_store %arg18[%781, %c0_223, %c0_224], %784 {strides = array<i32>} : memref<16x8x128xf32, #tpu.memory_space<vmem>>, vector<1x8x128xf32>,
    %c6_i32_225 = arith.constant 6 : i32
    %785 = arith.index_cast %c6_i32_225 : i32 to index
    %c0_226 = arith.constant 0 : index
    %c0_227 = arith.constant 0 : index
    %786 = vector.load %arg19[%785, %c0_226, %c0_227] : memref<16x8x512xf32, #tpu.memory_space<vmem>>, vector<1x8x512xf32>
    %787 = vector.shape_cast %786 : vector<1x8x512xf32> to vector<8x512xf32>
    %cst_228 = arith.constant dense<0.000000e+00> : vector<8x512xf32>
    %788 = tpu.matmul %780, %568, %cst_228 {dimension_numbers = #tpu.dot_dimension_numbers<[1], [0], [0], [1], [0, 0, 1, 1], [], []>} : vector<8x128xf32>, vector<128x512xf32>, vector<8x512xf32> -> vector<8x512xf32>
    %789 = arith.addf %787, %788 : vector<8x512xf32>
    %790 = vector.extract_strided_slice %789 {offsets = [0, 0], sizes = [8, 128], strides = [1, 1]} : vector<8x512xf32> to vector<8x128xf32>
    %791 = arith.negf %790 : vector<8x128xf32>
    %792 = math.exp %791 : vector<8x128xf32>
    %cst_229 = arith.constant 1.000000e+00 : f32
    %793 = vector.broadcast %cst_229 : f32 to vector<8x128xf32>
    %794 = arith.addf %793, %792 : vector<8x128xf32>
    %795 = arith.divf %793, %794 : vector<8x128xf32>
    %796 = vector.extract_strided_slice %789 {offsets = [0, 128], sizes = [8, 128], strides = [1, 1]} : vector<8x512xf32> to vector<8x128xf32>
    %797 = arith.negf %796 : vector<8x128xf32>
    %798 = math.exp %797 : vector<8x128xf32>
    %cst_230 = arith.constant 1.000000e+00 : f32
    %799 = vector.broadcast %cst_230 : f32 to vector<8x128xf32>
    %800 = arith.addf %799, %798 : vector<8x128xf32>
    %801 = arith.divf %799, %800 : vector<8x128xf32>
    %802 = vector.extract_strided_slice %789 {offsets = [0, 256], sizes = [8, 128], strides = [1, 1]} : vector<8x512xf32> to vector<8x128xf32>
    %803 = math.tanh %802 : vector<8x128xf32>
    %804 = vector.extract_strided_slice %789 {offsets = [0, 384], sizes = [8, 128], strides = [1, 1]} : vector<8x512xf32> to vector<8x128xf32>
    %805 = arith.negf %804 : vector<8x128xf32>
    %806 = math.exp %805 : vector<8x128xf32>
    %cst_231 = arith.constant 1.000000e+00 : f32
    %807 = vector.broadcast %cst_231 : f32 to vector<8x128xf32>
    %808 = arith.addf %807, %806 : vector<8x128xf32>
    %809 = arith.divf %807, %808 : vector<8x128xf32>
    %810 = arith.mulf %801, %778 : vector<8x128xf32>
    %811 = arith.mulf %795, %803 : vector<8x128xf32>
    %812 = arith.addf %810, %811 : vector<8x128xf32>
    %813 = math.tanh %812 : vector<8x128xf32>
    %814 = arith.mulf %809, %813 : vector<8x128xf32>
    %815 = arith.index_cast %c6_i32_225 : i32 to index
    %c0_232 = arith.constant 0 : index
    %c0_233 = arith.constant 0 : index
    %816 = vector.load %arg18[%815, %c0_232, %c0_233] : memref<16x8x128xf32, #tpu.memory_space<vmem>>, vector<1x8x128xf32>
    %817 = vector.shape_cast %816 : vector<1x8x128xf32> to vector<8x128xf32>
    %818 = vector.shape_cast %814 : vector<8x128xf32> to vector<1x8x128xf32>
    tpu.vector_store %arg18[%815, %c0_232, %c0_233], %818 {strides = array<i32>} : memref<16x8x128xf32, #tpu.memory_space<vmem>>, vector<1x8x128xf32>,
    %c7_i32_234 = arith.constant 7 : i32
    %819 = arith.index_cast %c7_i32_234 : i32 to index
    %c0_235 = arith.constant 0 : index
    %c0_236 = arith.constant 0 : index
    %820 = vector.load %arg19[%819, %c0_235, %c0_236] : memref<16x8x512xf32, #tpu.memory_space<vmem>>, vector<1x8x512xf32>
    %821 = vector.shape_cast %820 : vector<1x8x512xf32> to vector<8x512xf32>
    %cst_237 = arith.constant dense<0.000000e+00> : vector<8x512xf32>
    %822 = tpu.matmul %814, %568, %cst_237 {dimension_numbers = #tpu.dot_dimension_numbers<[1], [0], [0], [1], [0, 0, 1, 1], [], []>} : vector<8x128xf32>, vector<128x512xf32>, vector<8x512xf32> -> vector<8x512xf32>
    %823 = arith.addf %821, %822 : vector<8x512xf32>
    %824 = vector.extract_strided_slice %823 {offsets = [0, 0], sizes = [8, 128], strides = [1, 1]} : vector<8x512xf32> to vector<8x128xf32>
    %825 = arith.negf %824 : vector<8x128xf32>
    %826 = math.exp %825 : vector<8x128xf32>
    %cst_238 = arith.constant 1.000000e+00 : f32
    %827 = vector.broadcast %cst_238 : f32 to vector<8x128xf32>
    %828 = arith.addf %827, %826 : vector<8x128xf32>
    %829 = arith.divf %827, %828 : vector<8x128xf32>
    %830 = vector.extract_strided_slice %823 {offsets = [0, 128], sizes = [8, 128], strides = [1, 1]} : vector<8x512xf32> to vector<8x128xf32>
    %831 = arith.negf %830 : vector<8x128xf32>
    %832 = math.exp %831 : vector<8x128xf32>
    %cst_239 = arith.constant 1.000000e+00 : f32
    %833 = vector.broadcast %cst_239 : f32 to vector<8x128xf32>
    %834 = arith.addf %833, %832 : vector<8x128xf32>
    %835 = arith.divf %833, %834 : vector<8x128xf32>
    %836 = vector.extract_strided_slice %823 {offsets = [0, 256], sizes = [8, 128], strides = [1, 1]} : vector<8x512xf32> to vector<8x128xf32>
    %837 = math.tanh %836 : vector<8x128xf32>
    %838 = vector.extract_strided_slice %823 {offsets = [0, 384], sizes = [8, 128], strides = [1, 1]} : vector<8x512xf32> to vector<8x128xf32>
    %839 = arith.negf %838 : vector<8x128xf32>
    %840 = math.exp %839 : vector<8x128xf32>
    %cst_240 = arith.constant 1.000000e+00 : f32
    %841 = vector.broadcast %cst_240 : f32 to vector<8x128xf32>
    %842 = arith.addf %841, %840 : vector<8x128xf32>
    %843 = arith.divf %841, %842 : vector<8x128xf32>
    %844 = arith.mulf %835, %812 : vector<8x128xf32>
    %845 = arith.mulf %829, %837 : vector<8x128xf32>
    %846 = arith.addf %844, %845 : vector<8x128xf32>
    %847 = math.tanh %846 : vector<8x128xf32>
    %848 = arith.mulf %843, %847 : vector<8x128xf32>
    %849 = arith.index_cast %c7_i32_234 : i32 to index
    %c0_241 = arith.constant 0 : index
    %c0_242 = arith.constant 0 : index
    %850 = vector.load %arg18[%849, %c0_241, %c0_242] : memref<16x8x128xf32, #tpu.memory_space<vmem>>, vector<1x8x128xf32>
    %851 = vector.shape_cast %850 : vector<1x8x128xf32> to vector<8x128xf32>
    %852 = vector.shape_cast %848 : vector<8x128xf32> to vector<1x8x128xf32>
    tpu.vector_store %arg18[%849, %c0_241, %c0_242], %852 {strides = array<i32>} : memref<16x8x128xf32, #tpu.memory_space<vmem>>, vector<1x8x128xf32>,
    %c8_i32_243 = arith.constant 8 : i32
    %853 = arith.index_cast %c8_i32_243 : i32 to index
    %c0_244 = arith.constant 0 : index
    %c0_245 = arith.constant 0 : index
    %854 = vector.load %arg19[%853, %c0_244, %c0_245] : memref<16x8x512xf32, #tpu.memory_space<vmem>>, vector<1x8x512xf32>
    %855 = vector.shape_cast %854 : vector<1x8x512xf32> to vector<8x512xf32>
    %cst_246 = arith.constant dense<0.000000e+00> : vector<8x512xf32>
    %856 = tpu.matmul %848, %568, %cst_246 {dimension_numbers = #tpu.dot_dimension_numbers<[1], [0], [0], [1], [0, 0, 1, 1], [], []>} : vector<8x128xf32>, vector<128x512xf32>, vector<8x512xf32> -> vector<8x512xf32>
    %857 = arith.addf %855, %856 : vector<8x512xf32>
    %858 = vector.extract_strided_slice %857 {offsets = [0, 0], sizes = [8, 128], strides = [1, 1]} : vector<8x512xf32> to vector<8x128xf32>
    %859 = arith.negf %858 : vector<8x128xf32>
    %860 = math.exp %859 : vector<8x128xf32>
    %cst_247 = arith.constant 1.000000e+00 : f32
    %861 = vector.broadcast %cst_247 : f32 to vector<8x128xf32>
    %862 = arith.addf %861, %860 : vector<8x128xf32>
    %863 = arith.divf %861, %862 : vector<8x128xf32>
    %864 = vector.extract_strided_slice %857 {offsets = [0, 128], sizes = [8, 128], strides = [1, 1]} : vector<8x512xf32> to vector<8x128xf32>
    %865 = arith.negf %864 : vector<8x128xf32>
    %866 = math.exp %865 : vector<8x128xf32>
    %cst_248 = arith.constant 1.000000e+00 : f32
    %867 = vector.broadcast %cst_248 : f32 to vector<8x128xf32>
    %868 = arith.addf %867, %866 : vector<8x128xf32>
    %869 = arith.divf %867, %868 : vector<8x128xf32>
    %870 = vector.extract_strided_slice %857 {offsets = [0, 256], sizes = [8, 128], strides = [1, 1]} : vector<8x512xf32> to vector<8x128xf32>
    %871 = math.tanh %870 : vector<8x128xf32>
    %872 = vector.extract_strided_slice %857 {offsets = [0, 384], sizes = [8, 128], strides = [1, 1]} : vector<8x512xf32> to vector<8x128xf32>
    %873 = arith.negf %872 : vector<8x128xf32>
    %874 = math.exp %873 : vector<8x128xf32>
    %cst_249 = arith.constant 1.000000e+00 : f32
    %875 = vector.broadcast %cst_249 : f32 to vector<8x128xf32>
    %876 = arith.addf %875, %874 : vector<8x128xf32>
    %877 = arith.divf %875, %876 : vector<8x128xf32>
    %878 = arith.mulf %869, %846 : vector<8x128xf32>
    %879 = arith.mulf %863, %871 : vector<8x128xf32>
    %880 = arith.addf %878, %879 : vector<8x128xf32>
    %881 = math.tanh %880 : vector<8x128xf32>
    %882 = arith.mulf %877, %881 : vector<8x128xf32>
    %883 = arith.index_cast %c8_i32_243 : i32 to index
    %c0_250 = arith.constant 0 : index
    %c0_251 = arith.constant 0 : index
    %884 = vector.load %arg18[%883, %c0_250, %c0_251] : memref<16x8x128xf32, #tpu.memory_space<vmem>>, vector<1x8x128xf32>
    %885 = vector.shape_cast %884 : vector<1x8x128xf32> to vector<8x128xf32>
    %886 = vector.shape_cast %882 : vector<8x128xf32> to vector<1x8x128xf32>
    tpu.vector_store %arg18[%883, %c0_250, %c0_251], %886 {strides = array<i32>} : memref<16x8x128xf32, #tpu.memory_space<vmem>>, vector<1x8x128xf32>,
    %c9_i32_252 = arith.constant 9 : i32
    %887 = arith.index_cast %c9_i32_252 : i32 to index
    %c0_253 = arith.constant 0 : index
    %c0_254 = arith.constant 0 : index
    %888 = vector.load %arg19[%887, %c0_253, %c0_254] : memref<16x8x512xf32, #tpu.memory_space<vmem>>, vector<1x8x512xf32>
    %889 = vector.shape_cast %888 : vector<1x8x512xf32> to vector<8x512xf32>
    %cst_255 = arith.constant dense<0.000000e+00> : vector<8x512xf32>
    %890 = tpu.matmul %882, %568, %cst_255 {dimension_numbers = #tpu.dot_dimension_numbers<[1], [0], [0], [1], [0, 0, 1, 1], [], []>} : vector<8x128xf32>, vector<128x512xf32>, vector<8x512xf32> -> vector<8x512xf32>
    %891 = arith.addf %889, %890 : vector<8x512xf32>
    %892 = vector.extract_strided_slice %891 {offsets = [0, 0], sizes = [8, 128], strides = [1, 1]} : vector<8x512xf32> to vector<8x128xf32>
    %893 = arith.negf %892 : vector<8x128xf32>
    %894 = math.exp %893 : vector<8x128xf32>
    %cst_256 = arith.constant 1.000000e+00 : f32
    %895 = vector.broadcast %cst_256 : f32 to vector<8x128xf32>
    %896 = arith.addf %895, %894 : vector<8x128xf32>
    %897 = arith.divf %895, %896 : vector<8x128xf32>
    %898 = vector.extract_strided_slice %891 {offsets = [0, 128], sizes = [8, 128], strides = [1, 1]} : vector<8x512xf32> to vector<8x128xf32>
    %899 = arith.negf %898 : vector<8x128xf32>
    %900 = math.exp %899 : vector<8x128xf32>
    %cst_257 = arith.constant 1.000000e+00 : f32
    %901 = vector.broadcast %cst_257 : f32 to vector<8x128xf32>
    %902 = arith.addf %901, %900 : vector<8x128xf32>
    %903 = arith.divf %901, %902 : vector<8x128xf32>
    %904 = vector.extract_strided_slice %891 {offsets = [0, 256], sizes = [8, 128], strides = [1, 1]} : vector<8x512xf32> to vector<8x128xf32>
    %905 = math.tanh %904 : vector<8x128xf32>
    %906 = vector.extract_strided_slice %891 {offsets = [0, 384], sizes = [8, 128], strides = [1, 1]} : vector<8x512xf32> to vector<8x128xf32>
    %907 = arith.negf %906 : vector<8x128xf32>
    %908 = math.exp %907 : vector<8x128xf32>
    %cst_258 = arith.constant 1.000000e+00 : f32
    %909 = vector.broadcast %cst_258 : f32 to vector<8x128xf32>
    %910 = arith.addf %909, %908 : vector<8x128xf32>
    %911 = arith.divf %909, %910 : vector<8x128xf32>
    %912 = arith.mulf %903, %880 : vector<8x128xf32>
    %913 = arith.mulf %897, %905 : vector<8x128xf32>
    %914 = arith.addf %912, %913 : vector<8x128xf32>
    %915 = math.tanh %914 : vector<8x128xf32>
    %916 = arith.mulf %911, %915 : vector<8x128xf32>
    %917 = arith.index_cast %c9_i32_252 : i32 to index
    %c0_259 = arith.constant 0 : index
    %c0_260 = arith.constant 0 : index
    %918 = vector.load %arg18[%917, %c0_259, %c0_260] : memref<16x8x128xf32, #tpu.memory_space<vmem>>, vector<1x8x128xf32>
    %919 = vector.shape_cast %918 : vector<1x8x128xf32> to vector<8x128xf32>
    %920 = vector.shape_cast %916 : vector<8x128xf32> to vector<1x8x128xf32>
    tpu.vector_store %arg18[%917, %c0_259, %c0_260], %920 {strides = array<i32>} : memref<16x8x128xf32, #tpu.memory_space<vmem>>, vector<1x8x128xf32>,
    %c10_i32_261 = arith.constant 10 : i32
    %921 = arith.index_cast %c10_i32_261 : i32 to index
    %c0_262 = arith.constant 0 : index
    %c0_263 = arith.constant 0 : index
    %922 = vector.load %arg19[%921, %c0_262, %c0_263] : memref<16x8x512xf32, #tpu.memory_space<vmem>>, vector<1x8x512xf32>
    %923 = vector.shape_cast %922 : vector<1x8x512xf32> to vector<8x512xf32>
    %cst_264 = arith.constant dense<0.000000e+00> : vector<8x512xf32>
    %924 = tpu.matmul %916, %568, %cst_264 {dimension_numbers = #tpu.dot_dimension_numbers<[1], [0], [0], [1], [0, 0, 1, 1], [], []>} : vector<8x128xf32>, vector<128x512xf32>, vector<8x512xf32> -> vector<8x512xf32>
    %925 = arith.addf %923, %924 : vector<8x512xf32>
    %926 = vector.extract_strided_slice %925 {offsets = [0, 0], sizes = [8, 128], strides = [1, 1]} : vector<8x512xf32> to vector<8x128xf32>
    %927 = arith.negf %926 : vector<8x128xf32>
    %928 = math.exp %927 : vector<8x128xf32>
    %cst_265 = arith.constant 1.000000e+00 : f32
    %929 = vector.broadcast %cst_265 : f32 to vector<8x128xf32>
    %930 = arith.addf %929, %928 : vector<8x128xf32>
    %931 = arith.divf %929, %930 : vector<8x128xf32>
    %932 = vector.extract_strided_slice %925 {offsets = [0, 128], sizes = [8, 128], strides = [1, 1]} : vector<8x512xf32> to vector<8x128xf32>
    %933 = arith.negf %932 : vector<8x128xf32>
    %934 = math.exp %933 : vector<8x128xf32>
    %cst_266 = arith.constant 1.000000e+00 : f32
    %935 = vector.broadcast %cst_266 : f32 to vector<8x128xf32>
    %936 = arith.addf %935, %934 : vector<8x128xf32>
    %937 = arith.divf %935, %936 : vector<8x128xf32>
    %938 = vector.extract_strided_slice %925 {offsets = [0, 256], sizes = [8, 128], strides = [1, 1]} : vector<8x512xf32> to vector<8x128xf32>
    %939 = math.tanh %938 : vector<8x128xf32>
    %940 = vector.extract_strided_slice %925 {offsets = [0, 384], sizes = [8, 128], strides = [1, 1]} : vector<8x512xf32> to vector<8x128xf32>
    %941 = arith.negf %940 : vector<8x128xf32>
    %942 = math.exp %941 : vector<8x128xf32>
    %cst_267 = arith.constant 1.000000e+00 : f32
    %943 = vector.broadcast %cst_267 : f32 to vector<8x128xf32>
    %944 = arith.addf %943, %942 : vector<8x128xf32>
    %945 = arith.divf %943, %944 : vector<8x128xf32>
    %946 = arith.mulf %937, %914 : vector<8x128xf32>
    %947 = arith.mulf %931, %939 : vector<8x128xf32>
    %948 = arith.addf %946, %947 : vector<8x128xf32>
    %949 = math.tanh %948 : vector<8x128xf32>
    %950 = arith.mulf %945, %949 : vector<8x128xf32>
    %951 = arith.index_cast %c10_i32_261 : i32 to index
    %c0_268 = arith.constant 0 : index
    %c0_269 = arith.constant 0 : index
    %952 = vector.load %arg18[%951, %c0_268, %c0_269] : memref<16x8x128xf32, #tpu.memory_space<vmem>>, vector<1x8x128xf32>
    %953 = vector.shape_cast %952 : vector<1x8x128xf32> to vector<8x128xf32>
    %954 = vector.shape_cast %950 : vector<8x128xf32> to vector<1x8x128xf32>
    tpu.vector_store %arg18[%951, %c0_268, %c0_269], %954 {strides = array<i32>} : memref<16x8x128xf32, #tpu.memory_space<vmem>>, vector<1x8x128xf32>,
    %c11_i32_270 = arith.constant 11 : i32
    %955 = arith.index_cast %c11_i32_270 : i32 to index
    %c0_271 = arith.constant 0 : index
    %c0_272 = arith.constant 0 : index
    %956 = vector.load %arg19[%955, %c0_271, %c0_272] : memref<16x8x512xf32, #tpu.memory_space<vmem>>, vector<1x8x512xf32>
    %957 = vector.shape_cast %956 : vector<1x8x512xf32> to vector<8x512xf32>
    %cst_273 = arith.constant dense<0.000000e+00> : vector<8x512xf32>
    %958 = tpu.matmul %950, %568, %cst_273 {dimension_numbers = #tpu.dot_dimension_numbers<[1], [0], [0], [1], [0, 0, 1, 1], [], []>} : vector<8x128xf32>, vector<128x512xf32>, vector<8x512xf32> -> vector<8x512xf32>
    %959 = arith.addf %957, %958 : vector<8x512xf32>
    %960 = vector.extract_strided_slice %959 {offsets = [0, 0], sizes = [8, 128], strides = [1, 1]} : vector<8x512xf32> to vector<8x128xf32>
    %961 = arith.negf %960 : vector<8x128xf32>
    %962 = math.exp %961 : vector<8x128xf32>
    %cst_274 = arith.constant 1.000000e+00 : f32
    %963 = vector.broadcast %cst_274 : f32 to vector<8x128xf32>
    %964 = arith.addf %963, %962 : vector<8x128xf32>
    %965 = arith.divf %963, %964 : vector<8x128xf32>
    %966 = vector.extract_strided_slice %959 {offsets = [0, 128], sizes = [8, 128], strides = [1, 1]} : vector<8x512xf32> to vector<8x128xf32>
    %967 = arith.negf %966 : vector<8x128xf32>
    %968 = math.exp %967 : vector<8x128xf32>
    %cst_275 = arith.constant 1.000000e+00 : f32
    %969 = vector.broadcast %cst_275 : f32 to vector<8x128xf32>
    %970 = arith.addf %969, %968 : vector<8x128xf32>
    %971 = arith.divf %969, %970 : vector<8x128xf32>
    %972 = vector.extract_strided_slice %959 {offsets = [0, 256], sizes = [8, 128], strides = [1, 1]} : vector<8x512xf32> to vector<8x128xf32>
    %973 = math.tanh %972 : vector<8x128xf32>
    %974 = vector.extract_strided_slice %959 {offsets = [0, 384], sizes = [8, 128], strides = [1, 1]} : vector<8x512xf32> to vector<8x128xf32>
    %975 = arith.negf %974 : vector<8x128xf32>
    %976 = math.exp %975 : vector<8x128xf32>
    %cst_276 = arith.constant 1.000000e+00 : f32
    %977 = vector.broadcast %cst_276 : f32 to vector<8x128xf32>
    %978 = arith.addf %977, %976 : vector<8x128xf32>
    %979 = arith.divf %977, %978 : vector<8x128xf32>
    %980 = arith.mulf %971, %948 : vector<8x128xf32>
    %981 = arith.mulf %965, %973 : vector<8x128xf32>
    %982 = arith.addf %980, %981 : vector<8x128xf32>
    %983 = math.tanh %982 : vector<8x128xf32>
    %984 = arith.mulf %979, %983 : vector<8x128xf32>
    %985 = arith.index_cast %c11_i32_270 : i32 to index
    %c0_277 = arith.constant 0 : index
    %c0_278 = arith.constant 0 : index
    %986 = vector.load %arg18[%985, %c0_277, %c0_278] : memref<16x8x128xf32, #tpu.memory_space<vmem>>, vector<1x8x128xf32>
    %987 = vector.shape_cast %986 : vector<1x8x128xf32> to vector<8x128xf32>
    %988 = vector.shape_cast %984 : vector<8x128xf32> to vector<1x8x128xf32>
    tpu.vector_store %arg18[%985, %c0_277, %c0_278], %988 {strides = array<i32>} : memref<16x8x128xf32, #tpu.memory_space<vmem>>, vector<1x8x128xf32>,
    %c12_i32_279 = arith.constant 12 : i32
    %989 = arith.index_cast %c12_i32_279 : i32 to index
    %c0_280 = arith.constant 0 : index
    %c0_281 = arith.constant 0 : index
    %990 = vector.load %arg19[%989, %c0_280, %c0_281] : memref<16x8x512xf32, #tpu.memory_space<vmem>>, vector<1x8x512xf32>
    %991 = vector.shape_cast %990 : vector<1x8x512xf32> to vector<8x512xf32>
    %cst_282 = arith.constant dense<0.000000e+00> : vector<8x512xf32>
    %992 = tpu.matmul %984, %568, %cst_282 {dimension_numbers = #tpu.dot_dimension_numbers<[1], [0], [0], [1], [0, 0, 1, 1], [], []>} : vector<8x128xf32>, vector<128x512xf32>, vector<8x512xf32> -> vector<8x512xf32>
    %993 = arith.addf %991, %992 : vector<8x512xf32>
    %994 = vector.extract_strided_slice %993 {offsets = [0, 0], sizes = [8, 128], strides = [1, 1]} : vector<8x512xf32> to vector<8x128xf32>
    %995 = arith.negf %994 : vector<8x128xf32>
    %996 = math.exp %995 : vector<8x128xf32>
    %cst_283 = arith.constant 1.000000e+00 : f32
    %997 = vector.broadcast %cst_283 : f32 to vector<8x128xf32>
    %998 = arith.addf %997, %996 : vector<8x128xf32>
    %999 = arith.divf %997, %998 : vector<8x128xf32>
    %1000 = vector.extract_strided_slice %993 {offsets = [0, 128], sizes = [8, 128], strides = [1, 1]} : vector<8x512xf32> to vector<8x128xf32>
    %1001 = arith.negf %1000 : vector<8x128xf32>
    %1002 = math.exp %1001 : vector<8x128xf32>
    %cst_284 = arith.constant 1.000000e+00 : f32
    %1003 = vector.broadcast %cst_284 : f32 to vector<8x128xf32>
    %1004 = arith.addf %1003, %1002 : vector<8x128xf32>
    %1005 = arith.divf %1003, %1004 : vector<8x128xf32>
    %1006 = vector.extract_strided_slice %993 {offsets = [0, 256], sizes = [8, 128], strides = [1, 1]} : vector<8x512xf32> to vector<8x128xf32>
    %1007 = math.tanh %1006 : vector<8x128xf32>
    %1008 = vector.extract_strided_slice %993 {offsets = [0, 384], sizes = [8, 128], strides = [1, 1]} : vector<8x512xf32> to vector<8x128xf32>
    %1009 = arith.negf %1008 : vector<8x128xf32>
    %1010 = math.exp %1009 : vector<8x128xf32>
    %cst_285 = arith.constant 1.000000e+00 : f32
    %1011 = vector.broadcast %cst_285 : f32 to vector<8x128xf32>
    %1012 = arith.addf %1011, %1010 : vector<8x128xf32>
    %1013 = arith.divf %1011, %1012 : vector<8x128xf32>
    %1014 = arith.mulf %1005, %982 : vector<8x128xf32>
    %1015 = arith.mulf %999, %1007 : vector<8x128xf32>
    %1016 = arith.addf %1014, %1015 : vector<8x128xf32>
    %1017 = math.tanh %1016 : vector<8x128xf32>
    %1018 = arith.mulf %1013, %1017 : vector<8x128xf32>
    %1019 = arith.index_cast %c12_i32_279 : i32 to index
    %c0_286 = arith.constant 0 : index
    %c0_287 = arith.constant 0 : index
    %1020 = vector.load %arg18[%1019, %c0_286, %c0_287] : memref<16x8x128xf32, #tpu.memory_space<vmem>>, vector<1x8x128xf32>
    %1021 = vector.shape_cast %1020 : vector<1x8x128xf32> to vector<8x128xf32>
    %1022 = vector.shape_cast %1018 : vector<8x128xf32> to vector<1x8x128xf32>
    tpu.vector_store %arg18[%1019, %c0_286, %c0_287], %1022 {strides = array<i32>} : memref<16x8x128xf32, #tpu.memory_space<vmem>>, vector<1x8x128xf32>,
    %c13_i32_288 = arith.constant 13 : i32
    %1023 = arith.index_cast %c13_i32_288 : i32 to index
    %c0_289 = arith.constant 0 : index
    %c0_290 = arith.constant 0 : index
    %1024 = vector.load %arg19[%1023, %c0_289, %c0_290] : memref<16x8x512xf32, #tpu.memory_space<vmem>>, vector<1x8x512xf32>
    %1025 = vector.shape_cast %1024 : vector<1x8x512xf32> to vector<8x512xf32>
    %cst_291 = arith.constant dense<0.000000e+00> : vector<8x512xf32>
    %1026 = tpu.matmul %1018, %568, %cst_291 {dimension_numbers = #tpu.dot_dimension_numbers<[1], [0], [0], [1], [0, 0, 1, 1], [], []>} : vector<8x128xf32>, vector<128x512xf32>, vector<8x512xf32> -> vector<8x512xf32>
    %1027 = arith.addf %1025, %1026 : vector<8x512xf32>
    %1028 = vector.extract_strided_slice %1027 {offsets = [0, 0], sizes = [8, 128], strides = [1, 1]} : vector<8x512xf32> to vector<8x128xf32>
    %1029 = arith.negf %1028 : vector<8x128xf32>
    %1030 = math.exp %1029 : vector<8x128xf32>
    %cst_292 = arith.constant 1.000000e+00 : f32
    %1031 = vector.broadcast %cst_292 : f32 to vector<8x128xf32>
    %1032 = arith.addf %1031, %1030 : vector<8x128xf32>
    %1033 = arith.divf %1031, %1032 : vector<8x128xf32>
    %1034 = vector.extract_strided_slice %1027 {offsets = [0, 128], sizes = [8, 128], strides = [1, 1]} : vector<8x512xf32> to vector<8x128xf32>
    %1035 = arith.negf %1034 : vector<8x128xf32>
    %1036 = math.exp %1035 : vector<8x128xf32>
    %cst_293 = arith.constant 1.000000e+00 : f32
    %1037 = vector.broadcast %cst_293 : f32 to vector<8x128xf32>
    %1038 = arith.addf %1037, %1036 : vector<8x128xf32>
    %1039 = arith.divf %1037, %1038 : vector<8x128xf32>
    %1040 = vector.extract_strided_slice %1027 {offsets = [0, 256], sizes = [8, 128], strides = [1, 1]} : vector<8x512xf32> to vector<8x128xf32>
    %1041 = math.tanh %1040 : vector<8x128xf32>
    %1042 = vector.extract_strided_slice %1027 {offsets = [0, 384], sizes = [8, 128], strides = [1, 1]} : vector<8x512xf32> to vector<8x128xf32>
    %1043 = arith.negf %1042 : vector<8x128xf32>
    %1044 = math.exp %1043 : vector<8x128xf32>
    %cst_294 = arith.constant 1.000000e+00 : f32
    %1045 = vector.broadcast %cst_294 : f32 to vector<8x128xf32>
    %1046 = arith.addf %1045, %1044 : vector<8x128xf32>
    %1047 = arith.divf %1045, %1046 : vector<8x128xf32>
    %1048 = arith.mulf %1039, %1016 : vector<8x128xf32>
    %1049 = arith.mulf %1033, %1041 : vector<8x128xf32>
    %1050 = arith.addf %1048, %1049 : vector<8x128xf32>
    %1051 = math.tanh %1050 : vector<8x128xf32>
    %1052 = arith.mulf %1047, %1051 : vector<8x128xf32>
    %1053 = arith.index_cast %c13_i32_288 : i32 to index
    %c0_295 = arith.constant 0 : index
    %c0_296 = arith.constant 0 : index
    %1054 = vector.load %arg18[%1053, %c0_295, %c0_296] : memref<16x8x128xf32, #tpu.memory_space<vmem>>, vector<1x8x128xf32>
    %1055 = vector.shape_cast %1054 : vector<1x8x128xf32> to vector<8x128xf32>
    %1056 = vector.shape_cast %1052 : vector<8x128xf32> to vector<1x8x128xf32>
    tpu.vector_store %arg18[%1053, %c0_295, %c0_296], %1056 {strides = array<i32>} : memref<16x8x128xf32, #tpu.memory_space<vmem>>, vector<1x8x128xf32>,
    %c14_i32_297 = arith.constant 14 : i32
    %1057 = arith.index_cast %c14_i32_297 : i32 to index
    %c0_298 = arith.constant 0 : index
    %c0_299 = arith.constant 0 : index
    %1058 = vector.load %arg19[%1057, %c0_298, %c0_299] : memref<16x8x512xf32, #tpu.memory_space<vmem>>, vector<1x8x512xf32>
    %1059 = vector.shape_cast %1058 : vector<1x8x512xf32> to vector<8x512xf32>
    %cst_300 = arith.constant dense<0.000000e+00> : vector<8x512xf32>
    %1060 = tpu.matmul %1052, %568, %cst_300 {dimension_numbers = #tpu.dot_dimension_numbers<[1], [0], [0], [1], [0, 0, 1, 1], [], []>} : vector<8x128xf32>, vector<128x512xf32>, vector<8x512xf32> -> vector<8x512xf32>
    %1061 = arith.addf %1059, %1060 : vector<8x512xf32>
    %1062 = vector.extract_strided_slice %1061 {offsets = [0, 0], sizes = [8, 128], strides = [1, 1]} : vector<8x512xf32> to vector<8x128xf32>
    %1063 = arith.negf %1062 : vector<8x128xf32>
    %1064 = math.exp %1063 : vector<8x128xf32>
    %cst_301 = arith.constant 1.000000e+00 : f32
    %1065 = vector.broadcast %cst_301 : f32 to vector<8x128xf32>
    %1066 = arith.addf %1065, %1064 : vector<8x128xf32>
    %1067 = arith.divf %1065, %1066 : vector<8x128xf32>
    %1068 = vector.extract_strided_slice %1061 {offsets = [0, 128], sizes = [8, 128], strides = [1, 1]} : vector<8x512xf32> to vector<8x128xf32>
    %1069 = arith.negf %1068 : vector<8x128xf32>
    %1070 = math.exp %1069 : vector<8x128xf32>
    %cst_302 = arith.constant 1.000000e+00 : f32
    %1071 = vector.broadcast %cst_302 : f32 to vector<8x128xf32>
    %1072 = arith.addf %1071, %1070 : vector<8x128xf32>
    %1073 = arith.divf %1071, %1072 : vector<8x128xf32>
    %1074 = vector.extract_strided_slice %1061 {offsets = [0, 256], sizes = [8, 128], strides = [1, 1]} : vector<8x512xf32> to vector<8x128xf32>
    %1075 = math.tanh %1074 : vector<8x128xf32>
    %1076 = vector.extract_strided_slice %1061 {offsets = [0, 384], sizes = [8, 128], strides = [1, 1]} : vector<8x512xf32> to vector<8x128xf32>
    %1077 = arith.negf %1076 : vector<8x128xf32>
    %1078 = math.exp %1077 : vector<8x128xf32>
    %cst_303 = arith.constant 1.000000e+00 : f32
    %1079 = vector.broadcast %cst_303 : f32 to vector<8x128xf32>
    %1080 = arith.addf %1079, %1078 : vector<8x128xf32>
    %1081 = arith.divf %1079, %1080 : vector<8x128xf32>
    %1082 = arith.mulf %1073, %1050 : vector<8x128xf32>
    %1083 = arith.mulf %1067, %1075 : vector<8x128xf32>
    %1084 = arith.addf %1082, %1083 : vector<8x128xf32>
    %1085 = math.tanh %1084 : vector<8x128xf32>
    %1086 = arith.mulf %1081, %1085 : vector<8x128xf32>
    %1087 = arith.index_cast %c14_i32_297 : i32 to index
    %c0_304 = arith.constant 0 : index
    %c0_305 = arith.constant 0 : index
    %1088 = vector.load %arg18[%1087, %c0_304, %c0_305] : memref<16x8x128xf32, #tpu.memory_space<vmem>>, vector<1x8x128xf32>
    %1089 = vector.shape_cast %1088 : vector<1x8x128xf32> to vector<8x128xf32>
    %1090 = vector.shape_cast %1086 : vector<8x128xf32> to vector<1x8x128xf32>
    tpu.vector_store %arg18[%1087, %c0_304, %c0_305], %1090 {strides = array<i32>} : memref<16x8x128xf32, #tpu.memory_space<vmem>>, vector<1x8x128xf32>,
    %c15_i32_306 = arith.constant 15 : i32
    %1091 = arith.index_cast %c15_i32_306 : i32 to index
    %c0_307 = arith.constant 0 : index
    %c0_308 = arith.constant 0 : index
    %1092 = vector.load %arg19[%1091, %c0_307, %c0_308] : memref<16x8x512xf32, #tpu.memory_space<vmem>>, vector<1x8x512xf32>
    %1093 = vector.shape_cast %1092 : vector<1x8x512xf32> to vector<8x512xf32>
    %cst_309 = arith.constant dense<0.000000e+00> : vector<8x512xf32>
    %1094 = tpu.matmul %1086, %568, %cst_309 {dimension_numbers = #tpu.dot_dimension_numbers<[1], [0], [0], [1], [0, 0, 1, 1], [], []>} : vector<8x128xf32>, vector<128x512xf32>, vector<8x512xf32> -> vector<8x512xf32>
    %1095 = arith.addf %1093, %1094 : vector<8x512xf32>
    %1096 = vector.extract_strided_slice %1095 {offsets = [0, 0], sizes = [8, 128], strides = [1, 1]} : vector<8x512xf32> to vector<8x128xf32>
    %1097 = arith.negf %1096 : vector<8x128xf32>
    %1098 = math.exp %1097 : vector<8x128xf32>
    %cst_310 = arith.constant 1.000000e+00 : f32
    %1099 = vector.broadcast %cst_310 : f32 to vector<8x128xf32>
    %1100 = arith.addf %1099, %1098 : vector<8x128xf32>
    %1101 = arith.divf %1099, %1100 : vector<8x128xf32>
    %1102 = vector.extract_strided_slice %1095 {offsets = [0, 128], sizes = [8, 128], strides = [1, 1]} : vector<8x512xf32> to vector<8x128xf32>
    %1103 = arith.negf %1102 : vector<8x128xf32>
    %1104 = math.exp %1103 : vector<8x128xf32>
    %cst_311 = arith.constant 1.000000e+00 : f32
    %1105 = vector.broadcast %cst_311 : f32 to vector<8x128xf32>
    %1106 = arith.addf %1105, %1104 : vector<8x128xf32>
    %1107 = arith.divf %1105, %1106 : vector<8x128xf32>
    %1108 = vector.extract_strided_slice %1095 {offsets = [0, 256], sizes = [8, 128], strides = [1, 1]} : vector<8x512xf32> to vector<8x128xf32>
    %1109 = math.tanh %1108 : vector<8x128xf32>
    %1110 = vector.extract_strided_slice %1095 {offsets = [0, 384], sizes = [8, 128], strides = [1, 1]} : vector<8x512xf32> to vector<8x128xf32>
    %1111 = arith.negf %1110 : vector<8x128xf32>
    %1112 = math.exp %1111 : vector<8x128xf32>
    %cst_312 = arith.constant 1.000000e+00 : f32
    %1113 = vector.broadcast %cst_312 : f32 to vector<8x128xf32>
    %1114 = arith.addf %1113, %1112 : vector<8x128xf32>
    %1115 = arith.divf %1113, %1114 : vector<8x128xf32>
    %1116 = arith.mulf %1107, %1084 : vector<8x128xf32>
    %1117 = arith.mulf %1101, %1109 : vector<8x128xf32>
    %1118 = arith.addf %1116, %1117 : vector<8x128xf32>
    %1119 = math.tanh %1118 : vector<8x128xf32>
    %1120 = arith.mulf %1115, %1119 : vector<8x128xf32>
    %1121 = arith.index_cast %c15_i32_306 : i32 to index
    %c0_313 = arith.constant 0 : index
    %c0_314 = arith.constant 0 : index
    %1122 = vector.load %arg18[%1121, %c0_313, %c0_314] : memref<16x8x128xf32, #tpu.memory_space<vmem>>, vector<1x8x128xf32>
    %1123 = vector.shape_cast %1122 : vector<1x8x128xf32> to vector<8x128xf32>
    %1124 = vector.shape_cast %1120 : vector<8x128xf32> to vector<1x8x128xf32>
    tpu.vector_store %arg18[%1121, %c0_313, %c0_314], %1124 {strides = array<i32>} : memref<16x8x128xf32, #tpu.memory_space<vmem>>, vector<1x8x128xf32>,
    %c16_i32_315 = arith.constant 16 : i32
    %c1_316 = arith.constant 1 : index
    %c0_317 = arith.constant 0 : index
    %c0_318 = arith.constant 0 : index
    %1125 = vector.load %arg16[%c1_316, %c0_317, %c0_318] : memref<2x8x128xf32, #tpu.memory_space<vmem>>, vector<1x8x128xf32>
    %1126 = vector.shape_cast %1125 : vector<1x8x128xf32> to vector<8x128xf32>
    %1127 = vector.shape_cast %1120 : vector<8x128xf32> to vector<1x8x128xf32>
    tpu.vector_store %arg16[%c1_316, %c0_317, %c0_318], %1127 {strides = array<i32>} : memref<2x8x128xf32, #tpu.memory_space<vmem>>, vector<1x8x128xf32>,
    %c1_319 = arith.constant 1 : index
    %c0_320 = arith.constant 0 : index
    %c0_321 = arith.constant 0 : index
    %1128 = vector.load %arg17[%c1_319, %c0_320, %c0_321] : memref<2x8x128xf32, #tpu.memory_space<vmem>>, vector<1x8x128xf32>
    %1129 = vector.shape_cast %1128 : vector<1x8x128xf32> to vector<8x128xf32>
    %1130 = vector.shape_cast %1118 : vector<8x128xf32> to vector<1x8x128xf32>
    tpu.vector_store %arg17[%c1_319, %c0_320, %c0_321], %1130 {strides = array<i32>} : memref<2x8x128xf32, #tpu.memory_space<vmem>>, vector<1x8x128xf32>,
    %c0_322 = arith.constant 0 : index
    %c0_323 = arith.constant 0 : index
    %1131 = vector.load %arg9[%c0_322, %c0_323] : memref<128x128xf32, #tpu.memory_space<vmem>>, vector<128x128xf32>
    %c0_324 = arith.constant 0 : index
    %c0_325 = arith.constant 0 : index
    %c0_326 = arith.constant 0 : index
    %1132 = vector.load %arg18[%c0_324, %c0_325, %c0_326] : memref<16x8x128xf32, #tpu.memory_space<vmem>>, vector<16x8x128xf32>
    %1133 = vector.shape_cast %1132 : vector<16x8x128xf32> to vector<128x128xf32>
    %cst_327 = arith.constant dense<0.000000e+00> : vector<128x128xf32>
    %1134 = tpu.matmul %1133, %1131, %cst_327 {dimension_numbers = #tpu.dot_dimension_numbers<[1], [0], [0], [1], [0, 0, 1, 1], [], []>} : vector<128x128xf32>, vector<128x128xf32>, vector<128x128xf32> -> vector<128x128xf32>
    %c0_328 = arith.constant 0 : index
    %c0_329 = arith.constant 0 : index
    %1135 = vector.load %arg10[%c0_328, %c0_329] : memref<1x128xf32, #tpu.memory_space<vmem>>, vector<1x128xf32>
    %1136 = vector.broadcast %1135 : vector<1x128xf32> to vector<128x128xf32>
    %1137 = arith.addf %1134, %1136 : vector<128x128xf32>
    %1138 = vector.shape_cast %1137 : vector<128x128xf32> to vector<16x8x128xf32>
    %c0_330 = arith.constant 0 : index
    %c0_331 = arith.constant 0 : index
    %c0_332 = arith.constant 0 : index
    %1139 = vector.load %arg13[%c0_330, %c0_331, %c0_332] : memref<16x8x128xf32, #tpu.memory_space<vmem>>, vector<16x8x128xf32>
    tpu.vector_store %arg13[%c0_330, %c0_331, %c0_332], %1138 {strides = array<i32>} : memref<16x8x128xf32, #tpu.memory_space<vmem>>, vector<16x8x128xf32>,
    %c1_i32_333 = arith.constant 1 : i32
    %1140 = arith.cmpi eq, %arg1, %c1_i32_333 : i32
    %1141 = arith.extui %1140 : i1 to i32
    %c0_i32_334 = arith.constant 0 : i32
    %1142 = arith.cmpi ne, %1141, %c0_i32_334 : i32
    scf.if %1142 {
      %c0_335 = arith.constant 0 : index
      %c0_336 = arith.constant 0 : index
      %c0_337 = arith.constant 0 : index
      %1143 = vector.load %arg16[%c0_335, %c0_336, %c0_337] : memref<2x8x128xf32, #tpu.memory_space<vmem>>, vector<2x8x128xf32>
      %c0_338 = arith.constant 0 : index
      %c0_339 = arith.constant 0 : index
      %c0_340 = arith.constant 0 : index
      %1144 = vector.load %arg14[%c0_338, %c0_339, %c0_340] : memref<2x8x128xf32, #tpu.memory_space<vmem>>, vector<2x8x128xf32>
      tpu.vector_store %arg14[%c0_338, %c0_339, %c0_340], %1143 {strides = array<i32>} : memref<2x8x128xf32, #tpu.memory_space<vmem>>, vector<2x8x128xf32>,
      %c0_341 = arith.constant 0 : index
      %c0_342 = arith.constant 0 : index
      %c0_343 = arith.constant 0 : index
      %1145 = vector.load %arg17[%c0_341, %c0_342, %c0_343] : memref<2x8x128xf32, #tpu.memory_space<vmem>>, vector<2x8x128xf32>
      %c0_344 = arith.constant 0 : index
      %c0_345 = arith.constant 0 : index
      %c0_346 = arith.constant 0 : index
      %1146 = vector.load %arg15[%c0_344, %c0_345, %c0_346] : memref<2x8x128xf32, #tpu.memory_space<vmem>>, vector<2x8x128xf32>
      tpu.vector_store %arg15[%c0_344, %c0_345, %c0_346], %1145 {strides = array<i32>} : memref<2x8x128xf32, #tpu.memory_space<vmem>>, vector<2x8x128xf32>,
    } else {
    }
    return
  }
  func.func @transform_0(%arg0: i32, %arg1: i32) -> (i32, i32, i32) {
    %c0_i32 = arith.constant 0 : i32
    %c0_i32_0 = arith.constant 0 : i32
    return %arg1, %arg0, %c0_i32 : i32, i32, i32
  }
  func.func @transform_1(%arg0: i32, %arg1: i32) -> (i32, i32) {
    %c0_i32 = arith.constant 0 : i32
    %c0_i32_0 = arith.constant 0 : i32
    %c0_i32_1 = arith.constant 0 : i32
    return %c0_i32, %c0_i32_0 : i32, i32
  }
  func.func @transform_2(%arg0: i32, %arg1: i32) -> (i32, i32) {
    %c0_i32 = arith.constant 0 : i32
    %c0_i32_0 = arith.constant 0 : i32
    %c0_i32_1 = arith.constant 0 : i32
    return %c0_i32, %c0_i32_0 : i32, i32
  }
  func.func @transform_3(%arg0: i32, %arg1: i32) -> (i32, i32) {
    %c0_i32 = arith.constant 0 : i32
    %c0_i32_0 = arith.constant 0 : i32
    %c0_i32_1 = arith.constant 0 : i32
    return %c0_i32, %c0_i32_0 : i32, i32
  }
  func.func @transform_4(%arg0: i32, %arg1: i32) -> (i32, i32) {
    %c0_i32 = arith.constant 0 : i32
    %c0_i32_0 = arith.constant 0 : i32
    %c0_i32_1 = arith.constant 0 : i32
    return %c0_i32, %c0_i32_0 : i32, i32
  }
  func.func @transform_5(%arg0: i32, %arg1: i32) -> (i32, i32) {
    %c0_i32 = arith.constant 0 : i32
    %c0_i32_0 = arith.constant 0 : i32
    %c0_i32_1 = arith.constant 0 : i32
    return %c0_i32, %c0_i32_0 : i32, i32
  }
  func.func @transform_6(%arg0: i32, %arg1: i32) -> (i32, i32) {
    %c0_i32 = arith.constant 0 : i32
    %c0_i32_0 = arith.constant 0 : i32
    %c0_i32_1 = arith.constant 0 : i32
    return %c0_i32, %c0_i32_0 : i32, i32
  }
  func.func @transform_7(%arg0: i32, %arg1: i32) -> (i32, i32) {
    %c0_i32 = arith.constant 0 : i32
    %c0_i32_0 = arith.constant 0 : i32
    %c0_i32_1 = arith.constant 0 : i32
    return %c0_i32, %c0_i32_0 : i32, i32
  }
  func.func @transform_8(%arg0: i32, %arg1: i32) -> (i32, i32) {
    %c0_i32 = arith.constant 0 : i32
    %c0_i32_0 = arith.constant 0 : i32
    %c0_i32_1 = arith.constant 0 : i32
    return %c0_i32, %c0_i32_0 : i32, i32
  }
  func.func @transform_9(%arg0: i32, %arg1: i32) -> (i32, i32, i32) {
    %c0_i32 = arith.constant 0 : i32
    %c0_i32_0 = arith.constant 0 : i32
    %c0_i32_1 = arith.constant 0 : i32
    return %c0_i32, %arg0, %c0_i32_0 : i32, i32, i32
  }
  func.func @transform_10(%arg0: i32, %arg1: i32) -> (i32, i32, i32) {
    %c0_i32 = arith.constant 0 : i32
    %c0_i32_0 = arith.constant 0 : i32
    %c0_i32_1 = arith.constant 0 : i32
    return %c0_i32, %arg0, %c0_i32_0 : i32, i32, i32
  }
  func.func @transform_11(%arg0: i32, %arg1: i32) -> (i32, i32, i32) {
    %c0_i32 = arith.constant 0 : i32
    %c0_i32_0 = arith.constant 0 : i32
    return %arg1, %arg0, %c0_i32 : i32, i32, i32
  }
  func.func @transform_12(%arg0: i32, %arg1: i32) -> (i32, i32, i32) {
    %c0_i32 = arith.constant 0 : i32
    %c0_i32_0 = arith.constant 0 : i32
    %c0_i32_1 = arith.constant 0 : i32
    return %c0_i32, %arg0, %c0_i32_0 : i32, i32, i32
  }
  func.func @transform_13(%arg0: i32, %arg1: i32) -> (i32, i32, i32) {
    %c0_i32 = arith.constant 0 : i32
    %c0_i32_0 = arith.constant 0 : i32
    %c0_i32_1 = arith.constant 0 : i32
    return %c0_i32, %arg0, %c0_i32_0 : i32, i32, i32
  }
}

</mosaic_0001>

<bundles_post_ra>
// kernel: char_rnn_forward.1
= control target key start
LH: loop header
LB: loop body
LE: loop exit
PB: predicated region body
PF: predicated region fallthrough
CT: control target
= control target key end

     0   :  { %s14484_s0 = inlined_call_operand.vmem [shape: f32[32,16,128], index: 0, kind: input, shape index: {}]   ;;  %s14485_s1 = inlined_call_operand.vmem [shape: f32[128,512], index: 1, kind: input, shape index: {}]   ;;  %s14486_s2 = inlined_call_operand.vmem [shape: f32[128,512], index: 2, kind: input, shape index: {}]   ;;  %s14487_s3 = inlined_call_operand.vmem [shape: f32[1,512], index: 3, kind: input, shape index: {}]   ;;  %s14488_s4 = inlined_call_operand.vmem [shape: f32[128,512], index: 4, kind: input, shape index: {}]   ;;  %s14489_s5 = inlined_call_operand.vmem [shape: f32[128,512], index: 5, kind: input, shape index: {}]   ;;  %s14490_s6 = inlined_call_operand.vmem [shape: f32[1,512], index: 6, kind: input, shape index: {}]   ;;  %s14491_s7 = inlined_call_operand.vmem [shape: f32[128,128], index: 7, kind: input, shape index: {}]   ;;  %s14492_s8 = inlined_call_operand.vmem [shape: f32[1,128], index: 8, kind: input, shape index: {}]   ;;  %s14493_s9 = inlined_call_operand.vmem [shape: f32[2,16,128], index: 9, kind: input, shape index: {}]   ;;  %s14494_s10 = inlined_call_operand.vmem [shape: f32[2,16,128], index: 10, kind: input, shape index: {}]   ;;  %s14495_s11 = inlined_call_operand.vmem [shape: f32[32,16,128], index: 11, kind: output, shape index: {0}]   ;;  %s14496_s12 = inlined_call_operand.hbm [shape: f32[2,16,128], index: 12, kind: output, shape index: {1}]   ;;  %s14497_s13 = inlined_call_operand.hbm [shape: f32[2,16,128], index: 13, kind: output, shape index: {2}]  }
   0x1   :  { %14529 = sst [smem:[#allocation36_spill]] %s14484_s0 }
   0x2   :  { %14530 = sst [smem:[#allocation37_spill]] %s14490_s6 }
   0x3   :  { %14531 = sst [smem:[#allocation38_spill]] %s14491_s7 }
   0x4   :  { %14532 = sst [smem:[#allocation39_spill]] %s14492_s8 }
   0x5   :  { %14533 = sst [smem:[#allocation40_spill]] %s14493_s9 }
   0x6   :  { %14534 = sst [smem:[#allocation41_spill]] %s14494_s10 }
   0x7   :  { %14535 = sst [smem:[#allocation42_spill]] %s14495_s11 }
   0x8   :  { %14536 = sst [smem:[#allocation43_spill]] %s14496_s12 }
   0x9   :  { %14537 = sst [smem:[#allocation44_spill]] %s14497_s13 }
   0xa   :  { %19 = vsyncpa [#allocation11], 0 }
   0xb   :  { %21 = vsyncpa [#allocation11 + $0x1], 0 }
   0xc   :  { %22 = vsyncpa [#allocation13], 0 }
   0xd   :  { %24 = vsyncpa [#allocation13 + $0x1], 0  ;;  %s11497_s25 = smov 0   ;;  %s11499_s26 = smov 0  }
   0xe   :  { %s11501_s27 = smov 0   ;;  %s11503_s28 = smov 0  }
   0xf   :  { %s11505_s29 = smov 0   ;;  %s11507_s30 = smov 0  }
  0x10   :  { %s11509_s14 = smov 0   ;;  %s11511_s15 = smov 0  }
  0x11   :  { %s11513_s16 = smov 0   ;;  %s11515_s17 = smov 0  }
  0x12 LB: > { %14538 = sst [smem:[#allocation16_spill]] %s11399_s29  ;;  %s7971_s18 = sadd.s32 4294967295, %s11419_s17   ;;  %s11419_s17 = sphi %s11515_s17, %s30_s17   ;;  %s11415_s16 = sphi %s11513_s16, %s14606_s16   ;;  %s11411_s15 = sphi %s11511_s15, %s14600_s15   ;;  %s11407_s14 = sphi %s11509_s14, %s14605_s14   ;;  %s11403_s30 = sphi %s11507_s30, %s14599_s30   ;;  %s11399_s29 = sphi %s11505_s29, %s14598_s29   ;;  %s11395_s28 = sphi %s11503_s28, %s14597_s28   ;;  %s11391_s27 = sphi %s11501_s27, %s14604_s27   ;;  %s11387_s26 = sphi %s11499_s26, %s14603_s26   ;;  %s11383_s25 = sphi %s11497_s25, %s14602_s25  }
  0x13   : > { %14539 = sst [smem:[#allocation17_spill]] %s11407_s14  ;;  %s7972_s19 = sadd.s32 4294967294, %s11419_s17  }
  0x14   : > { %14540 = sst [smem:[#allocation18_spill]] %s11411_s15  ;;  %s39_s20 = sadd.s32 1, %s11411_s15 }
  0x15   : > { %s42_s21 = sadd.s32 1, %s11415_s16  ;;  %p40_p0 = scmp.ge.s32.totalorder %s39_s20, 2 }
  0x16   : > { %s51_s22 = sadd.s32 1, %s11399_s29  ;;  %p58_p1 = scmp.ne.s32.totalorder %s11399_s29, %s11395_s28 }
  0x17   : > { %p59_p2 = scmp.eq.s32.totalorder %s11419_s17, 0  ;;  %s14608_s20 = smov (%p40_p0, %s39_s20), 0 }
  0x18   : > { %14541 = sst [smem:[#allocation19_spill]] %s14608_s20  ;;  %s14610_s21 = smov (!%p40_p0, %s42_s21), %s11415_s16 }
  0x19   : > { %s46_s23 = ssub.s32 %s11411_s15, %s14608_s20  ;;  %p11560_p3 = por %p59_p2, %p58_p1 }
  0x1a   : > { %p44_p4 = scmp.ge.s32.totalorder %s14610_s21, 2  ;;  %s245_s13 = sadd.s32 1, %s11391_s27 }
  0x1b   : > { %p252_p5 = scmp.ne.s32.totalorder %s11391_s27, %s11387_s26  ;;  %p310_p6 = scmp.eq.s32.totalorder %s7971_s18, 3 }
  0x1c   : > { %s14612_s21 = smov (%p44_p4, %s14610_s21), 0  ;;  %p341_p12 = scmp.ne.s32.totalorder %s11387_s26, %s11383_s25 }
  0x1d   : > { %14543 = sst [smem:[#allocation20_spill]] %s14612_s21  ;;  %p11569_p7 = por %p252_p5, %p59_p2 }
  0x1e   : > { %p11573_p8 = por %p310_p6, %p58_p1  ;;  %s47_s20 = ssub.s32 %s11415_s16, %s14612_s21 }
  0x1f   : > { %p11579_p9 = por %p310_p6, %p252_p5  ;;  %s48_s8 = sor.u32 %s47_s20, %s46_s23 }
  0x20   : > { %p243_p10 = scmp.eq.s32.totalorder %s47_s20, 0  ;;  %p49_p11 = scmp.eq.s32.totalorder %s48_s8, 0 }
  0x21   : > { %p342_p13 = scmp.eq.s32.totalorder %s7972_s19, 3  ;;  %p7974_p1 = scmp.ge.s32.totalorder %s11419_s17, 4 }
  0x22   : > { %s11586_s18 = scalar_select %p243_p10, %s11391_s27, %s245_s13  }
  0x23   : > { %s11589_s7 = scalar_select %p49_p11, %s11399_s29, %s51_s22  }
  0x24   : > { %p11591_p0 = por %p342_p13, %p341_p12  ;;  %408 = sbr.rel (%p7974_p1) target bundleno = 83 (0x53), region = 48 }
  0x25   : > { %14547 = sst [smem:[#allocation21_spill]] %s11589_s7 }
  0x2b   : > { %411 = sbr.rel (!%p11560_p3) target bundleno = 61 (0x3d), region = 52  ;;  %s413_s8 = sand.u32 (%p11560_p3), 1, %s11399_s29  }
  0x2c   : > { %s8099_s20 = sshll.u32 (%p11560_p3), %s11411_s15, 5  ;;  %s7975_s13 = sshll.u32 (%p11560_p3), %s413_s8, 7 }
  0x2d   : > { %s418_s23 = sadd.s32 (%p11560_p3), %s11415_s16, %s8099_s20  ;;  %s14549_s0 = sld [smem:[#allocation36_spill]] (%p11560_p3) }
  0x2e   : > { %s7978_s22 = sshll.u32 (%p11560_p3), %s418_s23, 3  ;;  %s415_s24 = scalar_lea.vmem (%p11560_p3), [#allocation6], %s7975_s13 }
  0x33   : > { %s11604_s7 = scalar_lea.vmem %s14549_s0, %s7978_s22 }
  0x34   : > { %v478_v0 = vld [vmem:[%s11604_s7] sm:$0xff]  ;;  %v480_v1 = vld [vmem:[%s11604_s7 + $0x10] sm:$0xff] }
  0x35   : > { %v482_v2 = vld [vmem:[%s11604_s7 + $0x20] sm:$0xff]  ;;  %479 = vst [vmem:[%s415_s24] sm:$0xff] %v478_v0  ;;  %481 = vst [vmem:[%s415_s24 + $0x8] sm:$0xff] %v480_v1  ;;  %v484_v3 = vld [vmem:[%s11604_s7 + $0x30] sm:$0xff] }
  0x36   : > { %483 = vst [vmem:[%s415_s24 + $0x10] sm:$0xff] %v482_v2  ;;  %v486_v4 = vld [vmem:[%s11604_s7 + $0x40] sm:$0xff]  ;;  %v488_v5 = vld [vmem:[%s11604_s7 + $0x50] sm:$0xff]  ;;  %485 = vst [vmem:[%s415_s24 + $0x18] sm:$0xff] %v484_v3 }
  0x37   : > { %487 = vst [vmem:[%s415_s24 + $0x20] sm:$0xff] %v486_v4  ;;  %489 = vst [vmem:[%s415_s24 + $0x28] sm:$0xff] %v488_v5  ;;  %v490_v6 = vld [vmem:[%s11604_s7 + $0x60] sm:$0xff]  ;;  %v492_v7 = vld [vmem:[%s11604_s7 + $0x70] sm:$0xff] }
  0x38   : > { %v494_v8 = vld [vmem:[%s11604_s7 + $0x80] sm:$0xff]  ;;  %491 = vst [vmem:[%s415_s24 + $0x30] sm:$0xff] %v490_v6  ;;  %493 = vst [vmem:[%s415_s24 + $0x38] sm:$0xff] %v492_v7  ;;  %v496_v9 = vld [vmem:[%s11604_s7 + $0x90] sm:$0xff] }
  0x39   : > { %495 = vst [vmem:[%s415_s24 + $0x40] sm:$0xff] %v494_v8  ;;  %v498_v10 = vld [vmem:[%s11604_s7 + $0xa0] sm:$0xff]  ;;  %v500_v11 = vld [vmem:[%s11604_s7 + $0xb0] sm:$0xff]  ;;  %497 = vst [vmem:[%s415_s24 + $0x48] sm:$0xff] %v496_v9 }
  0x3a   : > { %499 = vst [vmem:[%s415_s24 + $0x50] sm:$0xff] %v498_v10  ;;  %501 = vst [vmem:[%s415_s24 + $0x58] sm:$0xff] %v500_v11  ;;  %v502_v12 = vld [vmem:[%s11604_s7 + $0xc0] sm:$0xff]  ;;  %v504_v13 = vld [vmem:[%s11604_s7 + $0xd0] sm:$0xff] }
  0x3b   : > { %v506_v14 = vld [vmem:[%s11604_s7 + $0xe0] sm:$0xff]  ;;  %503 = vst [vmem:[%s415_s24 + $0x60] sm:$0xff] %v502_v12  ;;  %505 = vst [vmem:[%s415_s24 + $0x68] sm:$0xff] %v504_v13  ;;  %v508_v15 = vld [vmem:[%s11604_s7 + $0xf0] sm:$0xff] }
  0x3c   : > { %507 = vst [vmem:[%s415_s24 + $0x70] sm:$0xff] %v506_v14  ;;  %509 = vst [vmem:[%s415_s24 + $0x78] sm:$0xff] %v508_v15 }
  0x3d PF: > { %515 = sbr.rel (!%p11569_p7) target bundleno = 72 (0x48), region = 90  ;;  %s517_s21 = sand.u32 (%p11569_p7), 1, %s11391_s27  }
  0x3e   : > { %s7980_s8 = sshll.u32 (%p11569_p7), %s11415_s16, 3  ;;  %s7979_s20 = sshll.u32 (%p11569_p7), %s517_s21, 4 }
  0x3f   : > { %s14550_s9 = sld [smem:[#allocation40_spill]] (%p11569_p7)  ;;  %s519_s19 = scalar_lea.vmem (%p11569_p7), [#allocation7], %s7979_s20 }
  0x45   : > { %s521_s22 = scalar_lea.vmem %s14550_s9, %s7980_s8 }
  0x46   : > { %v551_v16 = vld [vmem:[%s521_s22] sm:$0xff]  ;;  %v553_v17 = vld [vmem:[%s521_s22 + $0x10] sm:$0xff] }
  0x47   : > { %552 = vst [vmem:[%s519_s19] sm:$0xff] %v551_v16  ;;  %554 = vst [vmem:[%s519_s19 + $0x8] sm:$0xff] %v553_v17 }
  0x48 PF: > { %560 = sbr.rel (!%p11569_p7) target bundleno = 83 (0x53), region = 128  ;;  %s562_s7 = sand.u32 (%p11569_p7), 1, %s11391_s27  }
  0x49   : > { %s7982_s24 = sshll.u32 (%p11569_p7), %s11415_s16, 3  ;;  %s7981_s0 = sshll.u32 (%p11569_p7), %s562_s7, 4 }
  0x4a   : > { %s14551_s10 = sld [smem:[#allocation41_spill]] (%p11569_p7)  ;;  %s564_s8 = scalar_lea.vmem (%p11569_p7), [#allocation8], %s7981_s0 }
  0x50   : > { %s566_s29 = scalar_lea.vmem %s14551_s10, %s7982_s24 }
  0x51   : > { %v596_v18 = vld [vmem:[%s566_s29] sm:$0xff]  ;;  %v598_v19 = vld [vmem:[%s566_s29 + $0x10] sm:$0xff] }
  0x52   : > { %597 = vst [vmem:[%s564_s8] sm:$0xff] %v596_v18  ;;  %599 = vst [vmem:[%s564_s8 + $0x8] sm:$0xff] %v598_v19 }
  0x53 PF: > { %p7983_p2 = scmp.ge.s32.totalorder %s11419_s17, 1  ;;  %p604_p3 = scmp.lt.s32.totalorder %s11419_s17, 5 }
  0x55   : > { %p605_p4 = pnand %p7983_p2, %p604_p3 }
  0x57   : > { %608 = sbr.rel (%p605_p4) target bundleno = 8771 (0x2243), region = 166 }
  0x5e   : > { %s611_s12 = sand.u32 1, %s11395_s28   ;;  %s11640_s20 = sand.u32 1, %s11387_s26  }
  0x5f   : > { %s7984_s15 = sshll.u32 %s611_s12, 7  ;;  %s7985_s13 = sshll.u32 %s11640_s20, 4 }
  0x60   : > { %s11643_s29 = scalar_lea.vmem [#allocation6], %s7984_s15  ;;  %s620_s0 = scalar_lea.vmem [#allocation7], %s7985_s13 }
  0x61   : > { %s627_s23 = scalar_lea.vmem [#allocation8], %s7985_s13  ;;  %s11645_s22 = scalar_lea.vmem [#allocation9], %s7984_s15 }
  0x62   : > { %s11647_s19 = scalar_lea.vmem [#allocation10], %s7985_s13  ;;  %s11649_s7 = scalar_lea.vmem [#allocation12], %s7985_s13 }
  0x63   : > { %p7990_p5 = scmp.ne.s32.totalorder %s11403_s30, 0 }
  0x64   : > { %v691_v20 = vld [vmem:[%s620_s0] sm:$0xff] (!%p7990_p5)  ;;  %v692_v21 = vld [vmem:[%s620_s0 + $0x8] sm:$0xff] (!%p7990_p5) }
  0x65   : > { %690 = sbr.rel (%p7990_p5) target bundleno = 108 (0x6c), region = 182  ;;  %v695_v22 = vld [vmem:[%s627_s23] sm:$0xff] (!%p7990_p5)  ;;  %693 = vst [vmem:[#allocation2] sm:$0xff] (!%p7990_p5), %v691_v20  ;;  %694 = vst [vmem:[#allocation2 + $0x8] sm:$0xff] (!%p7990_p5), %v692_v21  ;;  %v696_v23 = vld [vmem:[%s627_s23 + $0x8] sm:$0xff] (!%p7990_p5) }
  0x66   : > { %697 = vst [vmem:[#allocation3] sm:$0xff] (!%p7990_p5), %v695_v22  ;;  %698 = vst [vmem:[#allocation3 + $0x8] sm:$0xff] (!%p7990_p5), %v696_v23 }
  0x6c PF: > { %v700_v24 = vld [vmem:[%s14485_s1 + $0x8] sm:$0xff]  ;;  %v699_v26 = vld [vmem:[%s14485_s1] sm:$0xff]  ;;  %v14505_v31 = vmov 0.0   ;;  %v702_v8 = vld [vmem:[%s14485_s1 + $0x18] sm:$0xff]  ;;  %s14580_s9 = sld [smem:[#allocation37_spill]]  ;;  %s14588_s13 = sld [smem:[#allocation38_spill]] }
  0x6d   : > { %v704_v25 = vld [vmem:[%s14485_s1 + $0x28] sm:$0xff]  ;;  %v703_v28 = vld [vmem:[%s14485_s1 + $0x20] sm:$0xff]  ;;  %977 = vmatprep.mubr.f32.mxu1 %v14505_v31  ;;  %929 = vmatprep.mubr.f32.mxu0 %v14505_v31  ;;  %v706_v9 = vld [vmem:[%s14485_s1 + $0x38] sm:$0xff]  ;;  %s14591_s10 = sld [smem:[#allocation39_spill]]  ;;  %p8088_p6 = scmp.ne.s32.totalorder %s11403_s30, 1 }
  0x6e   : > { %v8189_v27 = vpack.c.bf16 %v704_v25, %v700_v24  ;;  %v708_v29 = vld [vmem:[%s14485_s1 + $0x48] sm:$0xff]  ;;  %v8191_v32 = vpack.c.bf16 %v703_v28, %v699_v26  ;;  %v707_v34 = vld [vmem:[%s14485_s1 + $0x40] sm:$0xff]  ;;  %v8221_v13 = vpack.c.bf16 %v706_v9, %v702_v8  ;;  %v701_v14 = vld [vmem:[%s14485_s1 + $0x10] sm:$0xff] }
  0x6f   : > { %v712_v30 = vld [vmem:[%s14485_s1 + $0x68] sm:$0xff]  ;;  %v711_v35 = vld [vmem:[%s14485_s1 + $0x60] sm:$0xff]  ;;  %v705_v15 = vld [vmem:[%s14485_s1 + $0x30] sm:$0xff] }
  0x70   : > { %v8193_v33 = vpack.c.bf16 %v712_v30, %v708_v29  ;;  %v716_v36 = vld [vmem:[%s14485_s1 + $0x88] sm:$0xff]  ;;  %10397 = vmatprep.subr.bf16.mxu1 %v8189_v27  ;;  %8190 = vmatprep.subr.bf16.mxu0 %v8189_v27  ;;  %v8195_v38 = vpack.c.bf16 %v711_v35, %v707_v34  ;;  %v715_v40 = vld [vmem:[%s14485_s1 + $0x80] sm:$0xff]  ;;  %v710_v16 = vld [vmem:[%s14485_s1 + $0x58] sm:$0xff]  ;;  %v8223_v24 = vpack.c.bf16 %v705_v15, %v701_v14 }
  0x71   : > { %v720_v37 = vld [vmem:[%s14485_s1 + $0xa8] sm:$0xff]  ;;  %10405 = vmatpush1.bf16.msra.mxu1 %v8191_v32  ;;  %8192 = vmatpush1.bf16.msra.mxu0 %v8191_v32  ;;  %v719_v41 = vld [vmem:[%s14485_s1 + $0xa0] sm:$0xff]  ;;  %v714_v18 = vld [vmem:[%s14485_s1 + $0x78] sm:$0xff] }
  0x72   : > { %10398 = vmatprep.subr.bf16.mxu1 %v8193_v33  ;;  %v8197_v39 = vpack.c.bf16 %v720_v37, %v716_v36  ;;  %8194 = vmatprep.subr.bf16.mxu0 %v8193_v33  ;;  %v724_v42 = vld [vmem:[%s14485_s1 + $0xc8] sm:$0xff]  ;;  %v8199_v44 = vpack.c.bf16 %v719_v41, %v715_v40  ;;  %v723_v46 = vld [vmem:[%s14485_s1 + $0xc0] sm:$0xff]  ;;  %v8225_v26 = vpack.c.bf16 %v714_v18, %v710_v16  ;;  %v709_v27 = vld [vmem:[%s14485_s1 + $0x50] sm:$0xff] }
  0x73   : > { %v728_v43 = vld [vmem:[%s14485_s1 + $0xe8] sm:$0xff]  ;;  %v727_v47 = vld [vmem:[%s14485_s1 + $0xe0] sm:$0xff]  ;;  %v713_v28 = vld [vmem:[%s14485_s1 + $0x70] sm:$0xff] }
  0x74   : > { %v8201_v45 = vpack.c.bf16 %v728_v43, %v724_v42  ;;  %v732_v48 = vld [vmem:[%s14485_s1 + $0x108] sm:$0xff]  ;;  %v8203_v50 = vpack.c.bf16 %v727_v47, %v723_v46  ;;  %v731_v52 = vld [vmem:[%s14485_s1 + $0x100] sm:$0xff]  ;;  %v718_v29 = vld [vmem:[%s14485_s1 + $0x98] sm:$0xff] }
  0x75   : > { %10406 = vmatpush1.bf16.msra.mxu1 %v8195_v38  ;;  %8196 = vmatpush1.bf16.msra.mxu0 %v8195_v38  ;;  %v736_v49 = vld [vmem:[%s14485_s1 + $0x128] sm:$0xff]  ;;  %v735_v53 = vld [vmem:[%s14485_s1 + $0x120] sm:$0xff]  ;;  %v722_v32 = vld [vmem:[%s14485_s1 + $0xb8] sm:$0xff] }
  0x76   : > { %10399 = vmatprep.subr.bf16.mxu1 %v8197_v39  ;;  %8198 = vmatprep.subr.bf16.mxu0 %v8197_v39  ;;  %v8205_v51 = vpack.c.bf16 %v736_v49, %v732_v48  ;;  %v740_v54 = vld [vmem:[%s14485_s1 + $0x148] sm:$0xff]  ;;  %v8207_v56 = vpack.c.bf16 %v735_v53, %v731_v52  ;;  %v739_v58 = vld [vmem:[%s14485_s1 + $0x140] sm:$0xff]  ;;  %v8227_v39 = vpack.c.bf16 %v713_v28, %v709_v27  ;;  %v717_v42 = vld [vmem:[%s14485_s1 + $0x90] sm:$0xff] }
  0x77   : > { %v744_v55 = vld [vmem:[%s14485_s1 + $0x168] sm:$0xff]  ;;  %v743_v59 = vld [vmem:[%s14485_s1 + $0x160] sm:$0xff]  ;;  %v8229_v41 = vpack.c.bf16 %v722_v32, %v718_v29  ;;  %v721_v43 = vld [vmem:[%s14485_s1 + $0xb0] sm:$0xff] }
  0x78   : > { %v8209_v57 = vpack.c.bf16 %v744_v55, %v740_v54  ;;  %v748_v60 = vld [vmem:[%s14485_s1 + $0x188] sm:$0xff]  ;;  %v8211_v62 = vpack.c.bf16 %v743_v59, %v739_v58  ;;  %v747_v0 = vld [vmem:[%s14485_s1 + $0x180] sm:$0xff]  ;;  %v730_v46 = vld [vmem:[%s14485_s1 + $0xf8] sm:$0xff]  ;;  %v8231_v53 = vpack.c.bf16 %v721_v43, %v717_v42 }
  0x79   : > { %10407 = vmatpush1.bf16.msra.mxu1 %v8199_v44  ;;  %8200 = vmatpush1.bf16.msra.mxu0 %v8199_v44  ;;  %v752_v61 = vld [vmem:[%s14485_s1 + $0x1a8] sm:$0xff]  ;;  %v751_v1 = vld [vmem:[%s14485_s1 + $0x1a0] sm:$0xff]  ;;  %v726_v44 = vld [vmem:[%s14485_s1 + $0xd8] sm:$0xff] }
  0x7a   : > { %10400 = vmatprep.subr.bf16.mxu1 %v8201_v45  ;;  %8202 = vmatprep.subr.bf16.mxu0 %v8201_v45  ;;  %v8213_v63 = vpack.c.bf16 %v752_v61, %v748_v60  ;;  %v756_v2 = vld [vmem:[%s14485_s1 + $0x1c8] sm:$0xff]  ;;  %v8215_v4 = vpack.c.bf16 %v751_v1, %v747_v0  ;;  %v755_v6 = vld [vmem:[%s14485_s1 + $0x1c0] sm:$0xff]  ;;  %v11867_v52 = vld [vmem:[%s11643_s29 + $0x50] sm:$0xff]  ;;  %v8233_v55 = vpack.c.bf16 %v730_v46, %v726_v44 }
  0x7b   : > { %v760_v3 = vld [vmem:[%s14485_s1 + $0x1e8] sm:$0xff]  ;;  %v759_v7 = vld [vmem:[%s14485_s1 + $0x1e0] sm:$0xff]  ;;  %v11870_v54 = vld [vmem:[%s11643_s29 + $0x10] sm:$0xff] }
  0x7c   : > { %v8217_v5 = vpack.c.bf16 %v760_v3, %v756_v2  ;;  %v764_v10 = vld [vmem:[%s14486_s2 + $0x8] sm:$0xff]  ;;  %v8219_v12 = vpack.c.bf16 %v759_v7, %v755_v6  ;;  %v763_v19 = vld [vmem:[%s14486_s2] sm:$0xff]  ;;  %v734_v58 = vld [vmem:[%s14485_s1 + $0x118] sm:$0xff] }
  0x7d   : > { %10408 = vmatpush1.bf16.msra.mxu1 %v8203_v50  ;;  %8204 = vmatpush1.bf16.msra.mxu0 %v8203_v50  ;;  %v768_v11 = vld [vmem:[%s14486_s2 + $0x28] sm:$0xff]  ;;  %v767_v20 = vld [vmem:[%s14486_s2 + $0x20] sm:$0xff]  ;;  %v738_v60 = vld [vmem:[%s14485_s1 + $0x138] sm:$0xff] }
  0x7e   : > { %10401 = vmatprep.subr.bf16.mxu1 %v8205_v51  ;;  %8206 = vmatprep.subr.bf16.mxu0 %v8205_v51  ;;  %v11771_v17 = vpack.c.bf16 %v768_v11, %v764_v10  ;;  %v772_v21 = vld [vmem:[%s14486_s2 + $0x48] sm:$0xff]  ;;  %v11789_v23 = vld [vmem:[%s11643_s29 + $0x40] sm:$0xff]  ;;  %v11804_v30 = vpack.c.bf16 %v767_v20, %v763_v19  ;;  %v11907_v2 = vld [vmem:[%s11643_s29 + $0x58] sm:$0xff] }
  0x7f   : > { %v776_v22 = vld [vmem:[%s14486_s2 + $0x68] sm:$0xff]  ;;  %v11792_v25 = vld [vmem:[%s11643_s29] sm:$0xff]  ;;  %v733_v6 = vld [vmem:[%s14485_s1 + $0x110] sm:$0xff] }
  0x80   : > { %v11809_v33 = vpack.c.bf16 %v776_v22, %v772_v21  ;;  %v771_v34 = vld [vmem:[%s14486_s2 + $0x40] sm:$0xff]  ;;  %v780_v36 = vld [vmem:[%s14486_s2 + $0x88] sm:$0xff]  ;;  %v737_v7 = vld [vmem:[%s14485_s1 + $0x130] sm:$0xff] }
  0x81   : > { %10409 = vmatpush1.bf16.msra.mxu1 %v8207_v56  ;;  %8208 = vmatpush1.bf16.msra.mxu0 %v8207_v56  ;;  %v775_v35 = vld [vmem:[%s14486_s2 + $0x60] sm:$0xff]  ;;  %v784_v37 = vld [vmem:[%s14486_s2 + $0xa8] sm:$0xff]  ;;  %v725_v56 = vld [vmem:[%s14485_s1 + $0xd0] sm:$0xff]  ;;  %v8239_v18 = vpack.c.bf16 %v737_v7, %v733_v6 }
  0x82   : > { %10402 = vmatprep.subr.bf16.mxu1 %v8209_v57  ;;  %8210 = vmatprep.subr.bf16.mxu0 %v8209_v57  ;;  %v11827_v38 = vld [vmem:[%s11643_s29 + $0x48] sm:$0xff]  ;;  %v11842_v45 = vpack.c.bf16 %v775_v35, %v771_v34  ;;  %v11849_v47 = vpack.c.bf16 %v784_v37, %v780_v36  ;;  %v779_v48 = vld [vmem:[%s14486_s2 + $0x80] sm:$0xff]  ;;  %v729_v57 = vld [vmem:[%s14485_s1 + $0xf0] sm:$0xff] }
  0x83   : > { %v11830_v40 = vld [vmem:[%s11643_s29 + $0x8] sm:$0xff]  ;;  %v783_v49 = vld [vmem:[%s14486_s2 + $0xa0] sm:$0xff]  ;;  %v8235_v3 = vpack.c.bf16 %v729_v57, %v725_v56  ;;  %v742_v8 = vld [vmem:[%s14485_s1 + $0x158] sm:$0xff] }
  0x84   : > { %v788_v50 = vld [vmem:[%s14486_s2 + $0xc8] sm:$0xff]  ;;  %v11882_v59 = vpack.c.bf16 %v783_v49, %v779_v48  ;;  %v746_v10 = vld [vmem:[%s14485_s1 + $0x178] sm:$0xff]  ;;  %v11947_v16 = vld [vmem:[%s11643_s29 + $0x60] sm:$0xff] }
  0x85   : > { %10410 = vmatpush1.bf16.msra.mxu1 %v8211_v62  ;;  %8212 = vmatpush1.bf16.msra.mxu0 %v8211_v62  ;;  %v792_v51 = vld [vmem:[%s14486_s2 + $0xe8] sm:$0xff]  ;;  %v787_v62 = vld [vmem:[%s14486_s2 + $0xc0] sm:$0xff]  ;;  %v8241_v20 = vpack.c.bf16 %v746_v10, %v742_v8  ;;  %v741_v21 = vld [vmem:[%s14485_s1 + $0x150] sm:$0xff] }
  0x86   : > { %10403 = vmatprep.subr.bf16.mxu1 %v8213_v63  ;;  %8214 = vmatprep.subr.bf16.mxu0 %v8213_v63  ;;  %v11889_v61 = vpack.c.bf16 %v792_v51, %v788_v50  ;;  %v791_v63 = vld [vmem:[%s14486_s2 + $0xe0] sm:$0xff]  ;;  %v796_v0 = vld [vmem:[%s14486_s2 + $0x108] sm:$0xff]  ;;  %v745_v22 = vld [vmem:[%s14485_s1 + $0x170] sm:$0xff] }
  0x87   : > { %v800_v1 = vld [vmem:[%s14486_s2 + $0x128] sm:$0xff]  ;;  %v11922_v9 = vpack.c.bf16 %v791_v63, %v787_v62  ;;  %v11950_v19 = vld [vmem:[%s11643_s29 + $0x20] sm:$0xff]  ;;  %v754_v27 = vld [vmem:[%s14485_s1 + $0x1b8] sm:$0xff]  ;;  %v8243_v37 = vpack.c.bf16 %v745_v22, %v741_v21 }
  0x88   : > { %v11929_v11 = vpack.c.bf16 %v800_v1, %v796_v0  ;;  %v804_v14 = vld [vmem:[%s14486_s2 + $0x148] sm:$0xff]  ;;  %v803_v29 = vld [vmem:[%s14486_s2 + $0x140] sm:$0xff]  ;;  %v749_v42 = vld [vmem:[%s14485_s1 + $0x190] sm:$0xff] }
  0x89   : > { %10411 = vmatpush1.bf16.msra.mxu1 %v8215_v4  ;;  %8216 = vmatpush1.bf16.msra.mxu0 %v8215_v4  ;;  %v11910_v4 = vld [vmem:[%s11643_s29 + $0x18] sm:$0xff]  ;;  %v808_v15 = vld [vmem:[%s14486_s2 + $0x168] sm:$0xff]  ;;  %v807_v32 = vld [vmem:[%s14486_s2 + $0x160] sm:$0xff] }
  0x8a   : > { %10404 = vmatprep.subr.bf16.mxu1 %v8217_v5  ;;  %8218 = vmatprep.subr.bf16.mxu0 %v8217_v5  ;;  %v8237_v5 = vpack.c.bf16 %v738_v60, %v734_v58  ;;  %v11969_v28 = vpack.c.bf16 %v808_v15, %v804_v14  ;;  %v812_v34 = vld [vmem:[%s14486_s2 + $0x188] sm:$0xff]  ;;  %v753_v43 = vld [vmem:[%s14485_s1 + $0x1b0] sm:$0xff]  ;;  %v758_v44 = vld [vmem:[%s14485_s1 + $0x1d8] sm:$0xff]  ;;  %v12002_v46 = vpack.c.bf16 %v807_v32, %v803_v29 }
  0x8b   : > { %v816_v35 = vld [vmem:[%s14486_s2 + $0x1a8] sm:$0xff]  ;;  %v762_v48 = vld [vmem:[%s14485_s1 + $0x1f8] sm:$0xff]  ;;  %v811_v50 = vld [vmem:[%s14486_s2 + $0x180] sm:$0xff]  ;;  %v8247_v57 = vpack.c.bf16 %v753_v43, %v749_v42 }
  0x8c   : > { %v11987_v36 = vld [vmem:[%s11643_s29 + $0x68] sm:$0xff]  ;;  %v12009_v49 = vpack.c.bf16 %v816_v35, %v812_v34  ;;  %v815_v51 = vld [vmem:[%s14486_s2 + $0x1a0] sm:$0xff]  ;;  %v12027_v56 = vld [vmem:[%s11643_s29 + $0x70] sm:$0xff]  ;;  %v8249_v60 = vpack.c.bf16 %v762_v48, %v758_v44 }
  0x8d   : > { %10412 = vmatpush1.bf16.msra.mxu1 %v8219_v12  ;;  %8220 = vmatpush1.bf16.msra.mxu0 %v8219_v12  ;;  %v795_v12 = vld [vmem:[%s14486_s2 + $0x100] sm:$0xff]  ;;  %v12030_v58 = vld [vmem:[%s11643_s29 + $0x30] sm:$0xff]  ;;  %v766_v0 = vld [vmem:[%s14486_s2 + $0x18] sm:$0xff]  ;;  %v12042_v1 = vpack.c.bf16 %v815_v51, %v811_v50 }
  0x8e   : > { %8222 = vmatprep.subr.bf16.mxu1 %v8221_v13  ;;  %8254 = vmatprep.subr.bf16.mxu0 %v11771_v17  ;;  %v799_v13 = vld [vmem:[%s14486_s2 + $0x120] sm:$0xff]  ;;  %v757_v62 = vld [vmem:[%s14485_s1 + $0x1d0] sm:$0xff]  ;;  %v12061_v8 = vld [vmem:[%s11643_s29 + $0x78] sm:$0xff] }
  0x8f   : > { %v761_v63 = vld [vmem:[%s14485_s1 + $0x1f0] sm:$0xff]  ;;  %v819_v6 = vld [vmem:[%s14486_s2 + $0x1c0] sm:$0xff]  ;;  %v778_v21 = vld [vmem:[%s14486_s2 + $0x78] sm:$0xff] }
  0x90   : > { %978 = vmatmul.mubr.f32.vlgmr.msra.gmra.mrb[0].mxu1 %v11789_v23  ;;  %930 = vmatmul.mubr.f32.vlgmr.msra.gmra.mrb[0].mxu0 %v11792_v25  ;;  %v823_v7 = vld [vmem:[%s14486_s2 + $0x1e0] sm:$0xff]  ;;  %v8251_v10 = vpack.c.bf16 %v761_v63, %v757_v62  ;;  %v765_v14 = vld [vmem:[%s14486_s2 + $0x10] sm:$0xff]  ;;  %v782_v32 = vld [vmem:[%s14486_s2 + $0x98] sm:$0xff] }
  0x91   : > { %8224 = vmatpush1.bf16.msra.mxu1 %v8223_v24  ;;  %983 = vmatprep.mubr.f32.mxu1 %v14505_v31  ;;  %v750_v24 = vld [vmem:[%s14485_s1 + $0x198] sm:$0xff]  ;;  %v769_v15 = vld [vmem:[%s14486_s2 + $0x30] sm:$0xff]  ;;  %v12107_v35 = vld [vmem:[#allocation2] sm:$0xff] }
  0x92   : > { %8226 = vmatprep.subr.bf16.mxu1 %v8225_v26  ;;  %8256 = vmatpush1.bf16.msra.mxu0 %v11804_v30  ;;  %v11962_v26 = vpack.c.bf16 %v799_v13, %v795_v12  ;;  %v12064_v12 = vld [vmem:[%s11643_s29 + $0x38] sm:$0xff]  ;;  %v12088_v22 = vpack.c.bf16 %v769_v15, %v765_v14  ;;  %v777_v29 = vld [vmem:[%s14486_s2 + $0x70] sm:$0xff] }
  0x93   : > { %935 = vmatprep.mubr.f32.mxu0 %v14505_v31  ;;  %8258 = vmatprep.subr.bf16.mxu0 %v11809_v33  ;;  %v786_v34 = vld [vmem:[%s14486_s2 + $0xb8] sm:$0xff]  ;;  %v781_v42 = vld [vmem:[%s14486_s2 + $0x90] sm:$0xff] }
  0x94   : > { %984 = vmatmul.mubr.f32.gmra.mrb[2].mxu1 %v11827_v38  ;;  %936 = vmatmul.mubr.f32.gmra.mrb[2].mxu0 %v11830_v40  ;;  %v790_v43 = vld [vmem:[%s14486_s2 + $0xd8] sm:$0xff]  ;;  %v789_v51 = vld [vmem:[%s14486_s2 + $0xd0] sm:$0xff] }
  0x95   : > { %8228 = vmatpush1.bf16.msra.mxu1 %v8227_v39  ;;  %989 = vmatprep.mubr.f32.mxu1 %v14505_v31  ;;  %v11990_v39 = vld [vmem:[%s11643_s29 + $0x28] sm:$0xff]  ;;  %v794_v44 = vld [vmem:[%s14486_s2 + $0xf8] sm:$0xff]  ;;  %v797_v62 = vld [vmem:[%s14486_s2 + $0x110] sm:$0xff] }
  0x96   : > { %8230 = vmatprep.subr.bf16.mxu1 %v8229_v41  ;;  %8260 = vmatpush1.bf16.msra.mxu0 %v11842_v45  ;;  %v8245_v41 = vpack.c.bf16 %v754_v27, %v750_v24  ;;  %v773_v27 = vld [vmem:[%s14486_s2 + $0x50] sm:$0xff]  ;;  %v12140_v50 = vpack.c.bf16 %v794_v44, %v790_v43  ;;  %v806_v63 = vld [vmem:[%s14486_s2 + $0x158] sm:$0xff] }
  0x97   : > { %941 = vmatprep.mubr.f32.mxu0 %v14505_v31  ;;  %8262 = vmatprep.subr.bf16.mxu0 %v11849_v47  ;;  %v818_v14 = vld [vmem:[%s14486_s2 + $0x1b8] sm:$0xff] }
  0x98   : > { %990 = vmatmul.mubr.f32.gmra.mrb[4].mxu1 %v11867_v52  ;;  %942 = vmatmul.mubr.f32.gmra.mrb[4].mxu0 %v11870_v54 }
  0x99   : > { %8232 = vmatpush1.bf16.msra.mxu1 %v8231_v53  ;;  %995 = vmatprep.mubr.f32.mxu1 %v14505_v31  ;;  %v820_v53 = vld [vmem:[%s14486_s2 + $0x1c8] sm:$0xff] }
  0x9a   : > { %8234 = vmatprep.subr.bf16.mxu1 %v8233_v55  ;;  %8264 = vmatpush1.bf16.msra.mxu0 %v11882_v59  ;;  %v824_v55 = vld [vmem:[%s14486_s2 + $0x1e8] sm:$0xff] }
  0x9b   : > { %947 = vmatprep.mubr.f32.mxu0 %v14505_v31  ;;  %8266 = vmatprep.subr.bf16.mxu0 %v11889_v61 }
  0x9c   : > { %996 = vmatmul.mubr.f32.gmra.mrb[6].mxu1 %v11907_v2  ;;  %948 = vmatmul.mubr.f32.gmra.mrb[6].mxu0 %v11910_v4 }
  0x9d   : > { %8236 = vmatpush1.bf16.msra.mxu1 %v8235_v3  ;;  %1001 = vmatprep.mubr.f32.mxu1 %v14505_v31  ;;  %v770_v3 = vld [vmem:[%s14486_s2 + $0x38] sm:$0xff] }
  0x9e   : > { %8238 = vmatprep.subr.bf16.mxu1 %v8237_v5  ;;  %8268 = vmatpush1.bf16.msra.mxu0 %v11922_v9  ;;  %v12049_v5 = vpack.c.bf16 %v824_v55, %v820_v53  ;;  %v12066_v13 = vpack.c.bf16 %v770_v3, %v766_v0  ;;  %v798_v53 = vld [vmem:[%s14486_s2 + $0x118] sm:$0xff] }
  0x9f   : > { %953 = vmatprep.mubr.f32.mxu0 %v14505_v31  ;;  %8270 = vmatprep.subr.bf16.mxu0 %v11929_v11  ;;  %v802_v55 = vld [vmem:[%s14486_s2 + $0x138] sm:$0xff] }
  0xa0   : > { %1002 = vmatmul.mubr.f32.gmra.mrb[8].mxu1 %v11947_v16  ;;  %954 = vmatmul.mubr.f32.gmra.mrb[8].mxu0 %v11950_v19  ;;  %v810_v0 = vld [vmem:[%s14486_s2 + $0x178] sm:$0xff] }
  0xa1   : > { %8240 = vmatpush1.bf16.msra.mxu1 %v8239_v18  ;;  %1007 = vmatprep.mubr.f32.mxu1 %v14505_v31  ;;  %v12075_v18 = vpack.c.bf16 %v823_v7, %v819_v6  ;;  %v12184_v6 = vpack.c.bf16 %v810_v0, %v806_v63  ;;  %v805_v7 = vld [vmem:[%s14486_s2 + $0x150] sm:$0xff] }
  0xa2   : > { %8242 = vmatprep.subr.bf16.mxu1 %v8241_v20  ;;  %8272 = vmatpush1.bf16.msra.mxu0 %v11962_v26  ;;  %v774_v20 = vld [vmem:[%s14486_s2 + $0x58] sm:$0xff] }
  0xa3   : > { %959 = vmatprep.mubr.f32.mxu0 %v14505_v31  ;;  %8274 = vmatprep.subr.bf16.mxu0 %v11969_v28  ;;  %v12091_v24 = vpack.c.bf16 %v778_v21, %v774_v20  ;;  %v813_v21 = vld [vmem:[%s14486_s2 + $0x190] sm:$0xff] }
  0xa4   : > { %1008 = vmatmul.mubr.f32.gmra.mrb[10].mxu1 %v11987_v36  ;;  %960 = vmatmul.mubr.f32.gmra.mrb[10].mxu0 %v11990_v39 }
  0xa5   : > { %8244 = vmatpush1.bf16.msra.mxu1 %v8243_v37  ;;  %1013 = vmatprep.mubr.f32.mxu1 %v14505_v31  ;;  %v12113_v37 = vpack.c.bf16 %v777_v29, %v773_v27  ;;  %v822_v27 = vld [vmem:[%s14486_s2 + $0x1d8] sm:$0xff] }
  0xa6   : > { %8246 = vmatprep.subr.bf16.mxu1 %v8245_v41  ;;  %8276 = vmatpush1.bf16.msra.mxu0 %v12002_v46  ;;  %v12116_v41 = vpack.c.bf16 %v786_v34, %v782_v32  ;;  %v826_v29 = vld [vmem:[%s14486_s2 + $0x1f8] sm:$0xff] }
  0xa7   : > { %965 = vmatprep.mubr.f32.mxu0 %v14505_v31  ;;  %8278 = vmatprep.subr.bf16.mxu0 %v12009_v49  ;;  %v12228_v34 = vpack.c.bf16 %v826_v29, %v822_v27 }
  0xa8   : > { %1014 = vmatmul.mubr.f32.gmra.mrb[12].mxu1 %v12027_v56  ;;  %966 = vmatmul.mubr.f32.gmra.mrb[12].mxu0 %v12030_v58 }
  0xa9   : > { %8248 = vmatpush1.bf16.msra.mxu1 %v8247_v57  ;;  %1019 = vmatprep.mubr.f32.mxu1 %v14505_v31 }
  0xaa   : > { %8250 = vmatprep.subr.bf16.mxu1 %v8249_v60  ;;  %8280 = vmatpush1.bf16.msra.mxu0 %v12042_v1  ;;  %v12162_v60 = vpack.c.bf16 %v802_v55, %v798_v53 }
  0xab   : > { %971 = vmatprep.mubr.f32.mxu0 %v14505_v31  ;;  %8282 = vmatprep.subr.bf16.mxu0 %v12049_v5 }
  0xac   : > { %1020 = vmatmul.mubr.f32.gmra.mrb[14].mxu1 %v12061_v8  ;;  %972 = vmatmul.mubr.f32.gmra.mrb[14].mxu0 %v12064_v12 }
  0xad   : > { %8252 = vmatpush1.bf16.msra.mxu1 %v8251_v10  ;;  %1090 = vmatprep.mubr.f32.mxu1 %v14505_v31  ;;  %v814_v10 = vld [vmem:[%s14486_s2 + $0x198] sm:$0xff] }
  0xae   : > { %8286 = vmatprep.subr.bf16.mxu1 %v12066_v13  ;;  %8284 = vmatpush1.bf16.msra.mxu0 %v12075_v18  ;;  %v12206_v20 = vpack.c.bf16 %v818_v14, %v814_v10 }
  0xaf   : > { %1321 = vmatprep.mubr.f32.mxu0 %v14505_v31  ;;  %8318 = vmatprep.subr.bf16.mxu0 %v11771_v17 }
  0xb0   : > { %1091 = vmatmul.mubr.f32.vlgmr.msra.gmra.mrb[16].mxu1 %v11792_v25  ;;  %v785_v25 = vld [vmem:[%s14486_s2 + $0xb0] sm:$0xff] }
  0xb1   : > { %8288 = vmatpush1.bf16.msra.mxu1 %v12088_v22  ;;  %1096 = vmatprep.mubr.f32.mxu1 %v14505_v31  ;;  %v12137_v48 = vpack.c.bf16 %v785_v25, %v781_v42  ;;  %v821_v42 = vld [vmem:[%s14486_s2 + $0x1d0] sm:$0xff] }
  0xb2   : > { %8290 = vmatprep.subr.bf16.mxu1 %v12091_v24  ;;  %1322 = vmatmul.mubr.f32.vlgmr.msra.gmra.mrb[0].mxu0 %v12107_v35 }
  0xb3   : > { %8320 = vmatpush1.bf16.msra.mxu0 %v11804_v30  ;;  %1497 = vmatprep.mubr.f32.mxu0 %v14505_v31 }
  0xb4   : > { %1097 = vmatmul.mubr.f32.gmra.mrb[18].mxu1 %v11830_v40  ;;  %8322 = vmatprep.subr.bf16.mxu0 %v11809_v33  ;;  %v793_v40 = vld [vmem:[%s14486_s2 + $0xf0] sm:$0xff] }
  0xb5   : > { %1102 = vmatprep.mubr.f32.mxu1 %v14505_v31  ;;  %8292 = vmatpush1.bf16.msra.mxu1 %v12113_v37  ;;  %v12159_v57 = vpack.c.bf16 %v793_v40, %v789_v51 }
  0xb6   : > { %8294 = vmatprep.subr.bf16.mxu1 %v12116_v41 }
  0xb7   : > { %8324 = vmatpush1.bf16.msra.mxu0 %v11842_v45 }
  0xb8   : > { %1103 = vmatmul.mubr.f32.gmra.mrb[20].mxu1 %v11870_v54  ;;  %8326 = vmatprep.subr.bf16.mxu0 %v11849_v47  ;;  %v801_v54 = vld [vmem:[%s14486_s2 + $0x130] sm:$0xff] }
  0xb9   : > { %1108 = vmatprep.mubr.f32.mxu1 %v14505_v31  ;;  %8296 = vmatpush1.bf16.msra.mxu1 %v12137_v48  ;;  %v12181_v3 = vpack.c.bf16 %v801_v54, %v797_v62  ;;  %v845_v54 = vlaneseq }
  0xba   : > { %8298 = vmatprep.subr.bf16.mxu1 %v12140_v50 }
  0xbb   : > { %8328 = vmatpush1.bf16.msra.mxu0 %v11882_v59  ;;  %v12318_v63 = vshrl.u32 %v845_v54, 7 }
  0xbc   : > { %1109 = vmatmul.mubr.f32.gmra.mrb[22].mxu1 %v11910_v4  ;;  %8330 = vmatprep.subr.bf16.mxu0 %v11889_v61  ;;  %v809_v4 = vld [vmem:[%s14486_s2 + $0x170] sm:$0xff] }
  0xbd   : > { %1114 = vmatprep.mubr.f32.mxu1 %v14505_v31  ;;  %8300 = vmatpush1.bf16.msra.mxu1 %v12159_v57  ;;  %v12203_v15 = vpack.c.bf16 %v809_v4, %v805_v7  ;;  %14558 = vst [vmem:[#allocation28_spill] sm:$0xff] %v12318_v63  ;;  %v14507_v0 = vsub.s32 1, %v12318_v63  ;;  %v843_v7 = vld [vmem:[%s14487_s3] sm:$0xf]  ;;  %v14508_v4 = vsub.s32 0, %v12318_v63  ;;  %v14512_v54 = vsub.s32 3, %v12318_v63 }
  0xbe   : > { %8302 = vmatprep.subr.bf16.mxu1 %v12162_v60 }
  0xbf   : > { %8332 = vmatpush1.bf16.msra.mxu0 %v11922_v9  ;;  %v12327_v10 = vrot.slane %v843_v7, %v14507_v0  ;;  %v12331_v14 = vrot.slane %v843_v7, %v14508_v4 }
  0xc0   : > { %1115 = vmatmul.mubr.f32.gmra.mrb[24].mxu1 %v11950_v19  ;;  %8334 = vmatprep.subr.bf16.mxu0 %v11929_v11  ;;  %v817_v19 = vld [vmem:[%s14486_s2 + $0x1b0] sm:$0xff] }
  0xc1   : > { %1120 = vmatprep.mubr.f32.mxu1 %v14505_v31  ;;  %8304 = vmatpush1.bf16.msra.mxu1 %v12181_v3  ;;  %v12225_v32 = vpack.c.bf16 %v817_v19, %v813_v21 }
  0xc2   : > { %8306 = vmatprep.subr.bf16.mxu1 %v12184_v6 }
  0xc3   : > { %8336 = vmatpush1.bf16.msra.mxu0 %v11962_v26 }
  0xc4   : > { %1121 = vmatmul.mubr.f32.gmra.mrb[26].mxu1 %v11990_v39  ;;  %8338 = vmatprep.subr.bf16.mxu0 %v11969_v28  ;;  %v825_v39 = vld [vmem:[%s14486_s2 + $0x1f0] sm:$0xff] }
  0xc5   : > { %1126 = vmatprep.mubr.f32.mxu1 %v14505_v31  ;;  %8308 = vmatpush1.bf16.msra.mxu1 %v12203_v15  ;;  %v12241_v25 = vpack.c.bf16 %v825_v39, %v821_v42  ;;  %v14509_v42 = vsub.s32 2, %v12318_v63 }
  0xc6   : > { %8310 = vmatprep.subr.bf16.mxu1 %v12206_v20 }
  0xc7   : > { %8340 = vmatpush1.bf16.msra.mxu0 %v12002_v46 }
  0xc8   : > { %1127 = vmatmul.mubr.f32.gmra.mrb[28].mxu1 %v12030_v58  ;;  %8342 = vmatprep.subr.bf16.mxu0 %v12009_v49 }
  0xc9   : > { %1132 = vmatprep.mubr.f32.mxu1 %v14505_v31  ;;  %8312 = vmatpush1.bf16.msra.mxu1 %v12225_v32 }
  0xca   : > { %8314 = vmatprep.subr.bf16.mxu1 %v12228_v34 }
  0xcb   : > { %8344 = vmatpush1.bf16.msra.mxu0 %v12042_v1 }
  0xcc   : > { %1133 = vmatmul.mubr.f32.gmra.mrb[30].mxu1 %v12064_v12  ;;  %8346 = vmatprep.subr.bf16.mxu0 %v12049_v5 }
  0xcd   : > { %1138 = vmatprep.mubr.f32.mxu1 %v14505_v31  ;;  %8316 = vmatpush1.bf16.msra.mxu1 %v12241_v25 }
  0xce   : > { %8350 = vmatprep.subr.bf16.mxu1 %v12066_v13 }
  0xcf   : > { %8348 = vmatpush1.bf16.msra.mxu0 %v12075_v18 }
  0xd0   : > { %1139 = vmatmul.mubr.f32.gmra.mrb[32].mxu1 %v11789_v23  ;;  %8382 = vmatprep.subr.bf16.mxu0 %v11771_v17 }
  0xd1   : > { %1144 = vmatprep.mubr.f32.mxu1 %v14505_v31 }
  0xd4   : > { %1145 = vmatmul.mubr.f32.gmra.mrb[34].mxu1 %v11827_v38 }
  0xd5   : > { %1150 = vmatprep.mubr.f32.mxu1 %v14505_v31 }
  0xd8   : > { %1151 = vmatmul.mubr.f32.gmra.mrb[36].mxu1 %v11867_v52 }
  0xd9   : > { %1156 = vmatprep.mubr.f32.mxu1 %v14505_v31 }
  0xdc   : > { %1157 = vmatmul.mubr.f32.gmra.mrb[38].mxu1 %v11907_v2 }
  0xdd   : > { %1162 = vmatprep.mubr.f32.mxu1 %v14505_v31 }
  0xe0   : > { %1163 = vmatmul.mubr.f32.gmra.mrb[40].mxu1 %v11947_v16 }
  0xe1   : > { %1168 = vmatprep.mubr.f32.mxu1 %v14505_v31 }
  0xe4   : > { %1169 = vmatmul.mubr.f32.gmra.mrb[42].mxu1 %v11987_v36 }
  0xe5   : > { %1174 = vmatprep.mubr.f32.mxu1 %v14505_v31 }
  0xe8   : > { %1175 = vmatmul.mubr.f32.gmra.mrb[44].mxu1 %v12027_v56 }
  0xe9   : > { %1180 = vmatprep.mubr.f32.mxu1 %v14505_v31 }
  0xec   : > { %1181 = vmatmul.mubr.f32.gmra.mrb[46].mxu1 %v12061_v8 }
  0xed   : > { %1392 = vmatprep.mubr.f32.mxu1 %v14505_v31 }
  0xf0   : > { %1393 = vmatmul.mubr.f32.vlgmr.msra.gmra.mrb[16].mxu1 %v12107_v35 }
  0xf1   : > { %8352 = vmatpush1.bf16.msra.mxu1 %v12088_v22  ;;  %1568 = vmatprep.mubr.f32.mxu1 %v14505_v31 }
  0xf2   : > { %8354 = vmatprep.subr.bf16.mxu1 %v12091_v24 }
  0xf5   : > { %8356 = vmatpush1.bf16.msra.mxu1 %v12113_v37 }
  0xf6   : > { %8358 = vmatprep.subr.bf16.mxu1 %v12116_v41 }
  0xf9   : > { %8360 = vmatpush1.bf16.msra.mxu1 %v12137_v48 }
  0xfa   : > { %8362 = vmatprep.subr.bf16.mxu1 %v12140_v50 }
  0xfd   : > { %8364 = vmatpush1.bf16.msra.mxu1 %v12159_v57 }
  0xfe   : > { %8366 = vmatprep.subr.bf16.mxu1 %v12162_v60 }
 0x101   : > { %8368 = vmatpush1.bf16.msra.mxu1 %v12181_v3 }
 0x102   : > { %8370 = vmatprep.subr.bf16.mxu1 %v12184_v6 }
 0x105   : > { %8372 = vmatpush1.bf16.msra.mxu1 %v12203_v15 }
 0x106   : > { %8374 = vmatprep.subr.bf16.mxu1 %v12206_v20 }
 0x109   : > { %8376 = vmatpush1.bf16.msra.mxu1 %v12225_v32 }
 0x10a   : > { %8378 = vmatprep.subr.bf16.mxu1 %v12228_v34 }
 0x10d   : > { %8380 = vmatpush1.bf16.msra.mxu1 %v12241_v25 }
 0x10e   : > { %8414 = vmatprep.subr.bf16.mxu1 %v12066_v13 }
 0x163   : > { %v12286_v23 = vpop.f32.mrb[0].mxu1 }
 0x164   : > { %v12288_v38 = vpop.f32.mrb[1].mxu1 }
 0x167   : > { %v12290_v52 = vpop.f32.mrb[2].mxu1 }
 0x168   : > { %v12292_v2 = vpop.f32.mrb[3].mxu1 }
 0x16b   : > { %v12294_v16 = vpop.f32.mrb[4].mxu1 }
 0x16c   : > { %v12296_v36 = vpop.f32.mrb[5].mxu1 }
 0x16f   : > { %v12298_v56 = vpop.f32.mrb[6].mxu1 }
 0x170   : > { %v12300_v58 = vpop.f32.mrb[7].mxu1 }
 0x173   : > { %v12302_v8 = vpop.f32.mrb[8].mxu1 }
 0x174   : > { %v12304_v12 = vpop.f32.mrb[9].mxu1 }
 0x177   : > { %v12306_v35 = vpop.f32.mrb[10].mxu1 }
 0x178   : > { %14552 = vst [vmem:[#allocation22_spill] sm:$0xff] %v12306_v35  ;;  %v12308_v43 = vpop.f32.mrb[11].mxu1 }
 0x179   : > { %14553 = vst [vmem:[#allocation23_spill] sm:$0xff] %v12308_v43 }
 0x17b   : > { %v12310_v44 = vpop.f32.mrb[12].mxu1 }
 0x17c   : > { %14554 = vst [vmem:[#allocation24_spill] sm:$0xff] %v12310_v44  ;;  %v12312_v51 = vpop.f32.mrb[13].mxu1 }
 0x17d   : > { %14555 = vst [vmem:[#allocation25_spill] sm:$0xff] %v12312_v51 }
 0x17f   : > { %v12314_v40 = vpop.f32.mrb[14].mxu1 }
 0x180   : > { %14556 = vst [vmem:[#allocation26_spill] sm:$0xff] %v12314_v40  ;;  %v12316_v53 = vpop.f32.mrb[15].mxu1  ;;  %v1252_v40 = vld [vmem:[#allocation3] sm:$0xff] }
 0x181   : > { %14557 = vst [vmem:[#allocation27_spill] sm:$0xff] %v12316_v53  ;;  %v12339_v53 = vrot.slane %v843_v7, %v14509_v42 }
 0x185   : > { %v1323_v55 = vpop.f32.mrb[0].mxu0 }
 0x186   : > { %v1325_v62 = vpop.f32.mrb[1].mxu0  ;;  %v10413_v19 = vadd.f32 %v1323_v55, %v12331_v14 }
 0x187   : > { %v10414_v21 = vadd.f32 %v1325_v62, %v12327_v10  ;;  %v12343_v62 = vrot.slane %v843_v7, %v14512_v54 }
 0x188   : > { %v7991_v29 = vmul.f32 -1.442695, %v10413_v19 }
 0x189   : > { %v7992_v27 = vmul.f32 -1.442695, %v10414_v21 }
 0x18b   : > { %10765 = vpow2.f32 %v7992_v27 }
 0x18c   : > { %10767 = vpow2.f32 %v7991_v29 }
 0x195   : > { %v10766_v39 = vpop.eup %10765 }
 0x196   : > { %v10768_v31 = vpop.eup %10767  ;;  %v1412_v0 = vadd.f32 1.0, %v10766_v39 }
 0x197   : > { %v1406_v4 = vadd.f32 1.0, %v10768_v31 }
 0x198   : > { %10769 = vrcp.f32 %v1412_v0 }
 0x199   : > { %10771 = vrcp.f32 %v1406_v4 }
 0x1a2   : > { %v10770_v39 = vpop.eup %10769 }
 0x1a3   : > { %v10772_v42 = vpop.eup %10771  ;;  %v1422_v31 = vmul.f32 %v10770_v39, %v1252_v40 }
 0x1c3   : > { %v1394_v55 = vpop.f32.mrb[16].mxu1 }
 0x1c4   : > { %v10461_v21 = vadd.f32 %v1394_v55, %v12339_v53  ;;  %v1396_v19 = vpop.f32.mrb[17].mxu1 }
 0x1c5   : > { %v10462_v27 = vadd.f32 %v1396_v19, %v12343_v62 }
 0x1c6   : > { %10773 = vtanh.f32 %v10461_v21 }
 0x1c7   : > { %v7993_v29 = vmul.f32 -1.442695, %v10462_v27 }
 0x1c9   : > { %10775 = vpow2.f32 %v7993_v29 }
 0x1d0   : > { %v10774_v51 = vpop.eup %10773 }
 0x1d1   : > { %v1423_v44 = vmul.f32 %v10774_v51, %v10772_v42 }
 0x1d3   : > { %v10776_v63 = vpop.eup %10775  ;;  %v12347_v7 = vadd.f32 %v1423_v44, %v1422_v31  ;;  %v14560_v44 = vmov 0.0  }
 0x1d4   : > { %v1419_v54 = vadd.f32 1.0, %v10776_v63 }
 0x1d5   : > { %10777 = vtanh.f32 %v12347_v7 }
 0x1d6   : > { %10779 = vrcp.f32 %v1419_v54 }
 0x1df   : > { %v10778_v0 = vpop.eup %10777 }
 0x1e0   : > { %v10780_v4 = vpop.eup %10779 }
 0x1e1   : > { %v12350_v55 = vmul.f32 %v10780_v4, %v10778_v0 }
 0x1e3   : > { %14559 = vst [vmem:[#allocation29_spill] sm:$0xff] %v12350_v55  ;;  %1498 = vmatmul.mubr.f32.vlgmr.msra.gmra.mrb[2].mxu0 %v12350_v55  ;;  %1569 = vmatmul.mubr.f32.vlgmr.msra.gmra.mrb[18].mxu1 %v12350_v55 }
 0x1e4   : > { %8384 = vmatpush1.bf16.msra.mxu0 %v11804_v30  ;;  %8416 = vmatpush1.bf16.msra.mxu1 %v12088_v22 }
 0x1e5   : > { %8386 = vmatprep.subr.bf16.mxu0 %v11809_v33  ;;  %8418 = vmatprep.subr.bf16.mxu1 %v12091_v24 }
 0x1e6   : > { %1674 = vmatprep.mubr.f32.mxu0 %v14560_v44  ;;  %1745 = vmatprep.mubr.f32.mxu1 %v14560_v44 }
 0x1e8   : > { %8388 = vmatpush1.bf16.msra.mxu0 %v11842_v45  ;;  %8420 = vmatpush1.bf16.msra.mxu1 %v12113_v37 }
 0x1e9   : > { %8390 = vmatprep.subr.bf16.mxu0 %v11849_v47  ;;  %8422 = vmatprep.subr.bf16.mxu1 %v12116_v41 }
 0x1ec   : > { %8392 = vmatpush1.bf16.msra.mxu0 %v11882_v59  ;;  %8424 = vmatpush1.bf16.msra.mxu1 %v12137_v48 }
 0x1ed   : > { %8394 = vmatprep.subr.bf16.mxu0 %v11889_v61  ;;  %8426 = vmatprep.subr.bf16.mxu1 %v12140_v50 }
 0x1f0   : > { %8396 = vmatpush1.bf16.msra.mxu0 %v11922_v9  ;;  %8428 = vmatpush1.bf16.msra.mxu1 %v12159_v57 }
 0x1f1   : > { %8398 = vmatprep.subr.bf16.mxu0 %v11929_v11  ;;  %8430 = vmatprep.subr.bf16.mxu1 %v12162_v60 }
 0x1f4   : > { %8400 = vmatpush1.bf16.msra.mxu0 %v11962_v26  ;;  %8432 = vmatpush1.bf16.msra.mxu1 %v12181_v3 }
 0x1f5   : > { %8402 = vmatprep.subr.bf16.mxu0 %v11969_v28  ;;  %8434 = vmatprep.subr.bf16.mxu1 %v12184_v6 }
 0x1f8   : > { %8404 = vmatpush1.bf16.msra.mxu0 %v12002_v46  ;;  %8436 = vmatpush1.bf16.msra.mxu1 %v12203_v15 }
 0x1f9   : > { %8406 = vmatprep.subr.bf16.mxu0 %v12009_v49  ;;  %8438 = vmatprep.subr.bf16.mxu1 %v12206_v20 }
 0x1fc   : > { %8408 = vmatpush1.bf16.msra.mxu0 %v12042_v1  ;;  %8440 = vmatpush1.bf16.msra.mxu1 %v12225_v32 }
 0x1fd   : > { %8410 = vmatprep.subr.bf16.mxu0 %v12049_v5  ;;  %8442 = vmatprep.subr.bf16.mxu1 %v12228_v34 }
 0x200   : > { %8412 = vmatpush1.bf16.msra.mxu0 %v12075_v18  ;;  %8444 = vmatpush1.bf16.msra.mxu1 %v12241_v25 }
 0x201   : > { %8446 = vmatprep.subr.bf16.mxu0 %v11771_v17  ;;  %8478 = vmatprep.subr.bf16.mxu1 %v12066_v13 }
 0x2b6   : > { %v1499_v51 = vpop.f32.mrb[2].mxu0  ;;  %v1570_v40 = vpop.f32.mrb[18].mxu1 }
 0x2b7   : > { %v10415_v63 = vadd.f32 %v1499_v51, %v12331_v14  ;;  %v1501_v42 = vpop.f32.mrb[3].mxu0  ;;  %v1572_v54 = vpop.f32.mrb[19].mxu1  ;;  %v10463_v31 = vadd.f32 %v1570_v40, %v12339_v53 }
 0x2b8   : > { %v10416_v21 = vadd.f32 %v1501_v42, %v12327_v10  ;;  %v10464_v29 = vadd.f32 %v1572_v54, %v12343_v62 }
 0x2b9   : > { %v7994_v19 = vmul.f32 -1.442695, %v10415_v63 }
 0x2ba   : > { %v7995_v27 = vmul.f32 -1.442695, %v10416_v21  ;;  %v7996_v39 = vmul.f32 -1.442695, %v10464_v29 }
 0x2bb   : > { %10781 = vpow2.f32 %v7994_v19 }
 0x2bc   : > { %10783 = vpow2.f32 %v7995_v27 }
 0x2bd   : > { %10785 = vpow2.f32 %v7996_v39 }
 0x2be   : > { %10787 = vtanh.f32 %v10463_v31 }
 0x2c5   : > { %v10782_v0 = vpop.eup %10781 }
 0x2c6   : > { %v10784_v4 = vpop.eup %10783  ;;  %v1582_v55 = vadd.f32 1.0, %v10782_v0 }
 0x2c7   : > { %v1588_v43 = vadd.f32 1.0, %v10784_v4  ;;  %v10786_v51 = vpop.eup %10785 }
 0x2c8   : > { %10789 = vrcp.f32 %v1582_v55  ;;  %v10788_v35 = vpop.eup %10787  ;;  %v1595_v19 = vadd.f32 1.0, %v10786_v51 }
 0x2c9   : > { %10791 = vrcp.f32 %v1588_v43 }
 0x2ca   : > { %10793 = vrcp.f32 %v1595_v19 }
 0x2d2   : > { %v10790_v42 = vpop.eup %10789 }
 0x2d3   : > { %v10792_v63 = vpop.eup %10791  ;;  %v1599_v21 = vmul.f32 %v10790_v42, %v10788_v35 }
 0x2d4   : > { %v1598_v27 = vmul.f32 %v10792_v63, %v12347_v7  ;;  %v10794_v40 = vpop.eup %10793 }
 0x2d6   : > { %v12393_v54 = vadd.f32 %v1599_v21, %v1598_v27 }
 0x2d8   : > { %10795 = vtanh.f32 %v12393_v54 }
 0x2e2   : > { %v10796_v29 = vpop.eup %10795 }
 0x2e3   : > { %v12396_v39 = vmul.f32 %v10796_v29, %v10794_v40 }
 0x2e5   : > { %14561 = vst [vmem:[#allocation30_spill] sm:$0xff] %v12396_v39  ;;  %1675 = vmatmul.mubr.f32.vlgmr.msra.gmra.mrb[4].mxu0 %v12396_v39  ;;  %1746 = vmatmul.mubr.f32.vlgmr.msra.gmra.mrb[20].mxu1 %v12396_v39 }
 0x2e6   : > { %8448 = vmatpush1.bf16.msra.mxu0 %v11804_v30  ;;  %8480 = vmatpush1.bf16.msra.mxu1 %v12088_v22 }
 0x2e7   : > { %8450 = vmatprep.subr.bf16.mxu0 %v11809_v33  ;;  %8482 = vmatprep.subr.bf16.mxu1 %v12091_v24 }
 0x2e8   : > { %1851 = vmatprep.mubr.f32.mxu0 %v14560_v44  ;;  %1922 = vmatprep.mubr.f32.mxu1 %v14560_v44 }
 0x2ea   : > { %8452 = vmatpush1.bf16.msra.mxu0 %v11842_v45  ;;  %8484 = vmatpush1.bf16.msra.mxu1 %v12113_v37 }
 0x2eb   : > { %8454 = vmatprep.subr.bf16.mxu0 %v11849_v47  ;;  %8486 = vmatprep.subr.bf16.mxu1 %v12116_v41 }
 0x2ee   : > { %8456 = vmatpush1.bf16.msra.mxu0 %v11882_v59  ;;  %8488 = vmatpush1.bf16.msra.mxu1 %v12137_v48 }
 0x2ef   : > { %8458 = vmatprep.subr.bf16.mxu0 %v11889_v61  ;;  %8490 = vmatprep.subr.bf16.mxu1 %v12140_v50 }
 0x2f2   : > { %8460 = vmatpush1.bf16.msra.mxu0 %v11922_v9  ;;  %8492 = vmatpush1.bf16.msra.mxu1 %v12159_v57 }
 0x2f3   : > { %8462 = vmatprep.subr.bf16.mxu0 %v11929_v11  ;;  %8494 = vmatprep.subr.bf16.mxu1 %v12162_v60 }
 0x2f6   : > { %8464 = vmatpush1.bf16.msra.mxu0 %v11962_v26  ;;  %8496 = vmatpush1.bf16.msra.mxu1 %v12181_v3 }
 0x2f7   : > { %8466 = vmatprep.subr.bf16.mxu0 %v11969_v28  ;;  %8498 = vmatprep.subr.bf16.mxu1 %v12184_v6 }
 0x2fa   : > { %8468 = vmatpush1.bf16.msra.mxu0 %v12002_v46  ;;  %8500 = vmatpush1.bf16.msra.mxu1 %v12203_v15 }
 0x2fb   : > { %8470 = vmatprep.subr.bf16.mxu0 %v12009_v49  ;;  %8502 = vmatprep.subr.bf16.mxu1 %v12206_v20 }
 0x2fe   : > { %8472 = vmatpush1.bf16.msra.mxu0 %v12042_v1  ;;  %8504 = vmatpush1.bf16.msra.mxu1 %v12225_v32 }
 0x2ff   : > { %8474 = vmatprep.subr.bf16.mxu0 %v12049_v5  ;;  %8506 = vmatprep.subr.bf16.mxu1 %v12228_v34 }
 0x302   : > { %8476 = vmatpush1.bf16.msra.mxu0 %v12075_v18  ;;  %8508 = vmatpush1.bf16.msra.mxu1 %v12241_v25 }
 0x303   : > { %8510 = vmatprep.subr.bf16.mxu0 %v11771_v17  ;;  %8542 = vmatprep.subr.bf16.mxu1 %v12066_v13 }
 0x3b8   : > { %v1676_v35 = vpop.f32.mrb[4].mxu0  ;;  %v1747_v43 = vpop.f32.mrb[20].mxu1 }
 0x3b9   : > { %v10417_v7 = vadd.f32 %v1676_v35, %v12331_v14  ;;  %v1678_v55 = vpop.f32.mrb[5].mxu0  ;;  %v1749_v31 = vpop.f32.mrb[21].mxu1  ;;  %v10465_v21 = vadd.f32 %v1747_v43, %v12339_v53 }
 0x3ba   : > { %v10418_v0 = vadd.f32 %v1678_v55, %v12327_v10  ;;  %v10466_v42 = vadd.f32 %v1749_v31, %v12343_v62 }
 0x3bb   : > { %v7997_v4 = vmul.f32 -1.442695, %v10417_v7 }
 0x3bc   : > { %v7998_v51 = vmul.f32 -1.442695, %v10418_v0  ;;  %v7999_v63 = vmul.f32 -1.442695, %v10466_v42 }
 0x3bd   : > { %10797 = vpow2.f32 %v7997_v4 }
 0x3be   : > { %10799 = vpow2.f32 %v7998_v51 }
 0x3bf   : > { %10801 = vpow2.f32 %v7999_v63 }
 0x3c0   : > { %10803 = vtanh.f32 %v10465_v21 }
 0x3c7   : > { %v10798_v19 = vpop.eup %10797 }
 0x3c8   : > { %v10800_v27 = vpop.eup %10799  ;;  %v1759_v40 = vadd.f32 1.0, %v10798_v19 }
 0x3c9   : > { %v1765_v29 = vadd.f32 1.0, %v10800_v27  ;;  %v10802_v35 = vpop.eup %10801 }
 0x3ca   : > { %10805 = vrcp.f32 %v1759_v40  ;;  %v10804_v39 = vpop.eup %10803  ;;  %v1772_v4 = vadd.f32 1.0, %v10802_v35 }
 0x3cb   : > { %10807 = vrcp.f32 %v1765_v29 }
 0x3cc   : > { %10809 = vrcp.f32 %v1772_v4 }
 0x3d4   : > { %v10806_v55 = vpop.eup %10805 }
 0x3d5   : > { %v10808_v7 = vpop.eup %10807  ;;  %v1776_v0 = vmul.f32 %v10806_v55, %v10804_v39 }
 0x3d6   : > { %v1775_v51 = vmul.f32 %v10808_v7, %v12393_v54  ;;  %v10810_v43 = vpop.eup %10809 }
 0x3d8   : > { %v12439_v31 = vadd.f32 %v1776_v0, %v1775_v51 }
 0x3da   : > { %10811 = vtanh.f32 %v12439_v31 }
 0x3e4   : > { %v10812_v42 = vpop.eup %10811 }
 0x3e5   : > { %v12442_v63 = vmul.f32 %v10812_v42, %v10810_v43 }
 0x3e7   : > { %14562 = vst [vmem:[#allocation31_spill] sm:$0xff] %v12442_v63  ;;  %1852 = vmatmul.mubr.f32.vlgmr.msra.gmra.mrb[6].mxu0 %v12442_v63  ;;  %1923 = vmatmul.mubr.f32.vlgmr.msra.gmra.mrb[22].mxu1 %v12442_v63 }
 0x3e8   : > { %8512 = vmatpush1.bf16.msra.mxu0 %v11804_v30  ;;  %8544 = vmatpush1.bf16.msra.mxu1 %v12088_v22 }
 0x3e9   : > { %8514 = vmatprep.subr.bf16.mxu0 %v11809_v33  ;;  %8546 = vmatprep.subr.bf16.mxu1 %v12091_v24 }
 0x3ea   : > { %2028 = vmatprep.mubr.f32.mxu0 %v14560_v44  ;;  %2099 = vmatprep.mubr.f32.mxu1 %v14560_v44 }
 0x3ec   : > { %8516 = vmatpush1.bf16.msra.mxu0 %v11842_v45  ;;  %8548 = vmatpush1.bf16.msra.mxu1 %v12113_v37 }
 0x3ed   : > { %8518 = vmatprep.subr.bf16.mxu0 %v11849_v47  ;;  %8550 = vmatprep.subr.bf16.mxu1 %v12116_v41 }
 0x3f0   : > { %8520 = vmatpush1.bf16.msra.mxu0 %v11882_v59  ;;  %8552 = vmatpush1.bf16.msra.mxu1 %v12137_v48 }
 0x3f1   : > { %8522 = vmatprep.subr.bf16.mxu0 %v11889_v61  ;;  %8554 = vmatprep.subr.bf16.mxu1 %v12140_v50 }
 0x3f4   : > { %8524 = vmatpush1.bf16.msra.mxu0 %v11922_v9  ;;  %8556 = vmatpush1.bf16.msra.mxu1 %v12159_v57 }
 0x3f5   : > { %8526 = vmatprep.subr.bf16.mxu0 %v11929_v11  ;;  %8558 = vmatprep.subr.bf16.mxu1 %v12162_v60 }
 0x3f8   : > { %8528 = vmatpush1.bf16.msra.mxu0 %v11962_v26  ;;  %8560 = vmatpush1.bf16.msra.mxu1 %v12181_v3 }
 0x3f9   : > { %8530 = vmatprep.subr.bf16.mxu0 %v11969_v28  ;;  %8562 = vmatprep.subr.bf16.mxu1 %v12184_v6 }
 0x3fc   : > { %8532 = vmatpush1.bf16.msra.mxu0 %v12002_v46  ;;  %8564 = vmatpush1.bf16.msra.mxu1 %v12203_v15 }
 0x3fd   : > { %8534 = vmatprep.subr.bf16.mxu0 %v12009_v49  ;;  %8566 = vmatprep.subr.bf16.mxu1 %v12206_v20 }
 0x400   : > { %8536 = vmatpush1.bf16.msra.mxu0 %v12042_v1  ;;  %8568 = vmatpush1.bf16.msra.mxu1 %v12225_v32 }
 0x401   : > { %8538 = vmatprep.subr.bf16.mxu0 %v12049_v5  ;;  %8570 = vmatprep.subr.bf16.mxu1 %v12228_v34 }
 0x404   : > { %8540 = vmatpush1.bf16.msra.mxu0 %v12075_v18  ;;  %8572 = vmatpush1.bf16.msra.mxu1 %v12241_v25 }
 0x405   : > { %8574 = vmatprep.subr.bf16.mxu0 %v11771_v17  ;;  %8606 = vmatprep.subr.bf16.mxu1 %v12066_v13 }
 0x4ba   : > { %v1853_v54 = vpop.f32.mrb[6].mxu0  ;;  %v1924_v39 = vpop.f32.mrb[22].mxu1 }
 0x4bb   : > { %v10419_v21 = vadd.f32 %v1853_v54, %v12331_v14  ;;  %v1855_v19 = vpop.f32.mrb[7].mxu0  ;;  %v1926_v27 = vpop.f32.mrb[23].mxu1  ;;  %v10467_v0 = vadd.f32 %v1924_v39, %v12339_v53 }
 0x4bc   : > { %v10420_v40 = vadd.f32 %v1855_v19, %v12327_v10  ;;  %v10468_v55 = vadd.f32 %v1926_v27, %v12343_v62 }
 0x4bd   : > { %v8000_v29 = vmul.f32 -1.442695, %v10419_v21 }
 0x4be   : > { %v8001_v35 = vmul.f32 -1.442695, %v10420_v40  ;;  %v8002_v7 = vmul.f32 -1.442695, %v10468_v55 }
 0x4bf   : > { %10813 = vpow2.f32 %v8000_v29 }
 0x4c0   : > { %10815 = vpow2.f32 %v8001_v35 }
 0x4c1   : > { %10817 = vpow2.f32 %v8002_v7 }
 0x4c2   : > { %10819 = vtanh.f32 %v10467_v0 }
 0x4c9   : > { %v10814_v4 = vpop.eup %10813 }
 0x4ca   : > { %v10816_v51 = vpop.eup %10815  ;;  %v1936_v43 = vadd.f32 1.0, %v10814_v4 }
 0x4cb   : > { %v1942_v42 = vadd.f32 1.0, %v10816_v51  ;;  %v10818_v54 = vpop.eup %10817 }
 0x4cc   : > { %10821 = vrcp.f32 %v1936_v43  ;;  %v10820_v63 = vpop.eup %10819  ;;  %v1949_v29 = vadd.f32 1.0, %v10818_v54 }
 0x4cd   : > { %10823 = vrcp.f32 %v1942_v42 }
 0x4ce   : > { %10825 = vrcp.f32 %v1949_v29 }
 0x4d6   : > { %v10822_v19 = vpop.eup %10821 }
 0x4d7   : > { %v10824_v21 = vpop.eup %10823  ;;  %v1953_v40 = vmul.f32 %v10822_v19, %v10820_v63 }
 0x4d8   : > { %v1952_v35 = vmul.f32 %v10824_v21, %v12439_v31  ;;  %v10826_v39 = vpop.eup %10825 }
 0x4da   : > { %v12485_v27 = vadd.f32 %v1953_v40, %v1952_v35 }
 0x4dc   : > { %10827 = vtanh.f32 %v12485_v27 }
 0x4e6   : > { %v10828_v55 = vpop.eup %10827 }
 0x4e7   : > { %v12488_v7 = vmul.f32 %v10828_v55, %v10826_v39 }
 0x4e9   : > { %14563 = vst [vmem:[#allocation32_spill] sm:$0xff] %v12488_v7  ;;  %2029 = vmatmul.mubr.f32.vlgmr.msra.gmra.mrb[8].mxu0 %v12488_v7  ;;  %2100 = vmatmul.mubr.f32.vlgmr.msra.gmra.mrb[24].mxu1 %v12488_v7 }
 0x4ea   : > { %8576 = vmatpush1.bf16.msra.mxu0 %v11804_v30  ;;  %8608 = vmatpush1.bf16.msra.mxu1 %v12088_v22 }
 0x4eb   : > { %8578 = vmatprep.subr.bf16.mxu0 %v11809_v33  ;;  %8610 = vmatprep.subr.bf16.mxu1 %v12091_v24 }
 0x4ec   : > { %2205 = vmatprep.mubr.f32.mxu0 %v14560_v44  ;;  %2276 = vmatprep.mubr.f32.mxu1 %v14560_v44 }
 0x4ee   : > { %8580 = vmatpush1.bf16.msra.mxu0 %v11842_v45  ;;  %8612 = vmatpush1.bf16.msra.mxu1 %v12113_v37 }
 0x4ef   : > { %8582 = vmatprep.subr.bf16.mxu0 %v11849_v47  ;;  %8614 = vmatprep.subr.bf16.mxu1 %v12116_v41 }
 0x4f2   : > { %8584 = vmatpush1.bf16.msra.mxu0 %v11882_v59  ;;  %8616 = vmatpush1.bf16.msra.mxu1 %v12137_v48 }
 0x4f3   : > { %8586 = vmatprep.subr.bf16.mxu0 %v11889_v61  ;;  %8618 = vmatprep.subr.bf16.mxu1 %v12140_v50 }
 0x4f6   : > { %8588 = vmatpush1.bf16.msra.mxu0 %v11922_v9  ;;  %8620 = vmatpush1.bf16.msra.mxu1 %v12159_v57 }
 0x4f7   : > { %8590 = vmatprep.subr.bf16.mxu0 %v11929_v11  ;;  %8622 = vmatprep.subr.bf16.mxu1 %v12162_v60 }
 0x4fa   : > { %8592 = vmatpush1.bf16.msra.mxu0 %v11962_v26  ;;  %8624 = vmatpush1.bf16.msra.mxu1 %v12181_v3 }
 0x4fb   : > { %8594 = vmatprep.subr.bf16.mxu0 %v11969_v28  ;;  %8626 = vmatprep.subr.bf16.mxu1 %v12184_v6 }
 0x4fe   : > { %8596 = vmatpush1.bf16.msra.mxu0 %v12002_v46  ;;  %8628 = vmatpush1.bf16.msra.mxu1 %v12203_v15 }
 0x4ff   : > { %8598 = vmatprep.subr.bf16.mxu0 %v12009_v49  ;;  %8630 = vmatprep.subr.bf16.mxu1 %v12206_v20 }
 0x502   : > { %8600 = vmatpush1.bf16.msra.mxu0 %v12042_v1  ;;  %8632 = vmatpush1.bf16.msra.mxu1 %v12225_v32 }
 0x503   : > { %8602 = vmatprep.subr.bf16.mxu0 %v12049_v5  ;;  %8634 = vmatprep.subr.bf16.mxu1 %v12228_v34 }
 0x506   : > { %8604 = vmatpush1.bf16.msra.mxu0 %v12075_v18  ;;  %8636 = vmatpush1.bf16.msra.mxu1 %v12241_v25 }
 0x507   : > { %8638 = vmatprep.subr.bf16.mxu0 %v11771_v17  ;;  %8670 = vmatprep.subr.bf16.mxu1 %v12066_v13 }
 0x5bc   : > { %v2030_v31 = vpop.f32.mrb[8].mxu0  ;;  %v2101_v63 = vpop.f32.mrb[24].mxu1 }
 0x5bd   : > { %v10421_v0 = vadd.f32 %v2030_v31, %v12331_v14  ;;  %v2032_v4 = vpop.f32.mrb[9].mxu0  ;;  %v2103_v51 = vpop.f32.mrb[25].mxu1  ;;  %v10469_v40 = vadd.f32 %v2101_v63, %v12339_v53 }
 0x5be   : > { %v10422_v43 = vadd.f32 %v2032_v4, %v12327_v10  ;;  %v10470_v19 = vadd.f32 %v2103_v51, %v12343_v62 }
 0x5bf   : > { %v8003_v42 = vmul.f32 -1.442695, %v10421_v0 }
 0x5c0   : > { %v8004_v54 = vmul.f32 -1.442695, %v10422_v43  ;;  %v8005_v21 = vmul.f32 -1.442695, %v10470_v19 }
 0x5c1   : > { %10829 = vpow2.f32 %v8003_v42 }
 0x5c2   : > { %10831 = vpow2.f32 %v8004_v54 }
 0x5c3   : > { %10833 = vpow2.f32 %v8005_v21 }
 0x5c4   : > { %10835 = vtanh.f32 %v10469_v40 }
 0x5cb   : > { %v10830_v29 = vpop.eup %10829 }
 0x5cc   : > { %v10832_v35 = vpop.eup %10831  ;;  %v2113_v39 = vadd.f32 1.0, %v10830_v29 }
 0x5cd   : > { %v2119_v55 = vadd.f32 1.0, %v10832_v35  ;;  %v10834_v31 = vpop.eup %10833 }
 0x5ce   : > { %10837 = vrcp.f32 %v2113_v39  ;;  %v10836_v7 = vpop.eup %10835  ;;  %v2126_v42 = vadd.f32 1.0, %v10834_v31 }
 0x5cf   : > { %10839 = vrcp.f32 %v2119_v55 }
 0x5d0   : > { %10841 = vrcp.f32 %v2126_v42 }
 0x5d8   : > { %v10838_v4 = vpop.eup %10837 }
 0x5d9   : > { %v10840_v0 = vpop.eup %10839  ;;  %v2130_v43 = vmul.f32 %v10838_v4, %v10836_v7 }
 0x5da   : > { %v2129_v54 = vmul.f32 %v10840_v0, %v12485_v27  ;;  %v10842_v63 = vpop.eup %10841 }
 0x5dc   : > { %v12531_v51 = vadd.f32 %v2130_v43, %v2129_v54 }
 0x5de   : > { %10843 = vtanh.f32 %v12531_v51 }
 0x5e8   : > { %v10844_v19 = vpop.eup %10843 }
 0x5e9   : > { %v12534_v21 = vmul.f32 %v10844_v19, %v10842_v63 }
 0x5eb   : > { %14564 = vst [vmem:[#allocation33_spill] sm:$0xff] %v12534_v21  ;;  %2206 = vmatmul.mubr.f32.vlgmr.msra.gmra.mrb[10].mxu0 %v12534_v21  ;;  %2277 = vmatmul.mubr.f32.vlgmr.msra.gmra.mrb[26].mxu1 %v12534_v21 }
 0x5ec   : > { %8640 = vmatpush1.bf16.msra.mxu0 %v11804_v30  ;;  %8672 = vmatpush1.bf16.msra.mxu1 %v12088_v22 }
 0x5ed   : > { %8642 = vmatprep.subr.bf16.mxu0 %v11809_v33  ;;  %8674 = vmatprep.subr.bf16.mxu1 %v12091_v24 }
 0x5ee   : > { %2382 = vmatprep.mubr.f32.mxu0 %v14560_v44  ;;  %2453 = vmatprep.mubr.f32.mxu1 %v14560_v44 }
 0x5f0   : > { %8644 = vmatpush1.bf16.msra.mxu0 %v11842_v45  ;;  %8676 = vmatpush1.bf16.msra.mxu1 %v12113_v37 }
 0x5f1   : > { %8646 = vmatprep.subr.bf16.mxu0 %v11849_v47  ;;  %8678 = vmatprep.subr.bf16.mxu1 %v12116_v41 }
 0x5f4   : > { %8648 = vmatpush1.bf16.msra.mxu0 %v11882_v59  ;;  %8680 = vmatpush1.bf16.msra.mxu1 %v12137_v48 }
 0x5f5   : > { %8650 = vmatprep.subr.bf16.mxu0 %v11889_v61  ;;  %8682 = vmatprep.subr.bf16.mxu1 %v12140_v50 }
 0x5f8   : > { %8652 = vmatpush1.bf16.msra.mxu0 %v11922_v9  ;;  %8684 = vmatpush1.bf16.msra.mxu1 %v12159_v57 }
 0x5f9   : > { %8654 = vmatprep.subr.bf16.mxu0 %v11929_v11  ;;  %8686 = vmatprep.subr.bf16.mxu1 %v12162_v60 }
 0x5fc   : > { %8656 = vmatpush1.bf16.msra.mxu0 %v11962_v26  ;;  %8688 = vmatpush1.bf16.msra.mxu1 %v12181_v3 }
 0x5fd   : > { %8658 = vmatprep.subr.bf16.mxu0 %v11969_v28  ;;  %8690 = vmatprep.subr.bf16.mxu1 %v12184_v6 }
 0x600   : > { %8660 = vmatpush1.bf16.msra.mxu0 %v12002_v46  ;;  %8692 = vmatpush1.bf16.msra.mxu1 %v12203_v15 }
 0x601   : > { %8662 = vmatprep.subr.bf16.mxu0 %v12009_v49  ;;  %8694 = vmatprep.subr.bf16.mxu1 %v12206_v20 }
 0x604   : > { %8664 = vmatpush1.bf16.msra.mxu0 %v12042_v1  ;;  %8696 = vmatpush1.bf16.msra.mxu1 %v12225_v32 }
 0x605   : > { %8666 = vmatprep.subr.bf16.mxu0 %v12049_v5  ;;  %8698 = vmatprep.subr.bf16.mxu1 %v12228_v34 }
 0x608   : > { %8668 = vmatpush1.bf16.msra.mxu0 %v12075_v18  ;;  %8700 = vmatpush1.bf16.msra.mxu1 %v12241_v25 }
 0x609   : > { %8702 = vmatprep.subr.bf16.mxu0 %v11771_v17  ;;  %8734 = vmatprep.subr.bf16.mxu1 %v12066_v13 }
 0x6be   : > { %v2207_v27 = vpop.f32.mrb[10].mxu0  ;;  %v2278_v7 = vpop.f32.mrb[26].mxu1 }
 0x6bf   : > { %v10423_v40 = vadd.f32 %v2207_v27, %v12331_v14  ;;  %v2209_v29 = vpop.f32.mrb[11].mxu0  ;;  %v2280_v35 = vpop.f32.mrb[27].mxu1  ;;  %v10471_v43 = vadd.f32 %v2278_v7, %v12339_v53 }
 0x6c0   : > { %v10424_v39 = vadd.f32 %v2209_v29, %v12327_v10  ;;  %v10472_v4 = vadd.f32 %v2280_v35, %v12343_v62 }
 0x6c1   : > { %v8006_v55 = vmul.f32 -1.442695, %v10423_v40 }
 0x6c2   : > { %v8007_v31 = vmul.f32 -1.442695, %v10424_v39  ;;  %v8008_v0 = vmul.f32 -1.442695, %v10472_v4 }
 0x6c3   : > { %10845 = vpow2.f32 %v8006_v55 }
 0x6c4   : > { %10847 = vpow2.f32 %v8007_v31 }
 0x6c5   : > { %10849 = vpow2.f32 %v8008_v0 }
 0x6c6   : > { %10851 = vtanh.f32 %v10471_v43 }
 0x6cd   : > { %v10846_v42 = vpop.eup %10845 }
 0x6ce   : > { %v10848_v54 = vpop.eup %10847  ;;  %v2290_v63 = vadd.f32 1.0, %v10846_v42 }
 0x6cf   : > { %v2296_v19 = vadd.f32 1.0, %v10848_v54  ;;  %v10850_v27 = vpop.eup %10849 }
 0x6d0   : > { %10853 = vrcp.f32 %v2290_v63  ;;  %v10852_v21 = vpop.eup %10851  ;;  %v2303_v55 = vadd.f32 1.0, %v10850_v27 }
 0x6d1   : > { %10855 = vrcp.f32 %v2296_v19 }
 0x6d2   : > { %10857 = vrcp.f32 %v2303_v55 }
 0x6da   : > { %v10854_v29 = vpop.eup %10853 }
 0x6db   : > { %v10856_v40 = vpop.eup %10855  ;;  %v2307_v39 = vmul.f32 %v10854_v29, %v10852_v21 }
 0x6dc   : > { %v2306_v31 = vmul.f32 %v10856_v40, %v12531_v51  ;;  %v10858_v7 = vpop.eup %10857 }
 0x6de   : > { %v12577_v35 = vadd.f32 %v2307_v39, %v2306_v31 }
 0x6e0   : > { %10859 = vtanh.f32 %v12577_v35 }
 0x6ea   : > { %v10860_v4 = vpop.eup %10859 }
 0x6eb   : > { %v12580_v0 = vmul.f32 %v10860_v4, %v10858_v7 }
 0x6ed   : > { %14565 = vst [vmem:[#allocation34_spill] sm:$0xff] %v12580_v0  ;;  %2383 = vmatmul.mubr.f32.vlgmr.msra.gmra.mrb[12].mxu0 %v12580_v0  ;;  %2454 = vmatmul.mubr.f32.vlgmr.msra.gmra.mrb[28].mxu1 %v12580_v0 }
 0x6ee   : > { %8704 = vmatpush1.bf16.msra.mxu0 %v11804_v30  ;;  %8736 = vmatpush1.bf16.msra.mxu1 %v12088_v22 }
 0x6ef   : > { %8706 = vmatprep.subr.bf16.mxu0 %v11809_v33  ;;  %8738 = vmatprep.subr.bf16.mxu1 %v12091_v24 }
 0x6f0   : > { %2559 = vmatprep.mubr.f32.mxu0 %v14560_v44  ;;  %2630 = vmatprep.mubr.f32.mxu1 %v14560_v44 }
 0x6f2   : > { %8708 = vmatpush1.bf16.msra.mxu0 %v11842_v45  ;;  %8740 = vmatpush1.bf16.msra.mxu1 %v12113_v37 }
 0x6f3   : > { %8710 = vmatprep.subr.bf16.mxu0 %v11849_v47  ;;  %8742 = vmatprep.subr.bf16.mxu1 %v12116_v41 }
 0x6f6   : > { %8712 = vmatpush1.bf16.msra.mxu0 %v11882_v59  ;;  %8744 = vmatpush1.bf16.msra.mxu1 %v12137_v48 }
 0x6f7   : > { %8714 = vmatprep.subr.bf16.mxu0 %v11889_v61  ;;  %8746 = vmatprep.subr.bf16.mxu1 %v12140_v50 }
 0x6fa   : > { %8716 = vmatpush1.bf16.msra.mxu0 %v11922_v9  ;;  %8748 = vmatpush1.bf16.msra.mxu1 %v12159_v57 }
 0x6fb   : > { %8718 = vmatprep.subr.bf16.mxu0 %v11929_v11  ;;  %8750 = vmatprep.subr.bf16.mxu1 %v12162_v60 }
 0x6fe   : > { %8720 = vmatpush1.bf16.msra.mxu0 %v11962_v26  ;;  %8752 = vmatpush1.bf16.msra.mxu1 %v12181_v3 }
 0x6ff   : > { %8722 = vmatprep.subr.bf16.mxu0 %v11969_v28  ;;  %8754 = vmatprep.subr.bf16.mxu1 %v12184_v6 }
 0x702   : > { %8724 = vmatpush1.bf16.msra.mxu0 %v12002_v46  ;;  %8756 = vmatpush1.bf16.msra.mxu1 %v12203_v15 }
 0x703   : > { %8726 = vmatprep.subr.bf16.mxu0 %v12009_v49  ;;  %8758 = vmatprep.subr.bf16.mxu1 %v12206_v20 }
 0x706   : > { %8728 = vmatpush1.bf16.msra.mxu0 %v12042_v1  ;;  %8760 = vmatpush1.bf16.msra.mxu1 %v12225_v32 }
 0x707   : > { %8730 = vmatprep.subr.bf16.mxu0 %v12049_v5  ;;  %8762 = vmatprep.subr.bf16.mxu1 %v12228_v34 }
 0x70a   : > { %8732 = vmatpush1.bf16.msra.mxu0 %v12075_v18  ;;  %8764 = vmatpush1.bf16.msra.mxu1 %v12241_v25 }
 0x70b   : > { %8766 = vmatprep.subr.bf16.mxu0 %v11771_v17  ;;  %8798 = vmatprep.subr.bf16.mxu1 %v12066_v13 }
 0x7c0   : > { %v2384_v51 = vpop.f32.mrb[12].mxu0  ;;  %v2455_v21 = vpop.f32.mrb[28].mxu1 }
 0x7c1   : > { %v10425_v43 = vadd.f32 %v2384_v51, %v12331_v14  ;;  %v2386_v42 = vpop.f32.mrb[13].mxu0  ;;  %v2457_v54 = vpop.f32.mrb[29].mxu1  ;;  %v10473_v39 = vadd.f32 %v2455_v21, %v12339_v53 }
 0x7c2   : > { %v10426_v63 = vadd.f32 %v2386_v42, %v12327_v10  ;;  %v10474_v29 = vadd.f32 %v2457_v54, %v12343_v62 }
 0x7c3   : > { %v8009_v19 = vmul.f32 -1.442695, %v10425_v43 }
 0x7c4   : > { %v8010_v27 = vmul.f32 -1.442695, %v10426_v63  ;;  %v8011_v40 = vmul.f32 -1.442695, %v10474_v29 }
 0x7c5   : > { %10861 = vpow2.f32 %v8009_v19 }
 0x7c6   : > { %10863 = vpow2.f32 %v8010_v27 }
 0x7c7   : > { %10865 = vpow2.f32 %v8011_v40 }
 0x7c8   : > { %10867 = vtanh.f32 %v10473_v39 }
 0x7cf   : > { %v10862_v55 = vpop.eup %10861 }
 0x7d0   : > { %v10864_v31 = vpop.eup %10863  ;;  %v2467_v7 = vadd.f32 1.0, %v10862_v55 }
 0x7d1   : > { %v2473_v4 = vadd.f32 1.0, %v10864_v31  ;;  %v10866_v51 = vpop.eup %10865 }
 0x7d2   : > { %10869 = vrcp.f32 %v2467_v7  ;;  %v10868_v0 = vpop.eup %10867  ;;  %v2480_v19 = vadd.f32 1.0, %v10866_v51 }
 0x7d3   : > { %10871 = vrcp.f32 %v2473_v4 }
 0x7d4   : > { %10873 = vrcp.f32 %v2480_v19 }
 0x7dc   : > { %v10870_v42 = vpop.eup %10869 }
 0x7dd   : > { %v10872_v43 = vpop.eup %10871  ;;  %v2484_v63 = vmul.f32 %v10870_v42, %v10868_v0 }
 0x7de   : > { %v2483_v27 = vmul.f32 %v10872_v43, %v12577_v35  ;;  %v10874_v21 = vpop.eup %10873 }
 0x7e0   : > { %v12623_v54 = vadd.f32 %v2484_v63, %v2483_v27 }
 0x7e2   : > { %10875 = vtanh.f32 %v12623_v54 }
 0x7ec   : > { %v10876_v29 = vpop.eup %10875 }
 0x7ed   : > { %v12626_v40 = vmul.f32 %v10876_v29, %v10874_v21 }
 0x7ef   : > { %14566 = vst [vmem:[#allocation35_spill] sm:$0xff] %v12626_v40  ;;  %2560 = vmatmul.mubr.f32.vlgmr.msra.gmra.mrb[14].mxu0 %v12626_v40  ;;  %2631 = vmatmul.mubr.f32.vlgmr.msra.gmra.mrb[30].mxu1 %v12626_v40 }
 0x7f0   : > { %8768 = vmatpush1.bf16.msra.mxu0 %v11804_v30  ;;  %8800 = vmatpush1.bf16.msra.mxu1 %v12088_v22 }
 0x7f1   : > { %8770 = vmatprep.subr.bf16.mxu0 %v11809_v33  ;;  %8802 = vmatprep.subr.bf16.mxu1 %v12091_v24 }
 0x7f2   : > { %2736 = vmatprep.mubr.f32.mxu0 %v14560_v44  ;;  %2807 = vmatprep.mubr.f32.mxu1 %v14560_v44 }
 0x7f4   : > { %8772 = vmatpush1.bf16.msra.mxu0 %v11842_v45  ;;  %8804 = vmatpush1.bf16.msra.mxu1 %v12113_v37 }
 0x7f5   : > { %8774 = vmatprep.subr.bf16.mxu0 %v11849_v47  ;;  %8806 = vmatprep.subr.bf16.mxu1 %v12116_v41 }
 0x7f8   : > { %8776 = vmatpush1.bf16.msra.mxu0 %v11882_v59  ;;  %8808 = vmatpush1.bf16.msra.mxu1 %v12137_v48 }
 0x7f9   : > { %8778 = vmatprep.subr.bf16.mxu0 %v11889_v61  ;;  %8810 = vmatprep.subr.bf16.mxu1 %v12140_v50 }
 0x7fc   : > { %8780 = vmatpush1.bf16.msra.mxu0 %v11922_v9  ;;  %8812 = vmatpush1.bf16.msra.mxu1 %v12159_v57 }
 0x7fd   : > { %8782 = vmatprep.subr.bf16.mxu0 %v11929_v11  ;;  %8814 = vmatprep.subr.bf16.mxu1 %v12162_v60 }
 0x800   : > { %8784 = vmatpush1.bf16.msra.mxu0 %v11962_v26  ;;  %8816 = vmatpush1.bf16.msra.mxu1 %v12181_v3 }
 0x801   : > { %8786 = vmatprep.subr.bf16.mxu0 %v11969_v28  ;;  %8818 = vmatprep.subr.bf16.mxu1 %v12184_v6 }
 0x804   : > { %8788 = vmatpush1.bf16.msra.mxu0 %v12002_v46  ;;  %8820 = vmatpush1.bf16.msra.mxu1 %v12203_v15 }
 0x805   : > { %8790 = vmatprep.subr.bf16.mxu0 %v12009_v49  ;;  %8822 = vmatprep.subr.bf16.mxu1 %v12206_v20 }
 0x808   : > { %8792 = vmatpush1.bf16.msra.mxu0 %v12042_v1  ;;  %8824 = vmatpush1.bf16.msra.mxu1 %v12225_v32 }
 0x809   : > { %8794 = vmatprep.subr.bf16.mxu0 %v12049_v5  ;;  %8826 = vmatprep.subr.bf16.mxu1 %v12228_v34 }
 0x80c   : > { %8796 = vmatpush1.bf16.msra.mxu0 %v12075_v18  ;;  %8828 = vmatpush1.bf16.msra.mxu1 %v12241_v25 }
 0x80d   : > { %8830 = vmatprep.subr.bf16.mxu0 %v11771_v17  ;;  %8862 = vmatprep.subr.bf16.mxu1 %v12066_v13 }
 0x8c2   : > { %v2561_v35 = vpop.f32.mrb[14].mxu0  ;;  %v2632_v0 = vpop.f32.mrb[30].mxu1 }
 0x8c3   : > { %v10427_v39 = vadd.f32 %v2561_v35, %v12331_v14  ;;  %v2563_v55 = vpop.f32.mrb[15].mxu0  ;;  %v2634_v31 = vpop.f32.mrb[31].mxu1  ;;  %v10475_v63 = vadd.f32 %v2632_v0, %v12339_v53 }
 0x8c4   : > { %v10428_v7 = vadd.f32 %v2563_v55, %v12327_v10  ;;  %v10476_v42 = vadd.f32 %v2634_v31, %v12343_v62 }
 0x8c5   : > { %v8012_v4 = vmul.f32 -1.442695, %v10427_v39 }
 0x8c6   : > { %v8013_v51 = vmul.f32 -1.442695, %v10428_v7  ;;  %v8014_v43 = vmul.f32 -1.442695, %v10476_v42 }
 0x8c7   : > { %10877 = vpow2.f32 %v8012_v4 }
 0x8c8   : > { %10879 = vpow2.f32 %v8013_v51 }
 0x8c9   : > { %10881 = vpow2.f32 %v8014_v43 }
 0x8ca   : > { %10883 = vtanh.f32 %v10475_v63 }
 0x8d1   : > { %v10878_v19 = vpop.eup %10877 }
 0x8d2   : > { %v10880_v27 = vpop.eup %10879  ;;  %v2644_v21 = vadd.f32 1.0, %v10878_v19 }
 0x8d3   : > { %v2650_v29 = vadd.f32 1.0, %v10880_v27  ;;  %v10882_v35 = vpop.eup %10881 }
 0x8d4   : > { %10885 = vrcp.f32 %v2644_v21  ;;  %v10884_v40 = vpop.eup %10883  ;;  %v2657_v4 = vadd.f32 1.0, %v10882_v35 }
 0x8d5   : > { %10887 = vrcp.f32 %v2650_v29 }
 0x8d6   : > { %10889 = vrcp.f32 %v2657_v4 }
 0x8de   : > { %v10886_v55 = vpop.eup %10885 }
 0x8df   : > { %v10888_v39 = vpop.eup %10887  ;;  %v2661_v7 = vmul.f32 %v10886_v55, %v10884_v40  ;;  %v982_v40 = vadd.f32 %v12288_v38, %v12327_v10 }
 0x8e0   : > { %v2660_v51 = vmul.f32 %v10888_v39, %v12623_v54  ;;  %v10890_v0 = vpop.eup %10889  ;;  %v980_v54 = vadd.f32 %v12286_v23, %v12331_v14 }
 0x8e2   : > { %v12669_v31 = vadd.f32 %v2661_v7, %v2660_v51 }
 0x8e4   : > { %10891 = vtanh.f32 %v12669_v31 }
 0x8ee   : > { %v10892_v42 = vpop.eup %10891 }
 0x8ef   : > { %v12672_v43 = vmul.f32 %v10892_v42, %v10890_v0 }
 0x8f1   : > { %2737 = vmatmul.mubr.f32.vlgmr.msra.gmra.mrb[16].mxu0 %v12672_v43  ;;  %2808 = vmatmul.mubr.f32.vlgmr.msra.gmra.mrb[32].mxu1 %v12672_v43 }
 0x8f2   : > { %8832 = vmatpush1.bf16.msra.mxu0 %v11804_v30  ;;  %8864 = vmatpush1.bf16.msra.mxu1 %v12088_v22 }
 0x8f3   : > { %8834 = vmatprep.subr.bf16.mxu0 %v11809_v33  ;;  %8866 = vmatprep.subr.bf16.mxu1 %v12091_v24 }
 0x8f4   : > { %2913 = vmatprep.mubr.f32.mxu0 %v14560_v44  ;;  %2984 = vmatprep.mubr.f32.mxu1 %v14560_v44 }
 0x8f6   : > { %8836 = vmatpush1.bf16.msra.mxu0 %v11842_v45  ;;  %8868 = vmatpush1.bf16.msra.mxu1 %v12113_v37 }
 0x8f7   : > { %8838 = vmatprep.subr.bf16.mxu0 %v11849_v47  ;;  %8870 = vmatprep.subr.bf16.mxu1 %v12116_v41 }
 0x8fa   : > { %8840 = vmatpush1.bf16.msra.mxu0 %v11882_v59  ;;  %8872 = vmatpush1.bf16.msra.mxu1 %v12137_v48 }
 0x8fb   : > { %8842 = vmatprep.subr.bf16.mxu0 %v11889_v61  ;;  %8874 = vmatprep.subr.bf16.mxu1 %v12140_v50 }
 0x8fe   : > { %8844 = vmatpush1.bf16.msra.mxu0 %v11922_v9  ;;  %8876 = vmatpush1.bf16.msra.mxu1 %v12159_v57 }
 0x8ff   : > { %8846 = vmatprep.subr.bf16.mxu0 %v11929_v11  ;;  %8878 = vmatprep.subr.bf16.mxu1 %v12162_v60 }
 0x902   : > { %8848 = vmatpush1.bf16.msra.mxu0 %v11962_v26  ;;  %8880 = vmatpush1.bf16.msra.mxu1 %v12181_v3 }
 0x903   : > { %8850 = vmatprep.subr.bf16.mxu0 %v11969_v28  ;;  %8882 = vmatprep.subr.bf16.mxu1 %v12184_v6 }
 0x906   : > { %8852 = vmatpush1.bf16.msra.mxu0 %v12002_v46  ;;  %8884 = vmatpush1.bf16.msra.mxu1 %v12203_v15 }
 0x907   : > { %8854 = vmatprep.subr.bf16.mxu0 %v12009_v49  ;;  %8886 = vmatprep.subr.bf16.mxu1 %v12206_v20 }
 0x90a   : > { %8856 = vmatpush1.bf16.msra.mxu0 %v12042_v1  ;;  %8888 = vmatpush1.bf16.msra.mxu1 %v12225_v32 }
 0x90b   : > { %8858 = vmatprep.subr.bf16.mxu0 %v12049_v5  ;;  %8890 = vmatprep.subr.bf16.mxu1 %v12228_v34 }
 0x90e   : > { %8860 = vmatpush1.bf16.msra.mxu0 %v12075_v18  ;;  %8892 = vmatpush1.bf16.msra.mxu1 %v12241_v25 }
 0x90f   : > { %8894 = vmatprep.subr.bf16.mxu0 %v11771_v17  ;;  %8926 = vmatprep.subr.bf16.mxu1 %v12066_v13 }
 0x9c4   : > { %v2738_v63 = vpop.f32.mrb[16].mxu0  ;;  %v2809_v19 = vpop.f32.mrb[32].mxu1 }
 0x9c5   : > { %v2814_v27 = vadd.f32 %v2738_v63, %v980_v54  ;;  %v2740_v21 = vpop.f32.mrb[17].mxu0  ;;  %v2811_v29 = vpop.f32.mrb[33].mxu1  ;;  %v10477_v51 = vadd.f32 %v2809_v19, %v12339_v53 }
 0x9c6   : > { %v2815_v35 = vadd.f32 %v2740_v21, %v982_v40  ;;  %v10478_v7 = vadd.f32 %v2811_v29, %v12343_v62 }
 0x9c7   : > { %v8015_v55 = vmul.f32 -1.442695, %v2814_v27 }
 0x9c8   : > { %v8016_v39 = vmul.f32 -1.442695, %v2815_v35  ;;  %v8017_v4 = vmul.f32 -1.442695, %v10478_v7 }
 0x9c9   : > { %10893 = vpow2.f32 %v8015_v55 }
 0x9ca   : > { %10895 = vpow2.f32 %v8016_v39 }
 0x9cb   : > { %10897 = vpow2.f32 %v8017_v4  ;;  %v988_v4 = vadd.f32 %v12292_v2, %v12327_v10 }
 0x9cc   : > { %10899 = vtanh.f32 %v10477_v51 }
 0x9d3   : > { %v10894_v0 = vpop.eup %10893 }
 0x9d4   : > { %v10896_v23 = vpop.eup %10895  ;;  %v2821_v42 = vadd.f32 1.0, %v10894_v0 }
 0x9d5   : > { %v2827_v38 = vadd.f32 1.0, %v10896_v23  ;;  %v10898_v54 = vpop.eup %10897 }
 0x9d6   : > { %10901 = vrcp.f32 %v2821_v42  ;;  %v10900_v63 = vpop.eup %10899  ;;  %v2834_v35 = vadd.f32 1.0, %v10898_v54 }
 0x9d7   : > { %10903 = vrcp.f32 %v2827_v38 }
 0x9d8   : > { %10905 = vrcp.f32 %v2834_v35 }
 0x9e0   : > { %v10902_v40 = vpop.eup %10901 }
 0x9e1   : > { %v10904_v27 = vpop.eup %10903  ;;  %v2838_v21 = vmul.f32 %v10902_v40, %v10900_v63 }
 0x9e2   : > { %v2837_v55 = vmul.f32 %v10904_v27, %v12669_v31  ;;  %v10906_v19 = vpop.eup %10905  ;;  %v986_v31 = vadd.f32 %v12290_v52, %v12331_v14 }
 0x9e4   : > { %v12717_v29 = vadd.f32 %v2838_v21, %v2837_v55 }
 0x9e6   : > { %10907 = vtanh.f32 %v12717_v29 }
 0x9f0   : > { %v10908_v39 = vpop.eup %10907 }
 0x9f1   : > { %v12720_v7 = vmul.f32 %v10908_v39, %v10906_v19 }
 0x9f3   : > { %2914 = vmatmul.mubr.f32.vlgmr.msra.gmra.mrb[18].mxu0 %v12720_v7  ;;  %2985 = vmatmul.mubr.f32.vlgmr.msra.gmra.mrb[34].mxu1 %v12720_v7 }
 0x9f4   : > { %8896 = vmatpush1.bf16.msra.mxu0 %v11804_v30  ;;  %8928 = vmatpush1.bf16.msra.mxu1 %v12088_v22 }
 0x9f5   : > { %8898 = vmatprep.subr.bf16.mxu0 %v11809_v33  ;;  %8930 = vmatprep.subr.bf16.mxu1 %v12091_v24 }
 0x9f6   : > { %3090 = vmatprep.mubr.f32.mxu0 %v14560_v44  ;;  %3161 = vmatprep.mubr.f32.mxu1 %v14560_v44 }
 0x9f8   : > { %8900 = vmatpush1.bf16.msra.mxu0 %v11842_v45  ;;  %8932 = vmatpush1.bf16.msra.mxu1 %v12113_v37 }
 0x9f9   : > { %8902 = vmatprep.subr.bf16.mxu0 %v11849_v47  ;;  %8934 = vmatprep.subr.bf16.mxu1 %v12116_v41 }
 0x9fc   : > { %8904 = vmatpush1.bf16.msra.mxu0 %v11882_v59  ;;  %8936 = vmatpush1.bf16.msra.mxu1 %v12137_v48 }
 0x9fd   : > { %8906 = vmatprep.subr.bf16.mxu0 %v11889_v61  ;;  %8938 = vmatprep.subr.bf16.mxu1 %v12140_v50 }
 0xa00   : > { %8908 = vmatpush1.bf16.msra.mxu0 %v11922_v9  ;;  %8940 = vmatpush1.bf16.msra.mxu1 %v12159_v57 }
 0xa01   : > { %8910 = vmatprep.subr.bf16.mxu0 %v11929_v11  ;;  %8942 = vmatprep.subr.bf16.mxu1 %v12162_v60 }
 0xa04   : > { %8912 = vmatpush1.bf16.msra.mxu0 %v11962_v26  ;;  %8944 = vmatpush1.bf16.msra.mxu1 %v12181_v3 }
 0xa05   : > { %8914 = vmatprep.subr.bf16.mxu0 %v11969_v28  ;;  %8946 = vmatprep.subr.bf16.mxu1 %v12184_v6 }
 0xa08   : > { %8916 = vmatpush1.bf16.msra.mxu0 %v12002_v46  ;;  %8948 = vmatpush1.bf16.msra.mxu1 %v12203_v15 }
 0xa09   : > { %8918 = vmatprep.subr.bf16.mxu0 %v12009_v49  ;;  %8950 = vmatprep.subr.bf16.mxu1 %v12206_v20 }
 0xa0c   : > { %8920 = vmatpush1.bf16.msra.mxu0 %v12042_v1  ;;  %8952 = vmatpush1.bf16.msra.mxu1 %v12225_v32 }
 0xa0d   : > { %8922 = vmatprep.subr.bf16.mxu0 %v12049_v5  ;;  %8954 = vmatprep.subr.bf16.mxu1 %v12228_v34 }
 0xa10   : > { %8924 = vmatpush1.bf16.msra.mxu0 %v12075_v18  ;;  %8956 = vmatpush1.bf16.msra.mxu1 %v12241_v25 }
 0xa11   : > { %8958 = vmatprep.subr.bf16.mxu0 %v11771_v17  ;;  %8990 = vmatprep.subr.bf16.mxu1 %v12066_v13 }
 0xac6   : > { %v2915_v51 = vpop.f32.mrb[18].mxu0  ;;  %v2986_v0 = vpop.f32.mrb[34].mxu1 }
 0xac7   : > { %v2991_v23 = vadd.f32 %v2915_v51, %v986_v31  ;;  %v2917_v42 = vpop.f32.mrb[19].mxu0  ;;  %v2988_v38 = vpop.f32.mrb[35].mxu1  ;;  %v10479_v35 = vadd.f32 %v2986_v0, %v12339_v53 }
 0xac8   : > { %v2992_v54 = vadd.f32 %v2917_v42, %v988_v4  ;;  %v10480_v27 = vadd.f32 %v2988_v38, %v12343_v62 }
 0xac9   : > { %v8018_v63 = vmul.f32 -1.442695, %v2991_v23 }
 0xaca   : > { %v8019_v40 = vmul.f32 -1.442695, %v2992_v54  ;;  %v8020_v21 = vmul.f32 -1.442695, %v10480_v27  ;;  %v994_v27 = vadd.f32 %v12296_v36, %v12327_v10 }
 0xacb   : > { %10909 = vpow2.f32 %v8018_v63 }
 0xacc   : > { %10911 = vpow2.f32 %v8019_v40 }
 0xacd   : > { %10913 = vpow2.f32 %v8020_v21 }
 0xace   : > { %10915 = vtanh.f32 %v10479_v35 }
 0xad5   : > { %v10910_v55 = vpop.eup %10909 }
 0xad6   : > { %v10912_v52 = vpop.eup %10911  ;;  %v2998_v19 = vadd.f32 1.0, %v10910_v55 }
 0xad7   : > { %v3004_v2 = vadd.f32 1.0, %v10912_v52  ;;  %v10914_v39 = vpop.eup %10913 }
 0xad8   : > { %10917 = vrcp.f32 %v2998_v19  ;;  %v10916_v31 = vpop.eup %10915  ;;  %v3011_v42 = vadd.f32 1.0, %v10914_v39 }
 0xad9   : > { %10919 = vrcp.f32 %v3004_v2 }
 0xada   : > { %10921 = vrcp.f32 %v3011_v42 }
 0xae2   : > { %v10918_v4 = vpop.eup %10917 }
 0xae3   : > { %v10920_v51 = vpop.eup %10919  ;;  %v3015_v23 = vmul.f32 %v10918_v4, %v10916_v31 }
 0xae4   : > { %v3014_v54 = vmul.f32 %v10920_v51, %v12717_v29  ;;  %v10922_v0 = vpop.eup %10921  ;;  %v992_v29 = vadd.f32 %v12294_v16, %v12331_v14 }
 0xae6   : > { %v12765_v38 = vadd.f32 %v3015_v23, %v3014_v54 }
 0xae8   : > { %10923 = vtanh.f32 %v12765_v38 }
 0xaf2   : > { %v10924_v63 = vpop.eup %10923 }
 0xaf3   : > { %v12768_v40 = vmul.f32 %v10924_v63, %v10922_v0 }
 0xaf5   : > { %3091 = vmatmul.mubr.f32.vlgmr.msra.gmra.mrb[20].mxu0 %v12768_v40  ;;  %3162 = vmatmul.mubr.f32.vlgmr.msra.gmra.mrb[36].mxu1 %v12768_v40 }
 0xaf6   : > { %8960 = vmatpush1.bf16.msra.mxu0 %v11804_v30  ;;  %8992 = vmatpush1.bf16.msra.mxu1 %v12088_v22 }
 0xaf7   : > { %8962 = vmatprep.subr.bf16.mxu0 %v11809_v33  ;;  %8994 = vmatprep.subr.bf16.mxu1 %v12091_v24 }
 0xaf8   : > { %3267 = vmatprep.mubr.f32.mxu0 %v14560_v44  ;;  %3338 = vmatprep.mubr.f32.mxu1 %v14560_v44 }
 0xafa   : > { %8964 = vmatpush1.bf16.msra.mxu0 %v11842_v45  ;;  %8996 = vmatpush1.bf16.msra.mxu1 %v12113_v37 }
 0xafb   : > { %8966 = vmatprep.subr.bf16.mxu0 %v11849_v47  ;;  %8998 = vmatprep.subr.bf16.mxu1 %v12116_v41 }
 0xafe   : > { %8968 = vmatpush1.bf16.msra.mxu0 %v11882_v59  ;;  %9000 = vmatpush1.bf16.msra.mxu1 %v12137_v48 }
 0xaff   : > { %8970 = vmatprep.subr.bf16.mxu0 %v11889_v61  ;;  %9002 = vmatprep.subr.bf16.mxu1 %v12140_v50 }
 0xb02   : > { %8972 = vmatpush1.bf16.msra.mxu0 %v11922_v9  ;;  %9004 = vmatpush1.bf16.msra.mxu1 %v12159_v57 }
 0xb03   : > { %8974 = vmatprep.subr.bf16.mxu0 %v11929_v11  ;;  %9006 = vmatprep.subr.bf16.mxu1 %v12162_v60 }
 0xb06   : > { %8976 = vmatpush1.bf16.msra.mxu0 %v11962_v26  ;;  %9008 = vmatpush1.bf16.msra.mxu1 %v12181_v3 }
 0xb07   : > { %8978 = vmatprep.subr.bf16.mxu0 %v11969_v28  ;;  %9010 = vmatprep.subr.bf16.mxu1 %v12184_v6 }
 0xb0a   : > { %8980 = vmatpush1.bf16.msra.mxu0 %v12002_v46  ;;  %9012 = vmatpush1.bf16.msra.mxu1 %v12203_v15 }
 0xb0b   : > { %8982 = vmatprep.subr.bf16.mxu0 %v12009_v49  ;;  %9014 = vmatprep.subr.bf16.mxu1 %v12206_v20 }
 0xb0e   : > { %8984 = vmatpush1.bf16.msra.mxu0 %v12042_v1  ;;  %9016 = vmatpush1.bf16.msra.mxu1 %v12225_v32 }
 0xb0f   : > { %8986 = vmatprep.subr.bf16.mxu0 %v12049_v5  ;;  %9018 = vmatprep.subr.bf16.mxu1 %v12228_v34 }
 0xb12   : > { %8988 = vmatpush1.bf16.msra.mxu0 %v12075_v18  ;;  %9020 = vmatpush1.bf16.msra.mxu1 %v12241_v25 }
 0xb13   : > { %9022 = vmatprep.subr.bf16.mxu0 %v11771_v17  ;;  %9054 = vmatprep.subr.bf16.mxu1 %v12066_v13 }
 0xbc8   : > { %v3092_v21 = vpop.f32.mrb[20].mxu0  ;;  %v3163_v35 = vpop.f32.mrb[36].mxu1 }
 0xbc9   : > { %v3168_v55 = vadd.f32 %v3092_v21, %v992_v29  ;;  %v3094_v52 = vpop.f32.mrb[21].mxu0  ;;  %v3165_v19 = vpop.f32.mrb[37].mxu1  ;;  %v10481_v23 = vadd.f32 %v3163_v35, %v12339_v53 }
 0xbca   : > { %v3169_v2 = vadd.f32 %v3094_v52, %v994_v27  ;;  %v10482_v4 = vadd.f32 %v3165_v19, %v12343_v62 }
 0xbcb   : > { %v8021_v39 = vmul.f32 -1.442695, %v3168_v55 }
 0xbcc   : > { %v8022_v31 = vmul.f32 -1.442695, %v3169_v2  ;;  %v8023_v51 = vmul.f32 -1.442695, %v10482_v4 }
 0xbcd   : > { %10925 = vpow2.f32 %v8021_v39 }
 0xbce   : > { %10927 = vpow2.f32 %v8022_v31  ;;  %v1000_v31 = vadd.f32 %v12300_v58, %v12327_v10 }
 0xbcf   : > { %10929 = vpow2.f32 %v8023_v51 }
 0xbd0   : > { %10931 = vtanh.f32 %v10481_v23 }
 0xbd7   : > { %v10926_v42 = vpop.eup %10925 }
 0xbd8   : > { %v10928_v16 = vpop.eup %10927  ;;  %v3175_v54 = vadd.f32 1.0, %v10926_v42 }
 0xbd9   : > { %v3181_v36 = vadd.f32 1.0, %v10928_v16  ;;  %v10930_v0 = vpop.eup %10929 }
 0xbda   : > { %10933 = vrcp.f32 %v3175_v54  ;;  %v10932_v63 = vpop.eup %10931  ;;  %v3188_v55 = vadd.f32 1.0, %v10930_v0 }
 0xbdb   : > { %10935 = vrcp.f32 %v3181_v36 }
 0xbdc   : > { %10937 = vrcp.f32 %v3188_v55 }
 0xbe4   : > { %v10934_v29 = vpop.eup %10933 }
 0xbe5   : > { %v10936_v27 = vpop.eup %10935  ;;  %v3192_v21 = vmul.f32 %v10934_v29, %v10932_v63 }
 0xbe6   : > { %v3191_v52 = vmul.f32 %v10936_v27, %v12765_v38  ;;  %v10938_v35 = vpop.eup %10937  ;;  %v998_v38 = vadd.f32 %v12298_v56, %v12331_v14 }
 0xbe8   : > { %v12813_v19 = vadd.f32 %v3192_v21, %v3191_v52 }
 0xbea   : > { %10939 = vtanh.f32 %v12813_v19 }
 0xbf4   : > { %v10940_v2 = vpop.eup %10939 }
 0xbf5   : > { %v12816_v39 = vmul.f32 %v10940_v2, %v10938_v35 }
 0xbf7   : > { %3268 = vmatmul.mubr.f32.vlgmr.msra.gmra.mrb[22].mxu0 %v12816_v39  ;;  %3339 = vmatmul.mubr.f32.vlgmr.msra.gmra.mrb[38].mxu1 %v12816_v39 }
 0xbf8   : > { %9024 = vmatpush1.bf16.msra.mxu0 %v11804_v30  ;;  %9056 = vmatpush1.bf16.msra.mxu1 %v12088_v22 }
 0xbf9   : > { %9026 = vmatprep.subr.bf16.mxu0 %v11809_v33  ;;  %9058 = vmatprep.subr.bf16.mxu1 %v12091_v24 }
 0xbfa   : > { %3444 = vmatprep.mubr.f32.mxu0 %v14560_v44  ;;  %3515 = vmatprep.mubr.f32.mxu1 %v14560_v44 }
 0xbfc   : > { %9028 = vmatpush1.bf16.msra.mxu0 %v11842_v45  ;;  %9060 = vmatpush1.bf16.msra.mxu1 %v12113_v37 }
 0xbfd   : > { %9030 = vmatprep.subr.bf16.mxu0 %v11849_v47  ;;  %9062 = vmatprep.subr.bf16.mxu1 %v12116_v41 }
 0xc00   : > { %9032 = vmatpush1.bf16.msra.mxu0 %v11882_v59  ;;  %9064 = vmatpush1.bf16.msra.mxu1 %v12137_v48 }
 0xc01   : > { %9034 = vmatprep.subr.bf16.mxu0 %v11889_v61  ;;  %9066 = vmatprep.subr.bf16.mxu1 %v12140_v50 }
 0xc04   : > { %9036 = vmatpush1.bf16.msra.mxu0 %v11922_v9  ;;  %9068 = vmatpush1.bf16.msra.mxu1 %v12159_v57 }
 0xc05   : > { %9038 = vmatprep.subr.bf16.mxu0 %v11929_v11  ;;  %9070 = vmatprep.subr.bf16.mxu1 %v12162_v60 }
 0xc08   : > { %9040 = vmatpush1.bf16.msra.mxu0 %v11962_v26  ;;  %9072 = vmatpush1.bf16.msra.mxu1 %v12181_v3 }
 0xc09   : > { %9042 = vmatprep.subr.bf16.mxu0 %v11969_v28  ;;  %9074 = vmatprep.subr.bf16.mxu1 %v12184_v6 }
 0xc0c   : > { %9044 = vmatpush1.bf16.msra.mxu0 %v12002_v46  ;;  %9076 = vmatpush1.bf16.msra.mxu1 %v12203_v15 }
 0xc0d   : > { %9046 = vmatprep.subr.bf16.mxu0 %v12009_v49  ;;  %9078 = vmatprep.subr.bf16.mxu1 %v12206_v20 }
 0xc10   : > { %9048 = vmatpush1.bf16.msra.mxu0 %v12042_v1  ;;  %9080 = vmatpush1.bf16.msra.mxu1 %v12225_v32 }
 0xc11   : > { %9050 = vmatprep.subr.bf16.mxu0 %v12049_v5  ;;  %9082 = vmatprep.subr.bf16.mxu1 %v12228_v34 }
 0xc14   : > { %9052 = vmatpush1.bf16.msra.mxu0 %v12075_v18  ;;  %9084 = vmatpush1.bf16.msra.mxu1 %v12241_v25 }
 0xc15   : > { %9086 = vmatprep.subr.bf16.mxu0 %v11771_v17  ;;  %9118 = vmatprep.subr.bf16.mxu1 %v12066_v13 }
 0xcca   : > { %v3269_v4 = vpop.f32.mrb[22].mxu0  ;;  %v3340_v51 = vpop.f32.mrb[38].mxu1 }
 0xccb   : > { %v3345_v23 = vadd.f32 %v3269_v4, %v998_v38  ;;  %v3271_v42 = vpop.f32.mrb[23].mxu0  ;;  %v3342_v16 = vpop.f32.mrb[39].mxu1  ;;  %v10483_v27 = vadd.f32 %v3340_v51, %v12339_v53 }
 0xccc   : > { %v3346_v54 = vadd.f32 %v3271_v42, %v1000_v31  ;;  %v10484_v63 = vadd.f32 %v3342_v16, %v12343_v62 }
 0xccd   : > { %v8024_v36 = vmul.f32 -1.442695, %v3345_v23 }
 0xcce   : > { %v8025_v0 = vmul.f32 -1.442695, %v3346_v54  ;;  %v8026_v29 = vmul.f32 -1.442695, %v10484_v63 }
 0xccf   : > { %10941 = vpow2.f32 %v8024_v36  ;;  %v1006_v36 = vadd.f32 %v12304_v12, %v12327_v10 }
 0xcd0   : > { %10943 = vpow2.f32 %v8025_v0 }
 0xcd1   : > { %10945 = vpow2.f32 %v8026_v29 }
 0xcd2   : > { %10947 = vtanh.f32 %v10483_v27 }
 0xcd9   : > { %v10942_v21 = vpop.eup %10941 }
 0xcda   : > { %v10944_v56 = vpop.eup %10943  ;;  %v3352_v55 = vadd.f32 1.0, %v10942_v21 }
 0xcdb   : > { %v3358_v58 = vadd.f32 1.0, %v10944_v56  ;;  %v10946_v52 = vpop.eup %10945 }
 0xcdc   : > { %10949 = vrcp.f32 %v3352_v55  ;;  %v10948_v35 = vpop.eup %10947  ;;  %v3365_v4 = vadd.f32 1.0, %v10946_v52 }
 0xcdd   : > { %10951 = vrcp.f32 %v3358_v58 }
 0xcde   : > { %10953 = vrcp.f32 %v3365_v4 }
 0xce6   : > { %v10950_v2 = vpop.eup %10949 }
 0xce7   : > { %v10952_v38 = vpop.eup %10951  ;;  %v3369_v31 = vmul.f32 %v10950_v2, %v10948_v35 }
 0xce8   : > { %v3368_v23 = vmul.f32 %v10952_v38, %v12813_v19  ;;  %v10954_v51 = vpop.eup %10953  ;;  %v1004_v19 = vadd.f32 %v12302_v8, %v12331_v14 }
 0xcea   : > { %v12861_v42 = vadd.f32 %v3369_v31, %v3368_v23 }
 0xcec   : > { %10955 = vtanh.f32 %v12861_v42 }
 0xcf6   : > { %v10956_v16 = vpop.eup %10955 }
 0xcf7   : > { %v12864_v54 = vmul.f32 %v10956_v16, %v10954_v51 }
 0xcf9   : > { %3445 = vmatmul.mubr.f32.vlgmr.msra.gmra.mrb[24].mxu0 %v12864_v54  ;;  %3516 = vmatmul.mubr.f32.vlgmr.msra.gmra.mrb[40].mxu1 %v12864_v54 }
 0xcfa   : > { %9088 = vmatpush1.bf16.msra.mxu0 %v11804_v30  ;;  %9120 = vmatpush1.bf16.msra.mxu1 %v12088_v22 }
 0xcfb   : > { %9090 = vmatprep.subr.bf16.mxu0 %v11809_v33  ;;  %9122 = vmatprep.subr.bf16.mxu1 %v12091_v24 }
 0xcfc   : > { %3621 = vmatprep.mubr.f32.mxu0 %v14560_v44  ;;  %3692 = vmatprep.mubr.f32.mxu1 %v14560_v44 }
 0xcfe   : > { %9092 = vmatpush1.bf16.msra.mxu0 %v11842_v45  ;;  %9124 = vmatpush1.bf16.msra.mxu1 %v12113_v37 }
 0xcff   : > { %9094 = vmatprep.subr.bf16.mxu0 %v11849_v47  ;;  %9126 = vmatprep.subr.bf16.mxu1 %v12116_v41 }
 0xd02   : > { %9096 = vmatpush1.bf16.msra.mxu0 %v11882_v59  ;;  %9128 = vmatpush1.bf16.msra.mxu1 %v12137_v48 }
 0xd03   : > { %9098 = vmatprep.subr.bf16.mxu0 %v11889_v61  ;;  %9130 = vmatprep.subr.bf16.mxu1 %v12140_v50 }
 0xd06   : > { %9100 = vmatpush1.bf16.msra.mxu0 %v11922_v9  ;;  %9132 = vmatpush1.bf16.msra.mxu1 %v12159_v57 }
 0xd07   : > { %9102 = vmatprep.subr.bf16.mxu0 %v11929_v11  ;;  %9134 = vmatprep.subr.bf16.mxu1 %v12162_v60 }
 0xd0a   : > { %9104 = vmatpush1.bf16.msra.mxu0 %v11962_v26  ;;  %9136 = vmatpush1.bf16.msra.mxu1 %v12181_v3 }
 0xd0b   : > { %9106 = vmatprep.subr.bf16.mxu0 %v11969_v28  ;;  %9138 = vmatprep.subr.bf16.mxu1 %v12184_v6 }
 0xd0e   : > { %9108 = vmatpush1.bf16.msra.mxu0 %v12002_v46  ;;  %9140 = vmatpush1.bf16.msra.mxu1 %v12203_v15 }
 0xd0f   : > { %9110 = vmatprep.subr.bf16.mxu0 %v12009_v49  ;;  %9142 = vmatprep.subr.bf16.mxu1 %v12206_v20 }
 0xd12   : > { %9112 = vmatpush1.bf16.msra.mxu0 %v12042_v1  ;;  %9144 = vmatpush1.bf16.msra.mxu1 %v12225_v32 }
 0xd13   : > { %9114 = vmatprep.subr.bf16.mxu0 %v12049_v5  ;;  %9146 = vmatprep.subr.bf16.mxu1 %v12228_v34 }
 0xd16   : > { %9116 = vmatpush1.bf16.msra.mxu0 %v12075_v18  ;;  %9148 = vmatpush1.bf16.msra.mxu1 %v12241_v25 }
 0xd17   : > { %9150 = vmatprep.subr.bf16.mxu0 %v11771_v17  ;;  %9182 = vmatprep.subr.bf16.mxu1 %v12066_v13 }
 0xdcc   : > { %v3446_v0 = vpop.f32.mrb[24].mxu0  ;;  %v3517_v63 = vpop.f32.mrb[40].mxu1 }
 0xdcd   : > { %v3522_v29 = vadd.f32 %v3446_v0, %v1004_v19  ;;  %v3448_v27 = vpop.f32.mrb[25].mxu0  ;;  %v3519_v21 = vpop.f32.mrb[41].mxu1  ;;  %v10485_v2 = vadd.f32 %v3517_v63, %v12339_v53 }
 0xdce   : > { %v3523_v56 = vadd.f32 %v3448_v27, %v1006_v36  ;;  %v10486_v52 = vadd.f32 %v3519_v21, %v12343_v62 }
 0xdcf   : > { %v8027_v55 = vmul.f32 -1.442695, %v3522_v29 }
 0xdd0   : > { %v8028_v58 = vmul.f32 -1.442695, %v3523_v56  ;;  %v8029_v35 = vmul.f32 -1.442695, %v10486_v52 }
 0xdd1   : > { %10957 = vpow2.f32 %v8027_v55  ;;  %v14568_v55 = vld [vmem:[#allocation23_spill] sm:$0xff] }
 0xdd2   : > { %10959 = vpow2.f32 %v8028_v58  ;;  %v1012_v58 = vadd.f32 %v14568_v55, %v12327_v10 }
 0xdd3   : > { %10961 = vpow2.f32 %v8029_v35 }
 0xdd4   : > { %10963 = vtanh.f32 %v10485_v2 }
 0xddb   : > { %v10958_v38 = vpop.eup %10957 }
 0xddc   : > { %v10960_v8 = vpop.eup %10959  ;;  %v3529_v31 = vadd.f32 1.0, %v10958_v38 }
 0xddd   : > { %v3535_v12 = vadd.f32 1.0, %v10960_v8  ;;  %v10962_v4 = vpop.eup %10961 }
 0xdde   : > { %10965 = vrcp.f32 %v3529_v31  ;;  %v10964_v23 = vpop.eup %10963  ;;  %v3542_v36 = vadd.f32 1.0, %v10962_v4 }
 0xddf   : > { %10967 = vrcp.f32 %v3535_v12 }
 0xde0   : > { %10969 = vrcp.f32 %v3542_v36 }
 0xde8   : > { %v10966_v51 = vpop.eup %10965 }
 0xde9   : > { %v10968_v16 = vpop.eup %10967  ;;  %v3546_v19 = vmul.f32 %v10966_v51, %v10964_v23 }
 0xdea   : > { %v3545_v0 = vmul.f32 %v10968_v16, %v12861_v42  ;;  %v10970_v63 = vpop.eup %10969  ;;  %v14567_v42 = vld [vmem:[#allocation22_spill] sm:$0xff] }
 0xdeb   : > { %v1010_v56 = vadd.f32 %v14567_v42, %v12331_v14 }
 0xdec   : > { %v12909_v29 = vadd.f32 %v3546_v19, %v3545_v0 }
 0xdee   : > { %10971 = vtanh.f32 %v12909_v29 }
 0xdf8   : > { %v10972_v27 = vpop.eup %10971 }
 0xdf9   : > { %v12912_v21 = vmul.f32 %v10972_v27, %v10970_v63 }
 0xdfb   : > { %3622 = vmatmul.mubr.f32.vlgmr.msra.gmra.mrb[26].mxu0 %v12912_v21  ;;  %3693 = vmatmul.mubr.f32.vlgmr.msra.gmra.mrb[42].mxu1 %v12912_v21 }
 0xdfc   : > { %9152 = vmatpush1.bf16.msra.mxu0 %v11804_v30  ;;  %9184 = vmatpush1.bf16.msra.mxu1 %v12088_v22 }
 0xdfd   : > { %9154 = vmatprep.subr.bf16.mxu0 %v11809_v33  ;;  %9186 = vmatprep.subr.bf16.mxu1 %v12091_v24 }
 0xdfe   : > { %3798 = vmatprep.mubr.f32.mxu0 %v14560_v44  ;;  %3869 = vmatprep.mubr.f32.mxu1 %v14560_v44 }
 0xe00   : > { %9156 = vmatpush1.bf16.msra.mxu0 %v11842_v45  ;;  %9188 = vmatpush1.bf16.msra.mxu1 %v12113_v37 }
 0xe01   : > { %9158 = vmatprep.subr.bf16.mxu0 %v11849_v47  ;;  %9190 = vmatprep.subr.bf16.mxu1 %v12116_v41 }
 0xe04   : > { %9160 = vmatpush1.bf16.msra.mxu0 %v11882_v59  ;;  %9192 = vmatpush1.bf16.msra.mxu1 %v12137_v48 }
 0xe05   : > { %9162 = vmatprep.subr.bf16.mxu0 %v11889_v61  ;;  %9194 = vmatprep.subr.bf16.mxu1 %v12140_v50 }
 0xe08   : > { %9164 = vmatpush1.bf16.msra.mxu0 %v11922_v9  ;;  %9196 = vmatpush1.bf16.msra.mxu1 %v12159_v57 }
 0xe09   : > { %9166 = vmatprep.subr.bf16.mxu0 %v11929_v11  ;;  %9198 = vmatprep.subr.bf16.mxu1 %v12162_v60 }
 0xe0c   : > { %9168 = vmatpush1.bf16.msra.mxu0 %v11962_v26  ;;  %9200 = vmatpush1.bf16.msra.mxu1 %v12181_v3 }
 0xe0d   : > { %9170 = vmatprep.subr.bf16.mxu0 %v11969_v28  ;;  %9202 = vmatprep.subr.bf16.mxu1 %v12184_v6 }
 0xe10   : > { %9172 = vmatpush1.bf16.msra.mxu0 %v12002_v46  ;;  %9204 = vmatpush1.bf16.msra.mxu1 %v12203_v15 }
 0xe11   : > { %9174 = vmatprep.subr.bf16.mxu0 %v12009_v49  ;;  %9206 = vmatprep.subr.bf16.mxu1 %v12206_v20 }
 0xe14   : > { %9176 = vmatpush1.bf16.msra.mxu0 %v12042_v1  ;;  %9208 = vmatpush1.bf16.msra.mxu1 %v12225_v32 }
 0xe15   : > { %9178 = vmatprep.subr.bf16.mxu0 %v12049_v5  ;;  %9210 = vmatprep.subr.bf16.mxu1 %v12228_v34 }
 0xe18   : > { %9180 = vmatpush1.bf16.msra.mxu0 %v12075_v18  ;;  %9212 = vmatpush1.bf16.msra.mxu1 %v12241_v25 }
 0xe19   : > { %9214 = vmatprep.subr.bf16.mxu0 %v11771_v17  ;;  %9246 = vmatprep.subr.bf16.mxu1 %v12066_v13 }
 0xece   : > { %v3623_v52 = vpop.f32.mrb[26].mxu0  ;;  %v3694_v35 = vpop.f32.mrb[42].mxu1 }
 0xecf   : > { %v3699_v2 = vadd.f32 %v3623_v52, %v1010_v56  ;;  %v3625_v38 = vpop.f32.mrb[27].mxu0  ;;  %v3696_v8 = vpop.f32.mrb[43].mxu1  ;;  %v10487_v13 = vadd.f32 %v3694_v35, %v12339_v53 }
 0xed0   : > { %v3700_v31 = vadd.f32 %v3625_v38, %v1012_v58  ;;  %v10488_v17 = vadd.f32 %v3696_v8, %v12343_v62 }
 0xed1   : > { %v8030_v12 = vmul.f32 -1.442695, %v3699_v2 }
 0xed2   : > { %v8031_v4 = vmul.f32 -1.442695, %v3700_v31  ;;  %v8032_v23 = vmul.f32 -1.442695, %v10488_v17  ;;  %v4087_v17 = vld [vmem:[%s14488_s4 + $0x10] sm:$0xff] }
 0xed3   : > { %10973 = vpow2.f32 %v8030_v12  ;;  %v4085_v12 = vld [vmem:[%s14488_s4] sm:$0xff] }
 0xed4   : > { %10975 = vpow2.f32 %v8031_v4  ;;  %v4089_v4 = vld [vmem:[%s14488_s4 + $0x20] sm:$0xff] }
 0xed5   : > { %10977 = vpow2.f32 %v8032_v23  ;;  %v4091_v23 = vld [vmem:[%s14488_s4 + $0x30] sm:$0xff] }
 0xed6   : > { %10979 = vtanh.f32 %v10487_v13  ;;  %v4094_v13 = vld [vmem:[%s14488_s4 + $0x48] sm:$0xff] }
 0xedd   : > { %v10974_v51 = vpop.eup %10973 }
 0xede   : > { %v10976_v16 = vpop.eup %10975  ;;  %v3706_v19 = vadd.f32 1.0, %v10974_v51  ;;  %v4098_v51 = vld [vmem:[%s14488_s4 + $0x68] sm:$0xff] }
 0xedf   : > { %v3712_v36 = vadd.f32 1.0, %v10976_v16  ;;  %v10978_v0 = vpop.eup %10977  ;;  %v4096_v16 = vld [vmem:[%s14488_s4 + $0x58] sm:$0xff] }
 0xee0   : > { %10981 = vrcp.f32 %v3706_v19  ;;  %v10980_v63 = vpop.eup %10979  ;;  %v3719_v55 = vadd.f32 1.0, %v10978_v0  ;;  %v4100_v19 = vld [vmem:[%s14488_s4 + $0x78] sm:$0xff] }
 0xee1   : > { %10983 = vrcp.f32 %v3712_v36 }
 0xee2   : > { %10985 = vrcp.f32 %v3719_v55 }
 0xeea   : > { %v10982_v27 = vpop.eup %10981 }
 0xeeb   : > { %v10984_v42 = vpop.eup %10983  ;;  %v3723_v56 = vmul.f32 %v10982_v27, %v10980_v63  ;;  %v9279_v63 = vpack.c.bf16 %v4089_v4, %v4085_v12  ;;  %v9311_v27 = vpack.c.bf16 %v4091_v23, %v4087_v17  ;;  %v4119_v17 = vld [vmem:[%s14488_s4 + $0x110] sm:$0xff] }
 0xeec   : > { %v3722_v58 = vmul.f32 %v10984_v42, %v12909_v29  ;;  %v10986_v35 = vpop.eup %10985  ;;  %v4093_v42 = vld [vmem:[%s14488_s4 + $0x40] sm:$0xff]  ;;  %v4123_v23 = vld [vmem:[%s14488_s4 + $0x130] sm:$0xff] }
 0xeee   : > { %v12957_v52 = vadd.f32 %v3723_v56, %v3722_v58  ;;  %v4097_v56 = vld [vmem:[%s14488_s4 + $0x60] sm:$0xff]  ;;  %v9281_v58 = vpack.c.bf16 %v4098_v51, %v4094_v13  ;;  %v4126_v13 = vld [vmem:[%s14488_s4 + $0x148] sm:$0xff] }
 0xeef   : > { %v4130_v51 = vld [vmem:[%s14488_s4 + $0x168] sm:$0xff] }
 0xef0   : > { %10987 = vtanh.f32 %v12957_v52 }
 0xefa   : > { %v10988_v2 = vpop.eup %10987 }
 0xefb   : > { %v12960_v38 = vmul.f32 %v10988_v2, %v10986_v35  ;;  %v4095_v35 = vld [vmem:[%s14488_s4 + $0x50] sm:$0xff] }
 0xefc   : > { %v4099_v2 = vld [vmem:[%s14488_s4 + $0x70] sm:$0xff] }
 0xefd   : > { %3799 = vmatmul.mubr.f32.vlgmr.msra.gmra.mrb[28].mxu0 %v12960_v38  ;;  %3870 = vmatmul.mubr.f32.vlgmr.msra.gmra.mrb[44].mxu1 %v12960_v38 }
 0xefe   : > { %9216 = vmatpush1.bf16.msra.mxu0 %v11804_v30  ;;  %9248 = vmatpush1.bf16.msra.mxu1 %v12088_v22  ;;  %v4086_v30 = vld [vmem:[%s14488_s4 + $0x8] sm:$0xff] }
 0xeff   : > { %9218 = vmatprep.subr.bf16.mxu0 %v11809_v33  ;;  %9250 = vmatprep.subr.bf16.mxu1 %v12091_v24  ;;  %v4090_v33 = vld [vmem:[%s14488_s4 + $0x28] sm:$0xff] }
 0xf00   : > { %3975 = vmatprep.mubr.f32.mxu0 %v14560_v44  ;;  %4046 = vmatprep.mubr.f32.mxu1 %v14560_v44 }
 0xf02   : > { %9220 = vmatpush1.bf16.msra.mxu0 %v11842_v45  ;;  %9252 = vmatpush1.bf16.msra.mxu1 %v12113_v37  ;;  %v4088_v45 = vld [vmem:[%s14488_s4 + $0x18] sm:$0xff] }
 0xf03   : > { %9222 = vmatprep.subr.bf16.mxu0 %v11849_v47  ;;  %9254 = vmatprep.subr.bf16.mxu1 %v12116_v41  ;;  %v9277_v47 = vpack.c.bf16 %v4090_v33, %v4086_v30  ;;  %v4102_v30 = vld [vmem:[%s14488_s4 + $0x88] sm:$0xff] }
 0xf04   : > { %v4106_v33 = vld [vmem:[%s14488_s4 + $0xa8] sm:$0xff] }
 0xf06   : > { %9224 = vmatpush1.bf16.msra.mxu0 %v11882_v59  ;;  %9256 = vmatpush1.bf16.msra.mxu1 %v12137_v48  ;;  %v4092_v59 = vld [vmem:[%s14488_s4 + $0x38] sm:$0xff] }
 0xf07   : > { %9226 = vmatprep.subr.bf16.mxu0 %v11889_v61  ;;  %9258 = vmatprep.subr.bf16.mxu1 %v12140_v50  ;;  %v9309_v61 = vpack.c.bf16 %v4092_v59, %v4088_v45  ;;  %v4104_v45 = vld [vmem:[%s14488_s4 + $0x98] sm:$0xff]  ;;  %v9283_v59 = vpack.c.bf16 %v4097_v56, %v4093_v42  ;;  %v9297_v42 = vpack.c.bf16 %v4130_v51, %v4126_v13  ;;  %v14572_v51 = vld [vmem:[#allocation30_spill] sm:$0xff] }
 0xf0a   : > { %9228 = vmatpush1.bf16.msra.mxu0 %v11922_v9  ;;  %9260 = vmatpush1.bf16.msra.mxu1 %v12159_v57  ;;  %v14569_v9 = vld [vmem:[#allocation24_spill] sm:$0xff] }
 0xf0b   : > { %9230 = vmatprep.subr.bf16.mxu0 %v11929_v11  ;;  %9262 = vmatprep.subr.bf16.mxu1 %v12162_v60  ;;  %v1016_v11 = vadd.f32 %v14569_v9, %v12331_v14  ;;  %v4101_v9 = vld [vmem:[%s14488_s4 + $0x80] sm:$0xff] }
 0xf0e   : > { %9232 = vmatpush1.bf16.msra.mxu0 %v11962_v26  ;;  %9264 = vmatpush1.bf16.msra.mxu1 %v12181_v3  ;;  %v14570_v26 = vld [vmem:[#allocation25_spill] sm:$0xff] }
 0xf0f   : > { %9234 = vmatprep.subr.bf16.mxu0 %v11969_v28  ;;  %9266 = vmatprep.subr.bf16.mxu1 %v12184_v6  ;;  %v1018_v28 = vadd.f32 %v14570_v26, %v12327_v10  ;;  %v9285_v26 = vpack.c.bf16 %v4106_v33, %v4102_v30  ;;  %v4136_v30 = vld [vmem:[%s14488_s4 + $0x198] sm:$0xff] }
 0xf10   : > { %v4140_v33 = vld [vmem:[%s14488_s4 + $0x1b8] sm:$0xff] }
 0xf12   : > { %9236 = vmatpush1.bf16.msra.mxu0 %v12002_v46  ;;  %9268 = vmatpush1.bf16.msra.mxu1 %v12203_v15 }
 0xf13   : > { %9238 = vmatprep.subr.bf16.mxu0 %v12009_v49  ;;  %9270 = vmatprep.subr.bf16.mxu1 %v12206_v20 }
 0xf16   : > { %9240 = vmatpush1.bf16.msra.mxu0 %v12042_v1  ;;  %9272 = vmatpush1.bf16.msra.mxu1 %v12225_v32 }
 0xf17   : > { %9242 = vmatprep.subr.bf16.mxu0 %v12049_v5  ;;  %9274 = vmatprep.subr.bf16.mxu1 %v12228_v34 }
 0xf1a   : > { %9244 = vmatpush1.bf16.msra.mxu0 %v12075_v18  ;;  %9276 = vmatpush1.bf16.msra.mxu1 %v12241_v25 }
 0xf1b   : > { %9278 = vmatprep.subr.bf16.mxu0 %v9277_v47  ;;  %9310 = vmatprep.subr.bf16.mxu1 %v9309_v61  ;;  %v4108_v47 = vld [vmem:[%s14488_s4 + $0xb8] sm:$0xff]  ;;  %v9315_v61 = vpack.c.bf16 %v4099_v2, %v4095_v35  ;;  %v4134_v35 = vld [vmem:[%s14488_s4 + $0x188] sm:$0xff] }
 0xf1c   : > { %v4138_v2 = vld [vmem:[%s14488_s4 + $0x1a8] sm:$0xff] }
 0xfd0   : > { %v3800_v46 = vpop.f32.mrb[28].mxu0  ;;  %v3871_v49 = vpop.f32.mrb[44].mxu1 }
 0xfd1   : > { %v3876_v1 = vadd.f32 %v3800_v46, %v1016_v11  ;;  %v3802_v5 = vpop.f32.mrb[29].mxu0  ;;  %v3873_v18 = vpop.f32.mrb[45].mxu1  ;;  %v10489_v50 = vadd.f32 %v3871_v49, %v12339_v53  ;;  %v4105_v11 = vld [vmem:[%s14488_s4 + $0xa0] sm:$0xff]  ;;  %v4103_v46 = vld [vmem:[%s14488_s4 + $0x90] sm:$0xff] }
 0xfd2   : > { %v3877_v22 = vadd.f32 %v3802_v5, %v1018_v28  ;;  %v10490_v41 = vadd.f32 %v3873_v18, %v12343_v62  ;;  %v9317_v28 = vpack.c.bf16 %v4108_v47, %v4104_v45  ;;  %v4107_v49 = vld [vmem:[%s14488_s4 + $0xb0] sm:$0xff]  ;;  %v4114_v5 = vld [vmem:[%s14488_s4 + $0xe8] sm:$0xff]  ;;  %v4112_v18 = vld [vmem:[%s14488_s4 + $0xd8] sm:$0xff] }
 0xfd3   : > { %v8033_v24 = vmul.f32 -1.442695, %v3876_v1  ;;  %v4110_v1 = vld [vmem:[%s14488_s4 + $0xc8] sm:$0xff] }
 0xfd4   : > { %v8034_v37 = vmul.f32 -1.442695, %v3877_v22  ;;  %v8035_v48 = vmul.f32 -1.442695, %v10490_v41  ;;  %v4116_v22 = vld [vmem:[%s14488_s4 + $0xf8] sm:$0xff]  ;;  %v4109_v41 = vld [vmem:[%s14488_s4 + $0xc0] sm:$0xff] }
 0xfd5   : > { %10989 = vpow2.f32 %v8033_v24  ;;  %v9287_v24 = vpack.c.bf16 %v4105_v11, %v4101_v9  ;;  %v9301_v9 = vpack.c.bf16 %v4138_v2, %v4134_v35  ;;  %v9333_v11 = vpack.c.bf16 %v4140_v33, %v4136_v30  ;;  %v4170_v35 = vld [vmem:[%s14489_s5 + $0xa8] sm:$0xff]  ;;  %v4168_v2 = vld [vmem:[%s14489_s5 + $0x98] sm:$0xff]  ;;  %v4165_v33 = vld [vmem:[%s14489_s5 + $0x80] sm:$0xff] }
 0xfd6   : > { %10991 = vpow2.f32 %v8034_v37  ;;  %v9319_v37 = vpack.c.bf16 %v4107_v49, %v4103_v46  ;;  %v4142_v46 = vld [vmem:[%s14488_s4 + $0x1c8] sm:$0xff] }
 0xfd7   : > { %10993 = vpow2.f32 %v8035_v48  ;;  %v4113_v48 = vld [vmem:[%s14488_s4 + $0xe0] sm:$0xff]  ;;  %v4146_v49 = vld [vmem:[%s14488_s4 + $0x1e8] sm:$0xff] }
 0xfd8   : > { %10995 = vtanh.f32 %v10489_v50  ;;  %v9289_v50 = vpack.c.bf16 %v4114_v5, %v4110_v1  ;;  %v4144_v1 = vld [vmem:[%s14488_s4 + $0x1d8] sm:$0xff] }
 0xfd9   : > { %v4148_v5 = vld [vmem:[%s14488_s4 + $0x1f8] sm:$0xff] }
 0xfdf   : > { %v10990_v57 = vpop.eup %10989 }
 0xfe0   : > { %v10992_v60 = vpop.eup %10991  ;;  %v3883_v3 = vadd.f32 1.0, %v10990_v57  ;;  %v9321_v57 = vpack.c.bf16 %v4116_v22, %v4112_v18 }
 0xfe1   : > { %v3889_v6 = vadd.f32 1.0, %v10992_v60  ;;  %v10994_v15 = vpop.eup %10993  ;;  %v4111_v60 = vld [vmem:[%s14488_s4 + $0xd0] sm:$0xff] }
 0xfe2   : > { %10997 = vrcp.f32 %v3883_v3  ;;  %v10996_v20 = vpop.eup %10995  ;;  %v3896_v29 = vadd.f32 1.0, %v10994_v15  ;;  %v4115_v3 = vld [vmem:[%s14488_s4 + $0xf0] sm:$0xff]  ;;  %v4122_v15 = vld [vmem:[%s14488_s4 + $0x128] sm:$0xff] }
 0xfe3   : > { %10999 = vrcp.f32 %v3889_v6  ;;  %v4118_v6 = vld [vmem:[%s14488_s4 + $0x108] sm:$0xff] }
 0xfe4   : > { %11001 = vrcp.f32 %v3896_v29  ;;  %v4117_v29 = vld [vmem:[%s14488_s4 + $0x100] sm:$0xff]  ;;  %v9293_v12 = vpack.c.bf16 %v4122_v15, %v4118_v6 }
 0xfec   : > { %v10998_v32 = vpop.eup %10997 }
 0xfed   : > { %v11000_v34 = vpop.eup %10999  ;;  %v3900_v25 = vmul.f32 %v10998_v32, %v10996_v20  ;;  %v4120_v20 = vld [vmem:[%s14488_s4 + $0x118] sm:$0xff] }
 0xfee   : > { %v3899_v8 = vmul.f32 %v11000_v34, %v12957_v52  ;;  %v11002_v36 = vpop.eup %11001  ;;  %v9313_v52 = vpack.c.bf16 %v4100_v19, %v4096_v16  ;;  %v4124_v32 = vld [vmem:[%s14488_s4 + $0x138] sm:$0xff]  ;;  %v9291_v34 = vpack.c.bf16 %v4113_v48, %v4109_v41  ;;  %v9337_v41 = vpack.c.bf16 %v4148_v5, %v4144_v1  ;;  %v4145_v48 = vld [vmem:[%s14488_s4 + $0x1e0] sm:$0xff] }
 0xfef   : > { %v9325_v4 = vpack.c.bf16 %v4124_v32, %v4120_v20  ;;  %v4128_v16 = vld [vmem:[%s14488_s4 + $0x158] sm:$0xff]  ;;  %v4149_v32 = vld [vmem:[%s14489_s5] sm:$0xff] }
 0xff0   : > { %v13015_v31 = vadd.f32 %v3900_v25, %v3899_v8  ;;  %v9323_v25 = vpack.c.bf16 %v4115_v3, %v4111_v60  ;;  %v4121_v8 = vld [vmem:[%s14488_s4 + $0x120] sm:$0xff]  ;;  %v4132_v19 = vld [vmem:[%s14488_s4 + $0x178] sm:$0xff]  ;;  %v4150_v60 = vld [vmem:[%s14489_s5 + $0x8] sm:$0xff] }
 0xff1   : > { %v9329_v56 = vpack.c.bf16 %v4132_v19, %v4128_v16  ;;  %v4154_v3 = vld [vmem:[%s14489_s5 + $0x28] sm:$0xff]  ;;  %v14574_v19 = vld [vmem:[#allocation32_spill] sm:$0xff]  ;;  %v4173_v5 = vld [vmem:[%s14489_s5 + $0xc0] sm:$0xff] }
 0xff2   : > { %11003 = vtanh.f32 %v13015_v31  ;;  %v13210_v20 = vpack.c.bf16 %v4154_v3, %v4150_v60  ;;  %v14573_v16 = vld [vmem:[#allocation31_spill] sm:$0xff] }
 0xff3   : > { %v4190_v60 = vld [vmem:[%s14489_s5 + $0x148] sm:$0xff] }
 0xff4   : > { %v4194_v3 = vld [vmem:[%s14489_s5 + $0x168] sm:$0xff] }
 0xffc   : > { %v11004_v0 = vpop.eup %11003 }
 0xffd   : > { %v13048_v55 = vmul.f32 %v11004_v0, %v11002_v36  ;;  %v9295_v36 = vpack.c.bf16 %v4121_v8, %v4117_v29  ;;  %v9327_v0 = vpack.c.bf16 %v4123_v23, %v4119_v17  ;;  %v4162_v29 = vld [vmem:[%s14489_s5 + $0x68] sm:$0xff]  ;;  %v4161_v17 = vld [vmem:[%s14489_s5 + $0x60] sm:$0xff]  ;;  %v14571_v23 = vld [vmem:[#allocation29_spill] sm:$0xff] }
 0xfff   : > { %3976 = vmatmul.mubr.f32.vlgmr.msra.gmra.mrb[30].mxu0 %v13048_v55  ;;  %4047 = vmatmul.mubr.f32.vlgmr.msra.gmra.mrb[46].mxu1 %v13048_v55 }
0x1000   : > { %9280 = vmatpush1.bf16.msra.mxu0 %v9279_v63  ;;  %9312 = vmatpush1.bf16.msra.mxu1 %v9311_v27  ;;  %v4125_v63 = vld [vmem:[%s14488_s4 + $0x140] sm:$0xff] }
0x1001   : > { %9282 = vmatprep.subr.bf16.mxu0 %v9281_v58  ;;  %9314 = vmatprep.subr.bf16.mxu1 %v9313_v52  ;;  %v4129_v27 = vld [vmem:[%s14488_s4 + $0x160] sm:$0xff]  ;;  %v4127_v58 = vld [vmem:[%s14488_s4 + $0x150] sm:$0xff] }
0x1002   : > { %4315 = vmatprep.mubr.f32.mxu0 %v14560_v44  ;;  %4476 = vmatprep.mubr.f32.mxu1 %v14560_v44  ;;  %v4131_v52 = vld [vmem:[%s14488_s4 + $0x170] sm:$0xff]  ;;  %v9299_v45 = vpack.c.bf16 %v4129_v27, %v4125_v63  ;;  %v14577_v63 = vld [vmem:[#allocation35_spill] sm:$0xff] }
0x1003   : > { %v9331_v47 = vpack.c.bf16 %v4131_v52, %v4127_v58  ;;  %v4166_v52 = vld [vmem:[%s14489_s5 + $0x88] sm:$0xff] }
0x1004   : > { %9284 = vmatpush1.bf16.msra.mxu0 %v9283_v59  ;;  %9316 = vmatpush1.bf16.msra.mxu1 %v9315_v61  ;;  %v4133_v59 = vld [vmem:[%s14488_s4 + $0x180] sm:$0xff]  ;;  %v13345_v30 = vpack.c.bf16 %v4170_v35, %v4166_v52  ;;  %v4195_v35 = vld [vmem:[%s14489_s5 + $0x170] sm:$0xff] }
0x1005   : > { %9286 = vmatprep.subr.bf16.mxu0 %v9285_v26  ;;  %9318 = vmatprep.subr.bf16.mxu1 %v9317_v28  ;;  %v4137_v61 = vld [vmem:[%s14488_s4 + $0x1a0] sm:$0xff]  ;;  %v4135_v26 = vld [vmem:[%s14488_s4 + $0x190] sm:$0xff] }
0x1006   : > { %v4139_v28 = vld [vmem:[%s14488_s4 + $0x1b0] sm:$0xff]  ;;  %v9303_v18 = vpack.c.bf16 %v4137_v61, %v4133_v59 }
0x1007   : > { %v9335_v22 = vpack.c.bf16 %v4139_v28, %v4135_v26  ;;  %v4174_v28 = vld [vmem:[%s14489_s5 + $0xc8] sm:$0xff] }
0x1008   : > { %9288 = vmatpush1.bf16.msra.mxu0 %v9287_v24  ;;  %9320 = vmatpush1.bf16.msra.mxu1 %v9319_v37  ;;  %v4141_v24 = vld [vmem:[%s14488_s4 + $0x1c0] sm:$0xff]  ;;  %v9305_v37 = vpack.c.bf16 %v4146_v49, %v4142_v46  ;;  %v4178_v46 = vld [vmem:[%s14489_s5 + $0xe8] sm:$0xff]  ;;  %v4176_v49 = vld [vmem:[%s14489_s5 + $0xd8] sm:$0xff] }
0x1009   : > { %9290 = vmatprep.subr.bf16.mxu0 %v9289_v50  ;;  %9322 = vmatprep.subr.bf16.mxu1 %v9321_v57  ;;  %v4143_v50 = vld [vmem:[%s14488_s4 + $0x1d0] sm:$0xff]  ;;  %v9307_v6 = vpack.c.bf16 %v4145_v48, %v4141_v24  ;;  %v13380_v1 = vpack.c.bf16 %v4178_v46, %v4174_v28  ;;  %v4185_v48 = vld [vmem:[%s14489_s5 + $0x120] sm:$0xff] }
0x100a   : > { %v4147_v57 = vld [vmem:[%s14488_s4 + $0x1f0] sm:$0xff] }
0x100b   : > { %v9339_v15 = vpack.c.bf16 %v4147_v57, %v4143_v50  ;;  %v4180_v57 = vld [vmem:[%s14489_s5 + $0xf8] sm:$0xff]  ;;  %v4199_v46 = vld [vmem:[%s14489_s5 + $0x190] sm:$0xff] }
0x100c   : > { %9292 = vmatpush1.bf16.msra.mxu0 %v9291_v34  ;;  %9324 = vmatpush1.bf16.msra.mxu1 %v9323_v25  ;;  %v4153_v34 = vld [vmem:[%s14489_s5 + $0x20] sm:$0xff]  ;;  %v4158_v25 = vld [vmem:[%s14489_s5 + $0x48] sm:$0xff] }
0x100d   : > { %9294 = vmatprep.subr.bf16.mxu0 %v9293_v12  ;;  %9326 = vmatprep.subr.bf16.mxu1 %v9325_v4  ;;  %v13225_v8 = vpack.c.bf16 %v4153_v34, %v4149_v32  ;;  %v13227_v12 = vpack.c.bf16 %v4162_v29, %v4158_v25  ;;  %v4157_v4 = vld [vmem:[%s14489_s5 + $0x40] sm:$0xff]  ;;  %v4175_v32 = vld [vmem:[%s14489_s5 + $0xd0] sm:$0xff]  ;;  %v13430_v29 = vpack.c.bf16 %v4194_v3, %v4190_v60 }
0x100e   : > { %v13240_v13 = vpack.c.bf16 %v4161_v17, %v4157_v4  ;;  %v4179_v34 = vld [vmem:[%s14489_s5 + $0xf0] sm:$0xff]  ;;  %v4189_v25 = vld [vmem:[%s14489_s5 + $0x140] sm:$0xff] }
0x100f   : > { %v13432_v4 = vpack.c.bf16 %v4179_v34, %v4175_v32  ;;  %v4193_v17 = vld [vmem:[%s14489_s5 + $0x160] sm:$0xff]  ;;  %v4207_v3 = vld [vmem:[%s14489_s5 + $0x1d0] sm:$0xff] }
0x1010   : > { %9296 = vmatpush1.bf16.msra.mxu0 %v9295_v36  ;;  %9328 = vmatpush1.bf16.msra.mxu1 %v9327_v0  ;;  %v14575_v36 = vld [vmem:[#allocation33_spill] sm:$0xff]  ;;  %v14576_v0 = vld [vmem:[#allocation34_spill] sm:$0xff]  ;;  %v4211_v32 = vld [vmem:[%s14489_s5 + $0x1f0] sm:$0xff] }
0x1011   : > { %9298 = vmatprep.subr.bf16.mxu0 %v9297_v42  ;;  %9330 = vmatprep.subr.bf16.mxu1 %v9329_v56  ;;  %v4159_v42 = vld [vmem:[%s14489_s5 + $0x50] sm:$0xff]  ;;  %v13547_v34 = vpack.c.bf16 %v4211_v32, %v4207_v3 }
0x1012   : > { %v4163_v56 = vld [vmem:[%s14489_s5 + $0x70] sm:$0xff] }
0x1013   : > { %v13332_v58 = vpack.c.bf16 %v4163_v56, %v4159_v42  ;;  %v4201_v56 = vld [vmem:[%s14489_s5 + $0x1a0] sm:$0xff] }
0x1014   : > { %9300 = vmatpush1.bf16.msra.mxu0 %v9299_v45  ;;  %9332 = vmatpush1.bf16.msra.mxu1 %v9331_v47  ;;  %v4169_v45 = vld [vmem:[%s14489_s5 + $0xa0] sm:$0xff]  ;;  %v4172_v47 = vld [vmem:[%s14489_s5 + $0xb8] sm:$0xff] }
0x1015   : > { %9302 = vmatprep.subr.bf16.mxu0 %v9301_v9  ;;  %9334 = vmatprep.subr.bf16.mxu1 %v9333_v11  ;;  %v13356_v59 = vpack.c.bf16 %v4169_v45, %v4165_v33  ;;  %v13358_v61 = vpack.c.bf16 %v4172_v47, %v4168_v2  ;;  %v4167_v9 = vld [vmem:[%s14489_s5 + $0x90] sm:$0xff]  ;;  %v4206_v2 = vld [vmem:[%s14489_s5 + $0x1c8] sm:$0xff]  ;;  %v4200_v45 = vld [vmem:[%s14489_s5 + $0x198] sm:$0xff] }
0x1016   : > { %v4171_v11 = vld [vmem:[%s14489_s5 + $0xb0] sm:$0xff]  ;;  %v4210_v33 = vld [vmem:[%s14489_s5 + $0x1e8] sm:$0xff]  ;;  %v4204_v47 = vld [vmem:[%s14489_s5 + $0x1b8] sm:$0xff] }
0x1017   : > { %v13367_v26 = vpack.c.bf16 %v4171_v11, %v4167_v9  ;;  %v13507_v28 = vpack.c.bf16 %v4204_v47, %v4200_v45 }
0x1018   : > { %9304 = vmatpush1.bf16.msra.mxu0 %v9303_v18  ;;  %9336 = vmatpush1.bf16.msra.mxu1 %v9335_v22  ;;  %v4177_v18 = vld [vmem:[%s14489_s5 + $0xe0] sm:$0xff]  ;;  %v4182_v22 = vld [vmem:[%s14489_s5 + $0x108] sm:$0xff] }
0x1019   : > { %9306 = vmatprep.subr.bf16.mxu0 %v9305_v37  ;;  %9338 = vmatprep.subr.bf16.mxu1 %v9337_v41  ;;  %v13392_v24 = vpack.c.bf16 %v4177_v18, %v4173_v5  ;;  %v4186_v37 = vld [vmem:[%s14489_s5 + $0x128] sm:$0xff]  ;;  %v4181_v41 = vld [vmem:[%s14489_s5 + $0x100] sm:$0xff]  ;;  %v13516_v5 = vpack.c.bf16 %v4210_v33, %v4206_v2 }
0x101a   : > { %v13404_v50 = vpack.c.bf16 %v4186_v37, %v4182_v22  ;;  %v4205_v18 = vld [vmem:[%s14489_s5 + $0x1c0] sm:$0xff] }
0x101b   : > { %v4209_v22 = vld [vmem:[%s14489_s5 + $0x1e0] sm:$0xff] }
0x101c   : > { %9308 = vmatpush1.bf16.msra.mxu0 %v9307_v6  ;;  %9340 = vmatpush1.bf16.msra.mxu1 %v9339_v15  ;;  %v13416_v6 = vpack.c.bf16 %v4185_v48, %v4181_v41  ;;  %v13418_v15 = vpack.c.bf16 %v4180_v57, %v4176_v49  ;;  %v4203_v49 = vld [vmem:[%s14489_s5 + $0x1b0] sm:$0xff]  ;;  %v13529_v41 = vpack.c.bf16 %v4209_v22, %v4205_v18  ;;  %v4208_v48 = vld [vmem:[%s14489_s5 + $0x1d8] sm:$0xff] }
0x101d   : > { %9342 = vmatprep.subr.bf16.mxu0 %v13210_v20  ;;  %v13525_v37 = vpack.c.bf16 %v4203_v49, %v4199_v46  ;;  %v4212_v57 = vld [vmem:[%s14489_s5 + $0x1f8] sm:$0xff] }
0x101e   : > { %v13538_v60 = vpack.c.bf16 %v4212_v57, %v4208_v48 }
0x101f   : > { %4316 = vmatmul.mubr.f32.vlgmr.msra.gmra.mrb[32].mxu0 %v14571_v23  ;;  %4477 = vmatmul.mubr.f32.vlgmr.msra.gmra.mrb[48].mxu1 %v14571_v23  ;;  %v4184_v23 = vld [vmem:[%s14489_s5 + $0x118] sm:$0xff] }
0x1020   : > { %4321 = vmatprep.mubr.f32.mxu0 %v14560_v44  ;;  %4482 = vmatprep.mubr.f32.mxu1 %v14560_v44 }
0x1021   : > { %9344 = vmatpush1.bf16.msra.mxu0 %v13225_v8 }
0x1022   : > { %9346 = vmatprep.subr.bf16.mxu0 %v13227_v12 }
0x1023   : > { %4322 = vmatmul.mubr.f32.gmra.mrb[34].mxu0 %v14572_v51  ;;  %4483 = vmatmul.mubr.f32.gmra.mrb[50].mxu1 %v14572_v51  ;;  %v4188_v51 = vld [vmem:[%s14489_s5 + $0x138] sm:$0xff] }
0x1024   : > { %4327 = vmatprep.mubr.f32.mxu0 %v14560_v44  ;;  %4488 = vmatprep.mubr.f32.mxu1 %v14560_v44 }
0x1025   : > { %9348 = vmatpush1.bf16.msra.mxu0 %v13240_v13 }
0x1026   : > { %9350 = vmatprep.subr.bf16.mxu0 %v13345_v30 }
0x1027   : > { %4328 = vmatmul.mubr.f32.gmra.mrb[36].mxu0 %v14573_v16  ;;  %4489 = vmatmul.mubr.f32.gmra.mrb[52].mxu1 %v14573_v16  ;;  %v13444_v16 = vpack.c.bf16 %v4188_v51, %v4184_v23  ;;  %v14579_v23 = vld [vmem:[#allocation27_spill] sm:$0xff] }
0x1028   : > { %4333 = vmatprep.mubr.f32.mxu0 %v14560_v44  ;;  %4494 = vmatprep.mubr.f32.mxu1 %v14560_v44  ;;  %v1024_v51 = vadd.f32 %v14579_v23, %v12327_v10 }
0x1029   : > { %9352 = vmatpush1.bf16.msra.mxu0 %v13356_v59 }
0x102a   : > { %9354 = vmatprep.subr.bf16.mxu0 %v13380_v1 }
0x102b   : > { %4334 = vmatmul.mubr.f32.gmra.mrb[38].mxu0 %v14574_v19  ;;  %4495 = vmatmul.mubr.f32.gmra.mrb[54].mxu1 %v14574_v19  ;;  %v4198_v19 = vld [vmem:[%s14489_s5 + $0x188] sm:$0xff] }
0x102c   : > { %4339 = vmatprep.mubr.f32.mxu0 %v14560_v44  ;;  %4500 = vmatprep.mubr.f32.mxu1 %v14560_v44 }
0x102d   : > { %9356 = vmatpush1.bf16.msra.mxu0 %v13392_v24 }
0x102e   : > { %9358 = vmatprep.subr.bf16.mxu0 %v13404_v50 }
0x102f   : > { %4340 = vmatmul.mubr.f32.gmra.mrb[40].mxu0 %v14575_v36  ;;  %4501 = vmatmul.mubr.f32.gmra.mrb[56].mxu1 %v14575_v36  ;;  %v4202_v36 = vld [vmem:[%s14489_s5 + $0x1a8] sm:$0xff] }
0x1030   : > { %4345 = vmatprep.mubr.f32.mxu0 %v14560_v44  ;;  %4506 = vmatprep.mubr.f32.mxu1 %v14560_v44  ;;  %v13478_v42 = vpack.c.bf16 %v4202_v36, %v4198_v19 }
0x1031   : > { %9360 = vmatpush1.bf16.msra.mxu0 %v13416_v6 }
0x1032   : > { %9362 = vmatprep.subr.bf16.mxu0 %v13430_v29 }
0x1033   : > { %4346 = vmatmul.mubr.f32.gmra.mrb[42].mxu0 %v14576_v0  ;;  %4507 = vmatmul.mubr.f32.gmra.mrb[58].mxu1 %v14576_v0  ;;  %v4183_v0 = vld [vmem:[%s14489_s5 + $0x110] sm:$0xff] }
0x1034   : > { %4351 = vmatprep.mubr.f32.mxu0 %v14560_v44  ;;  %4512 = vmatprep.mubr.f32.mxu1 %v14560_v44 }
0x1037   : > { %4352 = vmatmul.mubr.f32.gmra.mrb[44].mxu0 %v14577_v63  ;;  %4513 = vmatmul.mubr.f32.gmra.mrb[60].mxu1 %v14577_v63  ;;  %v4187_v63 = vld [vmem:[%s14489_s5 + $0x130] sm:$0xff] }
0x1038   : > { %4357 = vmatprep.mubr.f32.mxu0 %v14560_v44  ;;  %4518 = vmatprep.mubr.f32.mxu1 %v14560_v44 }
0x103b   : > { %4358 = vmatmul.mubr.f32.gmra.mrb[46].mxu0 %v12672_v43  ;;  %4519 = vmatmul.mubr.f32.gmra.mrb[62].mxu1 %v12672_v43  ;;  %v4152_v43 = vld [vmem:[%s14489_s5 + $0x18] sm:$0xff] }
0x103c   : > { %4363 = vmatprep.mubr.f32.mxu0 %v14560_v44  ;;  %4524 = vmatprep.mubr.f32.mxu1 %v14560_v44 }
0x103f   : > { %4364 = vmatmul.mubr.f32.gmra.mrb[48].mxu0 %v12720_v7  ;;  %4525 = vmatmul.mubr.f32.gmra.mrb[64].mxu1 %v12720_v7  ;;  %v4156_v7 = vld [vmem:[%s14489_s5 + $0x38] sm:$0xff] }
0x1040   : > { %4369 = vmatprep.mubr.f32.mxu0 %v14560_v44  ;;  %4530 = vmatprep.mubr.f32.mxu1 %v14560_v44 }
0x1043   : > { %4370 = vmatmul.mubr.f32.gmra.mrb[50].mxu0 %v12768_v40  ;;  %4531 = vmatmul.mubr.f32.gmra.mrb[66].mxu1 %v12768_v40  ;;  %v13306_v40 = vpack.c.bf16 %v4156_v7, %v4152_v43  ;;  %v4197_v43 = vld [vmem:[%s14489_s5 + $0x180] sm:$0xff]  ;;  %v13463_v7 = vpack.c.bf16 %v4193_v17, %v4189_v25 }
0x1044   : > { %4375 = vmatprep.mubr.f32.mxu0 %v14560_v44  ;;  %4536 = vmatprep.mubr.f32.mxu1 %v14560_v44  ;;  %v13504_v11 = vpack.c.bf16 %v4201_v56, %v4197_v43  ;;  %v14578_v25 = vld [vmem:[#allocation26_spill] sm:$0xff] }
0x1045   : > { %9374 = vmatprep.subr.bf16.mxu1 %v13306_v40  ;;  %9364 = vmatpush1.bf16.msra.mxu0 %v13463_v7  ;;  %v1022_v17 = vadd.f32 %v14578_v25, %v12331_v14  ;;  %v4638_v25 = vld [vmem:[#allocation2 + $0x8] sm:$0xff] }
0x1046   : > { %9366 = vmatprep.subr.bf16.mxu0 %v13478_v42 }
0x1047   : > { %4376 = vmatmul.mubr.f32.gmra.mrb[52].mxu0 %v12816_v39  ;;  %4537 = vmatmul.mubr.f32.gmra.mrb[68].mxu1 %v12816_v39  ;;  %v4151_v39 = vld [vmem:[%s14489_s5 + $0x10] sm:$0xff] }
0x1048   : > { %4381 = vmatprep.mubr.f32.mxu0 %v14560_v44  ;;  %4542 = vmatprep.mubr.f32.mxu1 %v14560_v44 }
0x1049   : > { %9368 = vmatpush1.bf16.msra.mxu0 %v13504_v11 }
0x104a   : > { %9370 = vmatprep.subr.bf16.mxu0 %v13516_v5 }
0x104b   : > { %4382 = vmatmul.mubr.f32.gmra.mrb[54].mxu0 %v12864_v54  ;;  %4543 = vmatmul.mubr.f32.gmra.mrb[70].mxu1 %v12864_v54  ;;  %v4155_v54 = vld [vmem:[%s14489_s5 + $0x30] sm:$0xff] }
0x104c   : > { %4387 = vmatprep.mubr.f32.mxu0 %v14560_v44  ;;  %4548 = vmatprep.mubr.f32.mxu1 %v14560_v44 }
0x104d   : > { %9372 = vmatpush1.bf16.msra.mxu0 %v13529_v41 }
0x104e   : > { %9406 = vmatprep.subr.bf16.mxu0 %v13210_v20 }
0x104f   : > { %4388 = vmatmul.mubr.f32.gmra.mrb[56].mxu0 %v12912_v21  ;;  %4549 = vmatmul.mubr.f32.gmra.mrb[72].mxu1 %v12912_v21  ;;  %v13314_v21 = vpack.c.bf16 %v4155_v54, %v4151_v39  ;;  %v13466_v39 = vpack.c.bf16 %v4187_v63, %v4183_v0  ;;  %v4192_v54 = vld [vmem:[%s14489_s5 + $0x158] sm:$0xff] }
0x1050   : > { %4393 = vmatprep.mubr.f32.mxu0 %v14560_v44  ;;  %4554 = vmatprep.mubr.f32.mxu1 %v14560_v44 }
0x1051   : > { %9376 = vmatpush1.bf16.msra.mxu1 %v13314_v21 }
0x1053   : > { %4394 = vmatmul.mubr.f32.gmra.mrb[58].mxu0 %v12960_v38  ;;  %4555 = vmatmul.mubr.f32.gmra.mrb[74].mxu1 %v12960_v38  ;;  %v4160_v38 = vld [vmem:[%s14489_s5 + $0x58] sm:$0xff] }
0x1054   : > { %4399 = vmatprep.mubr.f32.mxu0 %v14560_v44  ;;  %4560 = vmatprep.mubr.f32.mxu1 %v14560_v44 }
0x1057   : > { %4400 = vmatmul.mubr.f32.gmra.mrb[60].mxu0 %v13048_v55  ;;  %4561 = vmatmul.mubr.f32.gmra.mrb[76].mxu1 %v13048_v55  ;;  %v4164_v55 = vld [vmem:[%s14489_s5 + $0x78] sm:$0xff] }
0x1058   : > { %4405 = vmatprep.mubr.f32.mxu0 %v14560_v44  ;;  %4566 = vmatprep.mubr.f32.mxu1 %v14560_v44  ;;  %v13324_v27 = vpack.c.bf16 %v4164_v55, %v4160_v38  ;;  %v4196_v38 = vld [vmem:[%s14489_s5 + $0x178] sm:$0xff]  ;;  %v4191_v55 = vld [vmem:[%s14489_s5 + $0x150] sm:$0xff] }
0x1059   : > { %v13483_v52 = vpack.c.bf16 %v4196_v38, %v4192_v54  ;;  %v13501_v9 = vpack.c.bf16 %v4195_v35, %v4191_v55 }
0x105a   : > { %9378 = vmatprep.subr.bf16.mxu1 %v13324_v27 }
0x105b   : > { %9380 = vmatpush1.bf16.msra.mxu1 %v13332_v58 }
0x105c   : > { %9382 = vmatprep.subr.bf16.mxu1 %v13358_v61 }
0x105f   : > { %9384 = vmatpush1.bf16.msra.mxu1 %v13367_v26 }
0x1060   : > { %9386 = vmatprep.subr.bf16.mxu1 %v13418_v15 }
0x1063   : > { %9388 = vmatpush1.bf16.msra.mxu1 %v13432_v4 }
0x1064   : > { %9390 = vmatprep.subr.bf16.mxu1 %v13444_v16 }
0x1067   : > { %9392 = vmatpush1.bf16.msra.mxu1 %v13466_v39 }
0x1068   : > { %9394 = vmatprep.subr.bf16.mxu1 %v13483_v52 }
0x106b   : > { %9396 = vmatpush1.bf16.msra.mxu1 %v13501_v9 }
0x106c   : > { %9398 = vmatprep.subr.bf16.mxu1 %v13507_v28 }
0x106f   : > { %9400 = vmatpush1.bf16.msra.mxu1 %v13525_v37 }
0x1070   : > { %9402 = vmatprep.subr.bf16.mxu1 %v13538_v60 }
0x1073   : > { %9404 = vmatpush1.bf16.msra.mxu1 %v13547_v34 }
0x1074   : > { %9438 = vmatprep.subr.bf16.mxu1 %v13306_v40 }
0x10d2   : > { %v3977_v19 = vpop.f32.mrb[30].mxu0  ;;  %v4048_v36 = vpop.f32.mrb[46].mxu1 }
0x10d3   : > { %v4053_v0 = vadd.f32 %v3977_v19, %v1022_v17  ;;  %v3979_v63 = vpop.f32.mrb[31].mxu0  ;;  %v4050_v43 = vpop.f32.mrb[47].mxu1  ;;  %v10491_v2 = vadd.f32 %v4048_v36, %v12339_v53  ;;  %v14581_v17 = vld [vmem:[#allocation28_spill] sm:$0xff] }
0x10d4   : > { %v4054_v54 = vadd.f32 %v3979_v63, %v1024_v51  ;;  %v10492_v56 = vadd.f32 %v4050_v43, %v12343_v62  ;;  %v14582_v23 = vsub.s32 0, %v14581_v17  ;;  %v14583_v19 = vsub.s32 1, %v14581_v17 }
0x10d5   : > { %v8036_v38 = vmul.f32 -1.442695, %v4053_v0 }
0x10d6   : > { %v8037_v55 = vmul.f32 -1.442695, %v4054_v54  ;;  %v8038_v35 = vmul.f32 -1.442695, %v10492_v56 }
0x10d7   : > { %11005 = vpow2.f32 %v8036_v38 }
0x10d8   : > { %11007 = vpow2.f32 %v8037_v55 }
0x10d9   : > { %11009 = vpow2.f32 %v8038_v35 }
0x10da   : > { %11011 = vtanh.f32 %v10491_v2  ;;  %v14584_v2 = vsub.s32 3, %v14581_v17 }
0x10e1   : > { %v11006_v33 = vpop.eup %11005 }
0x10e2   : > { %v11008_v14 = vpop.eup %11007  ;;  %v4060_v45 = vadd.f32 1.0, %v11006_v33 }
0x10e3   : > { %v4066_v10 = vadd.f32 1.0, %v11008_v14  ;;  %v11010_v47 = vpop.eup %11009 }
0x10e4   : > { %11013 = vrcp.f32 %v4060_v45  ;;  %v11012_v46 = vpop.eup %11011  ;;  %v4073_v48 = vadd.f32 1.0, %v11010_v47  ;;  %v14585_v45 = vsub.s32 2, %v14581_v17 }
0x10e5   : > { %11015 = vrcp.f32 %v4066_v10 }
0x10e6   : > { %11017 = vrcp.f32 %v4073_v48 }
0x10ee   : > { %v11014_v49 = vpop.eup %11013 }
0x10ef   : > { %v11016_v18 = vpop.eup %11015  ;;  %v4077_v22 = vmul.f32 %v11014_v49, %v11012_v46 }
0x10f0   : > { %v4076_v57 = vmul.f32 %v11016_v18, %v13015_v31  ;;  %v11018_v53 = vpop.eup %11017  ;;  %v4229_v31 = vld [vmem:[%s14580_s9] sm:$0xf] }
0x10f1   : > { %v13602_v51 = vrot.slane %v4229_v31, %v14582_v23  ;;  %v13606_v36 = vrot.slane %v4229_v31, %v14583_v19  ;;  %v13612_v33 = vrot.slane %v4229_v31, %v14584_v2  ;;  %v13617_v10 = vrot.slane %v4229_v31, %v14585_v45 }
0x10f2   : > { %v4078_v62 = vadd.f32 %v4077_v22, %v4076_v57 }
0x10f4   : > { %11019 = vtanh.f32 %v4078_v62  ;;  %4084 = vst [vmem:[#allocation3] sm:$0xff] %v4078_v62 }
0x10fe   : > { %v11020_v3 = vpop.eup %11019 }
0x10ff   : > { %v4080_v32 = vmul.f32 %v11020_v3, %v11018_v53  ;;  %v4640_v53 = vld [vmem:[#allocation3 + $0x8] sm:$0xff] }
0x1101   : > { %4083 = vst [vmem:[#allocation2] sm:$0xff] %v4080_v32  ;;  %4406 = vmatmul.mubr.f32.gmra.mrb[62].mxu0 %v4080_v32  ;;  %4567 = vmatmul.mubr.f32.gmra.mrb[78].mxu1 %v4080_v32 }
0x1102   : > { %4709 = vmatprep.mubr.f32.mxu0 %v14560_v44  ;;  %4780 = vmatprep.mubr.f32.mxu1 %v14560_v44 }
0x1105   : > { %4710 = vmatmul.mubr.f32.vlgmr.msra.gmra.mrb[32].mxu0 %v4638_v25  ;;  %4781 = vmatmul.mubr.f32.vlgmr.msra.gmra.mrb[48].mxu1 %v4638_v25 }
0x1106   : > { %9408 = vmatpush1.bf16.msra.mxu0 %v13225_v8  ;;  %9440 = vmatpush1.bf16.msra.mxu1 %v13314_v21 }
0x1107   : > { %9410 = vmatprep.subr.bf16.mxu0 %v13227_v12  ;;  %9442 = vmatprep.subr.bf16.mxu1 %v13324_v27 }
0x1108   : > { %4884 = vmatprep.mubr.f32.mxu0 %v14560_v44  ;;  %4955 = vmatprep.mubr.f32.mxu1 %v14560_v44 }
0x110a   : > { %9412 = vmatpush1.bf16.msra.mxu0 %v13240_v13  ;;  %9444 = vmatpush1.bf16.msra.mxu1 %v13332_v58 }
0x110b   : > { %9414 = vmatprep.subr.bf16.mxu0 %v13345_v30  ;;  %9446 = vmatprep.subr.bf16.mxu1 %v13358_v61 }
0x110e   : > { %9416 = vmatpush1.bf16.msra.mxu0 %v13356_v59  ;;  %9448 = vmatpush1.bf16.msra.mxu1 %v13367_v26 }
0x110f   : > { %9418 = vmatprep.subr.bf16.mxu0 %v13380_v1  ;;  %9450 = vmatprep.subr.bf16.mxu1 %v13418_v15 }
0x1112   : > { %9420 = vmatpush1.bf16.msra.mxu0 %v13392_v24  ;;  %9452 = vmatpush1.bf16.msra.mxu1 %v13432_v4 }
0x1113   : > { %9422 = vmatprep.subr.bf16.mxu0 %v13404_v50  ;;  %9454 = vmatprep.subr.bf16.mxu1 %v13444_v16 }
0x1116   : > { %9424 = vmatpush1.bf16.msra.mxu0 %v13416_v6  ;;  %9456 = vmatpush1.bf16.msra.mxu1 %v13466_v39 }
0x1117   : > { %9426 = vmatprep.subr.bf16.mxu0 %v13430_v29  ;;  %9458 = vmatprep.subr.bf16.mxu1 %v13483_v52 }
0x111a   : > { %9428 = vmatpush1.bf16.msra.mxu0 %v13463_v7  ;;  %9460 = vmatpush1.bf16.msra.mxu1 %v13501_v9 }
0x111b   : > { %9430 = vmatprep.subr.bf16.mxu0 %v13478_v42  ;;  %9462 = vmatprep.subr.bf16.mxu1 %v13507_v28 }
0x111e   : > { %9432 = vmatpush1.bf16.msra.mxu0 %v13504_v11  ;;  %9464 = vmatpush1.bf16.msra.mxu1 %v13525_v37 }
0x111f   : > { %9434 = vmatprep.subr.bf16.mxu0 %v13516_v5  ;;  %9466 = vmatprep.subr.bf16.mxu1 %v13538_v60 }
0x1122   : > { %9436 = vmatpush1.bf16.msra.mxu0 %v13529_v41  ;;  %9468 = vmatpush1.bf16.msra.mxu1 %v13547_v34 }
0x1123   : > { %9470 = vmatprep.subr.bf16.mxu0 %v13210_v20  ;;  %9502 = vmatprep.subr.bf16.mxu1 %v13306_v40 }
0x11d8   : > { %v4711_v0 = vpop.f32.mrb[32].mxu0  ;;  %v4782_v63 = vpop.f32.mrb[48].mxu1 }
0x11d9   : > { %v10493_v43 = vadd.f32 %v4711_v0, %v13602_v51  ;;  %v4713_v54 = vpop.f32.mrb[33].mxu0  ;;  %v4784_v38 = vpop.f32.mrb[49].mxu1  ;;  %v10525_v46 = vadd.f32 %v4782_v63, %v13617_v10 }
0x11da   : > { %v10494_v55 = vadd.f32 %v4713_v54, %v13606_v36  ;;  %v10526_v14 = vadd.f32 %v4784_v38, %v13612_v33 }
0x11db   : > { %v8039_v56 = vmul.f32 -1.442695, %v10493_v43 }
0x11dc   : > { %v8040_v35 = vmul.f32 -1.442695, %v10494_v55  ;;  %v8041_v47 = vmul.f32 -1.442695, %v10526_v14 }
0x11dd   : > { %11021 = vpow2.f32 %v8039_v56 }
0x11de   : > { %11023 = vpow2.f32 %v8040_v35 }
0x11df   : > { %11025 = vpow2.f32 %v8041_v47 }
0x11e0   : > { %11027 = vtanh.f32 %v10525_v46 }
0x11e7   : > { %v11022_v49 = vpop.eup %11021 }
0x11e8   : > { %v11024_v18 = vpop.eup %11023  ;;  %v4794_v22 = vadd.f32 1.0, %v11022_v49 }
0x11e9   : > { %v4800_v48 = vadd.f32 1.0, %v11024_v18  ;;  %v11026_v57 = vpop.eup %11025 }
0x11ea   : > { %11029 = vrcp.f32 %v4794_v22  ;;  %v11028_v62 = vpop.eup %11027  ;;  %v4807_v17 = vadd.f32 1.0, %v11026_v57 }
0x11eb   : > { %11031 = vrcp.f32 %v4800_v48 }
0x11ec   : > { %11033 = vrcp.f32 %v4807_v17 }
0x11f4   : > { %v11030_v3 = vpop.eup %11029 }
0x11f5   : > { %v11032_v32 = vpop.eup %11031  ;;  %v4811_v25 = vmul.f32 %v11030_v3, %v11028_v62 }
0x11f6   : > { %v4810_v31 = vmul.f32 %v11032_v32, %v4640_v53  ;;  %v11034_v19 = vpop.eup %11033 }
0x11f8   : > { %v13620_v23 = vadd.f32 %v4811_v25, %v4810_v31 }
0x11fa   : > { %11035 = vtanh.f32 %v13620_v23 }
0x1204   : > { %v11036_v0 = vpop.eup %11035 }
0x1205   : > { %v13623_v63 = vmul.f32 %v11036_v0, %v11034_v19 }
0x1207   : > { %4885 = vmatmul.mubr.f32.vlgmr.msra.gmra.mrb[34].mxu0 %v13623_v63  ;;  %4956 = vmatmul.mubr.f32.vlgmr.msra.gmra.mrb[50].mxu1 %v13623_v63 }
0x1208   : > { %9472 = vmatpush1.bf16.msra.mxu0 %v13225_v8  ;;  %9504 = vmatpush1.bf16.msra.mxu1 %v13314_v21 }
0x1209   : > { %9474 = vmatprep.subr.bf16.mxu0 %v13227_v12  ;;  %9506 = vmatprep.subr.bf16.mxu1 %v13324_v27 }
0x120a   : > { %5059 = vmatprep.mubr.f32.mxu0 %v14560_v44  ;;  %5130 = vmatprep.mubr.f32.mxu1 %v14560_v44 }
0x120c   : > { %9476 = vmatpush1.bf16.msra.mxu0 %v13240_v13  ;;  %9508 = vmatpush1.bf16.msra.mxu1 %v13332_v58 }
0x120d   : > { %9478 = vmatprep.subr.bf16.mxu0 %v13345_v30  ;;  %9510 = vmatprep.subr.bf16.mxu1 %v13358_v61 }
0x1210   : > { %9480 = vmatpush1.bf16.msra.mxu0 %v13356_v59  ;;  %9512 = vmatpush1.bf16.msra.mxu1 %v13367_v26 }
0x1211   : > { %9482 = vmatprep.subr.bf16.mxu0 %v13380_v1  ;;  %9514 = vmatprep.subr.bf16.mxu1 %v13418_v15 }
0x1214   : > { %9484 = vmatpush1.bf16.msra.mxu0 %v13392_v24  ;;  %9516 = vmatpush1.bf16.msra.mxu1 %v13432_v4 }
0x1215   : > { %9486 = vmatprep.subr.bf16.mxu0 %v13404_v50  ;;  %9518 = vmatprep.subr.bf16.mxu1 %v13444_v16 }
0x1218   : > { %9488 = vmatpush1.bf16.msra.mxu0 %v13416_v6  ;;  %9520 = vmatpush1.bf16.msra.mxu1 %v13466_v39 }
0x1219   : > { %9490 = vmatprep.subr.bf16.mxu0 %v13430_v29  ;;  %9522 = vmatprep.subr.bf16.mxu1 %v13483_v52 }
0x121c   : > { %9492 = vmatpush1.bf16.msra.mxu0 %v13463_v7  ;;  %9524 = vmatpush1.bf16.msra.mxu1 %v13501_v9 }
0x121d   : > { %9494 = vmatprep.subr.bf16.mxu0 %v13478_v42  ;;  %9526 = vmatprep.subr.bf16.mxu1 %v13507_v28 }
0x1220   : > { %9496 = vmatpush1.bf16.msra.mxu0 %v13504_v11  ;;  %9528 = vmatpush1.bf16.msra.mxu1 %v13525_v37 }
0x1221   : > { %9498 = vmatprep.subr.bf16.mxu0 %v13516_v5  ;;  %9530 = vmatprep.subr.bf16.mxu1 %v13538_v60 }
0x1224   : > { %9500 = vmatpush1.bf16.msra.mxu0 %v13529_v41  ;;  %9532 = vmatpush1.bf16.msra.mxu1 %v13547_v34 }
0x1225   : > { %9534 = vmatprep.subr.bf16.mxu0 %v13210_v20  ;;  %9566 = vmatprep.subr.bf16.mxu1 %v13306_v40 }
0x12da   : > { %v4886_v43 = vpop.f32.mrb[34].mxu0  ;;  %v4957_v54 = vpop.f32.mrb[50].mxu1 }
0x12db   : > { %v10495_v38 = vadd.f32 %v4886_v43, %v13602_v51  ;;  %v4888_v55 = vpop.f32.mrb[35].mxu0  ;;  %v4959_v56 = vpop.f32.mrb[51].mxu1  ;;  %v10527_v46 = vadd.f32 %v4957_v54, %v13617_v10 }
0x12dc   : > { %v10496_v35 = vadd.f32 %v4888_v55, %v13606_v36  ;;  %v10528_v45 = vadd.f32 %v4959_v56, %v13612_v33 }
0x12dd   : > { %v8042_v2 = vmul.f32 -1.442695, %v10495_v38 }
0x12de   : > { %v8043_v14 = vmul.f32 -1.442695, %v10496_v35  ;;  %v8044_v47 = vmul.f32 -1.442695, %v10528_v45 }
0x12df   : > { %11037 = vpow2.f32 %v8042_v2 }
0x12e0   : > { %11039 = vpow2.f32 %v8043_v14 }
0x12e1   : > { %11041 = vpow2.f32 %v8044_v47 }
0x12e2   : > { %11043 = vtanh.f32 %v10527_v46 }
0x12e9   : > { %v11038_v49 = vpop.eup %11037 }
0x12ea   : > { %v11040_v18 = vpop.eup %11039  ;;  %v4969_v22 = vadd.f32 1.0, %v11038_v49 }
0x12eb   : > { %v4975_v48 = vadd.f32 1.0, %v11040_v18  ;;  %v11042_v57 = vpop.eup %11041 }
0x12ec   : > { %11045 = vrcp.f32 %v4969_v22  ;;  %v11044_v62 = vpop.eup %11043  ;;  %v4982_v25 = vadd.f32 1.0, %v11042_v57 }
0x12ed   : > { %11047 = vrcp.f32 %v4975_v48 }
0x12ee   : > { %11049 = vrcp.f32 %v4982_v25 }
0x12f6   : > { %v11046_v53 = vpop.eup %11045 }
0x12f7   : > { %v11048_v3 = vpop.eup %11047  ;;  %v4986_v32 = vmul.f32 %v11046_v53, %v11044_v62 }
0x12f8   : > { %v4985_v17 = vmul.f32 %v11048_v3, %v13620_v23  ;;  %v11050_v19 = vpop.eup %11049 }
0x12fa   : > { %v13666_v31 = vadd.f32 %v4986_v32, %v4985_v17 }
0x12fc   : > { %11051 = vtanh.f32 %v13666_v31 }
0x1306   : > { %v11052_v0 = vpop.eup %11051 }
0x1307   : > { %v13669_v43 = vmul.f32 %v11052_v0, %v11050_v19 }
0x1309   : > { %5060 = vmatmul.mubr.f32.vlgmr.msra.gmra.mrb[36].mxu0 %v13669_v43  ;;  %5131 = vmatmul.mubr.f32.vlgmr.msra.gmra.mrb[52].mxu1 %v13669_v43 }
0x130a   : > { %9536 = vmatpush1.bf16.msra.mxu0 %v13225_v8  ;;  %9568 = vmatpush1.bf16.msra.mxu1 %v13314_v21 }
0x130b   : > { %9538 = vmatprep.subr.bf16.mxu0 %v13227_v12  ;;  %9570 = vmatprep.subr.bf16.mxu1 %v13324_v27 }
0x130c   : > { %5234 = vmatprep.mubr.f32.mxu0 %v14560_v44  ;;  %5305 = vmatprep.mubr.f32.mxu1 %v14560_v44 }
0x130e   : > { %9540 = vmatpush1.bf16.msra.mxu0 %v13240_v13  ;;  %9572 = vmatpush1.bf16.msra.mxu1 %v13332_v58 }
0x130f   : > { %9542 = vmatprep.subr.bf16.mxu0 %v13345_v30  ;;  %9574 = vmatprep.subr.bf16.mxu1 %v13358_v61 }
0x1312   : > { %9544 = vmatpush1.bf16.msra.mxu0 %v13356_v59  ;;  %9576 = vmatpush1.bf16.msra.mxu1 %v13367_v26 }
0x1313   : > { %9546 = vmatprep.subr.bf16.mxu0 %v13380_v1  ;;  %9578 = vmatprep.subr.bf16.mxu1 %v13418_v15 }
0x1316   : > { %9548 = vmatpush1.bf16.msra.mxu0 %v13392_v24  ;;  %9580 = vmatpush1.bf16.msra.mxu1 %v13432_v4 }
0x1317   : > { %9550 = vmatprep.subr.bf16.mxu0 %v13404_v50  ;;  %9582 = vmatprep.subr.bf16.mxu1 %v13444_v16 }
0x131a   : > { %9552 = vmatpush1.bf16.msra.mxu0 %v13416_v6  ;;  %9584 = vmatpush1.bf16.msra.mxu1 %v13466_v39 }
0x131b   : > { %9554 = vmatprep.subr.bf16.mxu0 %v13430_v29  ;;  %9586 = vmatprep.subr.bf16.mxu1 %v13483_v52 }
0x131e   : > { %9556 = vmatpush1.bf16.msra.mxu0 %v13463_v7  ;;  %9588 = vmatpush1.bf16.msra.mxu1 %v13501_v9 }
0x131f   : > { %9558 = vmatprep.subr.bf16.mxu0 %v13478_v42  ;;  %9590 = vmatprep.subr.bf16.mxu1 %v13507_v28 }
0x1322   : > { %9560 = vmatpush1.bf16.msra.mxu0 %v13504_v11  ;;  %9592 = vmatpush1.bf16.msra.mxu1 %v13525_v37 }
0x1323   : > { %9562 = vmatprep.subr.bf16.mxu0 %v13516_v5  ;;  %9594 = vmatprep.subr.bf16.mxu1 %v13538_v60 }
0x1326   : > { %9564 = vmatpush1.bf16.msra.mxu0 %v13529_v41  ;;  %9596 = vmatpush1.bf16.msra.mxu1 %v13547_v34 }
0x1327   : > { %9598 = vmatprep.subr.bf16.mxu0 %v13210_v20  ;;  %9630 = vmatprep.subr.bf16.mxu1 %v13306_v40 }
0x13dc   : > { %v5061_v23 = vpop.f32.mrb[36].mxu0  ;;  %v5132_v54 = vpop.f32.mrb[52].mxu1 }
0x13dd   : > { %v10497_v38 = vadd.f32 %v5061_v23, %v13602_v51  ;;  %v5063_v55 = vpop.f32.mrb[37].mxu0  ;;  %v5134_v56 = vpop.f32.mrb[53].mxu1  ;;  %v10529_v46 = vadd.f32 %v5132_v54, %v13617_v10 }
0x13de   : > { %v10498_v35 = vadd.f32 %v5063_v55, %v13606_v36  ;;  %v10530_v45 = vadd.f32 %v5134_v56, %v13612_v33 }
0x13df   : > { %v8045_v2 = vmul.f32 -1.442695, %v10497_v38 }
0x13e0   : > { %v8046_v14 = vmul.f32 -1.442695, %v10498_v35  ;;  %v8047_v47 = vmul.f32 -1.442695, %v10530_v45 }
0x13e1   : > { %11053 = vpow2.f32 %v8045_v2 }
0x13e2   : > { %11055 = vpow2.f32 %v8046_v14 }
0x13e3   : > { %11057 = vpow2.f32 %v8047_v47 }
0x13e4   : > { %11059 = vtanh.f32 %v10529_v46 }
0x13eb   : > { %v11054_v49 = vpop.eup %11053 }
0x13ec   : > { %v11056_v18 = vpop.eup %11055  ;;  %v5144_v22 = vadd.f32 1.0, %v11054_v49 }
0x13ed   : > { %v5150_v48 = vadd.f32 1.0, %v11056_v18  ;;  %v11058_v57 = vpop.eup %11057 }
0x13ee   : > { %11061 = vrcp.f32 %v5144_v22  ;;  %v11060_v62 = vpop.eup %11059  ;;  %v5157_v25 = vadd.f32 1.0, %v11058_v57 }
0x13ef   : > { %11063 = vrcp.f32 %v5150_v48 }
0x13f0   : > { %11065 = vrcp.f32 %v5157_v25 }
0x13f8   : > { %v11062_v53 = vpop.eup %11061 }
0x13f9   : > { %v11064_v3 = vpop.eup %11063  ;;  %v5161_v32 = vmul.f32 %v11062_v53, %v11060_v62 }
0x13fa   : > { %v5160_v17 = vmul.f32 %v11064_v3, %v13666_v31  ;;  %v11066_v0 = vpop.eup %11065 }
0x13fc   : > { %v13712_v19 = vadd.f32 %v5161_v32, %v5160_v17 }
0x13fe   : > { %11067 = vtanh.f32 %v13712_v19 }
0x1408   : > { %v11068_v23 = vpop.eup %11067 }
0x1409   : > { %v13715_v54 = vmul.f32 %v11068_v23, %v11066_v0 }
0x140b   : > { %5235 = vmatmul.mubr.f32.vlgmr.msra.gmra.mrb[38].mxu0 %v13715_v54  ;;  %5306 = vmatmul.mubr.f32.vlgmr.msra.gmra.mrb[54].mxu1 %v13715_v54 }
0x140c   : > { %9600 = vmatpush1.bf16.msra.mxu0 %v13225_v8  ;;  %9632 = vmatpush1.bf16.msra.mxu1 %v13314_v21 }
0x140d   : > { %9602 = vmatprep.subr.bf16.mxu0 %v13227_v12  ;;  %9634 = vmatprep.subr.bf16.mxu1 %v13324_v27 }
0x140e   : > { %5409 = vmatprep.mubr.f32.mxu0 %v14560_v44  ;;  %5480 = vmatprep.mubr.f32.mxu1 %v14560_v44 }
0x1410   : > { %9604 = vmatpush1.bf16.msra.mxu0 %v13240_v13  ;;  %9636 = vmatpush1.bf16.msra.mxu1 %v13332_v58 }
0x1411   : > { %9606 = vmatprep.subr.bf16.mxu0 %v13345_v30  ;;  %9638 = vmatprep.subr.bf16.mxu1 %v13358_v61 }
0x1414   : > { %9608 = vmatpush1.bf16.msra.mxu0 %v13356_v59  ;;  %9640 = vmatpush1.bf16.msra.mxu1 %v13367_v26 }
0x1415   : > { %9610 = vmatprep.subr.bf16.mxu0 %v13380_v1  ;;  %9642 = vmatprep.subr.bf16.mxu1 %v13418_v15 }
0x1418   : > { %9612 = vmatpush1.bf16.msra.mxu0 %v13392_v24  ;;  %9644 = vmatpush1.bf16.msra.mxu1 %v13432_v4 }
0x1419   : > { %9614 = vmatprep.subr.bf16.mxu0 %v13404_v50  ;;  %9646 = vmatprep.subr.bf16.mxu1 %v13444_v16 }
0x141c   : > { %9616 = vmatpush1.bf16.msra.mxu0 %v13416_v6  ;;  %9648 = vmatpush1.bf16.msra.mxu1 %v13466_v39 }
0x141d   : > { %9618 = vmatprep.subr.bf16.mxu0 %v13430_v29  ;;  %9650 = vmatprep.subr.bf16.mxu1 %v13483_v52 }
0x1420   : > { %9620 = vmatpush1.bf16.msra.mxu0 %v13463_v7  ;;  %9652 = vmatpush1.bf16.msra.mxu1 %v13501_v9 }
0x1421   : > { %9622 = vmatprep.subr.bf16.mxu0 %v13478_v42  ;;  %9654 = vmatprep.subr.bf16.mxu1 %v13507_v28 }
0x1424   : > { %9624 = vmatpush1.bf16.msra.mxu0 %v13504_v11  ;;  %9656 = vmatpush1.bf16.msra.mxu1 %v13525_v37 }
0x1425   : > { %9626 = vmatprep.subr.bf16.mxu0 %v13516_v5  ;;  %9658 = vmatprep.subr.bf16.mxu1 %v13538_v60 }
0x1428   : > { %9628 = vmatpush1.bf16.msra.mxu0 %v13529_v41  ;;  %9660 = vmatpush1.bf16.msra.mxu1 %v13547_v34 }
0x1429   : > { %9662 = vmatprep.subr.bf16.mxu0 %v13210_v20  ;;  %9694 = vmatprep.subr.bf16.mxu1 %v13306_v40 }
0x14de   : > { %v5236_v31 = vpop.f32.mrb[38].mxu0  ;;  %v5307_v38 = vpop.f32.mrb[54].mxu1 }
0x14df   : > { %v10499_v55 = vadd.f32 %v5236_v31, %v13602_v51  ;;  %v5238_v56 = vpop.f32.mrb[39].mxu0  ;;  %v5309_v35 = vpop.f32.mrb[55].mxu1  ;;  %v10531_v49 = vadd.f32 %v5307_v38, %v13617_v10 }
0x14e0   : > { %v10500_v2 = vadd.f32 %v5238_v56, %v13606_v36  ;;  %v10532_v47 = vadd.f32 %v5309_v35, %v13612_v33 }
0x14e1   : > { %v8048_v14 = vmul.f32 -1.442695, %v10499_v55 }
0x14e2   : > { %v8049_v45 = vmul.f32 -1.442695, %v10500_v2  ;;  %v8050_v46 = vmul.f32 -1.442695, %v10532_v47 }
0x14e3   : > { %11069 = vpow2.f32 %v8048_v14 }
0x14e4   : > { %11071 = vpow2.f32 %v8049_v45 }
0x14e5   : > { %11073 = vpow2.f32 %v8050_v46 }
0x14e6   : > { %11075 = vtanh.f32 %v10531_v49 }
0x14ed   : > { %v11070_v18 = vpop.eup %11069 }
0x14ee   : > { %v11072_v22 = vpop.eup %11071  ;;  %v5319_v48 = vadd.f32 1.0, %v11070_v18 }
0x14ef   : > { %v5325_v57 = vadd.f32 1.0, %v11072_v22  ;;  %v11074_v62 = vpop.eup %11073 }
0x14f0   : > { %11077 = vrcp.f32 %v5319_v48  ;;  %v11076_v53 = vpop.eup %11075  ;;  %v5332_v17 = vadd.f32 1.0, %v11074_v62 }
0x14f1   : > { %11079 = vrcp.f32 %v5325_v57 }
0x14f2   : > { %11081 = vrcp.f32 %v5332_v17 }
0x14fa   : > { %v11078_v3 = vpop.eup %11077 }
0x14fb   : > { %v11080_v32 = vpop.eup %11079  ;;  %v5336_v25 = vmul.f32 %v11078_v3, %v11076_v53 }
0x14fc   : > { %v5335_v0 = vmul.f32 %v11080_v32, %v13712_v19  ;;  %v11082_v31 = vpop.eup %11081 }
0x14fe   : > { %v13758_v23 = vadd.f32 %v5336_v25, %v5335_v0 }
0x1500   : > { %11083 = vtanh.f32 %v13758_v23 }
0x150a   : > { %v11084_v38 = vpop.eup %11083 }
0x150b   : > { %v13761_v55 = vmul.f32 %v11084_v38, %v11082_v31 }
0x150d   : > { %5410 = vmatmul.mubr.f32.vlgmr.msra.gmra.mrb[40].mxu0 %v13761_v55  ;;  %5481 = vmatmul.mubr.f32.vlgmr.msra.gmra.mrb[56].mxu1 %v13761_v55 }
0x150e   : > { %9664 = vmatpush1.bf16.msra.mxu0 %v13225_v8  ;;  %9696 = vmatpush1.bf16.msra.mxu1 %v13314_v21 }
0x150f   : > { %9666 = vmatprep.subr.bf16.mxu0 %v13227_v12  ;;  %9698 = vmatprep.subr.bf16.mxu1 %v13324_v27 }
0x1510   : > { %5584 = vmatprep.mubr.f32.mxu0 %v14560_v44  ;;  %5655 = vmatprep.mubr.f32.mxu1 %v14560_v44 }
0x1512   : > { %9668 = vmatpush1.bf16.msra.mxu0 %v13240_v13  ;;  %9700 = vmatpush1.bf16.msra.mxu1 %v13332_v58 }
0x1513   : > { %9670 = vmatprep.subr.bf16.mxu0 %v13345_v30  ;;  %9702 = vmatprep.subr.bf16.mxu1 %v13358_v61 }
0x1516   : > { %9672 = vmatpush1.bf16.msra.mxu0 %v13356_v59  ;;  %9704 = vmatpush1.bf16.msra.mxu1 %v13367_v26 }
0x1517   : > { %9674 = vmatprep.subr.bf16.mxu0 %v13380_v1  ;;  %9706 = vmatprep.subr.bf16.mxu1 %v13418_v15 }
0x151a   : > { %9676 = vmatpush1.bf16.msra.mxu0 %v13392_v24  ;;  %9708 = vmatpush1.bf16.msra.mxu1 %v13432_v4 }
0x151b   : > { %9678 = vmatprep.subr.bf16.mxu0 %v13404_v50  ;;  %9710 = vmatprep.subr.bf16.mxu1 %v13444_v16 }
0x151e   : > { %9680 = vmatpush1.bf16.msra.mxu0 %v13416_v6  ;;  %9712 = vmatpush1.bf16.msra.mxu1 %v13466_v39 }
0x151f   : > { %9682 = vmatprep.subr.bf16.mxu0 %v13430_v29  ;;  %9714 = vmatprep.subr.bf16.mxu1 %v13483_v52 }
0x1522   : > { %9684 = vmatpush1.bf16.msra.mxu0 %v13463_v7  ;;  %9716 = vmatpush1.bf16.msra.mxu1 %v13501_v9 }
0x1523   : > { %9686 = vmatprep.subr.bf16.mxu0 %v13478_v42  ;;  %9718 = vmatprep.subr.bf16.mxu1 %v13507_v28 }
0x1526   : > { %9688 = vmatpush1.bf16.msra.mxu0 %v13504_v11  ;;  %9720 = vmatpush1.bf16.msra.mxu1 %v13525_v37 }
0x1527   : > { %9690 = vmatprep.subr.bf16.mxu0 %v13516_v5  ;;  %9722 = vmatprep.subr.bf16.mxu1 %v13538_v60 }
0x152a   : > { %9692 = vmatpush1.bf16.msra.mxu0 %v13529_v41  ;;  %9724 = vmatpush1.bf16.msra.mxu1 %v13547_v34 }
0x152b   : > { %9726 = vmatprep.subr.bf16.mxu0 %v13210_v20  ;;  %9758 = vmatprep.subr.bf16.mxu1 %v13306_v40 }
0x15e0   : > { %v5411_v19 = vpop.f32.mrb[40].mxu0  ;;  %v5482_v56 = vpop.f32.mrb[56].mxu1 }
0x15e1   : > { %v10501_v35 = vadd.f32 %v5411_v19, %v13602_v51  ;;  %v5413_v2 = vpop.f32.mrb[41].mxu0  ;;  %v5484_v14 = vpop.f32.mrb[57].mxu1  ;;  %v10533_v22 = vadd.f32 %v5482_v56, %v13617_v10 }
0x15e2   : > { %v10502_v45 = vadd.f32 %v5413_v2, %v13606_v36  ;;  %v10534_v49 = vadd.f32 %v5484_v14, %v13612_v33 }
0x15e3   : > { %v8051_v47 = vmul.f32 -1.442695, %v10501_v35 }
0x15e4   : > { %v8052_v46 = vmul.f32 -1.442695, %v10502_v45  ;;  %v8053_v18 = vmul.f32 -1.442695, %v10534_v49 }
0x15e5   : > { %11085 = vpow2.f32 %v8051_v47 }
0x15e6   : > { %11087 = vpow2.f32 %v8052_v46 }
0x15e7   : > { %11089 = vpow2.f32 %v8053_v18 }
0x15e8   : > { %11091 = vtanh.f32 %v10533_v22 }
0x15ef   : > { %v11086_v48 = vpop.eup %11085 }
0x15f0   : > { %v11088_v57 = vpop.eup %11087  ;;  %v5494_v62 = vadd.f32 1.0, %v11086_v48 }
0x15f1   : > { %v5500_v53 = vadd.f32 1.0, %v11088_v57  ;;  %v11090_v3 = vpop.eup %11089 }
0x15f2   : > { %11093 = vrcp.f32 %v5494_v62  ;;  %v11092_v32 = vpop.eup %11091  ;;  %v5507_v31 = vadd.f32 1.0, %v11090_v3 }
0x15f3   : > { %11095 = vrcp.f32 %v5500_v53 }
0x15f4   : > { %11097 = vrcp.f32 %v5507_v31 }
0x15fc   : > { %v11094_v25 = vpop.eup %11093 }
0x15fd   : > { %v11096_v17 = vpop.eup %11095  ;;  %v5511_v0 = vmul.f32 %v11094_v25, %v11092_v32 }
0x15fe   : > { %v5510_v38 = vmul.f32 %v11096_v17, %v13758_v23  ;;  %v11098_v56 = vpop.eup %11097 }
0x1600   : > { %v13804_v19 = vadd.f32 %v5511_v0, %v5510_v38 }
0x1602   : > { %11099 = vtanh.f32 %v13804_v19 }
0x160c   : > { %v11100_v35 = vpop.eup %11099 }
0x160d   : > { %v13807_v2 = vmul.f32 %v11100_v35, %v11098_v56 }
0x160f   : > { %5585 = vmatmul.mubr.f32.vlgmr.msra.gmra.mrb[42].mxu0 %v13807_v2  ;;  %5656 = vmatmul.mubr.f32.vlgmr.msra.gmra.mrb[58].mxu1 %v13807_v2 }
0x1610   : > { %9728 = vmatpush1.bf16.msra.mxu0 %v13225_v8  ;;  %9760 = vmatpush1.bf16.msra.mxu1 %v13314_v21 }
0x1611   : > { %9730 = vmatprep.subr.bf16.mxu0 %v13227_v12  ;;  %9762 = vmatprep.subr.bf16.mxu1 %v13324_v27 }
0x1612   : > { %5759 = vmatprep.mubr.f32.mxu0 %v14560_v44  ;;  %5830 = vmatprep.mubr.f32.mxu1 %v14560_v44 }
0x1614   : > { %9732 = vmatpush1.bf16.msra.mxu0 %v13240_v13  ;;  %9764 = vmatpush1.bf16.msra.mxu1 %v13332_v58 }
0x1615   : > { %9734 = vmatprep.subr.bf16.mxu0 %v13345_v30  ;;  %9766 = vmatprep.subr.bf16.mxu1 %v13358_v61 }
0x1618   : > { %9736 = vmatpush1.bf16.msra.mxu0 %v13356_v59  ;;  %9768 = vmatpush1.bf16.msra.mxu1 %v13367_v26 }
0x1619   : > { %9738 = vmatprep.subr.bf16.mxu0 %v13380_v1  ;;  %9770 = vmatprep.subr.bf16.mxu1 %v13418_v15 }
0x161c   : > { %9740 = vmatpush1.bf16.msra.mxu0 %v13392_v24  ;;  %9772 = vmatpush1.bf16.msra.mxu1 %v13432_v4 }
0x161d   : > { %9742 = vmatprep.subr.bf16.mxu0 %v13404_v50  ;;  %9774 = vmatprep.subr.bf16.mxu1 %v13444_v16 }
0x1620   : > { %9744 = vmatpush1.bf16.msra.mxu0 %v13416_v6  ;;  %9776 = vmatpush1.bf16.msra.mxu1 %v13466_v39 }
0x1621   : > { %9746 = vmatprep.subr.bf16.mxu0 %v13430_v29  ;;  %9778 = vmatprep.subr.bf16.mxu1 %v13483_v52 }
0x1624   : > { %9748 = vmatpush1.bf16.msra.mxu0 %v13463_v7  ;;  %9780 = vmatpush1.bf16.msra.mxu1 %v13501_v9 }
0x1625   : > { %9750 = vmatprep.subr.bf16.mxu0 %v13478_v42  ;;  %9782 = vmatprep.subr.bf16.mxu1 %v13507_v28 }
0x1628   : > { %9752 = vmatpush1.bf16.msra.mxu0 %v13504_v11  ;;  %9784 = vmatpush1.bf16.msra.mxu1 %v13525_v37 }
0x1629   : > { %9754 = vmatprep.subr.bf16.mxu0 %v13516_v5  ;;  %9786 = vmatprep.subr.bf16.mxu1 %v13538_v60 }
0x162c   : > { %9756 = vmatpush1.bf16.msra.mxu0 %v13529_v41  ;;  %9788 = vmatpush1.bf16.msra.mxu1 %v13547_v34 }
0x162d   : > { %9790 = vmatprep.subr.bf16.mxu0 %v13210_v20  ;;  %9822 = vmatprep.subr.bf16.mxu1 %v13306_v40 }
0x16e2   : > { %v5586_v23 = vpop.f32.mrb[42].mxu0  ;;  %v5657_v14 = vpop.f32.mrb[58].mxu1 }
0x16e3   : > { %v10503_v45 = vadd.f32 %v5586_v23, %v13602_v51  ;;  %v5588_v47 = vpop.f32.mrb[43].mxu0  ;;  %v5659_v46 = vpop.f32.mrb[59].mxu1  ;;  %v10535_v62 = vadd.f32 %v5657_v14, %v13617_v10 }
0x16e4   : > { %v10504_v49 = vadd.f32 %v5588_v47, %v13606_v36  ;;  %v10536_v48 = vadd.f32 %v5659_v46, %v13612_v33 }
0x16e5   : > { %v8054_v18 = vmul.f32 -1.442695, %v10503_v45 }
0x16e6   : > { %v8055_v22 = vmul.f32 -1.442695, %v10504_v49  ;;  %v8056_v57 = vmul.f32 -1.442695, %v10536_v48 }
0x16e7   : > { %11101 = vpow2.f32 %v8054_v18 }
0x16e8   : > { %11103 = vpow2.f32 %v8055_v22 }
0x16e9   : > { %11105 = vpow2.f32 %v8056_v57 }
0x16ea   : > { %11107 = vtanh.f32 %v10535_v62 }
0x16f1   : > { %v11102_v53 = vpop.eup %11101 }
0x16f2   : > { %v11104_v3 = vpop.eup %11103  ;;  %v5669_v32 = vadd.f32 1.0, %v11102_v53 }
0x16f3   : > { %v5675_v25 = vadd.f32 1.0, %v11104_v3  ;;  %v11106_v17 = vpop.eup %11105 }
0x16f4   : > { %11109 = vrcp.f32 %v5669_v32  ;;  %v11108_v0 = vpop.eup %11107  ;;  %v5682_v35 = vadd.f32 1.0, %v11106_v17 }
0x16f5   : > { %11111 = vrcp.f32 %v5675_v25 }
0x16f6   : > { %11113 = vrcp.f32 %v5682_v35 }
0x16fe   : > { %v11110_v31 = vpop.eup %11109 }
0x16ff   : > { %v11112_v38 = vpop.eup %11111  ;;  %v5686_v56 = vmul.f32 %v11110_v31, %v11108_v0 }
0x1700   : > { %v5685_v23 = vmul.f32 %v11112_v38, %v13804_v19  ;;  %v11114_v14 = vpop.eup %11113 }
0x1702   : > { %v13850_v45 = vadd.f32 %v5686_v56, %v5685_v23 }
0x1704   : > { %11115 = vtanh.f32 %v13850_v45 }
0x170e   : > { %v11116_v47 = vpop.eup %11115 }
0x170f   : > { %v13853_v46 = vmul.f32 %v11116_v47, %v11114_v14 }
0x1711   : > { %5760 = vmatmul.mubr.f32.vlgmr.msra.gmra.mrb[44].mxu0 %v13853_v46  ;;  %5831 = vmatmul.mubr.f32.vlgmr.msra.gmra.mrb[60].mxu1 %v13853_v46 }
0x1712   : > { %9792 = vmatpush1.bf16.msra.mxu0 %v13225_v8  ;;  %9824 = vmatpush1.bf16.msra.mxu1 %v13314_v21 }
0x1713   : > { %9794 = vmatprep.subr.bf16.mxu0 %v13227_v12  ;;  %9826 = vmatprep.subr.bf16.mxu1 %v13324_v27 }
0x1714   : > { %5934 = vmatprep.mubr.f32.mxu0 %v14560_v44  ;;  %6005 = vmatprep.mubr.f32.mxu1 %v14560_v44 }
0x1716   : > { %9796 = vmatpush1.bf16.msra.mxu0 %v13240_v13  ;;  %9828 = vmatpush1.bf16.msra.mxu1 %v13332_v58 }
0x1717   : > { %9798 = vmatprep.subr.bf16.mxu0 %v13345_v30  ;;  %9830 = vmatprep.subr.bf16.mxu1 %v13358_v61 }
0x171a   : > { %9800 = vmatpush1.bf16.msra.mxu0 %v13356_v59  ;;  %9832 = vmatpush1.bf16.msra.mxu1 %v13367_v26 }
0x171b   : > { %9802 = vmatprep.subr.bf16.mxu0 %v13380_v1  ;;  %9834 = vmatprep.subr.bf16.mxu1 %v13418_v15 }
0x171e   : > { %9804 = vmatpush1.bf16.msra.mxu0 %v13392_v24  ;;  %9836 = vmatpush1.bf16.msra.mxu1 %v13432_v4 }
0x171f   : > { %9806 = vmatprep.subr.bf16.mxu0 %v13404_v50  ;;  %9838 = vmatprep.subr.bf16.mxu1 %v13444_v16 }
0x1722   : > { %9808 = vmatpush1.bf16.msra.mxu0 %v13416_v6  ;;  %9840 = vmatpush1.bf16.msra.mxu1 %v13466_v39 }
0x1723   : > { %9810 = vmatprep.subr.bf16.mxu0 %v13430_v29  ;;  %9842 = vmatprep.subr.bf16.mxu1 %v13483_v52 }
0x1726   : > { %9812 = vmatpush1.bf16.msra.mxu0 %v13463_v7  ;;  %9844 = vmatpush1.bf16.msra.mxu1 %v13501_v9 }
0x1727   : > { %9814 = vmatprep.subr.bf16.mxu0 %v13478_v42  ;;  %9846 = vmatprep.subr.bf16.mxu1 %v13507_v28 }
0x172a   : > { %9816 = vmatpush1.bf16.msra.mxu0 %v13504_v11  ;;  %9848 = vmatpush1.bf16.msra.mxu1 %v13525_v37 }
0x172b   : > { %9818 = vmatprep.subr.bf16.mxu0 %v13516_v5  ;;  %9850 = vmatprep.subr.bf16.mxu1 %v13538_v60 }
0x172e   : > { %9820 = vmatpush1.bf16.msra.mxu0 %v13529_v41  ;;  %9852 = vmatpush1.bf16.msra.mxu1 %v13547_v34 }
0x172f   : > { %9854 = vmatprep.subr.bf16.mxu0 %v13210_v20  ;;  %9886 = vmatprep.subr.bf16.mxu1 %v13306_v40 }
0x17e4   : > { %v5761_v19 = vpop.f32.mrb[44].mxu0  ;;  %v5832_v49 = vpop.f32.mrb[60].mxu1 }
0x17e5   : > { %v10505_v18 = vadd.f32 %v5761_v19, %v13602_v51  ;;  %v5763_v22 = vpop.f32.mrb[45].mxu0  ;;  %v5834_v48 = vpop.f32.mrb[61].mxu1  ;;  %v10537_v25 = vadd.f32 %v5832_v49, %v13617_v10 }
0x17e6   : > { %v10506_v57 = vadd.f32 %v5763_v22, %v13606_v36  ;;  %v10538_v3 = vadd.f32 %v5834_v48, %v13612_v33 }
0x17e7   : > { %v8057_v62 = vmul.f32 -1.442695, %v10505_v18 }
0x17e8   : > { %v8058_v53 = vmul.f32 -1.442695, %v10506_v57  ;;  %v8059_v32 = vmul.f32 -1.442695, %v10538_v3 }
0x17e9   : > { %11117 = vpow2.f32 %v8057_v62 }
0x17ea   : > { %11119 = vpow2.f32 %v8058_v53 }
0x17eb   : > { %11121 = vpow2.f32 %v8059_v32 }
0x17ec   : > { %11123 = vtanh.f32 %v10537_v25 }
0x17f3   : > { %v11118_v17 = vpop.eup %11117 }
0x17f4   : > { %v11120_v0 = vpop.eup %11119  ;;  %v5844_v31 = vadd.f32 1.0, %v11118_v17 }
0x17f5   : > { %v5850_v38 = vadd.f32 1.0, %v11120_v0  ;;  %v11122_v56 = vpop.eup %11121 }
0x17f6   : > { %11125 = vrcp.f32 %v5844_v31  ;;  %v11124_v35 = vpop.eup %11123  ;;  %v5857_v19 = vadd.f32 1.0, %v11122_v56 }
0x17f7   : > { %11127 = vrcp.f32 %v5850_v38 }
0x17f8   : > { %11129 = vrcp.f32 %v5857_v19 }
0x1800   : > { %v11126_v23 = vpop.eup %11125 }
0x1801   : > { %v11128_v14 = vpop.eup %11127  ;;  %v5861_v47 = vmul.f32 %v11126_v23, %v11124_v35 }
0x1802   : > { %v5860_v18 = vmul.f32 %v11128_v14, %v13850_v45  ;;  %v11130_v49 = vpop.eup %11129 }
0x1804   : > { %v13896_v22 = vadd.f32 %v5861_v47, %v5860_v18 }
0x1806   : > { %11131 = vtanh.f32 %v13896_v22 }
0x1810   : > { %v11132_v48 = vpop.eup %11131 }
0x1811   : > { %v13899_v57 = vmul.f32 %v11132_v48, %v11130_v49 }
0x1813   : > { %5935 = vmatmul.mubr.f32.vlgmr.msra.gmra.mrb[46].mxu0 %v13899_v57  ;;  %6006 = vmatmul.mubr.f32.vlgmr.msra.gmra.mrb[62].mxu1 %v13899_v57 }
0x1814   : > { %9856 = vmatpush1.bf16.msra.mxu0 %v13225_v8  ;;  %9888 = vmatpush1.bf16.msra.mxu1 %v13314_v21 }
0x1815   : > { %9858 = vmatprep.subr.bf16.mxu0 %v13227_v12  ;;  %9890 = vmatprep.subr.bf16.mxu1 %v13324_v27 }
0x1816   : > { %6109 = vmatprep.mubr.f32.mxu0 %v14560_v44  ;;  %6180 = vmatprep.mubr.f32.mxu1 %v14560_v44 }
0x1818   : > { %9860 = vmatpush1.bf16.msra.mxu0 %v13240_v13  ;;  %9892 = vmatpush1.bf16.msra.mxu1 %v13332_v58 }
0x1819   : > { %9862 = vmatprep.subr.bf16.mxu0 %v13345_v30  ;;  %9894 = vmatprep.subr.bf16.mxu1 %v13358_v61 }
0x181c   : > { %9864 = vmatpush1.bf16.msra.mxu0 %v13356_v59  ;;  %9896 = vmatpush1.bf16.msra.mxu1 %v13367_v26 }
0x181d   : > { %9866 = vmatprep.subr.bf16.mxu0 %v13380_v1  ;;  %9898 = vmatprep.subr.bf16.mxu1 %v13418_v15 }
0x1820   : > { %9868 = vmatpush1.bf16.msra.mxu0 %v13392_v24  ;;  %9900 = vmatpush1.bf16.msra.mxu1 %v13432_v4 }
0x1821   : > { %9870 = vmatprep.subr.bf16.mxu0 %v13404_v50  ;;  %9902 = vmatprep.subr.bf16.mxu1 %v13444_v16 }
0x1824   : > { %9872 = vmatpush1.bf16.msra.mxu0 %v13416_v6  ;;  %9904 = vmatpush1.bf16.msra.mxu1 %v13466_v39 }
0x1825   : > { %9874 = vmatprep.subr.bf16.mxu0 %v13430_v29  ;;  %9906 = vmatprep.subr.bf16.mxu1 %v13483_v52 }
0x1828   : > { %9876 = vmatpush1.bf16.msra.mxu0 %v13463_v7  ;;  %9908 = vmatpush1.bf16.msra.mxu1 %v13501_v9 }
0x1829   : > { %9878 = vmatprep.subr.bf16.mxu0 %v13478_v42  ;;  %9910 = vmatprep.subr.bf16.mxu1 %v13507_v28 }
0x182c   : > { %9880 = vmatpush1.bf16.msra.mxu0 %v13504_v11  ;;  %9912 = vmatpush1.bf16.msra.mxu1 %v13525_v37 }
0x182d   : > { %9882 = vmatprep.subr.bf16.mxu0 %v13516_v5  ;;  %9914 = vmatprep.subr.bf16.mxu1 %v13538_v60 }
0x1830   : > { %9884 = vmatpush1.bf16.msra.mxu0 %v13529_v41  ;;  %9916 = vmatpush1.bf16.msra.mxu1 %v13547_v34 }
0x1831   : > { %9918 = vmatprep.subr.bf16.mxu0 %v13210_v20  ;;  %9950 = vmatprep.subr.bf16.mxu1 %v13306_v40 }
0x18e6   : > { %v5936_v45 = vpop.f32.mrb[46].mxu0  ;;  %v6007_v62 = vpop.f32.mrb[62].mxu1 }
0x18e7   : > { %v10507_v53 = vadd.f32 %v5936_v45, %v13602_v51  ;;  %v5938_v3 = vpop.f32.mrb[47].mxu0  ;;  %v6009_v32 = vpop.f32.mrb[63].mxu1  ;;  %v10539_v56 = vadd.f32 %v6007_v62, %v13617_v10 }
0x18e8   : > { %v10508_v25 = vadd.f32 %v5938_v3, %v13606_v36  ;;  %v10540_v31 = vadd.f32 %v6009_v32, %v13612_v33 }
0x18e9   : > { %v8060_v17 = vmul.f32 -1.442695, %v10507_v53 }
0x18ea   : > { %v8061_v0 = vmul.f32 -1.442695, %v10508_v25  ;;  %v8062_v38 = vmul.f32 -1.442695, %v10540_v31 }
0x18eb   : > { %11133 = vpow2.f32 %v8060_v17 }
0x18ec   : > { %11135 = vpow2.f32 %v8061_v0 }
0x18ed   : > { %11137 = vpow2.f32 %v8062_v38 }
0x18ee   : > { %11139 = vtanh.f32 %v10539_v56 }
0x18f5   : > { %v11134_v35 = vpop.eup %11133 }
0x18f6   : > { %v11136_v23 = vpop.eup %11135  ;;  %v6019_v14 = vadd.f32 1.0, %v11134_v35 }
0x18f7   : > { %v6025_v47 = vadd.f32 1.0, %v11136_v23  ;;  %v11138_v19 = vpop.eup %11137 }
0x18f8   : > { %11141 = vrcp.f32 %v6019_v14  ;;  %v11140_v18 = vpop.eup %11139  ;;  %v6032_v53 = vadd.f32 1.0, %v11138_v19 }
0x18f9   : > { %11143 = vrcp.f32 %v6025_v47 }
0x18fa   : > { %11145 = vrcp.f32 %v6032_v53 }
0x1902   : > { %v11142_v49 = vpop.eup %11141 }
0x1903   : > { %v11144_v48 = vpop.eup %11143  ;;  %v6036_v45 = vmul.f32 %v11142_v49, %v11140_v18 }
0x1904   : > { %v6035_v3 = vmul.f32 %v11144_v48, %v13896_v22  ;;  %v11146_v62 = vpop.eup %11145 }
0x1906   : > { %v13942_v32 = vadd.f32 %v6036_v45, %v6035_v3 }
0x1908   : > { %11147 = vtanh.f32 %v13942_v32 }
0x1912   : > { %v11148_v25 = vpop.eup %11147 }
0x1913   : > { %v13945_v17 = vmul.f32 %v11148_v25, %v11146_v62 }
0x1915   : > { %6110 = vmatmul.mubr.f32.vlgmr.msra.gmra.mrb[48].mxu0 %v13945_v17  ;;  %6181 = vmatmul.mubr.f32.vlgmr.msra.gmra.mrb[64].mxu1 %v13945_v17 }
0x1916   : > { %9920 = vmatpush1.bf16.msra.mxu0 %v13225_v8  ;;  %9952 = vmatpush1.bf16.msra.mxu1 %v13314_v21 }
0x1917   : > { %9922 = vmatprep.subr.bf16.mxu0 %v13227_v12  ;;  %9954 = vmatprep.subr.bf16.mxu1 %v13324_v27 }
0x1918   : > { %6284 = vmatprep.mubr.f32.mxu0 %v14560_v44  ;;  %6355 = vmatprep.mubr.f32.mxu1 %v14560_v44 }
0x191a   : > { %9924 = vmatpush1.bf16.msra.mxu0 %v13240_v13  ;;  %9956 = vmatpush1.bf16.msra.mxu1 %v13332_v58 }
0x191b   : > { %9926 = vmatprep.subr.bf16.mxu0 %v13345_v30  ;;  %9958 = vmatprep.subr.bf16.mxu1 %v13358_v61 }
0x191e   : > { %9928 = vmatpush1.bf16.msra.mxu0 %v13356_v59  ;;  %9960 = vmatpush1.bf16.msra.mxu1 %v13367_v26 }
0x191f   : > { %9930 = vmatprep.subr.bf16.mxu0 %v13380_v1  ;;  %9962 = vmatprep.subr.bf16.mxu1 %v13418_v15 }
0x1922   : > { %9932 = vmatpush1.bf16.msra.mxu0 %v13392_v24  ;;  %9964 = vmatpush1.bf16.msra.mxu1 %v13432_v4 }
0x1923   : > { %9934 = vmatprep.subr.bf16.mxu0 %v13404_v50  ;;  %9966 = vmatprep.subr.bf16.mxu1 %v13444_v16 }
0x1926   : > { %9936 = vmatpush1.bf16.msra.mxu0 %v13416_v6  ;;  %9968 = vmatpush1.bf16.msra.mxu1 %v13466_v39 }
0x1927   : > { %9938 = vmatprep.subr.bf16.mxu0 %v13430_v29  ;;  %9970 = vmatprep.subr.bf16.mxu1 %v13483_v52 }
0x192a   : > { %9940 = vmatpush1.bf16.msra.mxu0 %v13463_v7  ;;  %9972 = vmatpush1.bf16.msra.mxu1 %v13501_v9 }
0x192b   : > { %9942 = vmatprep.subr.bf16.mxu0 %v13478_v42  ;;  %9974 = vmatprep.subr.bf16.mxu1 %v13507_v28 }
0x192e   : > { %9944 = vmatpush1.bf16.msra.mxu0 %v13504_v11  ;;  %9976 = vmatpush1.bf16.msra.mxu1 %v13525_v37 }
0x192f   : > { %9946 = vmatprep.subr.bf16.mxu0 %v13516_v5  ;;  %9978 = vmatprep.subr.bf16.mxu1 %v13538_v60 }
0x1932   : > { %9948 = vmatpush1.bf16.msra.mxu0 %v13529_v41  ;;  %9980 = vmatpush1.bf16.msra.mxu1 %v13547_v34 }
0x1933   : > { %9982 = vmatprep.subr.bf16.mxu0 %v13210_v20  ;;  %10014 = vmatprep.subr.bf16.mxu1 %v13306_v40 }
0x19e8   : > { %v6111_v22 = vpop.f32.mrb[48].mxu0  ;;  %v6182_v0 = vpop.f32.mrb[64].mxu1 }
0x19e9   : > { %v10509_v31 = vadd.f32 %v6111_v22, %v13602_v51  ;;  %v6113_v38 = vpop.f32.mrb[49].mxu0  ;;  %v6184_v56 = vpop.f32.mrb[65].mxu1  ;;  %v10541_v18 = vadd.f32 %v6182_v0, %v13617_v10 }
0x19ea   : > { %v10510_v35 = vadd.f32 %v6113_v38, %v13606_v36  ;;  %v10542_v47 = vadd.f32 %v6184_v56, %v13612_v33 }
0x19eb   : > { %v8063_v23 = vmul.f32 -1.442695, %v10509_v31 }
0x19ec   : > { %v8064_v14 = vmul.f32 -1.442695, %v10510_v35  ;;  %v8065_v19 = vmul.f32 -1.442695, %v10542_v47 }
0x19ed   : > { %11149 = vpow2.f32 %v8063_v23 }
0x19ee   : > { %11151 = vpow2.f32 %v8064_v14 }
0x19ef   : > { %11153 = vpow2.f32 %v8065_v19 }
0x19f0   : > { %11155 = vtanh.f32 %v10541_v18 }
0x19f7   : > { %v11150_v49 = vpop.eup %11149 }
0x19f8   : > { %v11152_v48 = vpop.eup %11151  ;;  %v6194_v45 = vadd.f32 1.0, %v11150_v49 }
0x19f9   : > { %v6200_v53 = vadd.f32 1.0, %v11152_v48  ;;  %v11154_v3 = vpop.eup %11153 }
0x19fa   : > { %11157 = vrcp.f32 %v6194_v45  ;;  %v11156_v62 = vpop.eup %11155  ;;  %v6207_v38 = vadd.f32 1.0, %v11154_v3 }
0x19fb   : > { %11159 = vrcp.f32 %v6200_v53 }
0x19fc   : > { %11161 = vrcp.f32 %v6207_v38 }
0x1a04   : > { %v11158_v25 = vpop.eup %11157 }
0x1a05   : > { %v11160_v22 = vpop.eup %11159  ;;  %v6211_v31 = vmul.f32 %v11158_v25, %v11156_v62 }
0x1a06   : > { %v6210_v35 = vmul.f32 %v11160_v22, %v13942_v32  ;;  %v11162_v0 = vpop.eup %11161 }
0x1a08   : > { %v13988_v56 = vadd.f32 %v6211_v31, %v6210_v35 }
0x1a0a   : > { %11163 = vtanh.f32 %v13988_v56 }
0x1a14   : > { %v11164_v23 = vpop.eup %11163 }
0x1a15   : > { %v13991_v14 = vmul.f32 %v11164_v23, %v11162_v0 }
0x1a17   : > { %6285 = vmatmul.mubr.f32.vlgmr.msra.gmra.mrb[50].mxu0 %v13991_v14  ;;  %6356 = vmatmul.mubr.f32.vlgmr.msra.gmra.mrb[66].mxu1 %v13991_v14 }
0x1a18   : > { %9984 = vmatpush1.bf16.msra.mxu0 %v13225_v8  ;;  %10016 = vmatpush1.bf16.msra.mxu1 %v13314_v21 }
0x1a19   : > { %9986 = vmatprep.subr.bf16.mxu0 %v13227_v12  ;;  %10018 = vmatprep.subr.bf16.mxu1 %v13324_v27 }
0x1a1a   : > { %6459 = vmatprep.mubr.f32.mxu0 %v14560_v44  ;;  %6530 = vmatprep.mubr.f32.mxu1 %v14560_v44 }
0x1a1c   : > { %9988 = vmatpush1.bf16.msra.mxu0 %v13240_v13  ;;  %10020 = vmatpush1.bf16.msra.mxu1 %v13332_v58 }
0x1a1d   : > { %9990 = vmatprep.subr.bf16.mxu0 %v13345_v30  ;;  %10022 = vmatprep.subr.bf16.mxu1 %v13358_v61 }
0x1a20   : > { %9992 = vmatpush1.bf16.msra.mxu0 %v13356_v59  ;;  %10024 = vmatpush1.bf16.msra.mxu1 %v13367_v26 }
0x1a21   : > { %9994 = vmatprep.subr.bf16.mxu0 %v13380_v1  ;;  %10026 = vmatprep.subr.bf16.mxu1 %v13418_v15 }
0x1a24   : > { %9996 = vmatpush1.bf16.msra.mxu0 %v13392_v24  ;;  %10028 = vmatpush1.bf16.msra.mxu1 %v13432_v4 }
0x1a25   : > { %9998 = vmatprep.subr.bf16.mxu0 %v13404_v50  ;;  %10030 = vmatprep.subr.bf16.mxu1 %v13444_v16 }
0x1a28   : > { %10000 = vmatpush1.bf16.msra.mxu0 %v13416_v6  ;;  %10032 = vmatpush1.bf16.msra.mxu1 %v13466_v39 }
0x1a29   : > { %10002 = vmatprep.subr.bf16.mxu0 %v13430_v29  ;;  %10034 = vmatprep.subr.bf16.mxu1 %v13483_v52 }
0x1a2c   : > { %10004 = vmatpush1.bf16.msra.mxu0 %v13463_v7  ;;  %10036 = vmatpush1.bf16.msra.mxu1 %v13501_v9 }
0x1a2d   : > { %10006 = vmatprep.subr.bf16.mxu0 %v13478_v42  ;;  %10038 = vmatprep.subr.bf16.mxu1 %v13507_v28 }
0x1a30   : > { %10008 = vmatpush1.bf16.msra.mxu0 %v13504_v11  ;;  %10040 = vmatpush1.bf16.msra.mxu1 %v13525_v37 }
0x1a31   : > { %10010 = vmatprep.subr.bf16.mxu0 %v13516_v5  ;;  %10042 = vmatprep.subr.bf16.mxu1 %v13538_v60 }
0x1a34   : > { %10012 = vmatpush1.bf16.msra.mxu0 %v13529_v41  ;;  %10044 = vmatpush1.bf16.msra.mxu1 %v13547_v34 }
0x1a35   : > { %10046 = vmatprep.subr.bf16.mxu0 %v13210_v20  ;;  %10078 = vmatprep.subr.bf16.mxu1 %v13306_v40 }
0x1aea   : > { %v6286_v32 = vpop.f32.mrb[50].mxu0  ;;  %v6357_v47 = vpop.f32.mrb[66].mxu1 }
0x1aeb   : > { %v10511_v19 = vadd.f32 %v6286_v32, %v13602_v51  ;;  %v6288_v18 = vpop.f32.mrb[51].mxu0  ;;  %v6359_v49 = vpop.f32.mrb[67].mxu1  ;;  %v10543_v25 = vadd.f32 %v6357_v47, %v13617_v10 }
0x1aec   : > { %v10512_v48 = vadd.f32 %v6288_v18, %v13606_v36  ;;  %v10544_v3 = vadd.f32 %v6359_v49, %v13612_v33 }
0x1aed   : > { %v8066_v45 = vmul.f32 -1.442695, %v10511_v19 }
0x1aee   : > { %v8067_v53 = vmul.f32 -1.442695, %v10512_v48  ;;  %v8068_v62 = vmul.f32 -1.442695, %v10544_v3 }
0x1aef   : > { %11165 = vpow2.f32 %v8066_v45 }
0x1af0   : > { %11167 = vpow2.f32 %v8067_v53 }
0x1af1   : > { %11169 = vpow2.f32 %v8068_v62 }
0x1af2   : > { %11171 = vtanh.f32 %v10543_v25 }
0x1af9   : > { %v11166_v22 = vpop.eup %11165 }
0x1afa   : > { %v11168_v31 = vpop.eup %11167  ;;  %v6369_v38 = vadd.f32 1.0, %v11166_v22 }
0x1afb   : > { %v6375_v35 = vadd.f32 1.0, %v11168_v31  ;;  %v11170_v0 = vpop.eup %11169 }
0x1afc   : > { %11173 = vrcp.f32 %v6369_v38  ;;  %v11172_v23 = vpop.eup %11171  ;;  %v6382_v48 = vadd.f32 1.0, %v11170_v0 }
0x1afd   : > { %11175 = vrcp.f32 %v6375_v35 }
0x1afe   : > { %11177 = vrcp.f32 %v6382_v48 }
0x1b06   : > { %v11174_v32 = vpop.eup %11173 }
0x1b07   : > { %v11176_v19 = vpop.eup %11175  ;;  %v6386_v18 = vmul.f32 %v11174_v32, %v11172_v23 }
0x1b08   : > { %v6385_v45 = vmul.f32 %v11176_v19, %v13988_v56  ;;  %v11178_v47 = vpop.eup %11177 }
0x1b0a   : > { %v14034_v49 = vadd.f32 %v6386_v18, %v6385_v45 }
0x1b0c   : > { %11179 = vtanh.f32 %v14034_v49 }
0x1b16   : > { %v11180_v53 = vpop.eup %11179 }
0x1b17   : > { %v14037_v3 = vmul.f32 %v11180_v53, %v11178_v47 }
0x1b19   : > { %6460 = vmatmul.mubr.f32.vlgmr.msra.gmra.mrb[52].mxu0 %v14037_v3  ;;  %6531 = vmatmul.mubr.f32.vlgmr.msra.gmra.mrb[68].mxu1 %v14037_v3 }
0x1b1a   : > { %10048 = vmatpush1.bf16.msra.mxu0 %v13225_v8  ;;  %10080 = vmatpush1.bf16.msra.mxu1 %v13314_v21 }
0x1b1b   : > { %10050 = vmatprep.subr.bf16.mxu0 %v13227_v12  ;;  %10082 = vmatprep.subr.bf16.mxu1 %v13324_v27 }
0x1b1c   : > { %6634 = vmatprep.mubr.f32.mxu0 %v14560_v44  ;;  %6705 = vmatprep.mubr.f32.mxu1 %v14560_v44 }
0x1b1e   : > { %10052 = vmatpush1.bf16.msra.mxu0 %v13240_v13  ;;  %10084 = vmatpush1.bf16.msra.mxu1 %v13332_v58 }
0x1b1f   : > { %10054 = vmatprep.subr.bf16.mxu0 %v13345_v30  ;;  %10086 = vmatprep.subr.bf16.mxu1 %v13358_v61 }
0x1b22   : > { %10056 = vmatpush1.bf16.msra.mxu0 %v13356_v59  ;;  %10088 = vmatpush1.bf16.msra.mxu1 %v13367_v26 }
0x1b23   : > { %10058 = vmatprep.subr.bf16.mxu0 %v13380_v1  ;;  %10090 = vmatprep.subr.bf16.mxu1 %v13418_v15 }
0x1b26   : > { %10060 = vmatpush1.bf16.msra.mxu0 %v13392_v24  ;;  %10092 = vmatpush1.bf16.msra.mxu1 %v13432_v4 }
0x1b27   : > { %10062 = vmatprep.subr.bf16.mxu0 %v13404_v50  ;;  %10094 = vmatprep.subr.bf16.mxu1 %v13444_v16 }
0x1b2a   : > { %10064 = vmatpush1.bf16.msra.mxu0 %v13416_v6  ;;  %10096 = vmatpush1.bf16.msra.mxu1 %v13466_v39 }
0x1b2b   : > { %10066 = vmatprep.subr.bf16.mxu0 %v13430_v29  ;;  %10098 = vmatprep.subr.bf16.mxu1 %v13483_v52 }
0x1b2e   : > { %10068 = vmatpush1.bf16.msra.mxu0 %v13463_v7  ;;  %10100 = vmatpush1.bf16.msra.mxu1 %v13501_v9 }
0x1b2f   : > { %10070 = vmatprep.subr.bf16.mxu0 %v13478_v42  ;;  %10102 = vmatprep.subr.bf16.mxu1 %v13507_v28 }
0x1b32   : > { %10072 = vmatpush1.bf16.msra.mxu0 %v13504_v11  ;;  %10104 = vmatpush1.bf16.msra.mxu1 %v13525_v37 }
0x1b33   : > { %10074 = vmatprep.subr.bf16.mxu0 %v13516_v5  ;;  %10106 = vmatprep.subr.bf16.mxu1 %v13538_v60 }
0x1b36   : > { %10076 = vmatpush1.bf16.msra.mxu0 %v13529_v41  ;;  %10108 = vmatpush1.bf16.msra.mxu1 %v13547_v34 }
0x1b37   : > { %10110 = vmatprep.subr.bf16.mxu0 %v13210_v20  ;;  %10142 = vmatprep.subr.bf16.mxu1 %v13306_v40 }
0x1bec   : > { %v6461_v56 = vpop.f32.mrb[52].mxu0  ;;  %v6532_v62 = vpop.f32.mrb[68].mxu1 }
0x1bed   : > { %v10513_v25 = vadd.f32 %v6461_v56, %v13602_v51  ;;  %v6463_v22 = vpop.f32.mrb[53].mxu0  ;;  %v6534_v31 = vpop.f32.mrb[69].mxu1  ;;  %v10545_v19 = vadd.f32 %v6532_v62, %v13617_v10 }
0x1bee   : > { %v10514_v38 = vadd.f32 %v6463_v22, %v13606_v36  ;;  %v10546_v23 = vadd.f32 %v6534_v31, %v13612_v33 }
0x1bef   : > { %v8069_v35 = vmul.f32 -1.442695, %v10513_v25 }
0x1bf0   : > { %v8070_v0 = vmul.f32 -1.442695, %v10514_v38  ;;  %v8071_v32 = vmul.f32 -1.442695, %v10546_v23 }
0x1bf1   : > { %11181 = vpow2.f32 %v8069_v35 }
0x1bf2   : > { %11183 = vpow2.f32 %v8070_v0 }
0x1bf3   : > { %11185 = vpow2.f32 %v8071_v32 }
0x1bf4   : > { %11187 = vtanh.f32 %v10545_v19 }
0x1bfb   : > { %v11182_v18 = vpop.eup %11181 }
0x1bfc   : > { %v11184_v48 = vpop.eup %11183  ;;  %v6544_v45 = vadd.f32 1.0, %v11182_v18 }
0x1bfd   : > { %v6550_v47 = vadd.f32 1.0, %v11184_v48  ;;  %v11186_v53 = vpop.eup %11185 }
0x1bfe   : > { %11189 = vrcp.f32 %v6544_v45  ;;  %v11188_v56 = vpop.eup %11187  ;;  %v6557_v35 = vadd.f32 1.0, %v11186_v53 }
0x1bff   : > { %11191 = vrcp.f32 %v6550_v47 }
0x1c00   : > { %11193 = vrcp.f32 %v6557_v35 }
0x1c08   : > { %v11190_v22 = vpop.eup %11189 }
0x1c09   : > { %v11192_v25 = vpop.eup %11191  ;;  %v6561_v38 = vmul.f32 %v11190_v22, %v11188_v56 }
0x1c0a   : > { %v6560_v0 = vmul.f32 %v11192_v25, %v14034_v49  ;;  %v11194_v62 = vpop.eup %11193 }
0x1c0c   : > { %v14080_v31 = vadd.f32 %v6561_v38, %v6560_v0 }
0x1c0e   : > { %11195 = vtanh.f32 %v14080_v31 }
0x1c18   : > { %v11196_v23 = vpop.eup %11195 }
0x1c19   : > { %v14083_v32 = vmul.f32 %v11196_v23, %v11194_v62 }
0x1c1b   : > { %14586 = vst [vmem:[#allocation22_spill] sm:$0xff] %v14083_v32  ;;  %6635 = vmatmul.mubr.f32.vlgmr.msra.gmra.mrb[54].mxu0 %v14083_v32  ;;  %6706 = vmatmul.mubr.f32.vlgmr.msra.gmra.mrb[70].mxu1 %v14083_v32 }
0x1c1c   : > { %10112 = vmatpush1.bf16.msra.mxu0 %v13225_v8  ;;  %10144 = vmatpush1.bf16.msra.mxu1 %v13314_v21 }
0x1c1d   : > { %10114 = vmatprep.subr.bf16.mxu0 %v13227_v12  ;;  %10146 = vmatprep.subr.bf16.mxu1 %v13324_v27 }
0x1c1e   : > { %6809 = vmatprep.mubr.f32.mxu0 %v14560_v44  ;;  %6880 = vmatprep.mubr.f32.mxu1 %v14560_v44 }
0x1c20   : > { %10116 = vmatpush1.bf16.msra.mxu0 %v13240_v13  ;;  %10148 = vmatpush1.bf16.msra.mxu1 %v13332_v58 }
0x1c21   : > { %10118 = vmatprep.subr.bf16.mxu0 %v13345_v30  ;;  %10150 = vmatprep.subr.bf16.mxu1 %v13358_v61 }
0x1c24   : > { %10120 = vmatpush1.bf16.msra.mxu0 %v13356_v59  ;;  %10152 = vmatpush1.bf16.msra.mxu1 %v13367_v26 }
0x1c25   : > { %10122 = vmatprep.subr.bf16.mxu0 %v13380_v1  ;;  %10154 = vmatprep.subr.bf16.mxu1 %v13418_v15 }
0x1c28   : > { %10124 = vmatpush1.bf16.msra.mxu0 %v13392_v24  ;;  %10156 = vmatpush1.bf16.msra.mxu1 %v13432_v4 }
0x1c29   : > { %10126 = vmatprep.subr.bf16.mxu0 %v13404_v50  ;;  %10158 = vmatprep.subr.bf16.mxu1 %v13444_v16 }
0x1c2c   : > { %10128 = vmatpush1.bf16.msra.mxu0 %v13416_v6  ;;  %10160 = vmatpush1.bf16.msra.mxu1 %v13466_v39 }
0x1c2d   : > { %10130 = vmatprep.subr.bf16.mxu0 %v13430_v29  ;;  %10162 = vmatprep.subr.bf16.mxu1 %v13483_v52 }
0x1c30   : > { %10132 = vmatpush1.bf16.msra.mxu0 %v13463_v7  ;;  %10164 = vmatpush1.bf16.msra.mxu1 %v13501_v9 }
0x1c31   : > { %10134 = vmatprep.subr.bf16.mxu0 %v13478_v42  ;;  %10166 = vmatprep.subr.bf16.mxu1 %v13507_v28 }
0x1c34   : > { %10136 = vmatpush1.bf16.msra.mxu0 %v13504_v11  ;;  %10168 = vmatpush1.bf16.msra.mxu1 %v13525_v37 }
0x1c35   : > { %10138 = vmatprep.subr.bf16.mxu0 %v13516_v5  ;;  %10170 = vmatprep.subr.bf16.mxu1 %v13538_v60 }
0x1c38   : > { %10140 = vmatpush1.bf16.msra.mxu0 %v13529_v41  ;;  %10172 = vmatpush1.bf16.msra.mxu1 %v13547_v34 }
0x1c39   : > { %10174 = vmatprep.subr.bf16.mxu0 %v13210_v20  ;;  %10206 = vmatprep.subr.bf16.mxu1 %v13306_v40 }
0x1cee   : > { %v6636_v49 = vpop.f32.mrb[54].mxu0  ;;  %v6707_v19 = vpop.f32.mrb[70].mxu1 }
0x1cef   : > { %v10515_v18 = vadd.f32 %v6636_v49, %v13602_v51  ;;  %v6638_v48 = vpop.f32.mrb[55].mxu0  ;;  %v6709_v45 = vpop.f32.mrb[71].mxu1  ;;  %v10547_v38 = vadd.f32 %v6707_v19, %v13617_v10 }
0x1cf0   : > { %v10516_v47 = vadd.f32 %v6638_v48, %v13606_v36  ;;  %v10548_v22 = vadd.f32 %v6709_v45, %v13612_v33 }
0x1cf1   : > { %v8072_v53 = vmul.f32 -1.442695, %v10515_v18 }
0x1cf2   : > { %v8073_v56 = vmul.f32 -1.442695, %v10516_v47  ;;  %v8074_v25 = vmul.f32 -1.442695, %v10548_v22 }
0x1cf3   : > { %11197 = vpow2.f32 %v8072_v53 }
0x1cf4   : > { %11199 = vpow2.f32 %v8073_v56 }
0x1cf5   : > { %11201 = vpow2.f32 %v8074_v25 }
0x1cf6   : > { %11203 = vtanh.f32 %v10547_v38 }
0x1cfd   : > { %v11198_v35 = vpop.eup %11197 }
0x1cfe   : > { %v11200_v0 = vpop.eup %11199  ;;  %v6719_v62 = vadd.f32 1.0, %v11198_v35 }
0x1cff   : > { %v6725_v23 = vadd.f32 1.0, %v11200_v0  ;;  %v11202_v49 = vpop.eup %11201 }
0x1d00   : > { %11205 = vrcp.f32 %v6719_v62  ;;  %v11204_v32 = vpop.eup %11203  ;;  %v6732_v53 = vadd.f32 1.0, %v11202_v49 }
0x1d01   : > { %11207 = vrcp.f32 %v6725_v23 }
0x1d02   : > { %11209 = vrcp.f32 %v6732_v53 }
0x1d0a   : > { %v11206_v48 = vpop.eup %11205 }
0x1d0b   : > { %v11208_v18 = vpop.eup %11207  ;;  %v6736_v47 = vmul.f32 %v11206_v48, %v11204_v32 }
0x1d0c   : > { %v6735_v56 = vmul.f32 %v11208_v18, %v14080_v31  ;;  %v11210_v19 = vpop.eup %11209 }
0x1d0e   : > { %v14126_v45 = vadd.f32 %v6736_v47, %v6735_v56 }
0x1d10   : > { %11211 = vtanh.f32 %v14126_v45 }
0x1d1a   : > { %v11212_v22 = vpop.eup %11211 }
0x1d1b   : > { %v14129_v25 = vmul.f32 %v11212_v22, %v11210_v19 }
0x1d1d   : > { %14587 = vst [vmem:[#allocation23_spill] sm:$0xff] %v14129_v25  ;;  %6810 = vmatmul.mubr.f32.vlgmr.msra.gmra.mrb[56].mxu0 %v14129_v25  ;;  %6881 = vmatmul.mubr.f32.vlgmr.msra.gmra.mrb[72].mxu1 %v14129_v25 }
0x1d1e   : > { %10176 = vmatpush1.bf16.msra.mxu0 %v13225_v8  ;;  %10208 = vmatpush1.bf16.msra.mxu1 %v13314_v21 }
0x1d1f   : > { %10178 = vmatprep.subr.bf16.mxu0 %v13227_v12  ;;  %10210 = vmatprep.subr.bf16.mxu1 %v13324_v27 }
0x1d20   : > { %6984 = vmatprep.mubr.f32.mxu0 %v14560_v44  ;;  %7055 = vmatprep.mubr.f32.mxu1 %v14560_v44 }
0x1d22   : > { %10180 = vmatpush1.bf16.msra.mxu0 %v13240_v13  ;;  %10212 = vmatpush1.bf16.msra.mxu1 %v13332_v58 }
0x1d23   : > { %10182 = vmatprep.subr.bf16.mxu0 %v13345_v30  ;;  %10214 = vmatprep.subr.bf16.mxu1 %v13358_v61 }
0x1d26   : > { %10184 = vmatpush1.bf16.msra.mxu0 %v13356_v59  ;;  %10216 = vmatpush1.bf16.msra.mxu1 %v13367_v26 }
0x1d27   : > { %10186 = vmatprep.subr.bf16.mxu0 %v13380_v1  ;;  %10218 = vmatprep.subr.bf16.mxu1 %v13418_v15 }
0x1d2a   : > { %10188 = vmatpush1.bf16.msra.mxu0 %v13392_v24  ;;  %10220 = vmatpush1.bf16.msra.mxu1 %v13432_v4 }
0x1d2b   : > { %10190 = vmatprep.subr.bf16.mxu0 %v13404_v50  ;;  %10222 = vmatprep.subr.bf16.mxu1 %v13444_v16 }
0x1d2e   : > { %10192 = vmatpush1.bf16.msra.mxu0 %v13416_v6  ;;  %10224 = vmatpush1.bf16.msra.mxu1 %v13466_v39 }
0x1d2f   : > { %10194 = vmatprep.subr.bf16.mxu0 %v13430_v29  ;;  %10226 = vmatprep.subr.bf16.mxu1 %v13483_v52 }
0x1d32   : > { %10196 = vmatpush1.bf16.msra.mxu0 %v13463_v7  ;;  %10228 = vmatpush1.bf16.msra.mxu1 %v13501_v9 }
0x1d33   : > { %10198 = vmatprep.subr.bf16.mxu0 %v13478_v42  ;;  %10230 = vmatprep.subr.bf16.mxu1 %v13507_v28 }
0x1d36   : > { %10200 = vmatpush1.bf16.msra.mxu0 %v13504_v11  ;;  %10232 = vmatpush1.bf16.msra.mxu1 %v13525_v37 }
0x1d37   : > { %10202 = vmatprep.subr.bf16.mxu0 %v13516_v5  ;;  %10234 = vmatprep.subr.bf16.mxu1 %v13538_v60 }
0x1d3a   : > { %10204 = vmatpush1.bf16.msra.mxu0 %v13529_v41  ;;  %10236 = vmatpush1.bf16.msra.mxu1 %v13547_v34 }
0x1d3b   : > { %10238 = vmatprep.subr.bf16.mxu0 %v13210_v20  ;;  %10270 = vmatprep.subr.bf16.mxu1 %v13306_v40 }
0x1df0   : > { %v6811_v31 = vpop.f32.mrb[56].mxu0  ;;  %v6882_v32 = vpop.f32.mrb[72].mxu1 }
0x1df1   : > { %v10517_v38 = vadd.f32 %v6811_v31, %v13602_v51  ;;  %v6813_v35 = vpop.f32.mrb[57].mxu0  ;;  %v6884_v0 = vpop.f32.mrb[73].mxu1  ;;  %v10549_v47 = vadd.f32 %v6882_v32, %v13617_v10 }
0x1df2   : > { %v10518_v62 = vadd.f32 %v6813_v35, %v13606_v36  ;;  %v10550_v48 = vadd.f32 %v6884_v0, %v13612_v33 }
0x1df3   : > { %v8075_v23 = vmul.f32 -1.442695, %v10517_v38 }
0x1df4   : > { %v8076_v49 = vmul.f32 -1.442695, %v10518_v62  ;;  %v8077_v18 = vmul.f32 -1.442695, %v10550_v48 }
0x1df5   : > { %11213 = vpow2.f32 %v8075_v23 }
0x1df6   : > { %11215 = vpow2.f32 %v8076_v49 }
0x1df7   : > { %11217 = vpow2.f32 %v8077_v18 }
0x1df8   : > { %11219 = vtanh.f32 %v10549_v47 }
0x1dff   : > { %v11214_v53 = vpop.eup %11213 }
0x1e00   : > { %v11216_v56 = vpop.eup %11215  ;;  %v6894_v19 = vadd.f32 1.0, %v11214_v53 }
0x1e01   : > { %v6900_v22 = vadd.f32 1.0, %v11216_v56  ;;  %v11218_v31 = vpop.eup %11217 }
0x1e02   : > { %11221 = vrcp.f32 %v6894_v19  ;;  %v11220_v25 = vpop.eup %11219  ;;  %v6907_v23 = vadd.f32 1.0, %v11218_v31 }
0x1e03   : > { %11223 = vrcp.f32 %v6900_v22 }
0x1e04   : > { %11225 = vrcp.f32 %v6907_v23 }
0x1e0c   : > { %v11222_v35 = vpop.eup %11221 }
0x1e0d   : > { %v11224_v38 = vpop.eup %11223  ;;  %v6911_v62 = vmul.f32 %v11222_v35, %v11220_v25 }
0x1e0e   : > { %v6910_v49 = vmul.f32 %v11224_v38, %v14126_v45  ;;  %v11226_v32 = vpop.eup %11225 }
0x1e10   : > { %v14172_v0 = vadd.f32 %v6911_v62, %v6910_v49 }
0x1e12   : > { %11227 = vtanh.f32 %v14172_v0 }
0x1e1c   : > { %v11228_v48 = vpop.eup %11227 }
0x1e1d   : > { %v14175_v18 = vmul.f32 %v11228_v48, %v11226_v32 }
0x1e1f   : > { %6985 = vmatmul.mubr.f32.vlgmr.msra.gmra.mrb[58].mxu0 %v14175_v18  ;;  %7056 = vmatmul.mubr.f32.vlgmr.msra.gmra.mrb[74].mxu1 %v14175_v18 }
0x1e20   : > { %10240 = vmatpush1.bf16.msra.mxu0 %v13225_v8  ;;  %10272 = vmatpush1.bf16.msra.mxu1 %v13314_v21 }
0x1e21   : > { %10242 = vmatprep.subr.bf16.mxu0 %v13227_v12  ;;  %10274 = vmatprep.subr.bf16.mxu1 %v13324_v27 }
0x1e22   : > { %7159 = vmatprep.mubr.f32.mxu0 %v14560_v44  ;;  %7230 = vmatprep.mubr.f32.mxu1 %v14560_v44 }
0x1e24   : > { %10244 = vmatpush1.bf16.msra.mxu0 %v13240_v13  ;;  %10276 = vmatpush1.bf16.msra.mxu1 %v13332_v58 }
0x1e25   : > { %10246 = vmatprep.subr.bf16.mxu0 %v13345_v30  ;;  %10278 = vmatprep.subr.bf16.mxu1 %v13358_v61 }
0x1e28   : > { %10248 = vmatpush1.bf16.msra.mxu0 %v13356_v59  ;;  %10280 = vmatpush1.bf16.msra.mxu1 %v13367_v26 }
0x1e29   : > { %10250 = vmatprep.subr.bf16.mxu0 %v13380_v1  ;;  %10282 = vmatprep.subr.bf16.mxu1 %v13418_v15 }
0x1e2c   : > { %10252 = vmatpush1.bf16.msra.mxu0 %v13392_v24  ;;  %10284 = vmatpush1.bf16.msra.mxu1 %v13432_v4 }
0x1e2d   : > { %10254 = vmatprep.subr.bf16.mxu0 %v13404_v50  ;;  %10286 = vmatprep.subr.bf16.mxu1 %v13444_v16 }
0x1e30   : > { %10256 = vmatpush1.bf16.msra.mxu0 %v13416_v6  ;;  %10288 = vmatpush1.bf16.msra.mxu1 %v13466_v39 }
0x1e31   : > { %10258 = vmatprep.subr.bf16.mxu0 %v13430_v29  ;;  %10290 = vmatprep.subr.bf16.mxu1 %v13483_v52 }
0x1e34   : > { %10260 = vmatpush1.bf16.msra.mxu0 %v13463_v7  ;;  %10292 = vmatpush1.bf16.msra.mxu1 %v13501_v9 }
0x1e35   : > { %10262 = vmatprep.subr.bf16.mxu0 %v13478_v42  ;;  %10294 = vmatprep.subr.bf16.mxu1 %v13507_v28 }
0x1e38   : > { %10264 = vmatpush1.bf16.msra.mxu0 %v13504_v11  ;;  %10296 = vmatpush1.bf16.msra.mxu1 %v13525_v37 }
0x1e39   : > { %10266 = vmatprep.subr.bf16.mxu0 %v13516_v5  ;;  %10298 = vmatprep.subr.bf16.mxu1 %v13538_v60 }
0x1e3c   : > { %10268 = vmatpush1.bf16.msra.mxu0 %v13529_v41  ;;  %10300 = vmatpush1.bf16.msra.mxu1 %v13547_v34 }
0x1e3d   : > { %10302 = vmatprep.subr.bf16.mxu0 %v13210_v20  ;;  %10334 = vmatprep.subr.bf16.mxu1 %v13306_v40 }
0x1ef2   : > { %v6986_v45 = vpop.f32.mrb[58].mxu0  ;;  %v7057_v25 = vpop.f32.mrb[74].mxu1 }
0x1ef3   : > { %v10519_v47 = vadd.f32 %v6986_v45, %v13602_v51  ;;  %v6988_v53 = vpop.f32.mrb[59].mxu0  ;;  %v7059_v56 = vpop.f32.mrb[75].mxu1  ;;  %v10551_v62 = vadd.f32 %v7057_v25, %v13617_v10 }
0x1ef4   : > { %v10520_v19 = vadd.f32 %v6988_v53, %v13606_v36  ;;  %v10552_v35 = vadd.f32 %v7059_v56, %v13612_v33 }
0x1ef5   : > { %v8078_v22 = vmul.f32 -1.442695, %v10519_v47 }
0x1ef6   : > { %v8079_v31 = vmul.f32 -1.442695, %v10520_v19  ;;  %v8080_v38 = vmul.f32 -1.442695, %v10552_v35 }
0x1ef7   : > { %11229 = vpow2.f32 %v8078_v22 }
0x1ef8   : > { %11231 = vpow2.f32 %v8079_v31 }
0x1ef9   : > { %11233 = vpow2.f32 %v8080_v38  ;;  %v7447_v38 = vld [vmem:[%s14588_s13 + $0x20] sm:$0xff] }
0x1efa   : > { %11235 = vtanh.f32 %v10551_v62  ;;  %v7448_v62 = vld [vmem:[%s14588_s13 + $0x28] sm:$0xff] }
0x1f01   : > { %v11230_v20 = vpop.eup %11229 }
0x1f02   : > { %v11232_v23 = vpop.eup %11231  ;;  %v7069_v40 = vadd.f32 1.0, %v11230_v20  ;;  %v10373_v20 = vpack.c.bf16 %v7448_v62, %v7447_v38 }
0x1f03   : > { %v7075_v49 = vadd.f32 1.0, %v11232_v23  ;;  %v11234_v32 = vpop.eup %11233  ;;  %v7449_v23 = vld [vmem:[%s14588_s13 + $0x30] sm:$0xff] }
0x1f04   : > { %11237 = vrcp.f32 %v7069_v40  ;;  %v11236_v48 = vpop.eup %11235  ;;  %v7082_v19 = vadd.f32 1.0, %v11234_v32  ;;  %v7450_v40 = vld [vmem:[%s14588_s13 + $0x38] sm:$0xff]  ;;  %v7451_v32 = vld [vmem:[%s14588_s13 + $0x40] sm:$0xff] }
0x1f05   : > { %11239 = vrcp.f32 %v7075_v49  ;;  %v10377_v49 = vpack.c.bf16 %v7450_v40, %v7449_v23 }
0x1f06   : > { %11241 = vrcp.f32 %v7082_v19  ;;  %v7455_v19 = vld [vmem:[%s14588_s13 + $0x60] sm:$0xff] }
0x1f0e   : > { %v11238_v45 = vpop.eup %11237 }
0x1f0f   : > { %v11240_v47 = vpop.eup %11239  ;;  %v7086_v53 = vmul.f32 %v11238_v45, %v11236_v48  ;;  %v7453_v45 = vld [vmem:[%s14588_s13 + $0x50] sm:$0xff] }
0x1f10   : > { %v7085_v22 = vmul.f32 %v11240_v47, %v14172_v0  ;;  %v11242_v25 = vpop.eup %11241  ;;  %v7454_v47 = vld [vmem:[%s14588_s13 + $0x58] sm:$0xff] }
0x1f12   : > { %v14218_v56 = vadd.f32 %v7086_v53, %v7085_v22  ;;  %v10385_v53 = vpack.c.bf16 %v7454_v47, %v7453_v45  ;;  %v7456_v22 = vld [vmem:[%s14588_s13 + $0x68] sm:$0xff] }
0x1f14   : > { %11243 = vtanh.f32 %v14218_v56 }
0x1f1e   : > { %v11244_v31 = vpop.eup %11243 }
0x1f1f   : > { %v14221_v35 = vmul.f32 %v11244_v31, %v11242_v25  ;;  %v7457_v25 = vld [vmem:[%s14588_s13 + $0x70] sm:$0xff]  ;;  %v7458_v31 = vld [vmem:[%s14588_s13 + $0x78] sm:$0xff] }
0x1f21   : > { %7160 = vmatmul.mubr.f32.vlgmr.msra.gmra.mrb[60].mxu0 %v14221_v35  ;;  %7231 = vmatmul.mubr.f32.vlgmr.msra.gmra.mrb[76].mxu1 %v14221_v35 }
0x1f22   : > { %10304 = vmatpush1.bf16.msra.mxu0 %v13225_v8  ;;  %10336 = vmatpush1.bf16.msra.mxu1 %v13314_v21  ;;  %v7444_v8 = vld [vmem:[%s14588_s13 + $0x8] sm:$0xff] }
0x1f23   : > { %10306 = vmatprep.subr.bf16.mxu0 %v13227_v12  ;;  %10338 = vmatprep.subr.bf16.mxu1 %v13324_v27 }
0x1f24   : > { %7334 = vmatprep.mubr.f32.mxu0 %v14560_v44  ;;  %7405 = vmatprep.mubr.f32.mxu1 %v14560_v44  ;;  %v7443_v44 = vld [vmem:[%s14588_s13] sm:$0xff] }
0x1f25   : > { %v10365_v12 = vpack.c.bf16 %v7444_v8, %v7443_v44  ;;  %v10393_v44 = vpack.c.bf16 %v7458_v31, %v7457_v25  ;;  %v14589_v8 = vld [vmem:[#allocation22_spill] sm:$0xff] }
0x1f26   : > { %10308 = vmatpush1.bf16.msra.mxu0 %v13240_v13  ;;  %10340 = vmatpush1.bf16.msra.mxu1 %v13332_v58  ;;  %v7647_v25 = vld [vmem:[#allocation2] sm:$0xff] (!%p8088_p6) }
0x1f27   : > { %10310 = vmatprep.subr.bf16.mxu0 %v13345_v30  ;;  %10342 = vmatprep.subr.bf16.mxu1 %v13358_v61  ;;  %7649 = vst [vmem:[%s11647_s19] sm:$0xff] (!%p8088_p6), %v7647_v25 }
0x1f2a   : > { %10312 = vmatpush1.bf16.msra.mxu0 %v13356_v59  ;;  %10344 = vmatpush1.bf16.msra.mxu1 %v13367_v26 }
0x1f2b   : > { %10314 = vmatprep.subr.bf16.mxu0 %v13380_v1  ;;  %10346 = vmatprep.subr.bf16.mxu1 %v13418_v15 }
0x1f2e   : > { %10316 = vmatpush1.bf16.msra.mxu0 %v13392_v24  ;;  %10348 = vmatpush1.bf16.msra.mxu1 %v13432_v4 }
0x1f2f   : > { %10318 = vmatprep.subr.bf16.mxu0 %v13404_v50  ;;  %10350 = vmatprep.subr.bf16.mxu1 %v13444_v16 }
0x1f32   : > { %10320 = vmatpush1.bf16.msra.mxu0 %v13416_v6  ;;  %10352 = vmatpush1.bf16.msra.mxu1 %v13466_v39 }
0x1f33   : > { %10322 = vmatprep.subr.bf16.mxu0 %v13430_v29  ;;  %10354 = vmatprep.subr.bf16.mxu1 %v13483_v52 }
0x1f36   : > { %10324 = vmatpush1.bf16.msra.mxu0 %v13463_v7  ;;  %10356 = vmatpush1.bf16.msra.mxu1 %v13501_v9 }
0x1f37   : > { %10326 = vmatprep.subr.bf16.mxu0 %v13478_v42  ;;  %10358 = vmatprep.subr.bf16.mxu1 %v13507_v28 }
0x1f3a   : > { %10328 = vmatpush1.bf16.msra.mxu0 %v13504_v11  ;;  %10360 = vmatpush1.bf16.msra.mxu1 %v13525_v37  ;;  %v7446_v37 = vld [vmem:[%s14588_s13 + $0x18] sm:$0xff] }
0x1f3b   : > { %10330 = vmatprep.subr.bf16.mxu0 %v13516_v5  ;;  %10362 = vmatprep.subr.bf16.mxu1 %v13538_v60  ;;  %v7445_v5 = vld [vmem:[%s14588_s13 + $0x10] sm:$0xff] }
0x1f3c   : > { %v10369_v0 = vpack.c.bf16 %v7446_v37, %v7445_v5 }
0x1f3e   : > { %10332 = vmatpush1.bf16.msra.mxu0 %v13529_v41  ;;  %10364 = vmatpush1.bf16.msra.mxu1 %v13547_v34 }
0x1f3f   : > { %10366 = vmatprep.subr.bf16.mxu0 %v10365_v12 }
0x1ff4   : > { %v7161_v13 = vpop.f32.mrb[60].mxu0  ;;  %v7232_v21 = vpop.f32.mrb[76].mxu1 }
0x1ff5   : > { %v10521_v27 = vadd.f32 %v7161_v13, %v13602_v51  ;;  %v7163_v58 = vpop.f32.mrb[61].mxu0  ;;  %v7234_v30 = vpop.f32.mrb[77].mxu1  ;;  %v10553_v50 = vadd.f32 %v7232_v21, %v13617_v10 }
0x1ff6   : > { %v10522_v59 = vadd.f32 %v7163_v58, %v13606_v36  ;;  %v10554_v1 = vadd.f32 %v7234_v30, %v13612_v33 }
0x1ff7   : > { %v8081_v61 = vmul.f32 -1.442695, %v10521_v27 }
0x1ff8   : > { %v8082_v26 = vmul.f32 -1.442695, %v10522_v59  ;;  %v8083_v24 = vmul.f32 -1.442695, %v10554_v1 }
0x1ff9   : > { %11245 = vpow2.f32 %v8081_v61 }
0x1ffa   : > { %11247 = vpow2.f32 %v8082_v26 }
0x1ffb   : > { %11249 = vpow2.f32 %v8083_v24 }
0x1ffc   : > { %11251 = vtanh.f32 %v10553_v50 }
0x2003   : > { %v11246_v6 = vpop.eup %11245 }
0x2004   : > { %v11248_v15 = vpop.eup %11247  ;;  %v7244_v29 = vadd.f32 1.0, %v11246_v6 }
0x2005   : > { %v7250_v4 = vadd.f32 1.0, %v11248_v15  ;;  %v11250_v16 = vpop.eup %11249 }
0x2006   : > { %11253 = vrcp.f32 %v7244_v29  ;;  %v11252_v7 = vpop.eup %11251  ;;  %v7257_v9 = vadd.f32 1.0, %v11250_v16 }
0x2007   : > { %11255 = vrcp.f32 %v7250_v4 }
0x2008   : > { %11257 = vrcp.f32 %v7257_v9 }
0x2010   : > { %v11254_v39 = vpop.eup %11253 }
0x2011   : > { %v11256_v42 = vpop.eup %11255  ;;  %v7261_v52 = vmul.f32 %v11254_v39, %v11252_v7 }
0x2012   : > { %v7260_v11 = vmul.f32 %v11256_v42, %v14218_v56  ;;  %v11258_v41 = vpop.eup %11257  ;;  %v10389_v56 = vpack.c.bf16 %v7456_v22, %v7455_v19 }
0x2014   : > { %v14268_v28 = vadd.f32 %v7261_v52, %v7260_v11 }
0x2016   : > { %11259 = vtanh.f32 %v14268_v28 }
0x2020   : > { %v11260_v60 = vpop.eup %11259 }
0x2021   : > { %v7264_v34 = vmul.f32 %v11260_v60, %v11258_v41 }
0x2023   : > { %7335 = vmatmul.mubr.f32.vlgmr.msra.gmra.mrb[62].mxu0 %v7264_v34  ;;  %7406 = vmatmul.mubr.f32.vlgmr.msra.gmra.mrb[78].mxu1 %v7264_v34 }
0x2024   : > { %10368 = vmatpush3.bf16.msra.mxu0 %v10365_v12  ;;  %8165 = vmatprep.mubr.f32.mxu0 %v13623_v63  ;;  %v7452_v63 = vld [vmem:[%s14588_s13 + $0x48] sm:$0xff] }
0x2025   : > { %10370 = vmatprep.subr.bf16.mxu0 %v10369_v0  ;;  %v10381_v48 = vpack.c.bf16 %v7452_v63, %v7451_v32  ;;  %v14590_v12 = vld [vmem:[#allocation23_spill] sm:$0xff] }
0x2028   : > { %10372 = vmatpush3.bf16.msra.mxu0 %v10369_v0 }
0x2029   : > { %10374 = vmatprep.subr.bf16.mxu0 %v10373_v20 }
0x202c   : > { %10376 = vmatpush3.bf16.msra.mxu0 %v10373_v20 }
0x202d   : > { %10378 = vmatprep.subr.bf16.mxu0 %v10377_v49 }
0x2030   : > { %10380 = vmatpush3.bf16.msra.mxu0 %v10377_v49 }
0x2031   : > { %10382 = vmatprep.subr.bf16.mxu0 %v10381_v48 }
0x2034   : > { %10384 = vmatpush3.bf16.msra.mxu0 %v10381_v48 }
0x2035   : > { %10386 = vmatprep.subr.bf16.mxu0 %v10385_v53 }
0x2038   : > { %10388 = vmatpush3.bf16.msra.mxu0 %v10385_v53 }
0x2039   : > { %10390 = vmatprep.subr.bf16.mxu0 %v10389_v56 }
0x203c   : > { %10392 = vmatpush3.bf16.msra.mxu0 %v10389_v56 }
0x203d   : > { %10394 = vmatprep.subr.bf16.mxu0 %v10393_v44 }
0x2040   : > { %10396 = vmatpush3.bf16.msra.mxu0 %v10393_v44  ;;  %v7651_v44 = vld [vmem:[#allocation3] sm:$0xff] (!%p8088_p6) }
0x2041   : > { %7653 = vst [vmem:[%s11649_s7] sm:$0xff] (!%p8088_p6), %v7651_v44 }
0x2043   : > { %8166 = vmatmul.mubr.f32.vlgmr.msra.gmra.mrb[64].mxu0 %v13669_v43 }
0x2044   : > { %8168 = vmatprep.mubr.f32.mxu0 %v13715_v54 }
0x2047   : > { %8169 = vmatmul.mubr.f32.gmra.mrb[66].mxu0 %v13761_v55 }
0x2048   : > { %8171 = vmatprep.mubr.f32.mxu0 %v13807_v2 }
0x204b   : > { %8172 = vmatmul.mubr.f32.gmra.mrb[68].mxu0 %v13853_v46 }
0x204c   : > { %8174 = vmatprep.mubr.f32.mxu0 %v13899_v57 }
0x204f   : > { %8175 = vmatmul.mubr.f32.gmra.mrb[70].mxu0 %v13945_v17 }
0x2050   : > { %8177 = vmatprep.mubr.f32.mxu0 %v13991_v14 }
0x2053   : > { %8178 = vmatmul.mubr.f32.gmra.mrb[72].mxu0 %v14037_v3 }
0x2054   : > { %8180 = vmatprep.mubr.f32.mxu0 %v14589_v8 }
0x2057   : > { %8181 = vmatmul.mubr.f32.gmra.mrb[74].mxu0 %v14590_v12 }
0x2058   : > { %8183 = vmatprep.mubr.f32.mxu0 %v14175_v18 }
0x205b   : > { %8184 = vmatmul.mubr.f32.gmra.mrb[76].mxu0 %v14221_v35 }
0x205c   : > { %8186 = vmatprep.mubr.f32.mxu0 %v7264_v34 }
0x20f6   : > { %v7336_v43 = vpop.f32.mrb[62].mxu0  ;;  %v7407_v54 = vpop.f32.mrb[78].mxu1 }
0x20f7   : > { %v10523_v55 = vadd.f32 %v7336_v43, %v13602_v51  ;;  %v7338_v2 = vpop.f32.mrb[63].mxu0  ;;  %v7409_v46 = vpop.f32.mrb[79].mxu1  ;;  %v10555_v18 = vadd.f32 %v7407_v54, %v13617_v10  ;;  %v8087_v10 = vld [vmem:[%s14591_s10] ss:$0 sm:$0xff] }
0x20f8   : > { %v10524_v57 = vadd.f32 %v7338_v2, %v13606_v36  ;;  %v10556_v3 = vadd.f32 %v7409_v46, %v13612_v33 }
0x20f9   : > { %v8084_v17 = vmul.f32 -1.442695, %v10523_v55 }
0x20fa   : > { %v8085_v14 = vmul.f32 -1.442695, %v10524_v57  ;;  %v8086_v13 = vmul.f32 -1.442695, %v10556_v3 }
0x20fb   : > { %11261 = vpow2.f32 %v8084_v17 }
0x20fc   : > { %11263 = vpow2.f32 %v8085_v14 }
0x20fd   : > { %11265 = vpow2.f32 %v8086_v13 }
0x20fe   : > { %11267 = vtanh.f32 %v10555_v18 }
0x2105   : > { %v11262_v21 = vpop.eup %11261 }
0x2106   : > { %v11264_v35 = vpop.eup %11263  ;;  %v7419_v27 = vadd.f32 1.0, %v11262_v21 }
0x2107   : > { %v7425_v58 = vadd.f32 1.0, %v11264_v35  ;;  %v11266_v51 = vpop.eup %11265 }
0x2108   : > { %11269 = vrcp.f32 %v7419_v27  ;;  %v11268_v36 = vpop.eup %11267  ;;  %v7432_v26 = vadd.f32 1.0, %v11266_v51 }
0x2109   : > { %11271 = vrcp.f32 %v7425_v58 }
0x210a   : > { %11273 = vrcp.f32 %v7432_v26 }
0x2112   : > { %v11270_v30 = vpop.eup %11269 }
0x2113   : > { %v11272_v59 = vpop.eup %11271  ;;  %v7436_v61 = vmul.f32 %v11270_v30, %v11268_v36 }
0x2114   : > { %v7435_v33 = vmul.f32 %v11272_v59, %v14268_v28  ;;  %v11274_v11 = vpop.eup %11273 }
0x2116   : > { %v8167_v1 = vpop.f32.mrb[64].mxu0  ;;  %v7437_v24 = vadd.f32 %v7436_v61, %v7435_v33 }
0x2117   : > { %v7554_v50 = vadd.f32 %v8167_v1, %v8087_v10  ;;  %v7548_v6 = vpop.f32.mrb[65].mxu0 }
0x2118   : > { %v7549_v15 = vadd.f32 %v8087_v10, %v7548_v6  ;;  %11275 = vtanh.f32 %v7437_v24  ;;  %7442 = vst [vmem:[#allocation3 + $0x8] sm:$0xff] %v7437_v24 }
0x2119   : > { %7628 = vst [vmem:[%s11645_s22 + $0x8] sm:$0xff] %v7554_v50 }
0x211a   : > { %7627 = vst [vmem:[%s11645_s22] sm:$0xff] %v7549_v15  ;;  %v8170_v29 = vpop.f32.mrb[66].mxu0 }
0x211b   : > { %v7564_v4 = vadd.f32 %v8170_v29, %v8087_v10  ;;  %v7558_v16 = vpop.f32.mrb[67].mxu0 }
0x211c   : > { %v7559_v7 = vadd.f32 %v8087_v10, %v7558_v16 }
0x211d   : > { %7630 = vst [vmem:[%s11645_s22 + $0x18] sm:$0xff] %v7564_v4 }
0x211e   : > { %7629 = vst [vmem:[%s11645_s22 + $0x10] sm:$0xff] %v7559_v7  ;;  %v8173_v39 = vpop.f32.mrb[68].mxu0 }
0x211f   : > { %v7574_v42 = vadd.f32 %v8173_v39, %v8087_v10  ;;  %v7568_v52 = vpop.f32.mrb[69].mxu0  ;;  %v7652_v8 = vld [vmem:[#allocation3 + $0x8] sm:$0xff] (!%p8088_p6) }
0x2120   : > { %v7569_v9 = vadd.f32 %v8087_v10, %v7568_v52  ;;  %7654 = vst [vmem:[%s11649_s7 + $0x8] sm:$0xff] (!%p8088_p6), %v7652_v8 }
0x2121   : > { %7632 = vst [vmem:[%s11645_s22 + $0x28] sm:$0xff] %v7574_v42 }
0x2122   : > { %v11276_v28 = vpop.eup %11275  ;;  %7631 = vst [vmem:[%s11645_s22 + $0x20] sm:$0xff] %v7569_v9  ;;  %v8176_v5 = vpop.f32.mrb[70].mxu0 }
0x2123   : > { %v7584_v37 = vadd.f32 %v8176_v5, %v8087_v10  ;;  %v7578_v41 = vpop.f32.mrb[71].mxu0  ;;  %v7439_v60 = vmul.f32 %v11276_v28, %v11274_v11 }
0x2124   : > { %v7579_v34 = vadd.f32 %v8087_v10, %v7578_v41 }
0x2125   : > { %7634 = vst [vmem:[%s11645_s22 + $0x38] sm:$0xff] %v7584_v37  ;;  %7441 = vst [vmem:[#allocation2 + $0x8] sm:$0xff] %v7439_v60  ;;  %8187 = vmatmul.mubr.f32.gmra.mrb[78].mxu0 %v7439_v60 }
0x2126   : > { %7633 = vst [vmem:[%s11645_s22 + $0x30] sm:$0xff] %v7579_v34  ;;  %v8179_v0 = vpop.f32.mrb[72].mxu0 }
0x2127   : > { %v7594_v38 = vadd.f32 %v8179_v0, %v8087_v10  ;;  %v7588_v62 = vpop.f32.mrb[73].mxu0 }
0x2128   : > { %v7589_v20 = vadd.f32 %v8087_v10, %v7588_v62 }
0x2129   : > { %7636 = vst [vmem:[%s11645_s22 + $0x48] sm:$0xff] %v7594_v38 }
0x212a   : > { %7635 = vst [vmem:[%s11645_s22 + $0x40] sm:$0xff] %v7589_v20  ;;  %v8182_v23 = vpop.f32.mrb[74].mxu0 }
0x212b   : > { %v7604_v40 = vadd.f32 %v8182_v23, %v8087_v10  ;;  %v7598_v49 = vpop.f32.mrb[75].mxu0 }
0x212c   : > { %v7599_v32 = vadd.f32 %v8087_v10, %v7598_v49  ;;  %v7648_v31 = vld [vmem:[#allocation2 + $0x8] sm:$0xff] (!%p8088_p6) }
0x212d   : > { %7638 = vst [vmem:[%s11645_s22 + $0x58] sm:$0xff] %v7604_v40  ;;  %7650 = vst [vmem:[%s11647_s19 + $0x8] sm:$0xff] (!%p8088_p6), %v7648_v31 }
0x212e   : > { %7637 = vst [vmem:[%s11645_s22 + $0x50] sm:$0xff] %v7599_v32  ;;  %v8185_v63 = vpop.f32.mrb[76].mxu0 }
0x212f   : > { %v7614_v48 = vadd.f32 %v8185_v63, %v8087_v10  ;;  %v7608_v45 = vpop.f32.mrb[77].mxu0 }
0x2130   : > { %v7609_v47 = vadd.f32 %v8087_v10, %v7608_v45 }
0x2131   : > { %7640 = vst [vmem:[%s11645_s22 + $0x68] sm:$0xff] %v7614_v48 }
0x2132   : > { %7639 = vst [vmem:[%s11645_s22 + $0x60] sm:$0xff] %v7609_v47 }
0x21f6   : > { %7646 = sbr.rel (%p8088_p6) target bundleno = 8701 (0x21fd), region = 186 }
0x21f8   : > { %v8188_v53 = vpop.f32.mrb[78].mxu0 }
0x21f9   : > { %v7624_v19 = vadd.f32 %v8188_v53, %v8087_v10  ;;  %v7618_v22 = vpop.f32.mrb[79].mxu0 }
0x21fa   : > { %v7619_v56 = vadd.f32 %v8087_v10, %v7618_v22 }
0x21fb   : > { %7642 = vst [vmem:[%s11645_s22 + $0x78] sm:$0xff] %v7624_v19 }
0x21fc   : > { %7641 = vst [vmem:[%s11645_s22 + $0x70] sm:$0xff] %v7619_v56 }
0x21fd PF: > { %s7660_s0 = scalar_lea.sflag [#allocation11], %s11640_s20  ;;  %s7665_s23 = scalar_lea.sflag [#allocation13], %s11640_s20  ;;  %v7734_v12 = vld [vmem:[%s11645_s22] sm:$0xff] (%p11573_p8)  ;;  %v7736_v43 = vld [vmem:[%s11645_s22 + $0x8] sm:$0xff] (%p11573_p8)  ;;  %v7738_v54 = vld [vmem:[%s11645_s22 + $0x10] sm:$0xff] (%p11573_p8) }
0x21fe   : > { %7671 = sbr.rel (!%p11573_p8) target bundleno = 8719 (0x220f), region = 190  ;;  %s14592_s28 = sld [smem:[#allocation17_spill]] (%p11573_p8)  ;;  %v7740_v55 = vld [vmem:[%s11645_s22 + $0x18] sm:$0xff] (%p11573_p8)  ;;  %v7742_v2 = vld [vmem:[%s11645_s22 + $0x20] sm:$0xff] (%p11573_p8)  ;;  %v7744_v46 = vld [vmem:[%s11645_s22 + $0x28] sm:$0xff] (%p11573_p8) }
0x21ff   : > { %s8100_s24 = sshll.u32 (%p11573_p8), %s11403_s30, 5  ;;  %v7746_v57 = vld [vmem:[%s11645_s22 + $0x30] sm:$0xff] (%p11573_p8)  ;;  %v7748_v17 = vld [vmem:[%s11645_s22 + $0x38] sm:$0xff] (%p11573_p8)  ;;  %v7750_v14 = vld [vmem:[%s11645_s22 + $0x40] sm:$0xff] (%p11573_p8)  ;;  %s14593_s12 = sld [smem:[#allocation42_spill]] (%p11573_p8) }
0x2200   : > { %v7752_v3 = vld [vmem:[%s11645_s22 + $0x48] sm:$0xff] (%p11573_p8)  ;;  %v7754_v13 = vld [vmem:[%s11645_s22 + $0x50] sm:$0xff] (%p11573_p8)  ;;  %v7756_v18 = vld [vmem:[%s11645_s22 + $0x58] sm:$0xff] (%p11573_p8) }
0x2201   : > { %v7758_v21 = vld [vmem:[%s11645_s22 + $0x60] sm:$0xff] (%p11573_p8)  ;;  %v7760_v35 = vld [vmem:[%s11645_s22 + $0x68] sm:$0xff] (%p11573_p8) }
0x2202   : > { %v7764_v58 = vld [vmem:[%s11645_s22 + $0x78] sm:$0xff] (%p11573_p8) }
0x2203   : > { %v7762_v27 = vld [vmem:[%s11645_s22 + $0x70] sm:$0xff] (%p11573_p8) }
0x2204   : > { %s7674_s11 = sadd.s32 (%p11573_p8), %s14592_s28, %s8100_s24 }
0x2205   : > { %s8094_s21 = sshll.u32 %s7674_s11, 3 }
0x2206   : > { %s7676_s9 = scalar_lea.vmem %s14593_s12, %s8094_s21 }
0x2207   : > { %7735 = vst [vmem:[%s7676_s9] sm:$0xff] %v7734_v12  ;;  %7737 = vst [vmem:[%s7676_s9 + $0x10] sm:$0xff] %v7736_v43 }
0x2208   : > { %7739 = vst [vmem:[%s7676_s9 + $0x20] sm:$0xff] %v7738_v54  ;;  %7741 = vst [vmem:[%s7676_s9 + $0x30] sm:$0xff] %v7740_v55 }
0x2209   : > { %7743 = vst [vmem:[%s7676_s9 + $0x40] sm:$0xff] %v7742_v2  ;;  %7745 = vst [vmem:[%s7676_s9 + $0x50] sm:$0xff] %v7744_v46 }
0x220a   : > { %7747 = vst [vmem:[%s7676_s9 + $0x60] sm:$0xff] %v7746_v57  ;;  %7749 = vst [vmem:[%s7676_s9 + $0x70] sm:$0xff] %v7748_v17 }
0x220b   : > { %7751 = vst [vmem:[%s7676_s9 + $0x80] sm:$0xff] %v7750_v14  ;;  %7753 = vst [vmem:[%s7676_s9 + $0x90] sm:$0xff] %v7752_v3 }
0x220c   : > { %7755 = vst [vmem:[%s7676_s9 + $0xa0] sm:$0xff] %v7754_v13  ;;  %7757 = vst [vmem:[%s7676_s9 + $0xb0] sm:$0xff] %v7756_v18 }
0x220d   : > { %7759 = vst [vmem:[%s7676_s9 + $0xc0] sm:$0xff] %v7758_v21  ;;  %7761 = vst [vmem:[%s7676_s9 + $0xd0] sm:$0xff] %v7760_v35 }
0x220e   : > { %7763 = vst [vmem:[%s7676_s9 + $0xe0] sm:$0xff] %v7762_v27  ;;  %7765 = vst [vmem:[%s7676_s9 + $0xf0] sm:$0xff] %v7764_v58 }
0x220f PF: > { %s14594_s30 = sld [smem:[#allocation17_spill]]  ;;  %s7777_s10 = sshll.u32 %s11647_s19, 4  ;;  %s14388_s10 = int_to_ptr.vmem [resolvable:$true] %s7777_s10 }
0x2210   : > { %s14595_s11 = sld [smem:[#allocation43_spill]]  ;;  %s14596_s12 = sld [smem:[#allocation44_spill]] }
0x2211   : > { %s11277_s9 = scalar_lea.vmem %s14388_s10, 256  ;;  %s11422_s19 = smov [#allocation10]  }
0x2212   : > { %p11278_p7 = scmp.ne.s32.totalorder %s14388_s10, %s11277_s9 }
0x2214   : > { %p11279_p8 = pnand %p11278_p7, %p11579_p9 }
0x2215   : > { %s8095_s15 = sshll.u32 %s14594_s30, 7  ;;  %s11281_s30 = sshll.u32 %s11422_s19, 4  ;;  %s11282_s30 = int_to_ptr.vmem [resolvable:$false] %s11281_s30 }
0x2216   : > { %s14386_s21 = scalar_lea.hbm %s14595_s11, %s8095_s15  ;;  %s14393_s22 = scalar_lea.hbm %s14596_s12, %s8095_s15 }
0x2217   : > { %p11280_p10 = pneg %p11279_p8  ;;  %s11283_s28 = scalar_lea.vmem %s11282_s30, 512 }
0x2218   : > { %p11284_p11 = scmp.lt.s32.totalorder %s14388_s10, %s11282_s30  ;;  %p11285_p12 = scmp.lt.s32.totalorder %s11283_s28, %s11277_s9 }
0x221a   : > { %p11286_p13 = por %p11285_p12, %p11284_p11 }
0x221c   : > { %p11287_p1 = pnand %p11286_p13, %p11280_p10 }
0x221e   : > { %11290 = shalt.err (!%p11287_p1)
}
0x221f   : > { %s11291_s15 = scalar_lea.hbm %s14386_s21, 256  ;;  %s11295_s29 = scalar_lea.hbm %s14595_s11, 512 }
0x2220   : > { %p11292_p2 = scmp.ne.s32.totalorder %s14386_s21, %s11291_s15  ;;  %p11296_p5 = scmp.lt.u32.totalorder %s14386_s21, %s14595_s11 }
0x2221   : > { %p11297_p6 = scmp.lt.u32.totalorder %s11295_s29, %s11291_s15  ;;  %p11299_p8 = scmp.lt.u32.totalorder %s11291_s15, %s14386_s21 }
0x2222   : > { %p11293_p3 = pnand %p11292_p2, %p11579_p9 }
0x2223   : > { %p11298_p7 = por %p11297_p6, %p11296_p5 }
0x2224   : > { %p11294_p4 = pneg %p11293_p3 }
0x2225   : > { %p11300_p10 = por %p11299_p8, %p11298_p7 }
0x2227   : > { %p11301_p11 = pnand %p11300_p10, %p11294_p4 }
0x2229   : > { %11304 = shalt.err (!%p11301_p11)
}
0x222a   : > { %s11423_s9 = smov 128   ;;  %s11424_s28 = smov 256  }
0x222b   : > { %s11425_s24 = smov 8   ;;  %s7792_s8 = sshll.u32 %s11649_s7, 4  ;;  %s14422_s8 = int_to_ptr.vmem [resolvable:$true] %s7792_s8 }
0x222c   : > { %10669 = dma.vmem_to_hbm [thread:$0]  (%p11579_p9), %s14388_s10, 256, %s14386_s21, %s7660_s0, %s11423_s9, %s11424_s28, %s11425_s24  }
0x222d   : > { %s11305_s15 = scalar_lea.vmem %s14422_s8, 256  ;;  %s11426_s29 = smov [#allocation12]  }
0x222e   : > { %p11306_p12 = scmp.ne.s32.totalorder %s14422_s8, %s11305_s15  ;;  %s11309_s19 = sshll.u32 %s11426_s29, 4  ;;  %s11310_s19 = int_to_ptr.vmem [resolvable:$false] %s11309_s19 }
0x222f   : > { %s11311_s30 = scalar_lea.vmem %s11310_s19, 512  ;;  %p11312_p2 = scmp.lt.s32.totalorder %s14422_s8, %s11310_s19 }
0x2230   : > { %p11307_p13 = pnand %p11306_p12, %p11579_p9  ;;  %p11313_p3 = scmp.lt.s32.totalorder %s11311_s30, %s11305_s15 }
0x2232   : > { %p11308_p1 = pneg %p11307_p13  ;;  %p11314_p4 = por %p11313_p3, %p11312_p2 }
0x2234   : > { %p11315_p5 = pnand %p11314_p4, %p11308_p1 }
0x2236   : > { %11318 = shalt.err (!%p11315_p5)
}
0x2237   : > { %s11319_s7 = scalar_lea.hbm %s14393_s22, 256  ;;  %s11323_s21 = scalar_lea.hbm %s14596_s12, 512 }
0x2238   : > { %p11320_p6 = scmp.ne.s32.totalorder %s14393_s22, %s11319_s7  ;;  %p11324_p10 = scmp.lt.u32.totalorder %s14393_s22, %s14596_s12 }
0x2239   : > { %p11325_p11 = scmp.lt.u32.totalorder %s11323_s21, %s11319_s7  ;;  %p11327_p13 = scmp.lt.u32.totalorder %s11319_s7, %s14393_s22 }
0x223a   : > { %p11321_p7 = pnand %p11320_p6, %p11579_p9 }
0x223b   : > { %p11326_p12 = por %p11325_p11, %p11324_p10 }
0x223c   : > { %p11322_p8 = pneg %p11321_p7 }
0x223d   : > { %p11328_p1 = por %p11327_p13, %p11326_p12 }
0x223f   : > { %p11329_p2 = pnand %p11328_p1, %p11322_p8 }
0x2241   : > { %11332 = shalt.err (!%p11329_p2)
}
0x2242   : > { %10670 = dma.vmem_to_hbm [thread:$0]  (%p11579_p9), %s14422_s8, 256, %s14393_s22, %s7665_s23, %s11423_s9, %s11424_s28, %s11425_s24  }
0x2243 PF: > { %p10680_p3 = scmp.ge.s32.totalorder %s11419_s17, 2  ;;  %s7814_s15 = sand.u32 1, %s11383_s25  }
0x2244   : > { %s7815_s30 = scalar_lea.sflag [#allocation11], %s7814_s15 }
0x2245   : > { %p10674_p4 = pnand %p10680_p3, %p11591_p0 }
0x2247   : > { %11374 = dma.done.wait (!%p10674_p4), %s7815_s30, 256  }
0x2248   : > { %11376 = vsyncadd (!%p10674_p4), %s7815_s30, 4294967040  ;;  %s7824_s14 = scalar_lea.sflag [#allocation13], %s7814_s15 }
0x2249   : > { %11378 = dma.done.wait (!%p10674_p4), %s7824_s14, 256  }
0x224a   : > { %11380 = vsyncadd (!%p10674_p4), %s7824_s14, 4294967040  ;;  %s30_s17 = sadd.s32 1, %s11419_s17   ;;  %s14597_s28 = sld [smem:[#allocation16_spill]] }
0x224b   : > { %p27_p5 = scmp.ge.s32.totalorder %s30_s17, 6   ;;  %s14598_s29 = sld [smem:[#allocation21_spill]] }
0x224c   : > { %s14599_s30 = sld [smem:[#allocation18_spill]]  ;;  %s14600_s15 = sld [smem:[#allocation19_spill]] }
0x224d   : > { %s14601_s20 = sld [smem:[#allocation20_spill]]  ;;  %s14602_s25 = smov %s11387_s26 }
0x224e   : > { %s14603_s26 = smov %s11391_s27  ;;  %s14604_s27 = smov %s11586_s18 }
0x224f   : > { %s14605_s14 = smov %s11415_s16  ;;  %29 = sbr.rel (!%p27_p5) target bundleno = 18 (0x12), region = 341 }
0x2253   : > { %s14606_s16 = smov %s14601_s20 }
0x2256   :  { %7829 = vsyncpa [#allocation11], 1 }
0x2257   :  { %7831 = vsyncpa [#allocation11 + $0x1], 1 }
0x2258   :  { %7832 = vsyncpa [#allocation13], 1 }
0x2259   :  { %7834 = vsyncpa [#allocation13 + $0x1], 1 }

</bundles_post_ra>
